<compile_context>
chip_gen: v5e
topology: v5e:2x2
jax: 0.10.0
libtpu: 0.0.40
codegen_flags: <defaults>
</compile_context>

<pallas_src>
import functools

import jax
import jax.numpy as jnp
from jax.experimental import pallas as pl
from jax.experimental.pallas import tpu as pltpu

_VMEM_LIMIT = 32 * 1024 * 1024   # safe on v5e / v6e / v7x; per-step usage is tiny


def _ceil_to(x, m):
    return (x + m - 1) // m * m


# -------------------- fused 3x3 conv (+opt BN+ReLU on input) + BN stats --------------------

def _conv3x3_bn_stats_kernel(x_ref, scale_ref, shift_ref, w_ref, mask_ref,
                             o_ref, sum_ref, sq_ref, *, H, Wp, apply_input_act):
    """One image per grid step.

    x_ref    : (1, R_in, C) bf16  reflect-padded image, (h,w) flattened to rows
    scale_ref: (1, C)       f32   BN scale applied to the *input* (conv2 path)
    shift_ref: (1, C)       f32   BN shift applied to the *input* (conv2 path)
    w_ref    : (9, C, Co)   bf16  per-tap weights, tap index = kh*3 + kw
    mask_ref : (R_out, 1)   f32   1.0 on valid output rows, 0.0 on the 2
                                  wrap-around ("garbage") columns per row
    o_ref    : (1, R_out, Co)     pre-BN conv output in padded-width layout
    sum_ref  : (1, 1, Co)   f32   per-image masked channel sum
    sq_ref   : (1, 1, Co)   f32   per-image masked channel sum of squares
    """
    R_out = H * Wp
    Co = w_ref.shape[2]

    x = x_ref[0].astype(jnp.float32)                       # (R_in, C)
    if apply_input_act:
        # BN1 + ReLU fused into conv2's input path (pointwise, commutes with
        # the reflect padding that was applied to the raw pre-BN values).
        x = jnp.maximum(x * scale_ref[...] + shift_ref[...], 0.0)

    acc = jnp.zeros((R_out, Co), jnp.float32)
    # 3x3 taps: output flat row p = h*Wp + w reads padded flat row p + kh*Wp + kw,
    # which is a *contiguous* row window -> plain slices, no im2col, MXU dots.
    for kh in range(3):
        for kw in range(3):
            t = kh * 3 + kw
            start = kh * Wp + kw
            lhs = x[start:start + R_out, :].astype(jnp.bfloat16)
            acc = acc + jnp.dot(lhs, w_ref[t],
                                preferred_element_type=jnp.float32)

    # BN batch statistics fused into the epilogue (exclude wrap-around columns).
    masked = acc * mask_ref[...]
    sum_ref[0] = jnp.sum(masked, axis=0, keepdims=True)
    sq_ref[0] = jnp.sum(masked * acc, axis=0, keepdims=True)

    o_ref[0] = acc.astype(o_ref.dtype)


def conv3x3_bn_stats(xp_flat, scale, shift, w_taps, col_mask, *, H, Wp,
                     apply_input_act, out_dtype):
    """xp_flat: (N, R_in, C) bf16 -> (conv out (N, H*Wp, Co), per-image sum, sumsq)."""
    N, R_in, C = xp_flat.shape
    Co = w_taps.shape[2]
    R_out = H * Wp
    kernel = functools.partial(_conv3x3_bn_stats_kernel, H=H, Wp=Wp,
                               apply_input_act=apply_input_act)
    return pl.pallas_call(
        kernel,
        out_shape=(jax.ShapeDtypeStruct((N, R_out, Co), out_dtype),
                   jax.ShapeDtypeStruct((N, 1, Co), jnp.float32),
                   jax.ShapeDtypeStruct((N, 1, Co), jnp.float32)),
        grid=(N,),
        in_specs=[pl.BlockSpec((1, R_in, C), lambda n: (n, 0, 0)),
                  pl.BlockSpec((1, C), lambda n: (0, 0)),
                  pl.BlockSpec((1, C), lambda n: (0, 0)),
                  pl.BlockSpec((9, C, Co), lambda n: (0, 0, 0)),
                  pl.BlockSpec((R_out, 1), lambda n: (0, 0))],
        out_specs=(pl.BlockSpec((1, R_out, Co), lambda n: (n, 0, 0)),
                   pl.BlockSpec((1, 1, Co), lambda n: (n, 0, 0)),
                   pl.BlockSpec((1, 1, Co), lambda n: (n, 0, 0))),
        compiler_params=pltpu.CompilerParams(
            dimension_semantics=("parallel",),
            vmem_limit_bytes=_VMEM_LIMIT),
    )(xp_flat, scale, shift, w_taps, col_mask)


# ------------------------ fused BN2 + residual add + final ReLU ------------------------

def _bn_residual_relu_kernel(h_ref, scale_ref, shift_ref, x_ref, o_ref, *, W):
    """h_ref: (1, H, Wp, C) pre-BN conv2 output (padded-width layout);
    x_ref: (1, H, W, C) residual; o_ref: (1, H, W, C) final output."""
    h = h_ref[0][:, :W, :].astype(jnp.float32)             # drop the 2 wrap columns
    scale = scale_ref[...].reshape(1, 1, -1)
    shift = shift_ref[...].reshape(1, 1, -1)
    y = h * scale + shift + x_ref[0]
    o_ref[0] = jnp.maximum(y, 0.0)


def bn_residual_relu(h_img, scale, shift, x_nhwc, *, W):
    N, H, Wp, C = h_img.shape
    kernel = functools.partial(_bn_residual_relu_kernel, W=W)
    return pl.pallas_call(
        kernel,
        out_shape=jax.ShapeDtypeStruct((N, H, W, C), jnp.float32),
        grid=(N,),
        in_specs=[pl.BlockSpec((1, H, Wp, C), lambda n: (n, 0, 0, 0)),
                  pl.BlockSpec((1, C), lambda n: (0, 0)),
                  pl.BlockSpec((1, C), lambda n: (0, 0)),
                  pl.BlockSpec((1, H, W, C), lambda n: (n, 0, 0, 0))],
        out_specs=pl.BlockSpec((1, H, W, C), lambda n: (n, 0, 0, 0)),
        compiler_params=pltpu.CompilerParams(
            dimension_semantics=("parallel",),
            vmem_limit_bytes=_VMEM_LIMIT),
    )(h_img, scale, shift, x_nhwc)


# ----------------------------------- glue helpers -----------------------------------

def _w_to_taps(w):
    """PyTorch Conv2d weight (Cout, Cin, 3, 3) -> (9, Cin, Cout) bf16, tap = kh*3+kw."""
    cout, cin = w.shape[0], w.shape[1]
    return jnp.transpose(w, (2, 3, 1, 0)).reshape(9, cin, cout).astype(jnp.bfloat16)


def _fold_bn(sum_n1c, sq_n1c, count, gamma, beta, eps):
    """Per-channel fold of batch stats + affine into scale/shift (tiny arrays)."""
    s = jnp.sum(sum_n1c, axis=0)                  # (1, C)
    q = jnp.sum(sq_n1c, axis=0)                   # (1, C)
    mean = s / count
    # NOTE: one-pass variance; clamped >=0.  Fine for ~unit-scale activations.
    var = jnp.maximum(q / count - mean * mean, 0.0)
    scale = gamma.reshape(1, -1) * jax.lax.rsqrt(var + eps)
    shift = beta.reshape(1, -1) - mean * scale
    return scale, shift


# --------------------------------- ResBlock forward ---------------------------------

def init_resblock(key, n_feats):
    k1, k2 = jax.random.split(key)
    scale = 1.0 / jnp.sqrt(jnp.float32(n_feats * 9))
    return {
        "w1": jax.random.normal(k1, (n_feats, n_feats, 3, 3), jnp.float32) * scale,
        "w2": jax.random.normal(k2, (n_feats, n_feats, 3, 3), jnp.float32) * scale,
        "gamma1": jnp.ones((n_feats,), jnp.float32),
        "beta1": jnp.zeros((n_feats,), jnp.float32),
        "gamma2": jnp.ones((n_feats,), jnp.float32),
        "beta2": jnp.zeros((n_feats,), jnp.float32),
    }


def resblock_forward(params, x_nchw, eps=1e-5):
    """Mirrors ResBlock.forward: relu(x + body(x)).  NCHW in / NCHW out (f32)."""
    N, C, H, W = x_nchw.shape
    Hp, Wp = H + 2, W + 2
    R_out = H * Wp
    R_in = _ceil_to(Hp * Wp + 2, 8)        # enough rows for the last (kh=2,kw=2) tap slice
    count = float(N * H * W)

    x = jnp.transpose(x_nchw, (0, 2, 3, 1)).astype(jnp.float32)      # NHWC, reused as residual

    def pad_flatten(img_nhwc):
        # ReflectionPad2d(1), flatten (h, w) to rows, zero-pad rows so every tap
        # slice stays in bounds (extra rows only feed masked wrap-around columns).
        p = jnp.pad(img_nhwc, ((0, 0), (1, 1), (1, 1), (0, 0)), mode="reflect")
        p = p.reshape(N, Hp * Wp, C)
        return jnp.pad(p, ((0, 0), (0, R_in - Hp * Wp), (0, 0)))

    # valid-row mask: output flat row r is a real pixel iff (r mod Wp) < W
    cols = jnp.arange(R_out, dtype=jnp.int32) % Wp
    col_mask = (cols < W).astype(jnp.float32).reshape(R_out, 1)

    w1 = _w_to_taps(params["w1"])
    w2 = _w_to_taps(params["w2"])
    ones = jnp.ones((1, C), jnp.float32)
    zeros = jnp.zeros((1, C), jnp.float32)

    # ---- conv1 + fused BN1 batch stats (bf16 intermediate) ----
    xp1 = pad_flatten(x.astype(jnp.bfloat16))
    h1, s1, q1 = conv3x3_bn_stats(xp1, ones, zeros, w1, col_mask,
                                  H=H, Wp=Wp, apply_input_act=False,
                                  out_dtype=jnp.bfloat16)
    sc1, sh1 = _fold_bn(s1, q1, count, params["gamma1"], params["beta1"], eps)

    # ---- conv2 with BN1+ReLU fused into its input path, + fused BN2 stats ----
    h1_img = h1.reshape(N, H, Wp, C)[:, :, :W, :]          # drop wrap columns (bf16)
    h1p = pad_flatten(h1_img)                              # reflect-pad of *pre-BN* h1
    h2, s2, q2 = conv3x3_bn_stats(h1p, sc1, sh1, w2, col_mask,
                                  H=H, Wp=Wp, apply_input_act=True,
                                  out_dtype=jnp.float32)
    sc2, sh2 = _fold_bn(s2, q2, count, params["gamma2"], params["beta2"], eps)

    # ---- BN2 + residual add + final ReLU (single fused pass) ----
    out = bn_residual_relu(h2.reshape(N, H, Wp, C), sc2, sh2, x, W=W)
    return jnp.transpose(out, (0, 3, 1, 2))                # NCHW


# ------------------------------ pure-JAX reference ------------------------------

def _resblock_reference(params, x_nchw, eps=1e-5):
    x = jnp.transpose(x_nchw, (0, 2, 3, 1)).astype(jnp.float32)

    def conv(h, w):
        hp = jnp.pad(h, ((0, 0), (1, 1), (1, 1), (0, 0)), mode="reflect")
        return jax.lax.conv_general_dilated(
            hp, jnp.transpose(w, (2, 3, 1, 0)), (1, 1), "VALID",
            dimension_numbers=("NHWC", "HWIO", "NHWC"))

    def bn(h, gamma, beta):
        mean = jnp.mean(h, axis=(0, 1, 2), keepdims=True)
        var = jnp.mean((h - mean) ** 2, axis=(0, 1, 2), keepdims=True)
        return (h - mean) * jax.lax.rsqrt(var + eps) * gamma + beta

    h = jax.nn.relu(bn(conv(x, params["w1"]), params["gamma1"], params["beta1"]))
    h = bn(conv(h, params["w2"]), params["gamma2"], params["beta2"])
    out = jax.nn.relu(x + h)
    return jnp.transpose(out, (0, 3, 1, 2))


# --------------------------------------- main ---------------------------------------

if __name__ == "__main__":
    batch, n_feats, spatial = 2, 32, 16

    key = jax.random.PRNGKey(0)
    kp, kx = jax.random.split(key)
    params = init_resblock(kp, n_feats)
    x = jax.random.normal(kx, (batch, n_feats, spatial, spatial), jnp.float32)

    fwd = jax.jit(resblock_forward)
    y = jax.block_until_ready(fwd(params, x))

    assert y.shape == (batch, n_feats, spatial, spatial), y.shape
    assert y.dtype == jnp.float32
    assert bool(jnp.all(jnp.isfinite(y)))
    assert bool(jnp.all(y >= 0.0))                          # final ReLU

    # numerical check vs a pure-JAX f32 reference (loose tol: bf16 MXU operands
    # and bf16 h1 storage introduce ~1e-2-level deviations)
    y_ref = jax.block_until_ready(_resblock_reference(params, x))
    assert float(jnp.max(jnp.abs(y - y_ref))) < 0.3

    print("KERNEL_OK")
</pallas_src>

<mosaic_0001>
module attributes {stable_mosaic.version = 11 : i64} {
  func.func @_conv3x3_bn_stats_kernel(%arg0: i32, %arg1: memref<1x328x32xbf16, #tpu.memory_space<vmem>>, %arg2: memref<1x32xf32, #tpu.memory_space<vmem>>, %arg3: memref<1x32xf32, #tpu.memory_space<vmem>>, %arg4: memref<9x32x32xbf16, #tpu.memory_space<vmem>>, %arg5: memref<288x1xf32, #tpu.memory_space<vmem>>, %arg6: memref<1x288x32xbf16, #tpu.memory_space<vmem>>, %arg7: memref<1x1x32xf32, #tpu.memory_space<vmem>>, %arg8: memref<1x1x32xf32, #tpu.memory_space<vmem>>) attributes {dimension_semantics = [#tpu.dimension_semantics<parallel>], iteration_bounds = array<i64: 2>, scalar_prefetch = 0 : i64, scratch_operands = 0 : i64, tpu.core_type = #tpu.core_type<tc>, window_params = [{transform_indices = @transform_0, window_bounds = array<i64: 1, 328, 32>}, {pipeline_mode = #tpu.pipeline_mode<synchronous>, transform_indices = @transform_1, window_bounds = array<i64: 1, 32>}, {pipeline_mode = #tpu.pipeline_mode<synchronous>, transform_indices = @transform_2, window_bounds = array<i64: 1, 32>}, {pipeline_mode = #tpu.pipeline_mode<synchronous>, transform_indices = @transform_3, window_bounds = array<i64: 9, 32, 32>}, {pipeline_mode = #tpu.pipeline_mode<synchronous>, transform_indices = @transform_4, window_bounds = array<i64: 288, 1>}, {transform_indices = @transform_5, window_bounds = array<i64: 1, 288, 32>}, {transform_indices = @transform_6, window_bounds = array<i64: 1, 1, 32>}, {transform_indices = @transform_7, window_bounds = array<i64: 1, 1, 32>}]} {
    %c0 = arith.constant 0 : index
    %c0_0 = arith.constant 0 : index
    %c0_1 = arith.constant 0 : index
    %0 = vector.load %arg1[%c0, %c0_0, %c0_1] : memref<1x328x32xbf16, #tpu.memory_space<vmem>>, vector<1x328x32xbf16>
    %1 = vector.shape_cast %0 : vector<1x328x32xbf16> to vector<328x32xbf16>
    %2 = arith.extf %1 : vector<328x32xbf16> to vector<328x32xf32>
    %cst = arith.constant 0.000000e+00 : f32
    %3 = vector.broadcast %cst : f32 to vector<288x32xf32>
    %4 = vector.extract_strided_slice %2 {offsets = [0, 0], sizes = [288, 32], strides = [1, 1]} : vector<328x32xf32> to vector<288x32xf32>
    %5 = arith.truncf %4 : vector<288x32xf32> to vector<288x32xbf16>
    %c0_2 = arith.constant 0 : index
    %c0_3 = arith.constant 0 : index
    %c0_4 = arith.constant 0 : index
    %6 = vector.load %arg4[%c0_2, %c0_3, %c0_4] : memref<9x32x32xbf16, #tpu.memory_space<vmem>>, vector<1x32x32xbf16>
    %7 = vector.shape_cast %6 : vector<1x32x32xbf16> to vector<32x32xbf16>
    %cst_5 = arith.constant dense<0.000000e+00> : vector<288x32xf32>
    %8 = tpu.matmul %5, %7, %cst_5 {dimension_numbers = #tpu.dot_dimension_numbers<[1], [0], [0], [1], [0, 0, 1, 1], [], []>} : vector<288x32xbf16>, vector<32x32xbf16>, vector<288x32xf32> -> vector<288x32xf32>
    %9 = arith.addf %3, %8 : vector<288x32xf32>
    %10 = vector.extract_strided_slice %2 {offsets = [1, 0], sizes = [288, 32], strides = [1, 1]} : vector<328x32xf32> to vector<288x32xf32>
    %11 = arith.truncf %10 : vector<288x32xf32> to vector<288x32xbf16>
    %c1 = arith.constant 1 : index
    %c0_6 = arith.constant 0 : index
    %c0_7 = arith.constant 0 : index
    %12 = vector.load %arg4[%c1, %c0_6, %c0_7] : memref<9x32x32xbf16, #tpu.memory_space<vmem>>, vector<1x32x32xbf16>
    %13 = vector.shape_cast %12 : vector<1x32x32xbf16> to vector<32x32xbf16>
    %cst_8 = arith.constant dense<0.000000e+00> : vector<288x32xf32>
    %14 = tpu.matmul %11, %13, %cst_8 {dimension_numbers = #tpu.dot_dimension_numbers<[1], [0], [0], [1], [0, 0, 1, 1], [], []>} : vector<288x32xbf16>, vector<32x32xbf16>, vector<288x32xf32> -> vector<288x32xf32>
    %15 = arith.addf %9, %14 : vector<288x32xf32>
    %16 = vector.extract_strided_slice %2 {offsets = [2, 0], sizes = [288, 32], strides = [1, 1]} : vector<328x32xf32> to vector<288x32xf32>
    %17 = arith.truncf %16 : vector<288x32xf32> to vector<288x32xbf16>
    %c2 = arith.constant 2 : index
    %c0_9 = arith.constant 0 : index
    %c0_10 = arith.constant 0 : index
    %18 = vector.load %arg4[%c2, %c0_9, %c0_10] : memref<9x32x32xbf16, #tpu.memory_space<vmem>>, vector<1x32x32xbf16>
    %19 = vector.shape_cast %18 : vector<1x32x32xbf16> to vector<32x32xbf16>
    %cst_11 = arith.constant dense<0.000000e+00> : vector<288x32xf32>
    %20 = tpu.matmul %17, %19, %cst_11 {dimension_numbers = #tpu.dot_dimension_numbers<[1], [0], [0], [1], [0, 0, 1, 1], [], []>} : vector<288x32xbf16>, vector<32x32xbf16>, vector<288x32xf32> -> vector<288x32xf32>
    %21 = arith.addf %15, %20 : vector<288x32xf32>
    %22 = vector.extract_strided_slice %2 {offsets = [18, 0], sizes = [288, 32], strides = [1, 1]} : vector<328x32xf32> to vector<288x32xf32>
    %23 = arith.truncf %22 : vector<288x32xf32> to vector<288x32xbf16>
    %c3 = arith.constant 3 : index
    %c0_12 = arith.constant 0 : index
    %c0_13 = arith.constant 0 : index
    %24 = vector.load %arg4[%c3, %c0_12, %c0_13] : memref<9x32x32xbf16, #tpu.memory_space<vmem>>, vector<1x32x32xbf16>
    %25 = vector.shape_cast %24 : vector<1x32x32xbf16> to vector<32x32xbf16>
    %cst_14 = arith.constant dense<0.000000e+00> : vector<288x32xf32>
    %26 = tpu.matmul %23, %25, %cst_14 {dimension_numbers = #tpu.dot_dimension_numbers<[1], [0], [0], [1], [0, 0, 1, 1], [], []>} : vector<288x32xbf16>, vector<32x32xbf16>, vector<288x32xf32> -> vector<288x32xf32>
    %27 = arith.addf %21, %26 : vector<288x32xf32>
    %28 = vector.extract_strided_slice %2 {offsets = [19, 0], sizes = [288, 32], strides = [1, 1]} : vector<328x32xf32> to vector<288x32xf32>
    %29 = arith.truncf %28 : vector<288x32xf32> to vector<288x32xbf16>
    %c4 = arith.constant 4 : index
    %c0_15 = arith.constant 0 : index
    %c0_16 = arith.constant 0 : index
    %30 = vector.load %arg4[%c4, %c0_15, %c0_16] : memref<9x32x32xbf16, #tpu.memory_space<vmem>>, vector<1x32x32xbf16>
    %31 = vector.shape_cast %30 : vector<1x32x32xbf16> to vector<32x32xbf16>
    %cst_17 = arith.constant dense<0.000000e+00> : vector<288x32xf32>
    %32 = tpu.matmul %29, %31, %cst_17 {dimension_numbers = #tpu.dot_dimension_numbers<[1], [0], [0], [1], [0, 0, 1, 1], [], []>} : vector<288x32xbf16>, vector<32x32xbf16>, vector<288x32xf32> -> vector<288x32xf32>
    %33 = arith.addf %27, %32 : vector<288x32xf32>
    %34 = vector.extract_strided_slice %2 {offsets = [20, 0], sizes = [288, 32], strides = [1, 1]} : vector<328x32xf32> to vector<288x32xf32>
    %35 = arith.truncf %34 : vector<288x32xf32> to vector<288x32xbf16>
    %c5 = arith.constant 5 : index
    %c0_18 = arith.constant 0 : index
    %c0_19 = arith.constant 0 : index
    %36 = vector.load %arg4[%c5, %c0_18, %c0_19] : memref<9x32x32xbf16, #tpu.memory_space<vmem>>, vector<1x32x32xbf16>
    %37 = vector.shape_cast %36 : vector<1x32x32xbf16> to vector<32x32xbf16>
    %cst_20 = arith.constant dense<0.000000e+00> : vector<288x32xf32>
    %38 = tpu.matmul %35, %37, %cst_20 {dimension_numbers = #tpu.dot_dimension_numbers<[1], [0], [0], [1], [0, 0, 1, 1], [], []>} : vector<288x32xbf16>, vector<32x32xbf16>, vector<288x32xf32> -> vector<288x32xf32>
    %39 = arith.addf %33, %38 : vector<288x32xf32>
    %40 = vector.extract_strided_slice %2 {offsets = [36, 0], sizes = [288, 32], strides = [1, 1]} : vector<328x32xf32> to vector<288x32xf32>
    %41 = arith.truncf %40 : vector<288x32xf32> to vector<288x32xbf16>
    %c6 = arith.constant 6 : index
    %c0_21 = arith.constant 0 : index
    %c0_22 = arith.constant 0 : index
    %42 = vector.load %arg4[%c6, %c0_21, %c0_22] : memref<9x32x32xbf16, #tpu.memory_space<vmem>>, vector<1x32x32xbf16>
    %43 = vector.shape_cast %42 : vector<1x32x32xbf16> to vector<32x32xbf16>
    %cst_23 = arith.constant dense<0.000000e+00> : vector<288x32xf32>
    %44 = tpu.matmul %41, %43, %cst_23 {dimension_numbers = #tpu.dot_dimension_numbers<[1], [0], [0], [1], [0, 0, 1, 1], [], []>} : vector<288x32xbf16>, vector<32x32xbf16>, vector<288x32xf32> -> vector<288x32xf32>
    %45 = arith.addf %39, %44 : vector<288x32xf32>
    %46 = vector.extract_strided_slice %2 {offsets = [37, 0], sizes = [288, 32], strides = [1, 1]} : vector<328x32xf32> to vector<288x32xf32>
    %47 = arith.truncf %46 : vector<288x32xf32> to vector<288x32xbf16>
    %c7 = arith.constant 7 : index
    %c0_24 = arith.constant 0 : index
    %c0_25 = arith.constant 0 : index
    %48 = vector.load %arg4[%c7, %c0_24, %c0_25] : memref<9x32x32xbf16, #tpu.memory_space<vmem>>, vector<1x32x32xbf16>
    %49 = vector.shape_cast %48 : vector<1x32x32xbf16> to vector<32x32xbf16>
    %cst_26 = arith.constant dense<0.000000e+00> : vector<288x32xf32>
    %50 = tpu.matmul %47, %49, %cst_26 {dimension_numbers = #tpu.dot_dimension_numbers<[1], [0], [0], [1], [0, 0, 1, 1], [], []>} : vector<288x32xbf16>, vector<32x32xbf16>, vector<288x32xf32> -> vector<288x32xf32>
    %51 = arith.addf %45, %50 : vector<288x32xf32>
    %52 = vector.extract_strided_slice %2 {offsets = [38, 0], sizes = [288, 32], strides = [1, 1]} : vector<328x32xf32> to vector<288x32xf32>
    %53 = arith.truncf %52 : vector<288x32xf32> to vector<288x32xbf16>
    %c8 = arith.constant 8 : index
    %c0_27 = arith.constant 0 : index
    %c0_28 = arith.constant 0 : index
    %54 = vector.load %arg4[%c8, %c0_27, %c0_28] : memref<9x32x32xbf16, #tpu.memory_space<vmem>>, vector<1x32x32xbf16>
    %55 = vector.shape_cast %54 : vector<1x32x32xbf16> to vector<32x32xbf16>
    %cst_29 = arith.constant dense<0.000000e+00> : vector<288x32xf32>
    %56 = tpu.matmul %53, %55, %cst_29 {dimension_numbers = #tpu.dot_dimension_numbers<[1], [0], [0], [1], [0, 0, 1, 1], [], []>} : vector<288x32xbf16>, vector<32x32xbf16>, vector<288x32xf32> -> vector<288x32xf32>
    %57 = arith.addf %51, %56 : vector<288x32xf32>
    %c0_30 = arith.constant 0 : index
    %c0_31 = arith.constant 0 : index
    %58 = vector.load %arg5[%c0_30, %c0_31] : memref<288x1xf32, #tpu.memory_space<vmem>>, vector<288x1xf32>
    %59 = vector.broadcast %58 : vector<288x1xf32> to vector<288x32xf32>
    %60 = arith.mulf %57, %59 : vector<288x32xf32>
    %cst_32 = arith.constant dense<0.000000e+00> : vector<32xf32>
    %61 = vector.multi_reduction <add>, %60, %cst_32 [0] : vector<288x32xf32> to vector<32xf32>
    %62 = vector.shape_cast %61 : vector<32xf32> to vector<1x32xf32>
    %c0_33 = arith.constant 0 : index
    %c0_34 = arith.constant 0 : index
    %c0_35 = arith.constant 0 : index
    %63 = vector.load %arg7[%c0_33, %c0_34, %c0_35] : memref<1x1x32xf32, #tpu.memory_space<vmem>>, vector<1x1x32xf32>
    %64 = vector.shape_cast %63 : vector<1x1x32xf32> to vector<1x32xf32>
    %65 = vector.shape_cast %62 : vector<1x32xf32> to vector<1x1x32xf32>
    tpu.vector_store %arg7[%c0_33, %c0_34, %c0_35], %65 {strides = array<i32>} : memref<1x1x32xf32, #tpu.memory_space<vmem>>, vector<1x1x32xf32>,
    %66 = arith.mulf %60, %57 : vector<288x32xf32>
    %cst_36 = arith.constant dense<0.000000e+00> : vector<32xf32>
    %67 = vector.multi_reduction <add>, %66, %cst_36 [0] : vector<288x32xf32> to vector<32xf32>
    %68 = vector.shape_cast %67 : vector<32xf32> to vector<1x32xf32>
    %c0_37 = arith.constant 0 : index
    %c0_38 = arith.constant 0 : index
    %c0_39 = arith.constant 0 : index
    %69 = vector.load %arg8[%c0_37, %c0_38, %c0_39] : memref<1x1x32xf32, #tpu.memory_space<vmem>>, vector<1x1x32xf32>
    %70 = vector.shape_cast %69 : vector<1x1x32xf32> to vector<1x32xf32>
    %71 = vector.shape_cast %68 : vector<1x32xf32> to vector<1x1x32xf32>
    tpu.vector_store %arg8[%c0_37, %c0_38, %c0_39], %71 {strides = array<i32>} : memref<1x1x32xf32, #tpu.memory_space<vmem>>, vector<1x1x32xf32>,
    %72 = arith.truncf %57 : vector<288x32xf32> to vector<288x32xbf16>
    %c0_40 = arith.constant 0 : index
    %c0_41 = arith.constant 0 : index
    %c0_42 = arith.constant 0 : index
    %73 = vector.load %arg6[%c0_40, %c0_41, %c0_42] : memref<1x288x32xbf16, #tpu.memory_space<vmem>>, vector<1x288x32xbf16>
    %74 = vector.shape_cast %73 : vector<1x288x32xbf16> to vector<288x32xbf16>
    %75 = vector.shape_cast %72 : vector<288x32xbf16> to vector<1x288x32xbf16>
    tpu.vector_store %arg6[%c0_40, %c0_41, %c0_42], %75 {strides = array<i32>} : memref<1x288x32xbf16, #tpu.memory_space<vmem>>, vector<1x288x32xbf16>,
    return
  }
  func.func @transform_0(%arg0: i32) -> (i32, i32, i32) {
    %c0_i32 = arith.constant 0 : i32
    %c0_i32_0 = arith.constant 0 : i32
    %c0_i32_1 = arith.constant 0 : i32
    return %arg0, %c0_i32, %c0_i32_0 : i32, i32, i32
  }
  func.func @transform_1(%arg0: i32) -> (i32, i32) {
    %c0_i32 = arith.constant 0 : i32
    %c0_i32_0 = arith.constant 0 : i32
    %c0_i32_1 = arith.constant 0 : i32
    return %c0_i32, %c0_i32_0 : i32, i32
  }
  func.func @transform_2(%arg0: i32) -> (i32, i32) {
    %c0_i32 = arith.constant 0 : i32
    %c0_i32_0 = arith.constant 0 : i32
    %c0_i32_1 = arith.constant 0 : i32
    return %c0_i32, %c0_i32_0 : i32, i32
  }
  func.func @transform_3(%arg0: i32) -> (i32, i32, i32) {
    %c0_i32 = arith.constant 0 : i32
    %c0_i32_0 = arith.constant 0 : i32
    %c0_i32_1 = arith.constant 0 : i32
    %c0_i32_2 = arith.constant 0 : i32
    return %c0_i32, %c0_i32_0, %c0_i32_1 : i32, i32, i32
  }
  func.func @transform_4(%arg0: i32) -> (i32, i32) {
    %c0_i32 = arith.constant 0 : i32
    %c0_i32_0 = arith.constant 0 : i32
    %c0_i32_1 = arith.constant 0 : i32
    return %c0_i32, %c0_i32_0 : i32, i32
  }
  func.func @transform_5(%arg0: i32) -> (i32, i32, i32) {
    %c0_i32 = arith.constant 0 : i32
    %c0_i32_0 = arith.constant 0 : i32
    %c0_i32_1 = arith.constant 0 : i32
    return %arg0, %c0_i32, %c0_i32_0 : i32, i32, i32
  }
  func.func @transform_6(%arg0: i32) -> (i32, i32, i32) {
    %c0_i32 = arith.constant 0 : i32
    %c0_i32_0 = arith.constant 0 : i32
    %c0_i32_1 = arith.constant 0 : i32
    return %arg0, %c0_i32, %c0_i32_0 : i32, i32, i32
  }
  func.func @transform_7(%arg0: i32) -> (i32, i32, i32) {
    %c0_i32 = arith.constant 0 : i32
    %c0_i32_0 = arith.constant 0 : i32
    %c0_i32_1 = arith.constant 0 : i32
    return %arg0, %c0_i32, %c0_i32_0 : i32, i32, i32
  }
}

module attributes {stable_mosaic.version = 11 : i64} {
  func.func @_conv3x3_bn_stats_kernel(%arg0: i32, %arg1: memref<1x328x32xbf16, #tpu.memory_space<vmem>>, %arg2: memref<1x32xf32, #tpu.memory_space<vmem>>, %arg3: memref<1x32xf32, #tpu.memory_space<vmem>>, %arg4: memref<9x32x32xbf16, #tpu.memory_space<vmem>>, %arg5: memref<288x1xf32, #tpu.memory_space<vmem>>, %arg6: memref<1x288x32xf32, #tpu.memory_space<vmem>>, %arg7: memref<1x1x32xf32, #tpu.memory_space<vmem>>, %arg8: memref<1x1x32xf32, #tpu.memory_space<vmem>>) attributes {dimension_semantics = [#tpu.dimension_semantics<parallel>], iteration_bounds = array<i64: 2>, scalar_prefetch = 0 : i64, scratch_operands = 0 : i64, tpu.core_type = #tpu.core_type<tc>, window_params = [{transform_indices = @transform_0, window_bounds = array<i64: 1, 328, 32>}, {pipeline_mode = #tpu.pipeline_mode<synchronous>, transform_indices = @transform_1, window_bounds = array<i64: 1, 32>}, {pipeline_mode = #tpu.pipeline_mode<synchronous>, transform_indices = @transform_2, window_bounds = array<i64: 1, 32>}, {pipeline_mode = #tpu.pipeline_mode<synchronous>, transform_indices = @transform_3, window_bounds = array<i64: 9, 32, 32>}, {pipeline_mode = #tpu.pipeline_mode<synchronous>, transform_indices = @transform_4, window_bounds = array<i64: 288, 1>}, {transform_indices = @transform_5, window_bounds = array<i64: 1, 288, 32>}, {transform_indices = @transform_6, window_bounds = array<i64: 1, 1, 32>}, {transform_indices = @transform_7, window_bounds = array<i64: 1, 1, 32>}]} {
    %c0 = arith.constant 0 : index
    %c0_0 = arith.constant 0 : index
    %c0_1 = arith.constant 0 : index
    %0 = vector.load %arg1[%c0, %c0_0, %c0_1] : memref<1x328x32xbf16, #tpu.memory_space<vmem>>, vector<1x328x32xbf16>
    %1 = vector.shape_cast %0 : vector<1x328x32xbf16> to vector<328x32xbf16>
    %2 = arith.extf %1 : vector<328x32xbf16> to vector<328x32xf32>
    %c0_2 = arith.constant 0 : index
    %c0_3 = arith.constant 0 : index
    %3 = vector.load %arg2[%c0_2, %c0_3] : memref<1x32xf32, #tpu.memory_space<vmem>>, vector<1x32xf32>
    %4 = vector.broadcast %3 : vector<1x32xf32> to vector<328x32xf32>
    %5 = arith.mulf %2, %4 : vector<328x32xf32>
    %c0_4 = arith.constant 0 : index
    %c0_5 = arith.constant 0 : index
    %6 = vector.load %arg3[%c0_4, %c0_5] : memref<1x32xf32, #tpu.memory_space<vmem>>, vector<1x32xf32>
    %7 = vector.broadcast %6 : vector<1x32xf32> to vector<328x32xf32>
    %8 = arith.addf %5, %7 : vector<328x32xf32>
    %cst = arith.constant 0.000000e+00 : f32
    %9 = vector.broadcast %cst : f32 to vector<328x32xf32>
    %10 = arith.maximumf %8, %9 : vector<328x32xf32>
    %cst_6 = arith.constant 0.000000e+00 : f32
    %11 = vector.broadcast %cst_6 : f32 to vector<288x32xf32>
    %12 = vector.extract_strided_slice %10 {offsets = [0, 0], sizes = [288, 32], strides = [1, 1]} : vector<328x32xf32> to vector<288x32xf32>
    %13 = arith.truncf %12 : vector<288x32xf32> to vector<288x32xbf16>
    %c0_7 = arith.constant 0 : index
    %c0_8 = arith.constant 0 : index
    %c0_9 = arith.constant 0 : index
    %14 = vector.load %arg4[%c0_7, %c0_8, %c0_9] : memref<9x32x32xbf16, #tpu.memory_space<vmem>>, vector<1x32x32xbf16>
    %15 = vector.shape_cast %14 : vector<1x32x32xbf16> to vector<32x32xbf16>
    %cst_10 = arith.constant dense<0.000000e+00> : vector<288x32xf32>
    %16 = tpu.matmul %13, %15, %cst_10 {dimension_numbers = #tpu.dot_dimension_numbers<[1], [0], [0], [1], [0, 0, 1, 1], [], []>} : vector<288x32xbf16>, vector<32x32xbf16>, vector<288x32xf32> -> vector<288x32xf32>
    %17 = arith.addf %11, %16 : vector<288x32xf32>
    %18 = vector.extract_strided_slice %10 {offsets = [1, 0], sizes = [288, 32], strides = [1, 1]} : vector<328x32xf32> to vector<288x32xf32>
    %19 = arith.truncf %18 : vector<288x32xf32> to vector<288x32xbf16>
    %c1 = arith.constant 1 : index
    %c0_11 = arith.constant 0 : index
    %c0_12 = arith.constant 0 : index
    %20 = vector.load %arg4[%c1, %c0_11, %c0_12] : memref<9x32x32xbf16, #tpu.memory_space<vmem>>, vector<1x32x32xbf16>
    %21 = vector.shape_cast %20 : vector<1x32x32xbf16> to vector<32x32xbf16>
    %cst_13 = arith.constant dense<0.000000e+00> : vector<288x32xf32>
    %22 = tpu.matmul %19, %21, %cst_13 {dimension_numbers = #tpu.dot_dimension_numbers<[1], [0], [0], [1], [0, 0, 1, 1], [], []>} : vector<288x32xbf16>, vector<32x32xbf16>, vector<288x32xf32> -> vector<288x32xf32>
    %23 = arith.addf %17, %22 : vector<288x32xf32>
    %24 = vector.extract_strided_slice %10 {offsets = [2, 0], sizes = [288, 32], strides = [1, 1]} : vector<328x32xf32> to vector<288x32xf32>
    %25 = arith.truncf %24 : vector<288x32xf32> to vector<288x32xbf16>
    %c2 = arith.constant 2 : index
    %c0_14 = arith.constant 0 : index
    %c0_15 = arith.constant 0 : index
    %26 = vector.load %arg4[%c2, %c0_14, %c0_15] : memref<9x32x32xbf16, #tpu.memory_space<vmem>>, vector<1x32x32xbf16>
    %27 = vector.shape_cast %26 : vector<1x32x32xbf16> to vector<32x32xbf16>
    %cst_16 = arith.constant dense<0.000000e+00> : vector<288x32xf32>
    %28 = tpu.matmul %25, %27, %cst_16 {dimension_numbers = #tpu.dot_dimension_numbers<[1], [0], [0], [1], [0, 0, 1, 1], [], []>} : vector<288x32xbf16>, vector<32x32xbf16>, vector<288x32xf32> -> vector<288x32xf32>
    %29 = arith.addf %23, %28 : vector<288x32xf32>
    %30 = vector.extract_strided_slice %10 {offsets = [18, 0], sizes = [288, 32], strides = [1, 1]} : vector<328x32xf32> to vector<288x32xf32>
    %31 = arith.truncf %30 : vector<288x32xf32> to vector<288x32xbf16>
    %c3 = arith.constant 3 : index
    %c0_17 = arith.constant 0 : index
    %c0_18 = arith.constant 0 : index
    %32 = vector.load %arg4[%c3, %c0_17, %c0_18] : memref<9x32x32xbf16, #tpu.memory_space<vmem>>, vector<1x32x32xbf16>
    %33 = vector.shape_cast %32 : vector<1x32x32xbf16> to vector<32x32xbf16>
    %cst_19 = arith.constant dense<0.000000e+00> : vector<288x32xf32>
    %34 = tpu.matmul %31, %33, %cst_19 {dimension_numbers = #tpu.dot_dimension_numbers<[1], [0], [0], [1], [0, 0, 1, 1], [], []>} : vector<288x32xbf16>, vector<32x32xbf16>, vector<288x32xf32> -> vector<288x32xf32>
    %35 = arith.addf %29, %34 : vector<288x32xf32>
    %36 = vector.extract_strided_slice %10 {offsets = [19, 0], sizes = [288, 32], strides = [1, 1]} : vector<328x32xf32> to vector<288x32xf32>
    %37 = arith.truncf %36 : vector<288x32xf32> to vector<288x32xbf16>
    %c4 = arith.constant 4 : index
    %c0_20 = arith.constant 0 : index
    %c0_21 = arith.constant 0 : index
    %38 = vector.load %arg4[%c4, %c0_20, %c0_21] : memref<9x32x32xbf16, #tpu.memory_space<vmem>>, vector<1x32x32xbf16>
    %39 = vector.shape_cast %38 : vector<1x32x32xbf16> to vector<32x32xbf16>
    %cst_22 = arith.constant dense<0.000000e+00> : vector<288x32xf32>
    %40 = tpu.matmul %37, %39, %cst_22 {dimension_numbers = #tpu.dot_dimension_numbers<[1], [0], [0], [1], [0, 0, 1, 1], [], []>} : vector<288x32xbf16>, vector<32x32xbf16>, vector<288x32xf32> -> vector<288x32xf32>
    %41 = arith.addf %35, %40 : vector<288x32xf32>
    %42 = vector.extract_strided_slice %10 {offsets = [20, 0], sizes = [288, 32], strides = [1, 1]} : vector<328x32xf32> to vector<288x32xf32>
    %43 = arith.truncf %42 : vector<288x32xf32> to vector<288x32xbf16>
    %c5 = arith.constant 5 : index
    %c0_23 = arith.constant 0 : index
    %c0_24 = arith.constant 0 : index
    %44 = vector.load %arg4[%c5, %c0_23, %c0_24] : memref<9x32x32xbf16, #tpu.memory_space<vmem>>, vector<1x32x32xbf16>
    %45 = vector.shape_cast %44 : vector<1x32x32xbf16> to vector<32x32xbf16>
    %cst_25 = arith.constant dense<0.000000e+00> : vector<288x32xf32>
    %46 = tpu.matmul %43, %45, %cst_25 {dimension_numbers = #tpu.dot_dimension_numbers<[1], [0], [0], [1], [0, 0, 1, 1], [], []>} : vector<288x32xbf16>, vector<32x32xbf16>, vector<288x32xf32> -> vector<288x32xf32>
    %47 = arith.addf %41, %46 : vector<288x32xf32>
    %48 = vector.extract_strided_slice %10 {offsets = [36, 0], sizes = [288, 32], strides = [1, 1]} : vector<328x32xf32> to vector<288x32xf32>
    %49 = arith.truncf %48 : vector<288x32xf32> to vector<288x32xbf16>
    %c6 = arith.constant 6 : index
    %c0_26 = arith.constant 0 : index
    %c0_27 = arith.constant 0 : index
    %50 = vector.load %arg4[%c6, %c0_26, %c0_27] : memref<9x32x32xbf16, #tpu.memory_space<vmem>>, vector<1x32x32xbf16>
    %51 = vector.shape_cast %50 : vector<1x32x32xbf16> to vector<32x32xbf16>
    %cst_28 = arith.constant dense<0.000000e+00> : vector<288x32xf32>
    %52 = tpu.matmul %49, %51, %cst_28 {dimension_numbers = #tpu.dot_dimension_numbers<[1], [0], [0], [1], [0, 0, 1, 1], [], []>} : vector<288x32xbf16>, vector<32x32xbf16>, vector<288x32xf32> -> vector<288x32xf32>
    %53 = arith.addf %47, %52 : vector<288x32xf32>
    %54 = vector.extract_strided_slice %10 {offsets = [37, 0], sizes = [288, 32], strides = [1, 1]} : vector<328x32xf32> to vector<288x32xf32>
    %55 = arith.truncf %54 : vector<288x32xf32> to vector<288x32xbf16>
    %c7 = arith.constant 7 : index
    %c0_29 = arith.constant 0 : index
    %c0_30 = arith.constant 0 : index
    %56 = vector.load %arg4[%c7, %c0_29, %c0_30] : memref<9x32x32xbf16, #tpu.memory_space<vmem>>, vector<1x32x32xbf16>
    %57 = vector.shape_cast %56 : vector<1x32x32xbf16> to vector<32x32xbf16>
    %cst_31 = arith.constant dense<0.000000e+00> : vector<288x32xf32>
    %58 = tpu.matmul %55, %57, %cst_31 {dimension_numbers = #tpu.dot_dimension_numbers<[1], [0], [0], [1], [0, 0, 1, 1], [], []>} : vector<288x32xbf16>, vector<32x32xbf16>, vector<288x32xf32> -> vector<288x32xf32>
    %59 = arith.addf %53, %58 : vector<288x32xf32>
    %60 = vector.extract_strided_slice %10 {offsets = [38, 0], sizes = [288, 32], strides = [1, 1]} : vector<328x32xf32> to vector<288x32xf32>
    %61 = arith.truncf %60 : vector<288x32xf32> to vector<288x32xbf16>
    %c8 = arith.constant 8 : index
    %c0_32 = arith.constant 0 : index
    %c0_33 = arith.constant 0 : index
    %62 = vector.load %arg4[%c8, %c0_32, %c0_33] : memref<9x32x32xbf16, #tpu.memory_space<vmem>>, vector<1x32x32xbf16>
    %63 = vector.shape_cast %62 : vector<1x32x32xbf16> to vector<32x32xbf16>
    %cst_34 = arith.constant dense<0.000000e+00> : vector<288x32xf32>
    %64 = tpu.matmul %61, %63, %cst_34 {dimension_numbers = #tpu.dot_dimension_numbers<[1], [0], [0], [1], [0, 0, 1, 1], [], []>} : vector<288x32xbf16>, vector<32x32xbf16>, vector<288x32xf32> -> vector<288x32xf32>
    %65 = arith.addf %59, %64 : vector<288x32xf32>
    %c0_35 = arith.constant 0 : index
    %c0_36 = arith.constant 0 : index
    %66 = vector.load %arg5[%c0_35, %c0_36] : memref<288x1xf32, #tpu.memory_space<vmem>>, vector<288x1xf32>
    %67 = vector.broadcast %66 : vector<288x1xf32> to vector<288x32xf32>
    %68 = arith.mulf %65, %67 : vector<288x32xf32>
    %cst_37 = arith.constant dense<0.000000e+00> : vector<32xf32>
    %69 = vector.multi_reduction <add>, %68, %cst_37 [0] : vector<288x32xf32> to vector<32xf32>
    %70 = vector.shape_cast %69 : vector<32xf32> to vector<1x32xf32>
    %c0_38 = arith.constant 0 : index
    %c0_39 = arith.constant 0 : index
    %c0_40 = arith.constant 0 : index
    %71 = vector.load %arg7[%c0_38, %c0_39, %c0_40] : memref<1x1x32xf32, #tpu.memory_space<vmem>>, vector<1x1x32xf32>
    %72 = vector.shape_cast %71 : vector<1x1x32xf32> to vector<1x32xf32>
    %73 = vector.shape_cast %70 : vector<1x32xf32> to vector<1x1x32xf32>
    tpu.vector_store %arg7[%c0_38, %c0_39, %c0_40], %73 {strides = array<i32>} : memref<1x1x32xf32, #tpu.memory_space<vmem>>, vector<1x1x32xf32>,
    %74 = arith.mulf %68, %65 : vector<288x32xf32>
    %cst_41 = arith.constant dense<0.000000e+00> : vector<32xf32>
    %75 = vector.multi_reduction <add>, %74, %cst_41 [0] : vector<288x32xf32> to vector<32xf32>
    %76 = vector.shape_cast %75 : vector<32xf32> to vector<1x32xf32>
    %c0_42 = arith.constant 0 : index
    %c0_43 = arith.constant 0 : index
    %c0_44 = arith.constant 0 : index
    %77 = vector.load %arg8[%c0_42, %c0_43, %c0_44] : memref<1x1x32xf32, #tpu.memory_space<vmem>>, vector<1x1x32xf32>
    %78 = vector.shape_cast %77 : vector<1x1x32xf32> to vector<1x32xf32>
    %79 = vector.shape_cast %76 : vector<1x32xf32> to vector<1x1x32xf32>
    tpu.vector_store %arg8[%c0_42, %c0_43, %c0_44], %79 {strides = array<i32>} : memref<1x1x32xf32, #tpu.memory_space<vmem>>, vector<1x1x32xf32>,
    %c0_45 = arith.constant 0 : index
    %c0_46 = arith.constant 0 : index
    %c0_47 = arith.constant 0 : index
    %80 = vector.load %arg6[%c0_45, %c0_46, %c0_47] : memref<1x288x32xf32, #tpu.memory_space<vmem>>, vector<1x288x32xf32>
    %81 = vector.shape_cast %80 : vector<1x288x32xf32> to vector<288x32xf32>
    %82 = vector.shape_cast %65 : vector<288x32xf32> to vector<1x288x32xf32>
    tpu.vector_store %arg6[%c0_45, %c0_46, %c0_47], %82 {strides = array<i32>} : memref<1x288x32xf32, #tpu.memory_space<vmem>>, vector<1x288x32xf32>,
    return
  }
  func.func @transform_0(%arg0: i32) -> (i32, i32, i32) {
    %c0_i32 = arith.constant 0 : i32
    %c0_i32_0 = arith.constant 0 : i32
    %c0_i32_1 = arith.constant 0 : i32
    return %arg0, %c0_i32, %c0_i32_0 : i32, i32, i32
  }
  func.func @transform_1(%arg0: i32) -> (i32, i32) {
    %c0_i32 = arith.constant 0 : i32
    %c0_i32_0 = arith.constant 0 : i32
    %c0_i32_1 = arith.constant 0 : i32
    return %c0_i32, %c0_i32_0 : i32, i32
  }
  func.func @transform_2(%arg0: i32) -> (i32, i32) {
    %c0_i32 = arith.constant 0 : i32
    %c0_i32_0 = arith.constant 0 : i32
    %c0_i32_1 = arith.constant 0 : i32
    return %c0_i32, %c0_i32_0 : i32, i32
  }
  func.func @transform_3(%arg0: i32) -> (i32, i32, i32) {
    %c0_i32 = arith.constant 0 : i32
    %c0_i32_0 = arith.constant 0 : i32
    %c0_i32_1 = arith.constant 0 : i32
    %c0_i32_2 = arith.constant 0 : i32
    return %c0_i32, %c0_i32_0, %c0_i32_1 : i32, i32, i32
  }
  func.func @transform_4(%arg0: i32) -> (i32, i32) {
    %c0_i32 = arith.constant 0 : i32
    %c0_i32_0 = arith.constant 0 : i32
    %c0_i32_1 = arith.constant 0 : i32
    return %c0_i32, %c0_i32_0 : i32, i32
  }
  func.func @transform_5(%arg0: i32) -> (i32, i32, i32) {
    %c0_i32 = arith.constant 0 : i32
    %c0_i32_0 = arith.constant 0 : i32
    %c0_i32_1 = arith.constant 0 : i32
    return %arg0, %c0_i32, %c0_i32_0 : i32, i32, i32
  }
  func.func @transform_6(%arg0: i32) -> (i32, i32, i32) {
    %c0_i32 = arith.constant 0 : i32
    %c0_i32_0 = arith.constant 0 : i32
    %c0_i32_1 = arith.constant 0 : i32
    return %arg0, %c0_i32, %c0_i32_0 : i32, i32, i32
  }
  func.func @transform_7(%arg0: i32) -> (i32, i32, i32) {
    %c0_i32 = arith.constant 0 : i32
    %c0_i32_0 = arith.constant 0 : i32
    %c0_i32_1 = arith.constant 0 : i32
    return %arg0, %c0_i32, %c0_i32_0 : i32, i32, i32
  }
}

module attributes {stable_mosaic.version = 11 : i64} {
  func.func @_bn_residual_relu_kernel(%arg0: i32, %arg1: memref<1x16x18x32xf32, #tpu.memory_space<vmem>>, %arg2: memref<1x32xf32, #tpu.memory_space<vmem>>, %arg3: memref<1x32xf32, #tpu.memory_space<vmem>>, %arg4: memref<1x16x16x32xf32, #tpu.memory_space<vmem>>, %arg5: memref<1x16x16x32xf32, #tpu.memory_space<vmem>>) attributes {dimension_semantics = [#tpu.dimension_semantics<parallel>], iteration_bounds = array<i64: 2>, scalar_prefetch = 0 : i64, scratch_operands = 0 : i64, tpu.core_type = #tpu.core_type<tc>, window_params = [{transform_indices = @transform_0, window_bounds = array<i64: 1, 16, 18, 32>}, {pipeline_mode = #tpu.pipeline_mode<synchronous>, transform_indices = @transform_1, window_bounds = array<i64: 1, 32>}, {pipeline_mode = #tpu.pipeline_mode<synchronous>, transform_indices = @transform_2, window_bounds = array<i64: 1, 32>}, {transform_indices = @transform_3, window_bounds = array<i64: 1, 16, 16, 32>}, {transform_indices = @transform_4, window_bounds = array<i64: 1, 16, 16, 32>}]} {
    %c0 = arith.constant 0 : index
    %c0_0 = arith.constant 0 : index
    %c0_1 = arith.constant 0 : index
    %c0_2 = arith.constant 0 : index
    %0 = vector.load %arg1[%c0, %c0_0, %c0_1, %c0_2] : memref<1x16x18x32xf32, #tpu.memory_space<vmem>>, vector<1x16x18x32xf32>
    %1 = vector.shape_cast %0 : vector<1x16x18x32xf32> to vector<16x18x32xf32>
    %2 = vector.extract_strided_slice %1 {offsets = [0, 0, 0], sizes = [16, 16, 32], strides = [1, 1, 1]} : vector<16x18x32xf32> to vector<16x16x32xf32>
    %c0_3 = arith.constant 0 : index
    %c0_4 = arith.constant 0 : index
    %3 = vector.load %arg2[%c0_3, %c0_4] : memref<1x32xf32, #tpu.memory_space<vmem>>, vector<1x32xf32>
    %4 = vector.shape_cast %3 : vector<1x32xf32> to vector<1x1x32xf32>
    %c0_5 = arith.constant 0 : index
    %c0_6 = arith.constant 0 : index
    %5 = vector.load %arg3[%c0_5, %c0_6] : memref<1x32xf32, #tpu.memory_space<vmem>>, vector<1x32xf32>
    %6 = vector.shape_cast %5 : vector<1x32xf32> to vector<1x1x32xf32>
    %7 = vector.broadcast %4 : vector<1x1x32xf32> to vector<16x16x32xf32>
    %8 = arith.mulf %2, %7 : vector<16x16x32xf32>
    %9 = vector.broadcast %6 : vector<1x1x32xf32> to vector<16x16x32xf32>
    %10 = arith.addf %8, %9 : vector<16x16x32xf32>
    %c0_7 = arith.constant 0 : index
    %c0_8 = arith.constant 0 : index
    %c0_9 = arith.constant 0 : index
    %c0_10 = arith.constant 0 : index
    %11 = vector.load %arg4[%c0_7, %c0_8, %c0_9, %c0_10] : memref<1x16x16x32xf32, #tpu.memory_space<vmem>>, vector<1x16x16x32xf32>
    %12 = vector.shape_cast %11 : vector<1x16x16x32xf32> to vector<16x16x32xf32>
    %13 = arith.addf %10, %12 : vector<16x16x32xf32>
    %cst = arith.constant 0.000000e+00 : f32
    %14 = vector.broadcast %cst : f32 to vector<16x16x32xf32>
    %15 = arith.maximumf %13, %14 : vector<16x16x32xf32>
    %c0_11 = arith.constant 0 : index
    %c0_12 = arith.constant 0 : index
    %c0_13 = arith.constant 0 : index
    %c0_14 = arith.constant 0 : index
    %16 = vector.load %arg5[%c0_11, %c0_12, %c0_13, %c0_14] : memref<1x16x16x32xf32, #tpu.memory_space<vmem>>, vector<1x16x16x32xf32>
    %17 = vector.shape_cast %16 : vector<1x16x16x32xf32> to vector<16x16x32xf32>
    %18 = vector.shape_cast %15 : vector<16x16x32xf32> to vector<1x16x16x32xf32>
    tpu.vector_store %arg5[%c0_11, %c0_12, %c0_13, %c0_14], %18 {strides = array<i32>} : memref<1x16x16x32xf32, #tpu.memory_space<vmem>>, vector<1x16x16x32xf32>,
    return
  }
  func.func @transform_0(%arg0: i32) -> (i32, i32, i32, i32) {
    %c0_i32 = arith.constant 0 : i32
    %c0_i32_0 = arith.constant 0 : i32
    %c0_i32_1 = arith.constant 0 : i32
    %c0_i32_2 = arith.constant 0 : i32
    return %arg0, %c0_i32, %c0_i32_0, %c0_i32_1 : i32, i32, i32, i32
  }
  func.func @transform_1(%arg0: i32) -> (i32, i32) {
    %c0_i32 = arith.constant 0 : i32
    %c0_i32_0 = arith.constant 0 : i32
    %c0_i32_1 = arith.constant 0 : i32
    return %c0_i32, %c0_i32_0 : i32, i32
  }
  func.func @transform_2(%arg0: i32) -> (i32, i32) {
    %c0_i32 = arith.constant 0 : i32
    %c0_i32_0 = arith.constant 0 : i32
    %c0_i32_1 = arith.constant 0 : i32
    return %c0_i32, %c0_i32_0 : i32, i32
  }
  func.func @transform_3(%arg0: i32) -> (i32, i32, i32, i32) {
    %c0_i32 = arith.constant 0 : i32
    %c0_i32_0 = arith.constant 0 : i32
    %c0_i32_1 = arith.constant 0 : i32
    %c0_i32_2 = arith.constant 0 : i32
    return %arg0, %c0_i32, %c0_i32_0, %c0_i32_1 : i32, i32, i32, i32
  }
  func.func @transform_4(%arg0: i32) -> (i32, i32, i32, i32) {
    %c0_i32 = arith.constant 0 : i32
    %c0_i32_0 = arith.constant 0 : i32
    %c0_i32_1 = arith.constant 0 : i32
    %c0_i32_2 = arith.constant 0 : i32
    return %arg0, %c0_i32, %c0_i32_0, %c0_i32_1 : i32, i32, i32, i32
  }
}

</mosaic_0001>

<bundles_post_ra>
// kernel: resblock_forward.5
= control target key start
LH: loop header
LB: loop body
LE: loop exit
PB: predicated region body
PF: predicated region fallthrough
CT: control target
= control target key end

     0   :  { %9 = vsyncpa [#allocation3], 0  ;;  %s993_s0 = inlined_call_operand.vmem [shape: f32[2,16,18,32], index: 0, kind: input, shape index: {}]   ;;  %s994_s1 = inlined_call_operand.vmem [shape: f32[1,32], index: 1, kind: input, shape index: {}]   ;;  %s995_s2 = inlined_call_operand.vmem [shape: f32[1,32], index: 2, kind: input, shape index: {}]   ;;  %s996_s3 = inlined_call_operand.vmem [shape: f32[2,16,16,32], index: 3, kind: input, shape index: {}]   ;;  %s997_s4 = inlined_call_operand.hbm [shape: f32[2,16,16,32], index: 4, kind: output, shape index: {}]  }
   0x1   :  { %11 = vsyncpa [#allocation3 + $0x1], 0  ;;  %s689_s15 = smov 0   ;;  %s691_s16 = smov 0  }
   0x2   :  { %s693_s17 = smov 0   ;;  %s695_s18 = smov 0  }
   0x3 LB: > { %s710_s19 = sadd.s32 4294967295, %s660_s18   ;;  %s539_s20 = sadd.s32 4294967294, %s660_s18   ;;  %s660_s18 = sphi %s695_s18, %s1003_s18   ;;  %s656_s17 = sphi %s693_s17, %s1002_s17   ;;  %s652_s16 = sphi %s691_s16, %s1001_s16   ;;  %s648_s15 = sphi %s689_s15, %s1000_s15  }
   0x4   : > { %s714_s21 = sadd.s32 1, %s660_s18   ;;  %s118_s22 = sadd.s32 1, %s656_s17 }
   0x5   : > { %s115_s23 = ssub.s32 %s660_s18, %s714_s21  ;;  %p128_p0 = scmp.ne.s32.totalorder %s656_s17, %s652_s16 }
   0x6   : > { %p116_p1 = scmp.eq.s32.totalorder %s115_s23, 0  ;;  %p129_p2 = scmp.eq.s32.totalorder %s710_s19, 1 }
   0x7   : > { %p134_p3 = scmp.ne.s32.totalorder %s652_s16, %s648_s15  ;;  %p135_p4 = scmp.eq.s32.totalorder %s539_s20, 1 }
   0x8   : > { %s725_s24 = scalar_select %p116_p1, %s656_s17, %s118_s22  }
   0x9   : > { %p727_p5 = por %p129_p2, %p128_p0  ;;  %p731_p6 = por %p135_p4, %p134_p3 }
   0xa   : > { %p542_p7 = scmp.ge.s32.totalorder %s660_s18, 1  ;;  %p175_p8 = scmp.lt.s32.totalorder %s660_s18, 3 }
   0xc   : > { %p176_p9 = pnand %p542_p7, %p175_p8 }
   0xd   : > { %p206_p10 = scmp.lt.s32.totalorder (!%p176_p9), %s710_s19, 1  ;;  %s203_s14 = sand.u32 (!%p176_p9), 1, %s652_s16  }
   0xe   : > { %179 = sbr.rel (%p176_p9) target bundleno = 68 (0x44), region = 36  ;;  %s777_s20 = sshll.u32 (!%p176_p9), %s203_s14, 8 }
   0xf   : > { %s803_s22 = scalar_lea.vmem (!%p176_p9), [#allocation2], %s777_s20  ;;  %s553_s23 = sshll.u32 (!%p176_p9), %s710_s19, 8 }
  0x10   : > { %s450_s5 = scalar_lea.sflag (!%p176_p9), [#allocation3], %s203_s14  ;;  %s618_s10 = scalar_lea.hbm (!%p176_p9), %s997_s4, 512 }
  0x13   : > { %s207_s27 = scalar_select %p206_p10, %s710_s19, 1  ;;  %v742_v0 = vld [vmem:[%s994_s1] ss:$0 sm:$0xff]  ;;  %vm416_vm0 = vcmask 261120  }
  0x14   : > { %v757_v1 = vld [vmem:[%s995_s2] ss:$0 sm:$0xff] }
  0x15   : > { %s554_s28 = smul.u32 384, %s207_s27  ;;  %s552_s29 = sshll.u32 %s207_s27, 8 }
  0x16   : > { %s747_s8 = scalar_lea.vmem %s996_s3, %s552_s29  ;;  %s462_s29 = sshll.u32 %s803_s22, 4  ;;  %s463_s29 = int_to_ptr.vmem [resolvable:$true] %s462_s29 }
  0x17   : > { %s752_s11 = scalar_lea.vmem %s993_s0, %s554_s28  ;;  %v320_v3 = vld [vmem:[%s747_s8] sm:$0xff]  ;;  %v321_v8 = vld [vmem:[%s747_s8 + $0x8] sm:$0xff]  ;;  %v322_v12 = vld [vmem:[%s747_s8 + $0x10] sm:$0xff]  ;;  %s461_s28 = scalar_lea.hbm %s997_s4, %s553_s23 }
  0x18   : > { %v216_v2 = vld [vmem:[%s752_s11] sm:$0xff]  ;;  %v217_v4 = vld [vmem:[%s752_s11 + $0x8] sm:$0xff]  ;;  %v218_v5 = vld [vmem:[%s752_s11 + $0x18] sm:$0xff]  ;;  %s464_s30 = sshll.u32 %s461_s28, 4  ;;  %s465_s30 = int_to_ptr.hbm [resolvable:$true] %s464_s30 }
  0x19   : > { %v253_v6 = vmul.f32 %v742_v0, %v216_v2  ;;  %v254_v7 = vmul.f32 %v742_v0, %v217_v4  ;;  %v255_v9 = vmul.f32 %v742_v0, %v218_v5  ;;  %v219_v10 = vld [vmem:[%s752_s11 + $0x20] sm:$0xff]  ;;  %v220_v11 = vld [vmem:[%s752_s11 + $0x30] sm:$0xff]  ;;  %v323_v14 = vld [vmem:[%s747_s8 + $0x18] sm:$0xff]  ;;  %s612_s6 = sshra.s32 %s465_s30, 4  ;;  %s613_s6 = int_to_ptr.hbm [resolvable:$true] %s612_s6 }
  0x1a   : > { %v256_v13 = vmul.f32 %v742_v0, %v219_v10  ;;  %v257_v15 = vmul.f32 %v742_v0, %v220_v11  ;;  %v221_v16 = vld [vmem:[%s752_s11 + $0x38] sm:$0xff]  ;;  %v324_v20 = vld [vmem:[%s747_s8 + $0x20] sm:$0xff]  ;;  %v222_v22 = vld [vmem:[%s752_s11 + $0x48] sm:$0xff]  ;;  %s614_s7 = scalar_lea.hbm %s613_s6, 256  ;;  %p619_p0 = scmp.lt.s32.totalorder %s613_s6, %s997_s4 }
  0x1b   : > { %v288_v17 = vadd.f32 %v757_v1, %v253_v6  ;;  %v289_v18 = vadd.f32 %v757_v1, %v254_v7  ;;  %v290_v19 = vadd.f32 %v757_v1, %v255_v9  ;;  %v258_v21 = vmul.f32 %v742_v0, %v221_v16  ;;  %v223_v23 = vld [vmem:[%s752_s11 + $0x50] sm:$0xff]  ;;  %v325_v26 = vld [vmem:[%s747_s8 + $0x28] sm:$0xff]  ;;  %v327_v34 = vld [vmem:[%s747_s8 + $0x38] sm:$0xff]  ;;  %p615_p11 = scmp.ne.s32.totalorder %s613_s6, %s614_s7  ;;  %p620_p1 = scmp.lt.s32.totalorder %s618_s10, %s614_s7 }
  0x1c   : > { %v291_v24 = vadd.f32 %v757_v1, %v256_v13  ;;  %v292_v25 = vadd.f32 %v757_v1, %v257_v15  ;;  %v259_v27 = vmul.f32 %v742_v0, %v222_v22  ;;  %v260_v28 = vmul.f32 %v742_v0, %v223_v23  ;;  %v326_v33 = vld [vmem:[%s747_s8 + $0x30] sm:$0xff]  ;;  %v224_v39 = vld [vmem:[%s752_s11 + $0x60] sm:$0xff]  ;;  %v225_v40 = vld [vmem:[%s752_s11 + $0x68] sm:$0xff] }
  0x1d   : > { %v352_v29 = vadd.f32 %v320_v3, %v288_v17  ;;  %v353_v30 = vadd.f32 %v321_v8, %v289_v18  ;;  %v354_v31 = vadd.f32 %v322_v12, %v290_v19  ;;  %v293_v32 = vadd.f32 %v757_v1, %v258_v21  ;;  %v226_v41 = vld [vmem:[%s752_s11 + $0x78] sm:$0xff]  ;;  %v227_v46 = vld [vmem:[%s752_s11 + $0x80] sm:$0xff]  ;;  %v228_v47 = vld [vmem:[%s752_s11 + $0x90] sm:$0xff]  ;;  %p616_p12 = pnand %p615_p11, %p727_p5  ;;  %p621_p2 = por %p620_p1, %p619_p0 }
  0x1e   : > { %v355_v35 = vadd.f32 %v323_v14, %v291_v24  ;;  %v356_v36 = vadd.f32 %v324_v20, %v292_v25  ;;  %v294_v37 = vadd.f32 %v757_v1, %v259_v27  ;;  %v295_v38 = vadd.f32 %v757_v1, %v260_v28  ;;  %v229_v52 = vld [vmem:[%s752_s11 + $0x98] sm:$0xff]  ;;  %v230_v57 = vld [vmem:[%s752_s11 + $0xa8] sm:$0xff]  ;;  %v231_v58 = vld [vmem:[%s752_s11 + $0xb0] sm:$0xff] }
  0x1f   : > { %v384_v42 = vmax.f32 %v352_v29, 0.0  ;;  %v385_v43 = vmax.f32 %v353_v30, 0.0  ;;  %v386_v44 = vmax.f32 %v354_v31, 0.0  ;;  %v357_v45 = vadd.f32 %v325_v26, %v293_v32  ;;  %v328_v61 = vld [vmem:[%s747_s8 + $0x40] sm:$0xff]  ;;  %v329_v62 = vld [vmem:[%s747_s8 + $0x48] sm:$0xff]  ;;  %v330_v63 = vld [vmem:[%s747_s8 + $0x50] sm:$0xff]  ;;  %p617_p13 = pneg %p616_p12 }
  0x20   : > { %v387_v48 = vmax.f32 %v355_v35, 0.0  ;;  %v388_v49 = vmax.f32 %v356_v36, 0.0  ;;  %v358_v50 = vadd.f32 %v326_v33, %v294_v37  ;;  %v359_v51 = vadd.f32 %v327_v34, %v295_v38  ;;  %v331_v7 = vld [vmem:[%s747_s8 + $0x58] sm:$0xff]  ;;  %v332_v8 = vld [vmem:[%s747_s8 + $0x60] sm:$0xff]  ;;  %v333_v12 = vld [vmem:[%s747_s8 + $0x68] sm:$0xff] }
  0x21   : > { %417 = vst.msk [vmem:[%s803_s22] sm:$0xff] %vm416_vm0, %v384_v42  ;;  %v389_v53 = vmax.f32 %v357_v45, 0.0  ;;  %v261_v54 = vmul.f32 %v742_v0, %v224_v39  ;;  %v262_v55 = vmul.f32 %v742_v0, %v225_v40  ;;  %v263_v56 = vmul.f32 %v742_v0, %v226_v41  ;;  %v334_v19 = vld [vmem:[%s747_s8 + $0x70] sm:$0xff]  ;;  %v335_v20 = vld [vmem:[%s747_s8 + $0x78] sm:$0xff]  ;;  %v232_v25 = vld [vmem:[%s752_s11 + $0xc0] sm:$0xff]  ;;  %p622_p3 = pnand %p621_p2, %p617_p13 }
  0x22   : > { %418 = vst.msk [vmem:[%s803_s22 + $0x8] sm:$0xff] %vm416_vm0, %v385_v43  ;;  %v390_v59 = vmax.f32 %v358_v50, 0.0  ;;  %v391_v60 = vmax.f32 %v359_v51, 0.0  ;;  %v264_v2 = vmul.f32 %v742_v0, %v227_v46  ;;  %v265_v3 = vmul.f32 %v742_v0, %v228_v47  ;;  %v233_v26 = vld [vmem:[%s752_s11 + $0xc8] sm:$0xff]  ;;  %v234_v27 = vld [vmem:[%s752_s11 + $0xd8] sm:$0xff]  ;;  %v235_v32 = vld [vmem:[%s752_s11 + $0xe0] sm:$0xff] }
  0x23   : > { %419 = vst.msk [vmem:[%s803_s22 + $0x10] sm:$0xff] %vm416_vm0, %v386_v44  ;;  %v296_v4 = vadd.f32 %v757_v1, %v261_v54  ;;  %v297_v5 = vadd.f32 %v757_v1, %v262_v55  ;;  %v298_v6 = vadd.f32 %v757_v1, %v263_v56  ;;  %v266_v9 = vmul.f32 %v742_v0, %v229_v52  ;;  %v236_v33 = vld [vmem:[%s752_s11 + $0xf0] sm:$0xff]  ;;  %v237_v38 = vld [vmem:[%s752_s11 + $0xf8] sm:$0xff]  ;;  %v238_v43 = vld [vmem:[%s752_s11 + $0x108] sm:$0xff] }
  0x24   : > { %420 = vst.msk [vmem:[%s803_s22 + $0x18] sm:$0xff] %vm416_vm0, %v387_v48  ;;  %v299_v10 = vadd.f32 %v757_v1, %v264_v2  ;;  %v300_v11 = vadd.f32 %v757_v1, %v265_v3  ;;  %v267_v13 = vmul.f32 %v742_v0, %v230_v57  ;;  %v268_v14 = vmul.f32 %v742_v0, %v231_v58  ;;  %v239_v44 = vld [vmem:[%s752_s11 + $0x110] sm:$0xff]  ;;  %v336_v47 = vld [vmem:[%s747_s8 + $0x80] sm:$0xff]  ;;  %v337_v48 = vld [vmem:[%s747_s8 + $0x88] sm:$0xff] }
  0x25   : > { %421 = vst.msk [vmem:[%s803_s22 + $0x20] sm:$0xff] %vm416_vm0, %v388_v49  ;;  %v360_v15 = vadd.f32 %v328_v61, %v296_v4  ;;  %v361_v16 = vadd.f32 %v329_v62, %v297_v5  ;;  %v362_v17 = vadd.f32 %v330_v63, %v298_v6  ;;  %v301_v18 = vadd.f32 %v757_v1, %v266_v9  ;;  %v338_v49 = vld [vmem:[%s747_s8 + $0x90] sm:$0xff]  ;;  %v339_v55 = vld [vmem:[%s747_s8 + $0x98] sm:$0xff]  ;;  %v340_v56 = vld [vmem:[%s747_s8 + $0xa0] sm:$0xff] }
  0x26   : > { %422 = vst.msk [vmem:[%s803_s22 + $0x28] sm:$0xff] %vm416_vm0, %v389_v53  ;;  %v363_v21 = vadd.f32 %v331_v7, %v299_v10  ;;  %v364_v22 = vadd.f32 %v332_v8, %v300_v11  ;;  %v302_v23 = vadd.f32 %v757_v1, %v267_v13  ;;  %v303_v24 = vadd.f32 %v757_v1, %v268_v14  ;;  %v342_v5 = vld [vmem:[%s747_s8 + $0xb0] sm:$0xff]  ;;  %v343_v6 = vld [vmem:[%s747_s8 + $0xb8] sm:$0xff]  ;;  %v240_v11 = vld [vmem:[%s752_s11 + $0x120] sm:$0xff] }
  0x27   : > { %423 = vst.msk [vmem:[%s803_s22 + $0x30] sm:$0xff] %vm416_vm0, %v390_v59  ;;  %v392_v28 = vmax.f32 %v360_v15, 0.0  ;;  %v393_v29 = vmax.f32 %v361_v16, 0.0  ;;  %v394_v30 = vmax.f32 %v362_v17, 0.0  ;;  %v365_v31 = vadd.f32 %v333_v12, %v301_v18  ;;  %v241_v12 = vld [vmem:[%s752_s11 + $0x128] sm:$0xff]  ;;  %v242_v13 = vld [vmem:[%s752_s11 + $0x138] sm:$0xff] }
  0x28   : > { %424 = vst.msk [vmem:[%s803_s22 + $0x38] sm:$0xff] %vm416_vm0, %v391_v60  ;;  %v395_v34 = vmax.f32 %v363_v21, 0.0  ;;  %v396_v35 = vmax.f32 %v364_v22, 0.0  ;;  %v366_v36 = vadd.f32 %v334_v19, %v302_v23  ;;  %v367_v37 = vadd.f32 %v335_v20, %v303_v24  ;;  %v341_v60 = vld [vmem:[%s747_s8 + $0xa8] sm:$0xff]  ;;  %v243_v18 = vld [vmem:[%s752_s11 + $0x140] sm:$0xff]  ;;  %v244_v19 = vld [vmem:[%s752_s11 + $0x150] sm:$0xff] }
  0x29   : > { %425 = vst.msk [vmem:[%s803_s22 + $0x40] sm:$0xff] %vm416_vm0, %v392_v28  ;;  %v397_v39 = vmax.f32 %v365_v31, 0.0  ;;  %v269_v40 = vmul.f32 %v742_v0, %v232_v25  ;;  %v270_v41 = vmul.f32 %v742_v0, %v233_v26  ;;  %v271_v42 = vmul.f32 %v742_v0, %v234_v27  ;;  %v245_v24 = vld [vmem:[%s752_s11 + $0x158] sm:$0xff] }
  0x2a   : > { %426 = vst.msk [vmem:[%s803_s22 + $0x48] sm:$0xff] %vm416_vm0, %v393_v29  ;;  %v398_v45 = vmax.f32 %v366_v36, 0.0  ;;  %v399_v46 = vmax.f32 %v367_v37, 0.0  ;;  %v272_v50 = vmul.f32 %v742_v0, %v235_v32  ;;  %v273_v51 = vmul.f32 %v742_v0, %v236_v33  ;;  %v246_v29 = vld [vmem:[%s752_s11 + $0x168] sm:$0xff]  ;;  %v344_v33 = vld [vmem:[%s747_s8 + $0xc0] sm:$0xff] }
  0x2b   : > { %427 = vst.msk [vmem:[%s803_s22 + $0x50] sm:$0xff] %vm416_vm0, %v394_v30  ;;  %v304_v52 = vadd.f32 %v757_v1, %v269_v40  ;;  %v305_v53 = vadd.f32 %v757_v1, %v270_v41  ;;  %v306_v54 = vadd.f32 %v757_v1, %v271_v42  ;;  %v274_v57 = vmul.f32 %v742_v0, %v237_v38  ;;  %v247_v30 = vld [vmem:[%s752_s11 + $0x170] sm:$0xff]  ;;  %v347_v41 = vld [vmem:[%s747_s8 + $0xd8] sm:$0xff]  ;;  %v348_v42 = vld [vmem:[%s747_s8 + $0xe0] sm:$0xff] }
  0x2c   : > { %428 = vst.msk [vmem:[%s803_s22 + $0x58] sm:$0xff] %vm416_vm0, %v395_v34  ;;  %v307_v58 = vadd.f32 %v757_v1, %v272_v50  ;;  %v308_v59 = vadd.f32 %v757_v1, %v273_v51  ;;  %v275_v61 = vmul.f32 %v742_v0, %v238_v43  ;;  %v276_v62 = vmul.f32 %v742_v0, %v239_v44  ;;  %v345_v34 = vld [vmem:[%s747_s8 + $0xc8] sm:$0xff] }
  0x2d   : > { %429 = vst.msk [vmem:[%s803_s22 + $0x60] sm:$0xff] %vm416_vm0, %v396_v35  ;;  %v368_v63 = vadd.f32 %v336_v47, %v304_v52  ;;  %v369_v2 = vadd.f32 %v337_v48, %v305_v53  ;;  %v370_v3 = vadd.f32 %v338_v49, %v306_v54  ;;  %v309_v4 = vadd.f32 %v757_v1, %v274_v57  ;;  %v346_v35 = vld [vmem:[%s747_s8 + $0xd0] sm:$0xff]  ;;  %v351_v54 = vld [vmem:[%s747_s8 + $0xf8] sm:$0xff] }
  0x2e   : > { %430 = vst.msk [vmem:[%s803_s22 + $0x68] sm:$0xff] %vm416_vm0, %v397_v39  ;;  %v371_v7 = vadd.f32 %v339_v55, %v307_v58  ;;  %v372_v8 = vadd.f32 %v340_v56, %v308_v59  ;;  %v310_v9 = vadd.f32 %v757_v1, %v275_v61  ;;  %v311_v10 = vadd.f32 %v757_v1, %v276_v62  ;;  %v350_v53 = vld [vmem:[%s747_s8 + $0xf0] sm:$0xff] }
  0x2f   : > { %431 = vst.msk [vmem:[%s803_s22 + $0x70] sm:$0xff] %vm416_vm0, %v398_v45  ;;  %v400_v14 = vmax.f32 %v368_v63, 0.0  ;;  %v401_v15 = vmax.f32 %v369_v2, 0.0  ;;  %v402_v16 = vmax.f32 %v370_v3, 0.0  ;;  %v373_v17 = vadd.f32 %v341_v60, %v309_v4 }
  0x30   : > { %432 = vst.msk [vmem:[%s803_s22 + $0x78] sm:$0xff] %vm416_vm0, %v399_v46  ;;  %v403_v20 = vmax.f32 %v371_v7, 0.0  ;;  %v404_v21 = vmax.f32 %v372_v8, 0.0  ;;  %v374_v22 = vadd.f32 %v342_v5, %v310_v9  ;;  %v375_v23 = vadd.f32 %v343_v6, %v311_v10  ;;  %v349_v46 = vld [vmem:[%s747_s8 + $0xe8] sm:$0xff] }
  0x31   : > { %433 = vst.msk [vmem:[%s803_s22 + $0x80] sm:$0xff] %vm416_vm0, %v400_v14  ;;  %v405_v25 = vmax.f32 %v373_v17, 0.0  ;;  %v277_v26 = vmul.f32 %v742_v0, %v240_v11  ;;  %v278_v27 = vmul.f32 %v742_v0, %v241_v12  ;;  %v279_v28 = vmul.f32 %v742_v0, %v242_v13 }
  0x32   : > { %434 = vst.msk [vmem:[%s803_s22 + $0x88] sm:$0xff] %vm416_vm0, %v401_v15  ;;  %v406_v31 = vmax.f32 %v374_v22, 0.0  ;;  %v407_v32 = vmax.f32 %v375_v23, 0.0  ;;  %v280_v36 = vmul.f32 %v742_v0, %v243_v18  ;;  %v281_v37 = vmul.f32 %v742_v0, %v244_v19 }
  0x33   : > { %435 = vst.msk [vmem:[%s803_s22 + $0x90] sm:$0xff] %vm416_vm0, %v402_v16  ;;  %v312_v38 = vadd.f32 %v757_v1, %v277_v26  ;;  %v313_v39 = vadd.f32 %v757_v1, %v278_v27  ;;  %v314_v40 = vadd.f32 %v757_v1, %v279_v28  ;;  %v282_v43 = vmul.f32 %v742_v0, %v245_v24 }
  0x34   : > { %436 = vst.msk [vmem:[%s803_s22 + $0x98] sm:$0xff] %vm416_vm0, %v403_v20  ;;  %v315_v44 = vadd.f32 %v757_v1, %v280_v36  ;;  %v316_v45 = vadd.f32 %v757_v1, %v281_v37  ;;  %v283_v47 = vmul.f32 %v742_v0, %v246_v29  ;;  %v284_v48 = vmul.f32 %v742_v0, %v247_v30 }
  0x35   : > { %437 = vst.msk [vmem:[%s803_s22 + $0xa0] sm:$0xff] %vm416_vm0, %v404_v21  ;;  %v376_v49 = vadd.f32 %v344_v33, %v312_v38  ;;  %v377_v50 = vadd.f32 %v345_v34, %v313_v39  ;;  %v378_v51 = vadd.f32 %v346_v35, %v314_v40  ;;  %v317_v52 = vadd.f32 %v757_v1, %v282_v43 }
  0x36   : > { %438 = vst.msk [vmem:[%s803_s22 + $0xa8] sm:$0xff] %vm416_vm0, %v405_v25  ;;  %v379_v55 = vadd.f32 %v347_v41, %v315_v44  ;;  %v380_v56 = vadd.f32 %v348_v42, %v316_v45  ;;  %v318_v57 = vadd.f32 %v757_v1, %v283_v47  ;;  %v319_v0 = vadd.f32 %v757_v1, %v284_v48 }
  0x37   : > { %439 = vst.msk [vmem:[%s803_s22 + $0xb0] sm:$0xff] %vm416_vm0, %v406_v31  ;;  %v408_v58 = vmax.f32 %v376_v49, 0.0  ;;  %v409_v59 = vmax.f32 %v377_v50, 0.0  ;;  %v410_v60 = vmax.f32 %v378_v51, 0.0  ;;  %v381_v61 = vadd.f32 %v349_v46, %v317_v52 }
  0x38   : > { %440 = vst.msk [vmem:[%s803_s22 + $0xb8] sm:$0xff] %vm416_vm0, %v407_v32  ;;  %v411_v62 = vmax.f32 %v379_v55, 0.0  ;;  %v382_v63 = vadd.f32 %v350_v53, %v318_v57  ;;  %v383_v2 = vadd.f32 %v351_v54, %v319_v0  ;;  %v412_v1 = vmax.f32 %v380_v56, 0.0 }
  0x39   : > { %441 = vst.msk [vmem:[%s803_s22 + $0xc0] sm:$0xff] %vm416_vm0, %v408_v58  ;;  %v413_v3 = vmax.f32 %v381_v61, 0.0 }
  0x3a   : > { %442 = vst.msk [vmem:[%s803_s22 + $0xc8] sm:$0xff] %vm416_vm0, %v409_v59  ;;  %v414_v4 = vmax.f32 %v382_v63, 0.0  ;;  %v415_v5 = vmax.f32 %v383_v2, 0.0 }
  0x3b   : > { %443 = vst.msk [vmem:[%s803_s22 + $0xd0] sm:$0xff] %vm416_vm0, %v410_v60 }
  0x3c   : > { %444 = vst.msk [vmem:[%s803_s22 + $0xd8] sm:$0xff] %vm416_vm0, %v411_v62 }
  0x3d   : > { %445 = vst.msk [vmem:[%s803_s22 + $0xe0] sm:$0xff] %vm416_vm0, %v412_v1 }
  0x3e   : > { %446 = vst.msk [vmem:[%s803_s22 + $0xe8] sm:$0xff] %vm416_vm0, %v413_v3 }
  0x3f   : > { %447 = vst.msk [vmem:[%s803_s22 + $0xf0] sm:$0xff] %vm416_vm0, %v414_v4 }
  0x40   : > { %448 = vst.msk [vmem:[%s803_s22 + $0xf8] sm:$0xff] %vm416_vm0, %v415_v5 }
  0x41   : > { %625 = shalt.err (!%p622_p3)
}
  0x42   : > { %s662_s13 = smov 128   ;;  %s663_s14 = smov 8  }
  0x43   : > { %555 = dma.vmem_to_hbm [thread:$0]  (%p727_p5), %s463_s29, 4096, %s465_s30, %s450_s5, %s662_s13, %s662_s13, %s663_s14  }
  0x44 PF: > { %p561_p4 = scmp.ge.s32.totalorder %s660_s18, 2  ;;  %s479_s20 = sand.u32 1, %s648_s15  }
  0x45   : > { %s480_s22 = scalar_lea.sflag [#allocation3], %s479_s20 }
  0x46   : > { %p558_p7 = pnand %p561_p4, %p731_p6 }
  0x48   : > { %p559_p8 = pneg %p558_p7 }
  0x4a   : > { %643 = dma.done.wait (%p559_p8), %s480_s22, 4096  }
  0x4b   : > { %645 = vsyncadd (%p559_p8), %s480_s22, 4294963200  ;;  %p14_p9 = scmp.ge.s32.totalorder %s714_s21, 4   ;;  %s1000_s15 = smov %s652_s16 }
  0x4c   : > { %s1001_s16 = smov %s656_s17  ;;  %s1002_s17 = smov %s725_s24 }
  0x4d   : > { %s1003_s18 = smov %s714_s21  ;;  %16 = sbr.rel (!%p14_p9) target bundleno = 3 (0x3), region = 74 }
  0x52   :  { %486 = vsyncpa [#allocation3], 1 }
  0x53   :  { %488 = vsyncpa [#allocation3 + $0x1], 1 }

// kernel: resblock_forward.4
= control target key start
LH: loop header
LB: loop body
LE: loop exit
PB: predicated region body
PF: predicated region fallthrough
CT: control target
= control target key end

     0   :  { %s3721_s24 = smov 0   ;;  %s5135_s0 = inlined_call_operand.vmem [shape: bf16[2,328,32], index: 0, kind: input, shape index: {}]   ;;  %s5136_s1 = inlined_call_operand.vmem [shape: f32[1,32], index: 1, kind: input, shape index: {}]   ;;  %s5137_s2 = inlined_call_operand.vmem [shape: f32[1,32], index: 2, kind: input, shape index: {}]   ;;  %s5138_s3 = inlined_call_operand.vmem [shape: bf16[9,32,32], index: 3, kind: input, shape index: {}]   ;;  %s5139_s4 = inlined_call_operand.vmem [shape: f32[288,1], index: 4, kind: input, shape index: {}]   ;;  %s5140_s5 = inlined_call_operand.vmem [shape: f32[2,288,32], index: 5, kind: output, shape index: {0}]   ;;  %s5141_s6 = inlined_call_operand.vmem [shape: f32[2,1,32], index: 6, kind: output, shape index: {1}]   ;;  %s5142_s7 = inlined_call_operand.vmem [shape: f32[2,1,32], index: 7, kind: output, shape index: {2}]  }
   0x1 LB: > { %s3253_s25 = sadd.s32 4294967295, %s3678_s24   ;;  %p3257_p0 = scmp.ge.s32.totalorder %s3678_s24, 1  ;;  %s3678_s24 = sphi %s3721_s24, %s18_s24  }
   0x2   : > { %p242_p1 = scmp.lt.s32.totalorder %s3678_s24, 3 }
   0x4   : > { %p243_p2 = pnand %p3257_p0, %p242_p1 }
   0x6   : > { %246 = sbr.rel (%p243_p2) target bundleno = 842 (0x34a), region = 40 }
   0xb   : > { %v3531_v0 = vld [vmem:[%s5138_s3 + $0x18] sm:$0xff]  ;;  %p280_p3 = scmp.lt.s32.totalorder %s3253_s25, 1  ;;  %v3530_v1 = vld [vmem:[%s5138_s3 + $0x10] sm:$0xff]  ;;  %v3533_v2 = vld [vmem:[%s5138_s3 + $0x28] sm:$0xff]  ;;  %vm538_vm0 = vsmask.f32 7424 }
   0xc   : > { %3645 = vmatpush.bf16.msra.mxu1 %v3531_v0  ;;  %3646 = vmatpush.bf16.msra.mxu2 %v3531_v0  ;;  %v3529_v3 = vld [vmem:[%s5138_s3 + $0x8] sm:$0xff]  ;;  %v3755_v5 = vld [vmem:[%s5136_s1] ss:$0 sm:$0xff]  ;;  %vm699_vm1 = vcmask 261120   ;;  %vm1024_vm2 = vcmask 1046528   ;;  %vm1726_vm5 = vcmask 1045504  }
   0xd   : > { %s5311_s25 = smov (!%p280_p3, %s3253_s25), 1  ;;  %760 = vmatpush.bf16.msra.mxu0 %v3531_v0  ;;  %3647 = vmatpush.bf16.msra.mxu3 %v3531_v0  ;;  %v3537_v4 = vld [vmem:[%s5138_s3 + $0x48] sm:$0xff]  ;;  %v3763_v13 = vld [vmem:[%s5137_s2] ss:$0 sm:$0xff]  ;;  %vm1434_vm3 = vsmask.f32 6400 }
   0xe   : > { %s3651_s9 = smul.u32 164, %s5311_s25  ;;  %vm2136_vm4 = vsmask.f32 5376  ;;  %vm2428_vm6 = vcmask 1044480   ;;  %vm2996_vm7 = vcmask 253952   ;;  %s295_s15 = scalar_lea.vmem %s5142_s7, %s5311_s25 }
   0xf   : > { %s3652_s27 = smul.u32 288, %s5311_s25 }
  0x10   : > { %3648 = vmatpush.bf16.msra.mxu1 %v3530_v1  ;;  %3649 = vmatpush.bf16.msra.mxu2 %v3530_v1  ;;  %s3750_s16 = scalar_lea.vmem %s5135_s0, %s3651_s9 }
  0x11   : > { %761 = vmatpush.bf16.msra.mxu0 %v3530_v1  ;;  %v3630_v6 = vld [vmem:[%s3750_s16 + $0x28] sm:$0xff]   ;;  %v3631_v7 = vld [vmem:[%s3750_s16 + $0x30] sm:$0xff]   ;;  %v3636_v14 = vld [vmem:[%s3750_s16 + $0x58] sm:$0xff]   ;;  %3650 = vmatpush.bf16.msra.mxu3 %v3530_v1  ;;  %s4695_s30 = scalar_lea.vmem %s5140_s5, %s3652_s27 }
  0x12   : > { %v3635_v8 = vld [vmem:[%s3750_s16 + $0x50] sm:$0xff]   ;;  %v3568_v9 = vunpack.c.l.bf16 %v3630_v6  ;;  %v3569_v10 = vunpack.c.h.bf16 %v3630_v6  ;;  %v3572_v11 = vunpack.c.l.bf16 %v3631_v7  ;;  %v3573_v12 = vunpack.c.h.bf16 %v3631_v7  ;;  %v3547_v35 = vld [vmem:[%s3750_s16] sm:$0xff]   ;;  %v3626_v40 = vld [vmem:[%s3750_s16 + $0x8] sm:$0xff]  }
  0x13   : > { %v3588_v15 = vunpack.c.l.bf16 %v3635_v8  ;;  %v3589_v16 = vunpack.c.h.bf16 %v3635_v8  ;;  %v3592_v17 = vunpack.c.l.bf16 %v3636_v14  ;;  %v3593_v18 = vunpack.c.h.bf16 %v3636_v14  ;;  %v3632_v61 = vld [vmem:[%s3750_s16 + $0x38] sm:$0xff]  }
  0x14   : > { %1134 = vmatpush.bf16.msrb.mxu2 %v3533_v2  ;;  %907 = vmatpush.bf16.msrb.mxu1 %v3529_v3  ;;  %v393_v19 = vmul.f32 %v3755_v5, %v3568_v9  ;;  %v394_v20 = vmul.f32 %v3755_v5, %v3569_v10  ;;  %v395_v21 = vmul.f32 %v3755_v5, %v3572_v11  ;;  %v3548_v47 = vunpack.c.l.bf16 %v3547_v35 }
  0x15   : > { %1592 = vmatpush.bf16.msrb.mxu0 %v3537_v4  ;;  %v396_v22 = vmul.f32 %v3755_v5, %v3573_v12  ;;  %v403_v23 = vmul.f32 %v3755_v5, %v3588_v15  ;;  %v404_v24 = vmul.f32 %v3755_v5, %v3589_v16  ;;  %v405_v25 = vmul.f32 %v3755_v5, %v3592_v17  ;;  %v3637_v16 = vld [vmem:[%s3750_s16 + $0x60] sm:$0xff]  }
  0x16   : > { %v406_v26 = vmul.f32 %v3755_v5, %v3593_v18  ;;  %v438_v27 = vadd.f32 %v3763_v13, %v393_v19  ;;  %v439_v28 = vadd.f32 %v3763_v13, %v394_v20  ;;  %v440_v29 = vadd.f32 %v3763_v13, %v395_v21 }
  0x17   : > { %v441_v30 = vadd.f32 %v3763_v13, %v396_v22  ;;  %v448_v31 = vadd.f32 %v3763_v13, %v403_v23  ;;  %v449_v32 = vadd.f32 %v3763_v13, %v404_v24  ;;  %v450_v33 = vadd.f32 %v3763_v13, %v405_v25 }
  0x18   : > { %v451_v34 = vadd.f32 %v3763_v13, %v406_v26  ;;  %v479_v36 = vmax.f32 %v438_v27, 0.0  ;;  %v480_v37 = vmax.f32 %v439_v28, 0.0  ;;  %v481_v38 = vmax.f32 %v440_v29, 0.0  ;;  %v3627_v28 = vld [vmem:[%s3750_s16 + $0x10] sm:$0xff]  }
  0x19   : > { %v482_v39 = vmax.f32 %v441_v30, 0.0  ;;  %v489_v41 = vmax.f32 %v448_v31, 0.0  ;;  %v490_v42 = vmax.f32 %v449_v32, 0.0  ;;  %v491_v43 = vmax.f32 %v450_v33, 0.0 }
  0x1a   : > { %v492_v44 = vmax.f32 %v451_v34, 0.0  ;;  %v3784_v45 = vpack.c.bf16 %v480_v37, %v479_v36  ;;  %v3549_v48 = vunpack.c.h.bf16 %v3547_v35  ;;  %v3552_v51 = vunpack.c.l.bf16 %v3626_v40 }
  0x1b   : > { %v3786_v46 = vpack.c.bf16 %v482_v39, %v481_v38  ;;  %v3788_v49 = vpack.c.bf16 %v490_v42, %v489_v41  ;;  %v3553_v52 = vunpack.c.h.bf16 %v3626_v40  ;;  %v383_v56 = vmul.f32 %v3755_v5, %v3548_v47  ;;  %v3640_v47 = vld [vmem:[%s3750_s16 + $0x78] sm:$0xff]  }
  0x1c   : > { %5183 = vst [vmem:[#allocation2_spill] sm:$0xff] %v3784_v45  ;;  %v3790_v50 = vpack.c.bf16 %v492_v44, %v491_v43  ;;  %v3793_v53 = vshll.u32 %v3784_v45, 16  ;;  %v3796_v54 = vshrl.u32 %v3784_v45, 16  ;;  %v384_v60 = vmul.f32 %v3755_v5, %v3549_v48 }
  0x1d   : > { %5184 = vst [vmem:[#allocation3_spill] sm:$0xff] %v3786_v46  ;;  %v3799_v55 = vshll.u32 %v3786_v46, 16  ;;  %v3803_v57 = vshll.u32 %v3788_v49, 16  ;;  %v3806_v58 = vshrl.u32 %v3788_v49, 16  ;;  %v385_v0 = vmul.f32 %v3755_v5, %v3552_v51 }
  0x1e   : > { %5185 = vst [vmem:[#allocation4_spill] sm:$0xff] %v3793_v53  ;;  %v3809_v59 = vshll.u32 %v3790_v50, 16  ;;  %v5146_v62 = vrot.slane %v3793_v53, 1  ;;  %v386_v1 = vmul.f32 %v3755_v5, %v3553_v52  ;;  %v428_v4 = vadd.f32 %v3763_v13, %v383_v56 }
  0x1f   : > { %5186 = vst [vmem:[#allocation5_spill] sm:$0xff] %v3796_v54  ;;  %v589_v63 = vrot.slane %v3799_v55, 1  ;;  %v621_v2 = vrot.slane %v3803_v57, 1  ;;  %v429_v6 = vadd.f32 %v3763_v13, %v384_v60  ;;  %v430_v8 = vadd.f32 %v3763_v13, %v385_v0 }
  0x20   : > { %5187 = vst [vmem:[#allocation6_spill] sm:$0xff] %v3799_v55  ;;  %v629_v3 = vrot.slane %v3809_v59, 1  ;;  %v585_v7 = vor.u32 %v3796_v54, %v5146_v62  ;;  %v431_v9 = vadd.f32 %v3763_v13, %v386_v1  ;;  %v3576_v10 = vunpack.c.l.bf16 %v3632_v61 }
  0x21   : > { %5188 = vst [vmem:[#allocation7_spill] sm:$0xff] %v3803_v57  ;;  %v625_v11 = vor.u32 %v3806_v58, %v621_v2  ;;  %v469_v12 = vmax.f32 %v428_v4, 0.0  ;;  %v470_v14 = vmax.f32 %v429_v6, 0.0  ;;  %v3577_v15 = vunpack.c.h.bf16 %v3632_v61  ;;  %v3641_v4 = vld [vmem:[%s3750_s16 + $0x80] sm:$0xff]  }
  0x22   : > { %5189 = vst [vmem:[#allocation8_spill] sm:$0xff] %v3806_v58  ;;  %v590_v17 = vsel %vm538_vm0, %v585_v7, %v589_v63  ;;  %v471_v18 = vmax.f32 %v430_v8, 0.0  ;;  %v472_v19 = vmax.f32 %v431_v9, 0.0  ;;  %v397_v20 = vmul.f32 %v3755_v5, %v3576_v10 }
  0x23   : > { %3277 = vmatmul.msk.bf16.vlgmr.msra.gmra.mxu1 %vm699_vm1, %v590_v17  ;;  %v630_v21 = vsel %vm538_vm0, %v625_v11, %v629_v3  ;;  %v3834_v22 = vpack.c.bf16 %v470_v14, %v469_v12  ;;  %v398_v23 = vmul.f32 %v3755_v5, %v3577_v15  ;;  %v3596_v26 = vunpack.c.l.bf16 %v3637_v16  ;;  %v3633_v12 = vld [vmem:[%s3750_s16 + $0x40] sm:$0xff]   ;;  %v3535_v14 = vld [vmem:[%s5138_s3 + $0x38] sm:$0xff] }
  0x24   : > { %3282 = vmatmul.msk.bf16.vlgmr.msra.gmra.mxu2 %vm699_vm1, %v630_v21  ;;  %v3838_v24 = vpack.c.bf16 %v472_v19, %v471_v18  ;;  %v442_v25 = vadd.f32 %v3763_v13, %v397_v20  ;;  %v3597_v27 = vunpack.c.h.bf16 %v3637_v16  ;;  %v3846_v32 = vshrl.u32 %v3786_v46, 16  ;;  %v3532_v15 = vld [vmem:[%s5138_s3 + $0x20] sm:$0xff]  ;;  %1300 = vmatpush.bf16.msrb.mxu3 %v3535_v14  ;;  %v3628_v14 = vld [vmem:[%s3750_s16 + $0x18] sm:$0xff]  }
  0x25   : > { %v540_v29 = vshrl.u32 %v3834_v22, 16  ;;  %v542_v30 = vshll.u32 %v3834_v22, 16  ;;  %v443_v31 = vadd.f32 %v3763_v13, %v398_v23  ;;  %v407_v35 = vmul.f32 %v3755_v5, %v3596_v26  ;;  %v3528_v20 = vld [vmem:[%s5138_s3] sm:$0xff]  ;;  %1135 = vmatpush.bf16.msrb.mxu2 %v3532_v15 }
  0x26   : > { %5190 = vst [vmem:[#allocation9_spill] sm:$0xff] %v3838_v24  ;;  %v5143_v33 = vshll.u32 %v3838_v24, 16  ;;  %v483_v34 = vmax.f32 %v442_v25, 0.0  ;;  %v408_v36 = vmul.f32 %v3755_v5, %v3597_v27  ;;  %v3852_v39 = vshrl.u32 %v3790_v50, 16  ;;  %908 = vmatpush.bf16.msrb.mxu1 %v3528_v20 }
  0x27   : > { %5191 = vst [vmem:[#allocation10_spill] sm:$0xff] %v3846_v32  ;;  %v544_v37 = vrot.slane %v542_v30, 1  ;;  %v484_v38 = vmax.f32 %v443_v31, 0.0  ;;  %v3556_v40 = vunpack.c.l.bf16 %v3627_v28  ;;  %v452_v42 = vadd.f32 %v3763_v13, %v407_v35 }
  0x28   : > { %v549_v41 = vrot.slane %v5143_v33, 1  ;;  %v453_v43 = vadd.f32 %v3763_v13, %v408_v36  ;;  %v3557_v44 = vunpack.c.h.bf16 %v3627_v28  ;;  %v593_v52 = vor.u32 %v3846_v32, %v589_v63 }
  0x29   : > { %v545_v48 = vor.u32 %v544_v37, %v540_v29  ;;  %v3859_v51 = vpack.c.bf16 %v484_v38, %v483_v34  ;;  %v387_v56 = vmul.f32 %v3755_v5, %v3556_v40  ;;  %v493_v60 = vmax.f32 %v452_v42, 0.0 }
  0x2a   : > { %v494_v61 = vmax.f32 %v453_v43, 0.0  ;;  %v633_v0 = vor.u32 %v3852_v39, %v629_v3  ;;  %v388_v1 = vmul.f32 %v3755_v5, %v3557_v44  ;;  %v3608_v9 = vunpack.c.l.bf16 %v3640_v47  ;;  %v3638_v43 = vld [vmem:[%s3750_s16 + $0x68] sm:$0xff]  }
  0x2b   : > { %5192 = vst [vmem:[#allocation11_spill] sm:$0xff] %v3859_v51  ;;  %v550_v6 = vsel %vm538_vm0, %v545_v48, %v549_v41  ;;  %v3868_v7 = vshll.u32 %v3859_v51, 16  ;;  %v432_v8 = vadd.f32 %v3763_v13, %v387_v56  ;;  %v5144_v11 = vshrl.u32 %v3838_v24, 16 }
  0x2c   : > { %3272 = vmatmul.msk.bf16.vlgmr.msra.gmra.mxu0 %vm699_vm1, %v550_v6  ;;  %v3872_v63 = vpack.c.bf16 %v494_v61, %v493_v60  ;;  %v433_v10 = vadd.f32 %v3763_v13, %v388_v1  ;;  %v3609_v3 = vunpack.c.h.bf16 %v3640_v47  ;;  %v3612_v18 = vunpack.c.l.bf16 %v3641_v4 }
  0x2d   : > { %5193 = vst [vmem:[#allocation12_spill] sm:$0xff] %v3868_v7  ;;  %v597_v16 = vrot.slane %v3868_v7, 1  ;;  %v473_v17 = vmax.f32 %v432_v8, 0.0  ;;  %v3613_v19 = vunpack.c.h.bf16 %v3641_v4  ;;  %v413_v25 = vmul.f32 %v3755_v5, %v3608_v9 }
  0x2e   : > { %v3888_v21 = vshll.u32 %v3872_v63, 16  ;;  %v474_v23 = vmax.f32 %v433_v10, 0.0  ;;  %v414_v26 = vmul.f32 %v3755_v5, %v3609_v3  ;;  %v415_v28 = vmul.f32 %v3755_v5, %v3612_v18 }
  0x2f   : > { %v598_v27 = vsel %vm538_vm0, %v593_v52, %v597_v16  ;;  %v416_v29 = vmul.f32 %v3755_v5, %v3613_v19  ;;  %v3580_v30 = vunpack.c.l.bf16 %v3633_v12  ;;  %v458_v35 = vadd.f32 %v3763_v13, %v413_v25 }
  0x30   : > { %v637_v31 = vrot.slane %v3888_v21, 1  ;;  %v3898_v34 = vpack.c.bf16 %v474_v23, %v473_v17  ;;  %v459_v36 = vadd.f32 %v3763_v13, %v414_v26  ;;  %v460_v37 = vadd.f32 %v3763_v13, %v415_v28 }
  0x31   : > { %v461_v38 = vadd.f32 %v3763_v13, %v416_v29  ;;  %v3581_v40 = vunpack.c.h.bf16 %v3633_v12  ;;  %v399_v42 = vmul.f32 %v3755_v5, %v3580_v30  ;;  %v499_v48 = vmax.f32 %v458_v35, 0.0 }
  0x32   : > { %5194 = vst [vmem:[#allocation13_spill] sm:$0xff] %v3898_v34  ;;  %v638_v44 = vsel %vm538_vm0, %v633_v0, %v637_v31  ;;  %v3910_v47 = vshll.u32 %v3898_v34, 16  ;;  %v500_v52 = vmax.f32 %v459_v36, 0.0  ;;  %v501_v56 = vmax.f32 %v460_v37, 0.0  ;;  %v3642_v37 = vld [vmem:[%s3750_s16 + $0x88] sm:$0xff]  }
  0x33   : > { %3278 = vmatmul.msk.bf16.gmra.mxu1 %vm699_vm1, %v598_v27  ;;  %v502_v60 = vmax.f32 %v461_v38, 0.0  ;;  %v400_v61 = vmul.f32 %v3755_v5, %v3581_v40  ;;  %v444_v1 = vadd.f32 %v3763_v13, %v399_v42  ;;  %v553_v4 = vor.u32 %v5144_v11, %v549_v41 }
  0x34   : > { %3283 = vmatmul.msk.bf16.gmra.mxu2 %vm699_vm1, %v638_v44  ;;  %v557_v0 = vrot.slane %v3910_v47, 1  ;;  %v3919_v6 = vpack.c.bf16 %v500_v52, %v499_v48  ;;  %v3600_v8 = vunpack.c.l.bf16 %v3638_v43  ;;  %v3601_v12 = vunpack.c.h.bf16 %v3638_v43 }
  0x35   : > { %v3921_v9 = vpack.c.bf16 %v502_v60, %v501_v56  ;;  %v445_v10 = vadd.f32 %v3763_v13, %v400_v61  ;;  %v485_v3 = vmax.f32 %v444_v1, 0.0  ;;  %v3932_v41 = vshrl.u32 %v3859_v51, 16 }
  0x36   : > { %v3926_v15 = vshll.u32 %v3919_v6, 16  ;;  %v3929_v17 = vshrl.u32 %v3919_v6, 16  ;;  %v409_v20 = vmul.f32 %v3755_v5, %v3600_v8  ;;  %v410_v23 = vmul.f32 %v3755_v5, %v3601_v12  ;;  %v3634_v8 = vld [vmem:[%s3750_s16 + $0x48] sm:$0xff]  }
  0x37   : > { %5195 = vst [vmem:[#allocation14_spill] sm:$0xff] %v3932_v41  ;;  %v3935_v18 = vshll.u32 %v3921_v9, 16  ;;  %v486_v19 = vmax.f32 %v445_v10, 0.0  ;;  %v558_v25 = vsel %vm538_vm0, %v553_v4, %v557_v0  ;;  %v3560_v27 = vunpack.c.l.bf16 %v3628_v14 }
  0x38   : > { %v5145_v26 = vrot.slane %v3926_v15, 1  ;;  %v3561_v28 = vunpack.c.h.bf16 %v3628_v14  ;;  %v454_v35 = vadd.f32 %v3763_v13, %v409_v20  ;;  %v455_v36 = vadd.f32 %v3763_v13, %v410_v23  ;;  %v3534_v14 = vld [vmem:[%s5138_s3 + $0x30] sm:$0xff] }
  0x39   : > { %v669_v29 = vrot.slane %v3935_v18, 1  ;;  %v3944_v30 = vpack.c.bf16 %v486_v19, %v485_v3  ;;  %v3953_v40 = vshrl.u32 %v3872_v63, 16  ;;  %v389_v42 = vmul.f32 %v3755_v5, %v3560_v27  ;;  %1301 = vmatpush.bf16.msrb.mxu3 %v3534_v14 }
  0x3a   : > { %v665_v38 = vor.u32 %v3929_v17, %v5145_v26  ;;  %v390_v43 = vmul.f32 %v3755_v5, %v3561_v28  ;;  %v601_v44 = vor.u32 %v3932_v41, %v597_v16  ;;  %v495_v52 = vmax.f32 %v454_v35, 0.0  ;;  %v3536_v16 = vld [vmem:[%s5138_s3 + $0x40] sm:$0xff] }
  0x3b   : > { %5196 = vst [vmem:[#allocation15_spill] sm:$0xff] %v3944_v30  ;;  %v3961_v48 = vshll.u32 %v3944_v30, 16  ;;  %v496_v56 = vmax.f32 %v455_v36, 0.0  ;;  %v434_v61 = vadd.f32 %v3763_v13, %v389_v42  ;;  %v3616_v4 = vunpack.c.l.bf16 %v3642_v37  ;;  %1593 = vmatpush.bf16.msrb.mxu0 %v3536_v16 }
  0x3c   : > { %3273 = vmatmul.msk.bf16.gmra.mxu0 %vm699_vm1, %v558_v25  ;;  %v670_v60 = vsel %vm538_vm0, %v665_v38, %v669_v29  ;;  %v435_v1 = vadd.f32 %v3763_v13, %v390_v43  ;;  %v3617_v12 = vunpack.c.h.bf16 %v3642_v37  ;;  %v641_v19 = vor.u32 %v3953_v40, %v637_v31  ;;  %v3639_v37 = vld [vmem:[%s3750_s16 + $0x70] sm:$0xff]  }
  0x3d   : > { %5197 = vst [vmem:[#allocation16_spill] sm:$0xff] %v3961_v48  ;;  %3287 = vmatmul.msk.bf16.vlgmr.msra.gmra.mxu3 %vm699_vm1, %v670_v60  ;;  %v605_v10 = vrot.slane %v3961_v48, 1  ;;  %v3973_v3 = vpack.c.bf16 %v496_v56, %v495_v52  ;;  %v475_v20 = vmax.f32 %v434_v61, 0.0  ;;  %v417_v25 = vmul.f32 %v3755_v5, %v3616_v4 }
  0x3e   : > { %v476_v23 = vmax.f32 %v435_v1, 0.0  ;;  %v3986_v28 = vshrl.u32 %v3898_v34, 16  ;;  %v418_v35 = vmul.f32 %v3755_v5, %v3617_v12  ;;  %v3584_v36 = vunpack.c.l.bf16 %v3634_v8  ;;  %v3629_v12 = vld [vmem:[%s3750_s16 + $0x20] sm:$0xff]  }
  0x3f   : > { %v3983_v27 = vshll.u32 %v3973_v3, 16  ;;  %v606_v31 = vsel %vm538_vm0, %v601_v44, %v605_v10  ;;  %v462_v42 = vadd.f32 %v3763_v13, %v417_v25  ;;  %v3585_v43 = vunpack.c.h.bf16 %v3634_v8 }
  0x40   : > { %v3993_v38 = vpack.c.bf16 %v476_v23, %v475_v20  ;;  %v463_v56 = vadd.f32 %v3763_v13, %v418_v35  ;;  %v3999_v60 = vshrl.u32 %v3921_v9, 16  ;;  %v401_v61 = vmul.f32 %v3755_v5, %v3584_v36 }
  0x41   : > { %v645_v52 = vrot.slane %v3983_v27, 1  ;;  %v503_v4 = vmax.f32 %v462_v42, 0.0  ;;  %v402_v44 = vmul.f32 %v3755_v5, %v3585_v43  ;;  %v3604_v16 = vunpack.c.l.bf16 %v3639_v37 }
  0x42   : > { %5198 = vst [vmem:[#allocation17_spill] sm:$0xff] %v3993_v38  ;;  %v4003_v1 = vshll.u32 %v3993_v38, 16  ;;  %v561_v14 = vor.u32 %v3986_v28, %v557_v0  ;;  %v504_v20 = vmax.f32 %v463_v56, 0.0  ;;  %v446_v23 = vadd.f32 %v3763_v13, %v401_v61  ;;  %v3643_v61 = vld [vmem:[%s3750_s16 + $0x90] sm:$0xff]  }
  0x43   : > { %3279 = vmatmul.msk.bf16.gmra.mxu1 %vm699_vm1, %v606_v31  ;;  %v646_v8 = vsel %vm538_vm0, %v641_v19, %v645_v52  ;;  %v447_v35 = vadd.f32 %v3763_v13, %v402_v44  ;;  %v3605_v36 = vunpack.c.h.bf16 %v3639_v37  ;;  %v411_v42 = vmul.f32 %v3755_v5, %v3604_v16 }
  0x44   : > { %3284 = vmatmul.msk.bf16.gmra.mxu2 %vm699_vm1, %v646_v8  ;;  %v5147_v25 = vrot.slane %v4003_v1, 1  ;;  %v4017_v31 = vpack.c.bf16 %v504_v20, %v503_v4  ;;  %v487_v19 = vmax.f32 %v446_v23, 0.0  ;;  %v3564_v43 = vunpack.c.l.bf16 %v3629_v12 }
  0x45   : > { %v673_v33 = vor.u32 %v3999_v60, %v669_v29  ;;  %v488_v11 = vmax.f32 %v447_v35, 0.0  ;;  %v412_v0 = vmul.f32 %v3755_v5, %v3605_v36  ;;  %v456_v56 = vadd.f32 %v3763_v13, %v411_v42 }
  0x46   : > { %v4024_v8 = vshll.u32 %v4017_v31, 16  ;;  %v4027_v44 = vshrl.u32 %v3944_v30, 16  ;;  %v3565_v37 = vunpack.c.h.bf16 %v3629_v12  ;;  %v391_v4 = vmul.f32 %v3755_v5, %v3564_v43 }
  0x47   : > { %v566_v16 = vsel %vm538_vm0, %v561_v14, %v5147_v25  ;;  %v4033_v29 = vpack.c.bf16 %v488_v11, %v487_v19  ;;  %v457_v20 = vadd.f32 %v3763_v13, %v412_v0  ;;  %v497_v23 = vmax.f32 %v456_v56, 0.0 }
  0x48   : > { %5199 = vst [vmem:[#allocation18_spill] sm:$0xff] %v4024_v8  ;;  %v677_v35 = vrot.slane %v4024_v8, 1  ;;  %v392_v36 = vmul.f32 %v3755_v5, %v3565_v37  ;;  %v436_v42 = vadd.f32 %v3763_v13, %v391_v4  ;;  %v3620_v26 = vunpack.c.l.bf16 %v3643_v61 }
  0x49   : > { %5200 = vst [vmem:[#allocation19_spill] sm:$0xff] %v4027_v44  ;;  %v4040_v12 = vshll.u32 %v4033_v29, 16  ;;  %v498_v43 = vmax.f32 %v457_v20, 0.0  ;;  %v4043_v62 = vshrl.u32 %v3973_v3, 16  ;;  %v3621_v14 = vunpack.c.h.bf16 %v3643_v61 }
  0x4a   : > { %v678_v11 = vsel %vm538_vm0, %v673_v33, %v677_v35  ;;  %v437_v19 = vadd.f32 %v3763_v13, %v392_v36  ;;  %v477_v0 = vmax.f32 %v436_v42, 0.0  ;;  %v419_v56 = vmul.f32 %v3755_v5, %v3620_v26 }
  0x4b   : > { %5201 = vst [vmem:[#allocation20_spill] sm:$0xff] %v4040_v12  ;;  %v609_v37 = vor.u32 %v4027_v44, %v605_v10  ;;  %v613_v4 = vrot.slane %v4040_v12, 1  ;;  %v4053_v20 = vpack.c.bf16 %v498_v43, %v497_v23  ;;  %v420_v25 = vmul.f32 %v3755_v5, %v3621_v14 }
  0x4c   : > { %3274 = vmatmul.msk.bf16.gmra.mxu0 %vm699_vm1, %v566_v16  ;;  %v478_v33 = vmax.f32 %v437_v19, 0.0  ;;  %v464_v61 = vadd.f32 %v3763_v13, %v419_v56  ;;  %v4059_v36 = vshrl.u32 %v4033_v29, 16  ;;  %v649_v26 = vor.u32 %v4043_v62, %v645_v52 }
  0x4d   : > { %3288 = vmatmul.msk.bf16.gmra.mxu3 %vm699_vm1, %v678_v11  ;;  %v4063_v16 = vshll.u32 %v4053_v20, 16  ;;  %v465_v10 = vadd.f32 %v3763_v13, %v420_v25  ;;  %v614_v43 = vsel %vm538_vm0, %v609_v37, %v613_v4  ;;  %v4072_v11 = vshrl.u32 %v3993_v38, 16 }
  0x4e   : > { %5202 = vst [vmem:[#allocation21_spill] sm:$0xff] %v4059_v36  ;;  %v4066_v42 = vpack.c.bf16 %v478_v33, %v477_v0  ;;  %v505_v23 = vmax.f32 %v464_v61, 0.0  ;;  %v617_v5 = vor.u32 %v4059_v36, %v613_v4  ;;  %v4087_v37 = vshrl.u32 %v4017_v31, 16 }
  0x4f   : > { %v653_v14 = vrot.slane %v4063_v16, 1  ;;  %v506_v19 = vmax.f32 %v465_v10, 0.0  ;;  %v5208_v10 = vrot.slane %v4003_v1, 1 }
  0x50   : > { %5203 = vst [vmem:[#allocation22_spill] sm:$0xff] %v4066_v42  ;;  %v4075_v52 = vshll.u32 %v4066_v42, 16  ;;  %v4077_v56 = vpack.c.bf16 %v505_v23, %v505_v23  ;;  %v622_v13 = vsel %vm538_vm0, %v617_v5, %v621_v2  ;;  %v4083_v25 = vshrl.u32 %v4066_v42, 16  ;;  %v3541_v2 = vld [vmem:[%s5138_s3 + $0x68] sm:$0xff] }
  0x51   : > { %v654_v0 = vsel %vm538_vm0, %v649_v26, %v653_v14  ;;  %v4089_v4 = vpack.c.bf16 %v506_v19, %v505_v23  ;;  %v569_v26 = vor.u32 %v4072_v11, %v5208_v10  ;;  %v681_v23 = vor.u32 %v4087_v37, %v677_v35  ;;  %2002 = vmatpush.bf16.msra.mxu2 %v3541_v2  ;;  %v3543_v10 = vld [vmem:[%s5138_s3 + $0x78] sm:$0xff] }
  0x52   : > { %5204 = vst [vmem:[#allocation23_spill] sm:$0xff] %v4075_v52  ;;  %v573_v33 = vrot.slane %v4075_v52, 1  ;;  %v683_v61 = vshll.u32 %v4077_v56, 16  ;;  %v3539_v35 = vld [vmem:[%s5138_s3 + $0x58] sm:$0xff]  ;;  %2294 = vmatpush.bf16.msra.mxu3 %v3543_v10  ;;  %v5210_v2 = vrot.slane %v3926_v15, 1 }
  0x53   : > { %5205 = vst [vmem:[#allocation24_spill] sm:$0xff] %v4077_v56  ;;  %3280 = vmatmul.msk.bf16.gmra.mxu1 %vm699_vm1, %v614_v43  ;;  %v5209_v43 = vrot.slane %v3793_v53, 1 }
  0x54   : > { %5206 = vst [vmem:[#allocation25_spill] sm:$0xff] %v4083_v25  ;;  %3285 = vmatmul.msk.bf16.gmra.mxu2 %vm699_vm1, %v654_v0  ;;  %v577_v5 = vor.u32 %v4083_v25, %v573_v33  ;;  %v685_v19 = vrot.slane %v683_v61, 1  ;;  %v574_v0 = vsel %vm538_vm0, %v569_v26, %v573_v33  ;;  %v3545_v33 = vld [vmem:[%s5138_s3 + $0x88] sm:$0xff]  ;;  %1836 = vmatpush.bf16.msra.mxu1 %v3539_v35  ;;  %v1438_v35 = vrot.slane %v3986_v28, 1 }
  0x55   : > { %5207 = vst [vmem:[#allocation26_spill] sm:$0xff] %v4089_v4  ;;  %v4108_v4 = vshrl.u32 %v4053_v20, 16  ;;  %2538 = vmatpush.bf16.msra.mxu0 %v3545_v33 }
  0x56   : > { %v582_v56 = vsel %vm538_vm0, %v577_v5, %v5209_v43  ;;  %v686_v8 = vsel %vm538_vm0, %v681_v23, %v685_v19  ;;  %v1026_v5 = vrot.slane %v3838_v24, 1  ;;  %v1025_v23 = vrot.slane %v3834_v22, 1 }
  0x57   : > { %v657_v61 = vor.u32 %v4108_v4, %v653_v14  ;;  %v5211_v19 = vshrl.u32 %v3838_v24, 16 }
  0x59   : > { %v662_v26 = vsel %vm538_vm0, %v657_v61, %v5210_v2  ;;  %v1435_v43 = vrot.slane %v5211_v19, 1  ;;  %v1439_v61 = vrot.slane %v3910_v47, 2  ;;  %v1030_v2 = vrot.slane %v3993_v38, 1 }
  0x5a   : > { %v1443_v19 = vrot.slane %v4003_v1, 2 }
  0x5b   : > { %v1440_v33 = vor.u32 %v1439_v61, %v1438_v35  ;;  %v1034_v35 = vrot.slane %v3784_v45, 1 }
  0x5c   : > { %3275 = vmatmul.msk.bf16.gmra.mxu0 %vm699_vm1, %v574_v0  ;;  %v5212_v0 = vshll.u32 %v3838_v24, 16 }
  0x5d   : > { %3289 = vmatmul.msk.bf16.gmra.mxu3 %vm699_vm1, %v686_v8  ;;  %v1028_v8 = vrot.slane %v3898_v34, 1 }
  0x5e   : > { %v1436_v10 = vrot.slane %v5212_v0, 2  ;;  %v1446_v0 = vrot.slane %v4083_v25, 1 }
  0x5f   : > { %v1029_v14 = vsel %vm1024_vm2, %v1026_v5, %v1028_v8 }
  0x63   : > { %3281 = vmatmul.msk.bf16.gmra.mxu1 %vm699_vm1, %v622_v13  ;;  %v1027_v13 = vsel %vm1024_vm2, %v1025_v23, %v1026_v5  ;;  %v1031_v5 = vsel %vm1024_vm2, %v1028_v8, %v1030_v2  ;;  %v1442_v23 = vrot.slane %v4072_v11, 1 }
  0x64   : > { %3286 = vmatmul.msk.bf16.gmra.mxu2 %vm699_vm1, %v662_v26 }
  0x6c   : > { %3276 = vmatmul.msk.bf16.gmra.mxu0 %vm699_vm1, %v582_v56  ;;  %v1437_v56 = vor.u32 %v1436_v10, %v1435_v43  ;;  %v1032_v43 = vrot.slane %v4066_v42, 1  ;;  %v1447_v10 = vrot.slane %v4075_v52, 2 }
  0x6d   : > { %3358 = vmatmul.msk.bf16.vlgmr.msrb.gmra.mxu3 %vm699_vm1, %v1029_v14 }
  0x6e   : > { %v1441_v26 = vsel %vm1434_vm3, %v1437_v56, %v1440_v33  ;;  %v1033_v8 = vsel %vm1024_vm2, %v1030_v2, %v1032_v43  ;;  %v1035_v56 = vsel %vm1024_vm2, %v1032_v43, %v1034_v35  ;;  %v1450_v2 = vrot.slane %v3796_v54, 1 }
  0x73   : > { %3298 = vmatmul.msk.bf16.vlgmr.msrb.gmra.mxu1 %vm699_vm1, %v3834_v22  ;;  %v1444_v22 = vor.u32 %v1443_v19, %v1442_v23  ;;  %v1036_v23 = vrot.slane %v3786_v46, 1 }
  0x74   : > { %3328 = vmatmul.msk.bf16.vlgmr.msrb.gmra.mxu2 %vm699_vm1, %v1027_v13 }
  0x75   : > { %v1445_v13 = vsel %vm1434_vm3, %v1440_v33, %v1444_v22 }
  0x7c   : > { %3388 = vmatmul.msk.bf16.vlgmr.msrb.gmra.mxu0 %vm699_vm1, %v1441_v26  ;;  %v1451_v26 = vrot.slane %v3793_v53, 2 }
  0x7d   : > { %3359 = vmatmul.msk.bf16.gmra.mxu3 %vm699_vm1, %v1031_v5 }
  0x83   : > { %3299 = vmatmul.msk.bf16.gmra.mxu1 %vm699_vm1, %v3838_v24 }
  0x84   : > { %3329 = vmatmul.msk.bf16.gmra.mxu2 %vm699_vm1, %v1029_v14  ;;  %v1448_v14 = vor.u32 %v1447_v10, %v1446_v0  ;;  %v1037_v0 = vsel %vm1024_vm2, %v1034_v35, %v1036_v23  ;;  %v1038_v35 = vrot.slane %v3859_v51, 1 }
  0x86   : > { %v1449_v61 = vsel %vm1434_vm3, %v1444_v22, %v1448_v14 }
  0x8c   : > { %3389 = vmatmul.msk.bf16.gmra.mxu0 %vm699_vm1, %v1445_v13 }
  0x8d   : > { %3360 = vmatmul.msk.bf16.gmra.mxu3 %vm699_vm1, %v1033_v8 }
  0x93   : > { %3300 = vmatmul.msk.bf16.gmra.mxu1 %vm699_vm1, %v3898_v34 }
  0x94   : > { %3330 = vmatmul.msk.bf16.gmra.mxu2 %vm699_vm1, %v1031_v5  ;;  %v1452_v5 = vor.u32 %v1451_v26, %v1450_v2  ;;  %v1454_v2 = vrot.slane %v3846_v32, 1  ;;  %v1455_v26 = vrot.slane %v3799_v55, 2  ;;  %v1039_v32 = vsel %vm1024_vm2, %v1036_v23, %v1038_v35 }
  0x95   : > { %v1040_v23 = vrot.slane %v3944_v30, 1 }
  0x96   : > { %v1453_v13 = vsel %vm1434_vm3, %v1448_v14, %v1452_v5  ;;  %v1456_v14 = vor.u32 %v1455_v26, %v1454_v2 }
  0x9c   : > { %3390 = vmatmul.msk.bf16.gmra.mxu0 %vm699_vm1, %v1449_v61 }
  0x9d   : > { %3361 = vmatmul.msk.bf16.gmra.mxu3 %vm699_vm1, %v1035_v56 }
  0xa0   : > { %v4169_v33 = vpop.f32.mrf.mxu1 }
  0xa3   : > { %3301 = vmatmul.msk.bf16.gmra.mxu1 %vm699_vm1, %v3993_v38 }
  0xa4   : > { %3331 = vmatmul.msk.bf16.gmra.mxu2 %vm699_vm1, %v1033_v8 }
  0xa7   : > { %v4177_v19 = vpop.f32.mrf.mxu2 }
  0xa8   : > { %5213 = vst [vmem:[#allocation27_spill] sm:$0xff] %v4177_v19  ;;  %v4179_v22 = vpop.f32.mrf.mxu1 }
  0xa9   : > { %v4181_v43 = vpop.f32.mrf.mxu0 }
  0xac   : > { %3391 = vmatmul.msk.bf16.gmra.mxu0 %vm699_vm1, %v1453_v13 }
  0xad   : > { %3362 = vmatmul.msk.bf16.gmra.mxu3 %vm699_vm1, %v1037_v0 }
  0xaf   : > { %v4187_v10 = vpop.f32.mrf.mxu2 }
  0xb0   : > { %5214 = vst [vmem:[#allocation28_spill] sm:$0xff] %v4187_v10  ;;  %v4189_v8 = vpop.f32.mrf.mxu1  ;;  %v1457_v10 = vsel %vm1434_vm3, %v1452_v5, %v1456_v14 }
  0xb1   : > { %v4191_v61 = vpop.f32.mrf.mxu0 }
  0xb3   : > { %3302 = vmatmul.msk.bf16.gmra.mxu1 %vm699_vm1, %v4066_v42  ;;  %v1459_v42 = vrot.slane %v3868_v7, 2  ;;  %v1041_v7 = vsel %vm1024_vm2, %v1038_v35, %v1040_v23 }
  0xb4   : > { %3332 = vmatmul.msk.bf16.gmra.mxu2 %vm699_vm1, %v1035_v56 }
  0xb7   : > { %v4199_v13 = vpop.f32.mrf.mxu2 }
  0xb8   : > { %5215 = vst [vmem:[#allocation29_spill] sm:$0xff] %v4199_v13  ;;  %v4201_v53 = vpop.f32.mrf.mxu1  ;;  %v1458_v13 = vrot.slane %v3932_v41, 1 }
  0xb9   : > { %v4203_v54 = vpop.f32.mrf.mxu0 }
  0xba   : > { %v1460_v5 = vor.u32 %v1459_v42, %v1458_v13 }
  0xbc   : > { %3392 = vmatmul.msk.bf16.gmra.mxu0 %vm699_vm1, %v1457_v10  ;;  %v1461_v41 = vsel %vm1434_vm3, %v1456_v14, %v1460_v5  ;;  %v1042_v14 = vrot.slane %v4033_v29, 1 }
  0xbd   : > { %3363 = vmatmul.msk.bf16.gmra.mxu3 %vm699_vm1, %v1039_v32 }
  0xbf   : > { %v4209_v55 = vpop.f32.mrf.mxu2 }
  0xc0   : > { %5216 = vst [vmem:[#allocation30_spill] sm:$0xff] %v4209_v55  ;;  %v4211_v56 = vpop.f32.mrf.mxu1  ;;  %v4213_v2 = vpop.f32.mrf.mxu3 }
  0xc1   : > { %5217 = vst [vmem:[#allocation31_spill] sm:$0xff] %v4213_v2  ;;  %v4215_v26 = vpop.f32.mrf.mxu0 }
  0xc3   : > { %3303 = vmatmul.msk.bf16.gmra.mxu1 %vm699_vm1, %v3784_v45  ;;  %v1463_v45 = vrot.slane %v3961_v48, 2  ;;  %v1043_v48 = vsel %vm1024_vm2, %v1040_v23, %v1042_v14 }
  0xc4   : > { %3333 = vmatmul.msk.bf16.gmra.mxu2 %vm699_vm1, %v1037_v0 }
  0xc7   : > { %v4223_v10 = vpop.f32.mrf.mxu2 }
  0xc8   : > { %5218 = vst [vmem:[#allocation32_spill] sm:$0xff] %v4223_v10  ;;  %v4225_v55 = vpop.f32.mrf.mxu1  ;;  %v4227_v19 = vpop.f32.mrf.mxu3 }
  0xc9   : > { %5219 = vst [vmem:[#allocation33_spill] sm:$0xff] %v4227_v19  ;;  %v4229_v2 = vpop.f32.mrf.mxu0  ;;  %v1462_v19 = vrot.slane %v4027_v44, 1 }
  0xcc   : > { %3393 = vmatmul.msk.bf16.gmra.mxu0 %vm699_vm1, %v1461_v41  ;;  %v1464_v41 = vor.u32 %v1463_v45, %v1462_v19 }
  0xcd   : > { %3364 = vmatmul.msk.bf16.gmra.mxu3 %vm699_vm1, %v1041_v7 }
  0xce   : > { %v1465_v44 = vsel %vm1434_vm3, %v1460_v5, %v1464_v41  ;;  %v1044_v5 = vrot.slane %v3788_v49, 1 }
  0xcf   : > { %v4235_v0 = vpop.f32.mrf.mxu2 }
  0xd0   : > { %5220 = vst [vmem:[#allocation34_spill] sm:$0xff] %v4235_v0  ;;  %v4237_v42 = vpop.f32.mrf.mxu1  ;;  %v4239_v13 = vpop.f32.mrf.mxu3 }
  0xd1   : > { %5221 = vst [vmem:[#allocation35_spill] sm:$0xff] %v4239_v13  ;;  %v4241_v10 = vpop.f32.mrf.mxu0 }
  0xd3   : > { %3304 = vmatmul.msk.bf16.gmra.mxu1 %vm699_vm1, %v3786_v46  ;;  %v1467_v46 = vrot.slane %v4040_v12, 2  ;;  %v3540_v12 = vld [vmem:[%s5138_s3 + $0x60] sm:$0xff] }
  0xd4   : > { %3334 = vmatmul.msk.bf16.gmra.mxu2 %vm699_vm1, %v1039_v32 }
  0xd5   : > { %2003 = vmatpush.bf16.msra.mxu2 %v3540_v12 }
  0xd7   : > { %v4249_v35 = vpop.f32.mrf.mxu2 }
  0xd8   : > { %5222 = vst [vmem:[#allocation36_spill] sm:$0xff] %v4249_v35  ;;  %v4251_v0 = vpop.f32.mrf.mxu1  ;;  %v4253_v52 = vpop.f32.mrf.mxu3 }
  0xd9   : > { %5223 = vst [vmem:[#allocation37_spill] sm:$0xff] %v4253_v52  ;;  %v4255_v13 = vpop.f32.mrf.mxu0  ;;  %v1466_v52 = vrot.slane %v4059_v36, 1 }
  0xdc   : > { %3394 = vmatmul.msk.bf16.gmra.mxu0 %vm699_vm1, %v1465_v44  ;;  %v1468_v44 = vor.u32 %v1467_v46, %v1466_v52  ;;  %v3542_v46 = vld [vmem:[%s5138_s3 + $0x70] sm:$0xff] }
  0xdd   : > { %3365 = vmatmul.msk.bf16.gmra.mxu3 %vm699_vm1, %v1043_v48 }
  0xde   : > { %v1469_v36 = vsel %vm1434_vm3, %v1464_v41, %v1468_v44  ;;  %2295 = vmatpush.bf16.msra.mxu3 %v3542_v46 }
  0xdf   : > { %v4261_v32 = vpop.f32.mrf.mxu2 }
  0xe0   : > { %5224 = vst [vmem:[#allocation38_spill] sm:$0xff] %v4261_v32  ;;  %v4263_v45 = vpop.f32.mrf.mxu1  ;;  %v4265_v19 = vpop.f32.mrf.mxu3 }
  0xe1   : > { %5225 = vst [vmem:[#allocation39_spill] sm:$0xff] %v4263_v45  ;;  %v4267_v35 = vpop.f32.mrf.mxu0 }
  0xe2   : > { %5226 = vst [vmem:[#allocation40_spill] sm:$0xff] %v4265_v19 }
  0xe3   : > { %3305 = vmatmul.msk.bf16.gmra.mxu1 %vm699_vm1, %v3859_v51  ;;  %v1045_v51 = vsel %vm1024_vm2, %v1042_v14, %v1044_v5 }
  0xe4   : > { %3335 = vmatmul.msk.bf16.gmra.mxu2 %vm699_vm1, %v1041_v7  ;;  %v3538_v7 = vld [vmem:[%s5138_s3 + $0x50] sm:$0xff] }
  0xe5   : > { %1837 = vmatpush.bf16.msra.mxu1 %v3538_v7  ;;  %v1046_v7 = vrot.slane %v3790_v50, 1 }
  0xe7   : > { %v4275_v23 = vpop.f32.mrf.mxu2  ;;  %v1047_v45 = vsel %vm1024_vm2, %v1044_v5, %v1046_v7 }
  0xe8   : > { %5227 = vst [vmem:[#allocation41_spill] sm:$0xff] %v4275_v23  ;;  %v4277_v32 = vpop.f32.mrf.mxu1  ;;  %v4279_v25 = vpop.f32.mrf.mxu3  ;;  %v1471_v23 = vrot.slane %v3803_v57, 2 }
  0xe9   : > { %5228 = vst [vmem:[#allocation42_spill] sm:$0xff] %v4277_v32  ;;  %v4281_v19 = vpop.f32.mrf.mxu0  ;;  %v3544_v32 = vld [vmem:[%s5138_s3 + $0x80] sm:$0xff] }
  0xea   : > { %5229 = vst [vmem:[#allocation43_spill] sm:$0xff] %v4279_v25  ;;  %2539 = vmatpush.bf16.msra.mxu0 %v3544_v32 }
  0xec   : > { %3395 = vmatmul.msk.bf16.gmra.mxu0 %vm699_vm1, %v1469_v36  ;;  %v1470_v36 = vrot.slane %v3806_v58, 1 }
  0xed   : > { %3366 = vmatmul.msk.bf16.gmra.mxu3 %vm699_vm1, %v1045_v51 }
  0xee   : > { %v1472_v46 = vor.u32 %v1471_v23, %v1470_v36 }
  0xef   : > { %v4296_v52 = vpop.f32.mrf.mxu2 }
  0xf0   : > { %5230 = vst [vmem:[#allocation44_spill] sm:$0xff] %v4296_v52  ;;  %v910_v41 = vpop.f32.mrf.mxu1  ;;  %v1303_v25 = vpop.f32.mrf.mxu3  ;;  %v1473_v57 = vsel %vm1434_vm3, %v1468_v44, %v1472_v46  ;;  %v1474_v44 = vrot.slane %v3852_v39, 1 }
  0xf1   : > { %v4298_v14 = vpop.f32.mrf.mxu0  ;;  %v911_v12 = vadd.f32 %v910_v41, %v4181_v43 }
  0xf3   : > { %3306 = vmatmul.msk.bf16.gmra.mxu1 %vm699_vm1, %v3944_v30 }
  0xf4   : > { %3336 = vmatmul.msk.bf16.gmra.mxu2 %vm699_vm1, %v1043_v48 }
  0xf7   : > { %v1137_v52 = vpop.f32.mrf.mxu2 }
  0xf8   : > { %v1227_v38 = vadd.f32 %v1137_v52, %v911_v12  ;;  %v912_v43 = vpop.f32.mrf.mxu1  ;;  %v1305_v41 = vpop.f32.mrf.mxu3 }
  0xf9   : > { %v1595_v58 = vpop.f32.mrf.mxu0  ;;  %v913_v34 = vadd.f32 %v912_v43, %v4191_v61  ;;  %v1475_v61 = vrot.slane %v3809_v59, 2 }
  0xfa   : > { %v1393_v24 = vadd.f32 %v1303_v25, %v1227_v38 }
  0xfc   : > { %3396 = vmatmul.msk.bf16.gmra.mxu0 %vm699_vm1, %v1473_v57  ;;  %v4314_v32 = vadd.f32 %v1595_v58, %v1393_v24  ;;  %v1476_v58 = vor.u32 %v1475_v61, %v1474_v44  ;;  %v1048_v24 = vrot.slane %v3872_v63, 1 }
  0xfd   : > { %3367 = vmatmul.msk.bf16.gmra.mxu3 %vm699_vm1, %v1047_v45 }
  0xff   : > { %v1139_v48 = vpop.f32.mrf.mxu2 }
 0x100   : > { %v1228_v23 = vadd.f32 %v1139_v48, %v913_v34  ;;  %v915_v36 = vpop.f32.mrf.mxu1  ;;  %v1308_v52 = vpop.f32.mrf.mxu3  ;;  %v1477_v48 = vsel %vm1434_vm3, %v1472_v46, %v1476_v58  ;;  %v1478_v46 = vrot.slane %v3953_v40, 1 }
 0x101   : > { %v1597_v12 = vpop.f32.mrf.mxu0  ;;  %v916_v30 = vadd.f32 %v915_v36, %v4203_v54 }
 0x102   : > { %v1394_v38 = vadd.f32 %v1305_v41, %v1228_v23  ;;  %v1049_v23 = vsel %vm1024_vm2, %v1046_v7, %v1048_v24 }
 0x103   : > { %3307 = vmatmul.msk.bf16.gmra.mxu1 %vm699_vm1, %v4033_v29 }
 0x104   : > { %3337 = vmatmul.msk.bf16.gmra.mxu2 %vm699_vm1, %v1045_v51  ;;  %v4323_v57 = vadd.f32 %v1597_v12, %v1394_v38 }
 0x107   : > { %v1142_v34 = vpop.f32.mrf.mxu2 }
 0x108   : > { %v1229_v25 = vadd.f32 %v1142_v34, %v916_v30  ;;  %v917_v5 = vpop.f32.mrf.mxu1  ;;  %v1310_v43 = vpop.f32.mrf.mxu3 }
 0x109   : > { %v1600_v54 = vpop.f32.mrf.mxu0  ;;  %v918_v36 = vadd.f32 %v917_v5, %v4215_v26  ;;  %v1479_v26 = vrot.slane %v3888_v21, 2  ;;  %v1050_v5 = vrot.slane %v3973_v3, 1 }
 0x10a   : > { %v1395_v41 = vadd.f32 %v1308_v52, %v1229_v25 }
 0x10b   : > { %v1480_v25 = vor.u32 %v1479_v26, %v1478_v46 }
 0x10c   : > { %3397 = vmatmul.msk.bf16.gmra.mxu0 %vm699_vm1, %v1477_v48  ;;  %v4330_v51 = vadd.f32 %v1600_v54, %v1395_v41 }
 0x10d   : > { %3368 = vmatmul.msk.bf16.gmra.mxu3 %vm699_vm1, %v1049_v23 }
 0x10f   : > { %v1144_v12 = vpop.f32.mrf.mxu2 }
 0x110   : > { %v1230_v44 = vadd.f32 %v1144_v12, %v918_v36  ;;  %v920_v61 = vpop.f32.mrf.mxu1  ;;  %v1313_v30 = vpop.f32.mrf.mxu3  ;;  %v1481_v12 = vsel %vm1434_vm3, %v1476_v58, %v1480_v25  ;;  %v1482_v58 = vrot.slane %v4043_v62, 1 }
 0x111   : > { %v1602_v38 = vpop.f32.mrf.mxu0  ;;  %v921_v34 = vadd.f32 %v920_v61, %v4229_v2 }
 0x112   : > { %v1396_v52 = vadd.f32 %v1310_v43, %v1230_v44  ;;  %v1051_v44 = vsel %vm1024_vm2, %v1048_v24, %v1050_v5 }
 0x113   : > { %3308 = vmatmul.msk.bf16.gmra.mxu1 %vm699_vm1, %v3788_v49 }
 0x114   : > { %3338 = vmatmul.msk.bf16.gmra.mxu2 %vm699_vm1, %v1047_v45  ;;  %v4339_v7 = vadd.f32 %v1602_v38, %v1396_v52 }
 0x117   : > { %v1147_v54 = vpop.f32.mrf.mxu2 }
 0x118   : > { %v1231_v48 = vadd.f32 %v1147_v54, %v921_v34  ;;  %v922_v36 = vpop.f32.mrf.mxu1  ;;  %v1315_v41 = vpop.f32.mrf.mxu3 }
 0x119   : > { %v1605_v2 = vpop.f32.mrf.mxu0  ;;  %v923_v61 = vadd.f32 %v922_v36, %v4241_v10  ;;  %v1483_v10 = vrot.slane %v3983_v27, 2  ;;  %v1052_v36 = vrot.slane %v4053_v20, 1 }
 0x11a   : > { %v1397_v43 = vadd.f32 %v1313_v30, %v1231_v48 }
 0x11b   : > { %v1484_v48 = vor.u32 %v1483_v10, %v1482_v58 }
 0x11c   : > { %3398 = vmatmul.msk.bf16.gmra.mxu0 %vm699_vm1, %v1481_v12  ;;  %v4346_v45 = vadd.f32 %v1605_v2, %v1397_v43 }
 0x11d   : > { %3369 = vmatmul.msk.bf16.gmra.mxu3 %vm699_vm1, %v1051_v44 }
 0x11f   : > { %v1149_v38 = vpop.f32.mrf.mxu2 }
 0x120   : > { %v1232_v46 = vadd.f32 %v1149_v38, %v923_v61  ;;  %v925_v26 = vpop.f32.mrf.mxu1  ;;  %v1318_v34 = vpop.f32.mrf.mxu3  ;;  %v1485_v38 = vsel %vm1434_vm3, %v1480_v25, %v1484_v48  ;;  %v1486_v25 = vrot.slane %v4108_v4, 1 }
 0x121   : > { %v1607_v52 = vpop.f32.mrf.mxu0  ;;  %v926_v54 = vadd.f32 %v925_v26, %v4255_v13 }
 0x122   : > { %v1398_v30 = vadd.f32 %v1315_v41, %v1232_v46  ;;  %v1053_v46 = vsel %vm1024_vm2, %v1050_v5, %v1052_v36 }
 0x123   : > { %3309 = vmatmul.msk.bf16.gmra.mxu1 %vm699_vm1, %v3790_v50 }
 0x124   : > { %3339 = vmatmul.msk.bf16.gmra.mxu2 %vm699_vm1, %v1049_v23  ;;  %v4355_v24 = vadd.f32 %v1607_v52, %v1398_v30 }
 0x127   : > { %v1152_v2 = vpop.f32.mrf.mxu2 }
 0x128   : > { %v1233_v12 = vadd.f32 %v1152_v2, %v926_v54  ;;  %v927_v61 = vpop.f32.mrf.mxu1  ;;  %v1320_v43 = vpop.f32.mrf.mxu3 }
 0x129   : > { %v1610_v13 = vpop.f32.mrf.mxu0  ;;  %v928_v26 = vadd.f32 %v927_v61, %v4267_v35  ;;  %v1487_v35 = vrot.slane %v4063_v16, 2  ;;  %v1054_v61 = vrot.slane %v3919_v6, 1 }
 0x12a   : > { %v1399_v41 = vadd.f32 %v1318_v34, %v1233_v12 }
 0x12b   : > { %v1488_v12 = vor.u32 %v1487_v35, %v1486_v25 }
 0x12c   : > { %3399 = vmatmul.msk.bf16.gmra.mxu0 %vm699_vm1, %v1485_v38  ;;  %v4362_v23 = vadd.f32 %v1610_v13, %v1399_v41 }
 0x12d   : > { %3370 = vmatmul.msk.bf16.gmra.mxu3 %vm699_vm1, %v1053_v46 }
 0x12f   : > { %v1154_v52 = vpop.f32.mrf.mxu2 }
 0x130   : > { %v1234_v58 = vadd.f32 %v1154_v52, %v928_v26  ;;  %v930_v10 = vpop.f32.mrf.mxu1  ;;  %v1323_v54 = vpop.f32.mrf.mxu3  ;;  %v1489_v52 = vsel %vm1434_vm3, %v1484_v48, %v1488_v12  ;;  %v1491_v48 = vrot.slane %v3926_v15, 2 }
 0x131   : > { %v1612_v30 = vpop.f32.mrf.mxu0  ;;  %v931_v2 = vadd.f32 %v930_v10, %v4281_v19 }
 0x132   : > { %v1400_v34 = vadd.f32 %v1320_v43, %v1234_v58  ;;  %v1055_v58 = vsel %vm1024_vm2, %v1052_v36, %v1054_v61 }
 0x133   : > { %3310 = vmatmul.msk.bf16.gmra.mxu1 %vm699_vm1, %v3872_v63 }
 0x134   : > { %3340 = vmatmul.msk.bf16.gmra.mxu2 %vm699_vm1, %v1051_v44  ;;  %v4371_v5 = vadd.f32 %v1612_v30, %v1400_v34 }
 0x136   : > { %5231 = vst [vmem:[#allocation45_spill] sm:$0xff] %v4371_v5 }
 0x137   : > { %v1157_v13 = vpop.f32.mrf.mxu2 }
 0x138   : > { %v1235_v38 = vadd.f32 %v1157_v13, %v931_v2  ;;  %v932_v26 = vpop.f32.mrf.mxu1  ;;  %v1325_v41 = vpop.f32.mrf.mxu3  ;;  %v1490_v13 = vrot.slane %v3929_v17, 1 }
 0x139   : > { %v1615_v19 = vpop.f32.mrf.mxu0  ;;  %v933_v10 = vadd.f32 %v932_v26, %v4298_v14 }
 0x13a   : > { %v1401_v43 = vadd.f32 %v1323_v54, %v1235_v38  ;;  %v1492_v36 = vor.u32 %v1491_v48, %v1490_v13  ;;  %v1056_v38 = vrot.slane %v3921_v9, 1 }
 0x13c   : > { %3400 = vmatmul.msk.bf16.gmra.mxu0 %vm699_vm1, %v1489_v52  ;;  %v4378_v44 = vadd.f32 %v1615_v19, %v1401_v43 }
 0x13d   : > { %3371 = vmatmul.msk.bf16.gmra.mxu3 %vm699_vm1, %v1055_v58 }
 0x13f   : > { %v1159_v30 = vpop.f32.mrf.mxu2 }
 0x140   : > { %v1236_v25 = vadd.f32 %v1159_v30, %v933_v10  ;;  %v935_v35 = vpop.f32.mrf.mxu1  ;;  %v1328_v2 = vpop.f32.mrf.mxu3  ;;  %v1493_v30 = vsel %vm1434_vm3, %v1488_v12, %v1492_v36  ;;  %v1495_v12 = vrot.slane %v3935_v18, 2 }
 0x141   : > { %v1617_v34 = vpop.f32.mrf.mxu0  ;;  %v936_v54 = vadd.f32 %v935_v35, %v4169_v33 }
 0x142   : > { %v1402_v5 = vadd.f32 %v1325_v41, %v1236_v25  ;;  %v1057_v25 = vsel %vm1024_vm2, %v1054_v61, %v1056_v38 }
 0x143   : > { %3311 = vmatmul.msk.bf16.gmra.mxu1 %vm699_vm1, %v3973_v3 }
 0x144   : > { %3341 = vmatmul.msk.bf16.gmra.mxu2 %vm699_vm1, %v1053_v46  ;;  %v4386_v14 = vadd.f32 %v1617_v34, %v1402_v5 }
 0x147   : > { %v1162_v26 = vpop.f32.mrf.mxu2 }
 0x148   : > { %v1237_v19 = vadd.f32 %v1162_v26, %v936_v54  ;;  %v937_v52 = vpop.f32.mrf.mxu1  ;;  %v1330_v10 = vpop.f32.mrf.mxu3  ;;  %v1494_v54 = vrot.slane %v3999_v60, 1 }
 0x149   : > { %v1620_v43 = vpop.f32.mrf.mxu0  ;;  %v938_v33 = vadd.f32 %v937_v52, %v4179_v22 }
 0x14a   : > { %v1403_v41 = vadd.f32 %v1328_v2, %v1237_v19  ;;  %v1496_v26 = vor.u32 %v1495_v12, %v1494_v54  ;;  %v4406_v19 = vrot.slane %v4017_v31, 1 }
 0x14c   : > { %3401 = vmatmul.msk.bf16.gmra.mxu0 %vm699_vm1, %v1493_v30  ;;  %v4393_v46 = vadd.f32 %v1620_v43, %v1403_v41 }
 0x14d   : > { %3372 = vmatmul.msk.bf16.gmra.mxu3 %vm699_vm1, %v1057_v25 }
 0x14e   : > { %5232 = vst [vmem:[#allocation46_spill] sm:$0xff] %v4393_v46 }
 0x14f   : > { %v1164_v5 = vpop.f32.mrf.mxu2 }
 0x150   : > { %v1238_v35 = vadd.f32 %v1164_v5, %v938_v33  ;;  %v940_v34 = vpop.f32.mrf.mxu1  ;;  %v1333_v13 = vpop.f32.mrf.mxu3 }
 0x151   : > { %v1622_v48 = vpop.f32.mrf.mxu0  ;;  %v941_v22 = vadd.f32 %v940_v34, %v4189_v8 }
 0x152   : > { %v1404_v2 = vadd.f32 %v1330_v10, %v1238_v35  ;;  %v1497_v10 = vsel %vm1434_vm3, %v1492_v36, %v1496_v26  ;;  %v1498_v36 = vrot.slane %v4087_v37, 1 }
 0x153   : > { %3312 = vmatmul.msk.bf16.gmra.mxu1 %vm699_vm1, %v4053_v20 }
 0x154   : > { %3342 = vmatmul.msk.bf16.gmra.mxu2 %vm699_vm1, %v1055_v58  ;;  %v4402_v61 = vadd.f32 %v1622_v48, %v1404_v2  ;;  %v1059_v58 = vsel %vm1024_vm2, %v1056_v38, %v4406_v19  ;;  %v3644_v48 = vld [vmem:[%s3750_s16 + $0x98] sm:$0xff]  }
 0x155   : > { %v3624_v38 = vunpack.c.l.bf16 %v3644_v48 }
 0x156   : > { %5233 = vst [vmem:[#allocation47_spill] sm:$0xff] %v4402_v61 }
 0x157   : > { %v1167_v52 = vpop.f32.mrf.mxu2 }
 0x158   : > { %v1239_v43 = vadd.f32 %v1167_v52, %v941_v22  ;;  %v942_v30 = vpop.f32.mrf.mxu1  ;;  %v1335_v41 = vpop.f32.mrf.mxu3 }
 0x159   : > { %v1625_v33 = vpop.f32.mrf.mxu0  ;;  %v943_v8 = vadd.f32 %v942_v30, %v4201_v53 }
 0x15a   : > { %v1405_v5 = vadd.f32 %v1333_v13, %v1239_v43  ;;  %v5235_v13 = vld [vmem:[#allocation18_spill] sm:$0xff] }
 0x15b   : > { %v1499_v52 = vrot.slane %v5235_v13, 2 }
 0x15c   : > { %3402 = vmatmul.msk.bf16.gmra.mxu0 %vm699_vm1, %v1497_v10  ;;  %v4412_v35 = vadd.f32 %v1625_v33, %v1405_v5  ;;  %v5236_v10 = vld [vmem:[#allocation26_spill] sm:$0xff] }
 0x15d   : > { %3373 = vmatmul.msk.bf16.gmra.mxu3 %vm699_vm1, %v1059_v58  ;;  %v1500_v53 = vor.u32 %v1499_v52, %v1498_v36  ;;  %v1272_v5 = vrot.slane %v5236_v10, 1  ;;  %v5181_v52 = vshll.u32 %v5236_v10, 16 }
 0x15e   : > { %5234 = vst [vmem:[#allocation48_spill] sm:$0xff] %v4412_v35 }
 0x15f   : > { %v1169_v34 = vpop.f32.mrf.mxu2  ;;  %v1501_v46 = vsel %vm1434_vm3, %v1496_v26, %v1500_v53 }
 0x160   : > { %v1240_v54 = vadd.f32 %v1169_v34, %v943_v8  ;;  %v945_v12 = vpop.f32.mrf.mxu1  ;;  %v1338_v2 = vpop.f32.mrf.mxu3  ;;  %v3667_v8 = vld [vmem:[%s5136_s1] ss:$0 sm:$0xff] }
 0x161   : > { %v1627_v22 = vpop.f32.mrf.mxu0  ;;  %v946_v30 = vadd.f32 %v945_v12, %v4211_v56  ;;  %v421_v34 = vmul.f32 %v3667_v8, %v3624_v38  ;;  %v3668_v56 = vld [vmem:[%s5137_s2] ss:$0 sm:$0xff] }
 0x162   : > { %v1406_v43 = vadd.f32 %v1335_v41, %v1240_v54 }
 0x163   : > { %3313 = vmatmul.msk.bf16.gmra.mxu1 %vm699_vm1, %v3919_v6  ;;  %v466_v12 = vadd.f32 %v3668_v56, %v421_v34 }
 0x164   : > { %3343 = vmatmul.msk.bf16.gmra.mxu2 %vm699_vm1, %v1057_v25  ;;  %v4422_v33 = vadd.f32 %v1627_v22, %v1406_v43  ;;  %v1273_v22 = vsel %vm1024_vm2, %v4406_v19, %v1272_v5 }
 0x167   : > { %v1172_v35 = vpop.f32.mrf.mxu2 }
 0x168   : > { %v1241_v41 = vadd.f32 %v1172_v35, %v946_v30  ;;  %v947_v48 = vpop.f32.mrf.mxu1  ;;  %v1340_v54 = vpop.f32.mrf.mxu3  ;;  %v5182_v35 = vshrl.u32 %v5236_v10, 16 }
 0x169   : > { %v1630_v61 = vpop.f32.mrf.mxu0  ;;  %v948_v26 = vadd.f32 %v947_v48, %v4225_v55 }
 0x16a   : > { %v1407_v25 = vadd.f32 %v1338_v2, %v1241_v41  ;;  %v4442_v2 = vmax.f32 %v466_v12, 0.0 }
 0x16c   : > { %3403 = vmatmul.msk.bf16.gmra.mxu0 %vm699_vm1, %v1501_v46  ;;  %v4436_v36 = vadd.f32 %v1630_v61, %v1407_v25  ;;  %v1505_v46 = vrot.slane %v5182_v35, 1  ;;  %v1508_v61 = vrot.slane %v5181_v52, 2  ;;  %v4450_v25 = vpack.c.bf16 %v4442_v2, %v4442_v2 }
 0x16d   : > { %3374 = vmatmul.msk.bf16.gmra.mxu3 %vm699_vm1, %v1273_v22 }
 0x16e   : > { %5237 = vst [vmem:[#allocation18_spill] sm:$0xff] %v4436_v36  ;;  %v1509_v48 = vor.u32 %v1508_v61, %v1505_v46  ;;  %v1274_v56 = vrot.slane %v4450_v25, 1  ;;  %v1515_v46 = vshll.u32 %v4450_v25, 16 }
 0x16f   : > { %v1174_v43 = vpop.f32.mrf.mxu2 }
 0x170   : > { %v1242_v38 = vadd.f32 %v1174_v43, %v948_v26  ;;  %v950_v30 = vpop.f32.mrf.mxu1  ;;  %v1343_v8 = vpop.f32.mrf.mxu3  ;;  %v1510_v52 = vsel %vm1434_vm3, %v1500_v53, %v1509_v48  ;;  %v1275_v36 = vsel %vm1024_vm2, %v1272_v5, %v1274_v56 }
 0x171   : > { %v1632_v41 = vpop.f32.mrf.mxu0  ;;  %v951_v22 = vadd.f32 %v950_v30, %v4237_v42  ;;  %v1512_v30 = vshrl.u32 %v4450_v25, 16 }
 0x172   : > { %v1408_v34 = vadd.f32 %v1340_v54, %v1242_v38 }
 0x173   : > { %3314 = vmatmul.msk.bf16.gmra.mxu1 %vm699_vm1, %v3921_v9 }
 0x174   : > { %3344 = vmatmul.msk.bf16.gmra.mxu2 %vm699_vm1, %v1059_v58  ;;  %v4455_v55 = vadd.f32 %v1632_v41, %v1408_v34  ;;  %v5238_v41 = vld [vmem:[#allocation24_spill] sm:$0xff] }
 0x175   : > { %v1060_v42 = vrot.slane %v5238_v41, 1  ;;  %v2141_v41 = vrot.slane %v4003_v1, 3 }
 0x177   : > { %v1177_v12 = vpop.f32.mrf.mxu2  ;;  %v1061_v5 = vsel %vm1024_vm2, %v4406_v19, %v1060_v42  ;;  %v5240_v19 = vld [vmem:[#allocation39_spill] sm:$0xff] }
 0x178   : > { %v1243_v26 = vadd.f32 %v1177_v12, %v951_v22  ;;  %v952_v43 = vpop.f32.mrf.mxu1  ;;  %v1345_v54 = vpop.f32.mrf.mxu3 }
 0x179   : > { %v1635_v38 = vpop.f32.mrf.mxu0  ;;  %v953_v61 = vadd.f32 %v952_v43, %v4251_v0 }
 0x17a   : > { %v1409_v35 = vadd.f32 %v1343_v8, %v1243_v26  ;;  %v2138_v26 = vrot.slane %v3910_v47, 3 }
 0x17c   : > { %3404 = vmatmul.msk.bf16.gmra.mxu0 %vm699_vm1, %v1510_v52  ;;  %v4462_v58 = vadd.f32 %v1635_v38, %v1409_v35  ;;  %v1514_v35 = vrot.slane %v1512_v30, 1  ;;  %v1517_v52 = vrot.slane %v1515_v46, 2  ;;  %v2140_v38 = vrot.slane %v4072_v11, 2 }
 0x17d   : > { %3375 = vmatmul.msk.bf16.gmra.mxu3 %vm699_vm1, %v1275_v36  ;;  %v2137_v36 = vrot.slane %v3986_v28, 2 }
 0x17e   : > { %v1518_v43 = vor.u32 %v1517_v52, %v1514_v35  ;;  %v2142_v46 = vor.u32 %v2141_v41, %v2140_v38  ;;  %v5242_v35 = vld [vmem:[#allocation13_spill] sm:$0xff] }
 0x17f   : > { %v1179_v34 = vpop.f32.mrf.mxu2  ;;  %v2139_v30 = vor.u32 %v2138_v26, %v2137_v36  ;;  %v1728_v52 = vrot.slane %v5242_v35, 2  ;;  %v5245_v26 = vld [vmem:[#allocation42_spill] sm:$0xff] }
 0x180   : > { %v1244_v22 = vadd.f32 %v1179_v34, %v953_v61  ;;  %v955_v53 = vpop.f32.mrf.mxu1  ;;  %v1348_v8 = vpop.f32.mrf.mxu3  ;;  %v1519_v1 = vsel %vm1434_vm3, %v1509_v48, %v1518_v43 }
 0x181   : > { %v1637_v12 = vpop.f32.mrf.mxu0  ;;  %v956_v42 = vadd.f32 %v955_v53, %v5240_v19  ;;  %v2667_v53 = vld [vmem:[%s5139_s4] sm:$0xff] }
 0x182   : > { %v1410_v56 = vadd.f32 %v1345_v54, %v1244_v22  ;;  %v2143_v22 = vsel %vm2136_vm4, %v2139_v30, %v2142_v46 }
 0x183   : > { %3315 = vmatmul.msk.bf16.gmra.mxu1 %vm699_vm1, %v4017_v31 }
 0x184   : > { %3345 = vmatmul.msk.bf16.gmra.mxu2 %vm699_vm1, %v1061_v5  ;;  %v4478_v0 = vadd.f32 %v1637_v12, %v1410_v56  ;;  %v5241_v12 = vld [vmem:[#allocation9_spill] sm:$0xff] }
 0x185   : > { %v1727_v5 = vrot.slane %v5241_v12, 2  ;;  %v5244_v56 = vld [vmem:[#allocation17_spill] sm:$0xff] }
 0x186   : > { %5239 = vst [vmem:[#allocation26_spill] sm:$0xff] %v4478_v0  ;;  %v1730_v48 = vrot.slane %v5244_v56, 2 }
 0x187   : > { %v1182_v28 = vpop.f32.mrf.mxu2  ;;  %v1729_v30 = vsel %vm1726_vm5, %v1727_v5, %v1728_v52  ;;  %v2429_v5 = vrot.slane %v5242_v35, 3  ;;  %v2669_v35 = vld [vmem:[%s5139_s4 + $0x10] sm:$0xff] }
 0x188   : > { %v1245_v54 = vadd.f32 %v1182_v28, %v956_v42  ;;  %v957_v47 = vpop.f32.mrf.mxu1  ;;  %v1350_v61 = vpop.f32.mrf.mxu3 }
 0x189   : > { %v1640_v11 = vpop.f32.mrf.mxu0  ;;  %v958_v38 = vadd.f32 %v957_v47, %v5245_v26  ;;  %v2668_v47 = vld [vmem:[%s5139_s4 + $0x8] sm:$0xff] }
 0x18a   : > { %v1411_v34 = vadd.f32 %v1348_v8, %v1245_v54  ;;  %v3680_v8 = vmov 0   ;;  %v1731_v54 = vsel %vm1726_vm5, %v1728_v52, %v1730_v48  ;;  %v5249_v52 = vld [vmem:[#allocation27_spill] sm:$0xff] }
 0x18b   : > { %3662 = vset.pattern.permute.xlu0 %v3680_v8  ;;  %3663 = vset.pattern.permute.xlu1 %v3680_v8 }
 0x18c   : > { %3405 = vmatmul.msk.bf16.gmra.mxu0 %vm699_vm1, %v1519_v1  ;;  %v4489_v36 = vadd.f32 %v1640_v11, %v1411_v34  ;;  %2705 = vperm.xlu0 %3662, %v2667_v53   ;;  %v5246_v1 = vld [vmem:[#allocation25_spill] sm:$0xff] }
 0x18d   : > { %3478 = vmatmul.msk.bf16.vlgmr.msra.gmra.mxu3 %vm699_vm1, %v2143_v22  ;;  %3664 = vset.pattern.permute.xlu2 %v3680_v8  ;;  %v2144_v34 = vrot.slane %v5246_v1, 2  ;;  %v5247_v22 = vld [vmem:[#allocation23_spill] sm:$0xff]  ;;  %v2430_v8 = vrot.slane %v5244_v56, 3 }
 0x18e   : > { %5243 = vst [vmem:[#allocation24_spill] sm:$0xff] %v4489_v36  ;;  %v2145_v12 = vrot.slane %v5247_v22, 3  ;;  %2715 = vperm.xlu1 %3663, %v2669_v35   ;;  %v5256_v35 = vld [vmem:[#allocation29_spill] sm:$0xff] }
 0x18f   : > { %v1184_v41 = vpop.f32.mrf.mxu2  ;;  %v2431_v22 = vsel %vm2428_vm6, %v2429_v5, %v2430_v8 }
 0x190   : > { %v1246_v43 = vadd.f32 %v1184_v41, %v958_v38  ;;  %v960_v19 = vpop.f32.mrf.mxu1  ;;  %v1353_v42 = vpop.f32.mrf.mxu3  ;;  %v2146_v26 = vor.u32 %v2145_v12, %v2144_v34  ;;  %v5252_v34 = vld [vmem:[#allocation28_spill] sm:$0xff] }
 0x191   : > { %v1642_v28 = vpop.f32.mrf.mxu0 }
 0x192   : > { %v1412_v11 = vadd.f32 %v1350_v61, %v1246_v43  ;;  %v961_v61 = vadd.f32 %v960_v19, %v5249_v52  ;;  %v5251_v19 = vld [vmem:[#allocation22_spill] sm:$0xff] }
 0x193   : > { %3418 = vmatmul.msk.bf16.vlgmr.msra.gmra.mxu1 %vm699_vm1, %v1729_v30 }
 0x194   : > { %3448 = vmatmul.msk.bf16.vlgmr.msra.gmra.mxu2 %vm699_vm1, %v1731_v54  ;;  %v4503_v53 = vadd.f32 %v1642_v28, %v1412_v11  ;;  %2710 = vperm.xlu0 %3662, %v2668_v47   ;;  %v2147_v28 = vsel %vm2136_vm4, %v2142_v46, %v2146_v26  ;;  %v1732_v11 = vrot.slane %v5251_v19, 2 }
 0x196   : > { %5248 = vst [vmem:[#allocation39_spill] sm:$0xff] %v4503_v53  ;;  %v5254_v53 = vld [vmem:[#allocation4_spill] sm:$0xff] }
 0x197   : > { %v1187_v38 = vpop.f32.mrf.mxu2 }
 0x198   : > { %v1247_v41 = vadd.f32 %v1187_v38, %v961_v61  ;;  %v962_v43 = vpop.f32.mrf.mxu1  ;;  %v1355_v30 = vpop.f32.mrf.mxu3  ;;  %v1733_v61 = vsel %vm1726_vm5, %v1730_v48, %v1732_v11 }
 0x199   : > { %v1645_v1 = vpop.f32.mrf.mxu0  ;;  %v963_v12 = vadd.f32 %v962_v43, %v5252_v34 }
 0x19a   : > { %v1413_v36 = vadd.f32 %v1353_v42, %v1247_v41  ;;  %v5253_v41 = vld [vmem:[#allocation5_spill] sm:$0xff] }
 0x19c   : > { %3508 = vmatmul.msk.bf16.vlgmr.msra.gmra.mxu0 %vm699_vm1, %v2431_v22  ;;  %v4514_v56 = vadd.f32 %v1645_v1, %v1413_v36  ;;  %v2148_v22 = vrot.slane %v5253_v41, 2  ;;  %v2149_v36 = vrot.slane %v5254_v53, 3  ;;  %v2670_v1 = vld [vmem:[%s5139_s4 + $0x18] sm:$0xff] }
 0x19d   : > { %3479 = vmatmul.msk.bf16.gmra.mxu3 %vm699_vm1, %v2147_v28  ;;  %v2432_v28 = vrot.slane %v5251_v19, 3  ;;  %2720 = vperm.xlu1 %3663, %v2670_v1   ;;  %v5258_v19 = vld [vmem:[#allocation2_spill] sm:$0xff] }
 0x19e   : > { %5250 = vst [vmem:[#allocation9_spill] sm:$0xff] %v4514_v56 }
 0x19f   : > { %v1189_v47 = vpop.f32.mrf.mxu2  ;;  %v2433_v41 = vsel %vm2428_vm6, %v2430_v8, %v2432_v28 }
 0x1a0   : > { %v1248_v5 = vadd.f32 %v1189_v47, %v963_v12  ;;  %v965_v42 = vpop.f32.mrf.mxu1  ;;  %v1358_v52 = vpop.f32.mrf.mxu3 }
 0x1a1   : > { %v1647_v46 = vpop.f32.mrf.mxu0  ;;  %v966_v48 = vadd.f32 %v965_v42, %v5256_v35  ;;  %v5259_v42 = vld [vmem:[#allocation30_spill] sm:$0xff] }
 0x1a2   : > { %v1414_v38 = vadd.f32 %v1355_v30, %v1248_v5  ;;  %v2150_v30 = vor.u32 %v2149_v36, %v2148_v22 }
 0x1a3   : > { %3419 = vmatmul.msk.bf16.gmra.mxu1 %vm699_vm1, %v1731_v54 }
 0x1a4   : > { %3449 = vmatmul.msk.bf16.gmra.mxu2 %vm699_vm1, %v1733_v61  ;;  %v4527_v43 = vadd.f32 %v1647_v46, %v1414_v38  ;;  %v2151_v54 = vsel %vm2136_vm4, %v2146_v26, %v2150_v30  ;;  %v1734_v38 = vrot.slane %v5258_v19, 2 }
 0x1a6   : > { %5255 = vst [vmem:[#allocation13_spill] sm:$0xff] %v4527_v43  ;;  %v1735_v8 = vsel %vm1726_vm5, %v1732_v11, %v1734_v38  ;;  %v5261_v43 = vld [vmem:[#allocation6_spill] sm:$0xff] }
 0x1a7   : > { %v1192_v34 = vpop.f32.mrf.mxu2 }
 0x1a8   : > { %v1249_v12 = vadd.f32 %v1192_v34, %v966_v48  ;;  %v967_v47 = vpop.f32.mrf.mxu1  ;;  %v1360_v53 = vpop.f32.mrf.mxu3 }
 0x1a9   : > { %v1650_v5 = vpop.f32.mrf.mxu0  ;;  %v968_v22 = vadd.f32 %v967_v47, %v5259_v42  ;;  %v2434_v47 = vrot.slane %v5258_v19, 3 }
 0x1aa   : > { %v1415_v56 = vadd.f32 %v1358_v52, %v1249_v12  ;;  %v5260_v12 = vld [vmem:[#allocation10_spill] sm:$0xff] }
 0x1ab   : > { %v2152_v26 = vrot.slane %v5260_v12, 2 }
 0x1ac   : > { %3509 = vmatmul.msk.bf16.gmra.mxu0 %vm699_vm1, %v2433_v41  ;;  %v4534_v46 = vadd.f32 %v1650_v5, %v1415_v56  ;;  %v2153_v41 = vrot.slane %v5261_v43, 3  ;;  %v5263_v5 = vld [vmem:[#allocation32_spill] sm:$0xff] }
 0x1ad   : > { %3480 = vmatmul.msk.bf16.gmra.mxu3 %vm699_vm1, %v2151_v54 }
 0x1ae   : > { %5257 = vst [vmem:[#allocation17_spill] sm:$0xff] %v4534_v46  ;;  %v2154_v42 = vor.u32 %v2153_v41, %v2152_v26 }
 0x1af   : > { %v1194_v36 = vpop.f32.mrf.mxu2 }
 0x1b0   : > { %v1250_v1 = vadd.f32 %v1194_v36, %v968_v22  ;;  %v970_v35 = vpop.f32.mrf.mxu1  ;;  %v1363_v48 = vpop.f32.mrf.mxu3  ;;  %v2155_v43 = vsel %vm2136_vm4, %v2150_v30, %v2154_v42 }
 0x1b1   : > { %v1652_v34 = vpop.f32.mrf.mxu0  ;;  %v971_v54 = vadd.f32 %v970_v35, %v5263_v5  ;;  %v5265_v35 = vld [vmem:[#allocation3_spill] sm:$0xff] }
 0x1b2   : > { %v1416_v52 = vadd.f32 %v1360_v53, %v1250_v1  ;;  %v2435_v1 = vsel %vm2428_vm6, %v2432_v28, %v2434_v47 }
 0x1b3   : > { %3420 = vmatmul.msk.bf16.gmra.mxu1 %vm699_vm1, %v1733_v61  ;;  %v2673_v61 = vld [vmem:[%s5139_s4 + $0x30] sm:$0xff] }
 0x1b4   : > { %3450 = vmatmul.msk.bf16.gmra.mxu2 %vm699_vm1, %v1735_v8  ;;  %v4544_v56 = vadd.f32 %v1652_v34, %v1416_v52  ;;  %v1736_v34 = vrot.slane %v5265_v35, 2  ;;  %2735 = vperm.xlu0 %3662, %v2673_v61   ;;  %v5266_v52 = vld [vmem:[#allocation34_spill] sm:$0xff] }
 0x1b6   : > { %5262 = vst [vmem:[#allocation42_spill] sm:$0xff] %v4544_v56  ;;  %v5268_v56 = vld [vmem:[#allocation12_spill] sm:$0xff] }
 0x1b7   : > { %v1197_v22 = vpop.f32.mrf.mxu2 }
 0x1b8   : > { %v1251_v36 = vadd.f32 %v1197_v22, %v971_v54  ;;  %v972_v46 = vpop.f32.mrf.mxu1  ;;  %v1365_v11 = vpop.f32.mrf.mxu3  ;;  %v1737_v54 = vsel %vm1726_vm5, %v1734_v38, %v1736_v34 }
 0x1b9   : > { %v1655_v53 = vpop.f32.mrf.mxu0  ;;  %v973_v26 = vadd.f32 %v972_v46, %v5266_v52  ;;  %v2674_v46 = vld [vmem:[%s5139_s4 + $0x38] sm:$0xff] }
 0x1ba   : > { %v1417_v12 = vadd.f32 %v1363_v48, %v1251_v36  ;;  %v5267_v36 = vld [vmem:[#allocation14_spill] sm:$0xff]  ;;  %2740 = vperm.xlu1 %3663, %v2674_v46  }
 0x1bc   : > { %3510 = vmatmul.msk.bf16.gmra.mxu0 %vm699_vm1, %v2435_v1  ;;  %v4554_v19 = vadd.f32 %v1655_v53, %v1417_v12  ;;  %v2156_v1 = vrot.slane %v5267_v36, 2  ;;  %v2157_v53 = vrot.slane %v5268_v56, 3  ;;  %v2671_v12 = vld [vmem:[%s5139_s4 + $0x20] sm:$0xff] }
 0x1bd   : > { %3481 = vmatmul.msk.bf16.gmra.mxu3 %vm699_vm1, %v2155_v43  ;;  %2725 = vperm.xlu2 %3664, %v2671_v12   ;;  %v5269_v43 = vld [vmem:[#allocation36_spill] sm:$0xff] }
 0x1be   : > { %5264 = vst [vmem:[#allocation25_spill] sm:$0xff] %v4554_v19  ;;  %v2158_v61 = vor.u32 %v2157_v53, %v2156_v1  ;;  %v5272_v1 = vld [vmem:[#allocation38_spill] sm:$0xff] }
 0x1bf   : > { %v1199_v41 = vpop.f32.mrf.mxu2 }
 0x1c0   : > { %v1252_v28 = vadd.f32 %v1199_v41, %v973_v26  ;;  %v975_v48 = vpop.f32.mrf.mxu1  ;;  %v1368_v5 = vpop.f32.mrf.mxu3 }
 0x1c1   : > { %v1657_v30 = vpop.f32.mrf.mxu0  ;;  %v976_v56 = vadd.f32 %v975_v48, %v5269_v43  ;;  %v5271_v48 = vld [vmem:[#allocation11_spill] sm:$0xff] }
 0x1c2   : > { %v1418_v22 = vadd.f32 %v1365_v11, %v1252_v28  ;;  %v2436_v11 = vrot.slane %v5265_v35, 3 }
 0x1c3   : > { %3421 = vmatmul.msk.bf16.gmra.mxu1 %vm699_vm1, %v1735_v8  ;;  %v2159_v8 = vsel %vm2136_vm4, %v2154_v42, %v2158_v61 }
 0x1c4   : > { %3451 = vmatmul.msk.bf16.gmra.mxu2 %vm699_vm1, %v1737_v54  ;;  %v4570_v38 = vadd.f32 %v1657_v30, %v1418_v22  ;;  %v2437_v19 = vsel %vm2428_vm6, %v2434_v47, %v2436_v11  ;;  %v2672_v30 = vld [vmem:[%s5139_s4 + $0x28] sm:$0xff]  ;;  %v1738_v22 = vrot.slane %v5271_v48, 2 }
 0x1c5   : > { %2730 = vperm.xlu2 %3664, %v2672_v30   ;;  %v5276_v30 = vld [vmem:[#allocation41_spill] sm:$0xff] }
 0x1c7   : > { %v1202_v52 = vpop.f32.mrf.mxu2 }
 0x1c8   : > { %v1253_v26 = vadd.f32 %v1202_v52, %v976_v56  ;;  %v977_v41 = vpop.f32.mrf.mxu1  ;;  %v1370_v28 = vpop.f32.mrf.mxu3  ;;  %v5273_v56 = vld [vmem:[#allocation19_spill] sm:$0xff] }
 0x1c9   : > { %v1660_v36 = vpop.f32.mrf.mxu0  ;;  %v978_v53 = vadd.f32 %v977_v41, %v5272_v1  ;;  %v2160_v52 = vrot.slane %v5273_v56, 2 }
 0x1ca   : > { %v1419_v0 = vadd.f32 %v1368_v5, %v1253_v26  ;;  %v5274_v26 = vld [vmem:[#allocation16_spill] sm:$0xff] }
 0x1cc   : > { %3511 = vmatmul.msk.bf16.gmra.mxu0 %vm699_vm1, %v2437_v19  ;;  %v4580_v35 = vadd.f32 %v1660_v36, %v1419_v0  ;;  %v1739_v19 = vsel %vm1726_vm5, %v1736_v34, %v1738_v22  ;;  %v2161_v0 = vrot.slane %v5274_v26, 3  ;;  %v2676_v36 = vld [vmem:[%s5139_s4 + $0x48] sm:$0xff] }
 0x1cd   : > { %3482 = vmatmul.msk.bf16.gmra.mxu3 %vm699_vm1, %v2159_v8  ;;  %2750 = vperm.xlu0 %3662, %v2676_v36   ;;  %v2438_v8 = vrot.slane %v5271_v48, 3 }
 0x1ce   : > { %5270 = vst [vmem:[#allocation23_spill] sm:$0xff] %v4580_v35 }
 0x1cf   : > { %v1204_v12 = vpop.f32.mrf.mxu2  ;;  %v2439_v26 = vsel %vm2428_vm6, %v2436_v11, %v2438_v8 }
 0x1d0   : > { %v1254_v47 = vadd.f32 %v1204_v12, %v978_v53  ;;  %v980_v5 = vpop.f32.mrf.mxu1  ;;  %v1373_v46 = vpop.f32.mrf.mxu3 }
 0x1d1   : > { %v1662_v42 = vpop.f32.mrf.mxu0  ;;  %v981_v34 = vadd.f32 %v980_v5, %v5276_v30  ;;  %v5278_v5 = vld [vmem:[#allocation15_spill] sm:$0xff] }
 0x1d2   : > { %v1420_v43 = vadd.f32 %v1370_v28, %v1254_v47  ;;  %v2162_v28 = vor.u32 %v2161_v0, %v2160_v52  ;;  %v5279_v52 = vld [vmem:[#allocation44_spill] sm:$0xff] }
 0x1d3   : > { %3422 = vmatmul.msk.bf16.gmra.mxu1 %vm699_vm1, %v1737_v54 }
 0x1d4   : > { %3452 = vmatmul.msk.bf16.gmra.mxu2 %vm699_vm1, %v1739_v19  ;;  %v4593_v41 = vadd.f32 %v1662_v42, %v1420_v43  ;;  %v2163_v54 = vsel %vm2136_vm4, %v2158_v61, %v2162_v28  ;;  %v2677_v42 = vld [vmem:[%s5139_s4 + $0x50] sm:$0xff]  ;;  %v1740_v43 = vrot.slane %v5278_v5, 2 }
 0x1d5   : > { %2755 = vperm.xlu1 %3663, %v2677_v42   ;;  %v5282_v42 = vld [vmem:[#allocation31_spill] sm:$0xff] }
 0x1d6   : > { %5275 = vst [vmem:[#allocation27_spill] sm:$0xff] %v4593_v41  ;;  %v5281_v41 = vld [vmem:[#allocation20_spill] sm:$0xff] }
 0x1d7   : > { %v1207_v1 = vpop.f32.mrf.mxu2 }
 0x1d8   : > { %v1255_v53 = vadd.f32 %v1207_v1, %v981_v34  ;;  %v982_v12 = vpop.f32.mrf.mxu1  ;;  %v1375_v47 = vpop.f32.mrf.mxu3  ;;  %v1741_v34 = vsel %vm1726_vm5, %v1738_v22, %v1740_v43 }
 0x1d9   : > { %v1665_v56 = vpop.f32.mrf.mxu0  ;;  %v983_v0 = vadd.f32 %v982_v12, %v5279_v52 }
 0x1da   : > { %v1421_v35 = vadd.f32 %v1373_v46, %v1255_v53  ;;  %v5280_v53 = vld [vmem:[#allocation21_spill] sm:$0xff] }
 0x1dc   : > { %3512 = vmatmul.msk.bf16.gmra.mxu0 %vm699_vm1, %v2439_v26  ;;  %v4603_v48 = vadd.f32 %v1665_v56, %v1421_v35  ;;  %v2164_v26 = vrot.slane %v5280_v53, 2  ;;  %v2165_v35 = vrot.slane %v5281_v41, 3  ;;  %v2675_v56 = vld [vmem:[%s5139_s4 + $0x40] sm:$0xff] }
 0x1dd   : > { %3483 = vmatmul.msk.bf16.gmra.mxu3 %vm699_vm1, %v2163_v54  ;;  %2745 = vperm.xlu2 %3664, %v2675_v56   ;;  %v2440_v54 = vrot.slane %v5278_v5, 3 }
 0x1de   : > { %5277 = vst [vmem:[#allocation22_spill] sm:$0xff] %v4603_v48 }
 0x1df   : > { %v1209_v36 = vpop.f32.mrf.mxu2  ;;  %v2441_v53 = vsel %vm2428_vm6, %v2438_v8, %v2440_v54 }
 0x1e0   : > { %v1256_v11 = vadd.f32 %v1209_v36, %v983_v0  ;;  %v985_v46 = vpop.f32.mrf.mxu1  ;;  %v1378_v30 = vpop.f32.mrf.mxu3 }
 0x1e1   : > { %v1667_v61 = vpop.f32.mrf.mxu0  ;;  %v986_v22 = vadd.f32 %v985_v46, %v5282_v42  ;;  %v1742_v46 = vrot.slane %v4033_v29, 2 }
 0x1e2   : > { %v1422_v1 = vadd.f32 %v1375_v47, %v1256_v11  ;;  %v2166_v47 = vor.u32 %v2165_v35, %v2164_v26 }
 0x1e3   : > { %3423 = vmatmul.msk.bf16.gmra.mxu1 %vm699_vm1, %v1739_v19  ;;  %v1743_v42 = vsel %vm1726_vm5, %v1740_v43, %v1742_v46 }
 0x1e4   : > { %3453 = vmatmul.msk.bf16.gmra.mxu2 %vm699_vm1, %v1741_v34  ;;  %v4616_v12 = vadd.f32 %v1667_v61, %v1422_v1  ;;  %v2167_v19 = vsel %vm2136_vm4, %v2162_v28, %v2166_v47  ;;  %v2679_v61 = vld [vmem:[%s5139_s4 + $0x60] sm:$0xff]  ;;  %v5284_v1 = vld [vmem:[#allocation33_spill] sm:$0xff] }
 0x1e5   : > { %2765 = vperm.xlu0 %3662, %v2679_v61   ;;  %v5287_v61 = vld [vmem:[#allocation35_spill] sm:$0xff] }
 0x1e7   : > { %v1212_v52 = vpop.f32.mrf.mxu2 }
 0x1e8   : > { %v1257_v0 = vadd.f32 %v1212_v52, %v986_v22  ;;  %v987_v36 = vpop.f32.mrf.mxu1  ;;  %v1380_v41 = vpop.f32.mrf.mxu3  ;;  %v5285_v52 = vld [vmem:[#allocation8_spill] sm:$0xff] }
 0x1e9   : > { %v1670_v11 = vpop.f32.mrf.mxu0  ;;  %v988_v26 = vadd.f32 %v987_v36, %v5284_v1 }
 0x1ea   : > { %v1423_v48 = vadd.f32 %v1378_v30, %v1257_v0  ;;  %v2168_v0 = vrot.slane %v5285_v52, 2 }
 0x1ec   : > { %3513 = vmatmul.msk.bf16.gmra.mxu0 %vm699_vm1, %v2441_v53  ;;  %v4626_v5 = vadd.f32 %v1670_v11, %v1423_v48  ;;  %v5286_v53 = vld [vmem:[#allocation7_spill] sm:$0xff] }
 0x1ed   : > { %3484 = vmatmul.msk.bf16.gmra.mxu3 %vm699_vm1, %v2167_v19  ;;  %v2169_v48 = vrot.slane %v5286_v53, 3  ;;  %v2680_v11 = vld [vmem:[%s5139_s4 + $0x68] sm:$0xff]  ;;  %v2442_v19 = vrot.slane %v4033_v29, 3  ;;  %v1744_v29 = vrot.slane %v3788_v49, 2 }
 0x1ee   : > { %5283 = vst [vmem:[#allocation28_spill] sm:$0xff] %v4626_v5  ;;  %2770 = vperm.xlu1 %3663, %v2680_v11  }
 0x1ef   : > { %v1214_v35 = vpop.f32.mrf.mxu2  ;;  %v2443_v53 = vsel %vm2428_vm6, %v2440_v54, %v2442_v19 }
 0x1f0   : > { %v1258_v8 = vadd.f32 %v1214_v35, %v988_v26  ;;  %v990_v30 = vpop.f32.mrf.mxu1  ;;  %v1383_v56 = vpop.f32.mrf.mxu3 }
 0x1f1   : > { %v1672_v28 = vpop.f32.mrf.mxu0  ;;  %v991_v43 = vadd.f32 %v990_v30, %v5287_v61  ;;  %v5288_v30 = vld [vmem:[#allocation37_spill] sm:$0xff]  ;;  %v1745_v61 = vsel %vm1726_vm5, %v1742_v46, %v1744_v29 }
 0x1f2   : > { %v1424_v22 = vadd.f32 %v1380_v41, %v1258_v8  ;;  %v2170_v41 = vor.u32 %v2169_v48, %v2168_v0 }
 0x1f3   : > { %3424 = vmatmul.msk.bf16.gmra.mxu1 %vm699_vm1, %v1741_v34 }
 0x1f4   : > { %3454 = vmatmul.msk.bf16.gmra.mxu2 %vm699_vm1, %v1743_v42  ;;  %v4639_v36 = vadd.f32 %v1672_v28, %v1424_v22  ;;  %v2171_v34 = vsel %vm2136_vm4, %v2166_v47, %v2170_v41  ;;  %v2678_v22 = vld [vmem:[%s5139_s4 + $0x58] sm:$0xff] }
 0x1f5   : > { %2760 = vperm.xlu2 %3664, %v2678_v22  }
 0x1f7   : > { %v1217_v1 = vpop.f32.mrf.mxu2 }
 0x1f8   : > { %v1259_v26 = vadd.f32 %v1217_v1, %v991_v43  ;;  %v992_v35 = vpop.f32.mrf.mxu1  ;;  %v1385_v8 = vpop.f32.mrf.mxu3  ;;  %v2172_v43 = vrot.slane %v3852_v39, 2  ;;  %v2173_v1 = vrot.slane %v3809_v59, 3 }
 0x1f9   : > { %v1675_v52 = vpop.f32.mrf.mxu0  ;;  %v993_v28 = vadd.f32 %v992_v35, %v5288_v30 }
 0x1fa   : > { %v1425_v5 = vadd.f32 %v1383_v56, %v1259_v26  ;;  %v2682_v26 = vld [vmem:[%s5139_s4 + $0x78] sm:$0xff] }
 0x1fb   : > { %2780 = vperm.xlu0 %3662, %v2682_v26  }
 0x1fc   : > { %3514 = vmatmul.msk.bf16.gmra.mxu0 %vm699_vm1, %v2443_v53  ;;  %v4646_v11 = vadd.f32 %v1675_v52, %v1425_v5  ;;  %v2444_v52 = vrot.slane %v3788_v49, 3  ;;  %v5289_v53 = vld [vmem:[#allocation40_spill] sm:$0xff]  ;;  %v1746_v49 = vrot.slane %v3790_v50, 2 }
 0x1fd   : > { %3485 = vmatmul.msk.bf16.gmra.mxu3 %vm699_vm1, %v2171_v34 }
 0x1fe   : > { %v2445_v22 = vsel %vm2428_vm6, %v2442_v19, %v2444_v52  ;;  %v1747_v26 = vsel %vm1726_vm5, %v1744_v29, %v1746_v49 }
 0x1ff   : > { %v1219_v0 = vpop.f32.mrf.mxu2 }
 0x200   : > { %v1260_v54 = vadd.f32 %v1219_v0, %v993_v28  ;;  %v995_v56 = vpop.f32.mrf.mxu1  ;;  %v1388_v48 = vpop.f32.mrf.mxu3 }
 0x201   : > { %v1677_v47 = vpop.f32.mrf.mxu0  ;;  %v996_v46 = vadd.f32 %v995_v56, %v5289_v53  ;;  %v5290_v56 = vld [vmem:[#allocation43_spill] sm:$0xff] }
 0x202   : > { %v1426_v5 = vadd.f32 %v1385_v8, %v1260_v54  ;;  %v2174_v8 = vor.u32 %v2173_v1, %v2172_v43 }
 0x203   : > { %3425 = vmatmul.msk.bf16.gmra.mxu1 %vm699_vm1, %v1743_v42 }
 0x204   : > { %3455 = vmatmul.msk.bf16.gmra.mxu2 %vm699_vm1, %v1745_v61  ;;  %v4662_v35 = vadd.f32 %v1677_v47, %v1426_v5  ;;  %v2175_v42 = vsel %vm2136_vm4, %v2170_v41, %v2174_v8  ;;  %v2683_v5 = vld [vmem:[%s5139_s4 + $0x80] sm:$0xff] }
 0x205   : > { %2785 = vperm.xlu1 %3663, %v2683_v5  }
 0x207   : > { %v1222_v34 = vpop.f32.mrf.mxu2 }
 0x208   : > { %v1261_v39 = vadd.f32 %v1222_v34, %v996_v46  ;;  %v997_v30 = vpop.f32.mrf.mxu1  ;;  %v1390_v59 = vpop.f32.mrf.mxu3  ;;  %v2176_v46 = vrot.slane %v3953_v40, 2  ;;  %v2177_v34 = vrot.slane %v3888_v21, 3 }
 0x209   : > { %v1680_v28 = vpop.f32.mrf.mxu0  ;;  %v998_v47 = vadd.f32 %v997_v30, %v5290_v56  ;;  %v2706_v56 = vpop.permute.xlu0 %2705 }
 0x20a   : > { %v1427_v0 = vadd.f32 %v1388_v48, %v1261_v39  ;;  %v2681_v39 = vld [vmem:[%s5139_s4 + $0x70] sm:$0xff] }
 0x20b   : > { %2775 = vperm.xlu2 %3664, %v2681_v39   ;;  %v2180_v39 = vrot.slane %v4043_v62, 2 }
 0x20c   : > { %3515 = vmatmul.msk.bf16.gmra.mxu0 %vm699_vm1, %v2445_v22  ;;  %v4669_v54 = vadd.f32 %v1680_v28, %v1427_v0  ;;  %v2446_v28 = vrot.slane %v3790_v50, 3 }
 0x20d   : > { %3486 = vmatmul.msk.bf16.gmra.mxu3 %vm699_vm1, %v2175_v42 }
 0x20e   : > { %v2447_v42 = vsel %vm2428_vm6, %v2444_v52, %v2446_v28 }
 0x20f   : > { %v1224_v43 = vpop.f32.mrf.mxu2 }
 0x210   : > { %v1262_v19 = vadd.f32 %v1224_v43, %v998_v47  ;;  %v1839_v48 = vpop.f32.mrf.mxu1  ;;  %v2297_v41 = vpop.f32.mrf.mxu3 }
 0x211   : > { %v1682_v1 = vpop.f32.mrf.mxu0  ;;  %v1929_v29 = vadd.f32 %v1839_v48, %v4314_v32  ;;  %v1748_v32 = vrot.slane %v3872_v63, 2 }
 0x212   : > { %v1428_v53 = vadd.f32 %v1390_v59, %v1262_v19  ;;  %v2178_v59 = vor.u32 %v2177_v34, %v2176_v46 }
 0x213   : > { %3426 = vmatmul.msk.bf16.gmra.mxu1 %vm699_vm1, %v1745_v61 }
 0x214   : > { %3456 = vmatmul.msk.bf16.gmra.mxu2 %vm699_vm1, %v1747_v26  ;;  %v4685_v30 = vadd.f32 %v1682_v1, %v1428_v53  ;;  %v2179_v5 = vsel %vm2136_vm4, %v2174_v8, %v2178_v59  ;;  %v2685_v8 = vld [vmem:[%s5139_s4 + $0x90] sm:$0xff]  ;;  %v1749_v53 = vsel %vm1726_vm5, %v1746_v49, %v1748_v32 }
 0x215   : > { %2795 = vperm.xlu0 %3662, %v2685_v8  }
 0x217   : > { %v2005_v40 = vpop.f32.mrf.mxu2 }
 0x218   : > { %v2095_v22 = vadd.f32 %v2005_v40, %v1929_v29  ;;  %v1841_v21 = vpop.f32.mrf.mxu1  ;;  %v2299_v0 = vpop.f32.mrf.mxu3  ;;  %v2686_v40 = vld [vmem:[%s5139_s4 + $0x98] sm:$0xff] }
 0x219   : > { %v2541_v61 = vpop.f32.mrf.mxu0  ;;  %v1930_v52 = vadd.f32 %v1841_v21, %v4323_v57  ;;  %v2181_v57 = vrot.slane %v3983_v27, 3  ;;  %v2711_v29 = vpop.permute.xlu0 %2710  ;;  %2800 = vperm.xlu1 %3663, %v2686_v40   ;;  %v2448_v21 = vrot.slane %v3872_v63, 3  ;;  %v2684_v40 = vld [vmem:[%s5139_s4 + $0x88] sm:$0xff]  ;;  %v1752_v63 = vrot.slane %v4053_v20, 2 }
 0x21a   : > { %v2387_v47 = vadd.f32 %v2297_v41, %v2095_v22  ;;  %2790 = vperm.xlu2 %3664, %v2684_v40   ;;  %v2726_v40 = vpop.permute.xlu2 %2725 }
 0x21b   : > { %v4720_v62 = vor.u32 %v2181_v57, %v2180_v39  ;;  %v2688_v57 = vld [vmem:[%s5139_s4 + $0xa8] sm:$0xff] }
 0x21c   : > { %3516 = vmatmul.msk.bf16.gmra.mxu0 %vm699_vm1, %v2447_v42  ;;  %v2631_v50 = vadd.f32 %v2541_v61, %v2387_v47 }
 0x21d   : > { %3487 = vmatmul.msk.bf16.gmra.mxu3 %vm699_vm1, %v2179_v5  ;;  %2810 = vperm.xlu0 %3662, %v2688_v57  }
 0x21e   : > { %3112 = vst.msk [vmem:[%s4695_s30] sm:$0xff] %vm699_vm1, %v2631_v50  ;;  %v2883_v46 = vmul.f32 %v2706_v56, %v2631_v50 }
 0x21f   : > { %v2007_v43 = vpop.f32.mrf.mxu2 }
 0x220   : > { %v2096_v19 = vadd.f32 %v2007_v43, %v1930_v52  ;;  %v1844_v48 = vpop.f32.mrf.mxu1  ;;  %v2302_v41 = vpop.f32.mrf.mxu3  ;;  %v2998_v49 = vmul.f32 %v2883_v46, %v2631_v50 }
 0x221   : > { %v2543_v1 = vpop.f32.mrf.mxu0  ;;  %v2716_v50 = vpop.permute.xlu1 %2715 }
 0x222   : > { %v2388_v34 = vadd.f32 %v2299_v0, %v2096_v19  ;;  %v1931_v0 = vadd.f32 %v1844_v48, %v4330_v51  ;;  %v2449_v51 = vsel %vm2428_vm6, %v2446_v28, %v2448_v21  ;;  %v3034_v19 = vsel %vm699_vm1, %v2998_v49, 0.0 }
 0x223   : > { %3427 = vmatmul.msk.bf16.gmra.mxu1 %vm699_vm1, %v1747_v26  ;;  %v2919_v26 = vsel %vm699_vm1, %v2883_v46, 0.0  ;;  %v2183_v46 = vsel %vm2136_vm4, %v2178_v59, %v4720_v62  ;;  %v1750_v28 = vrot.slane %v3973_v3, 2  ;;  %v2689_v59 = vld [vmem:[%s5139_s4 + $0xb0] sm:$0xff] }
 0x224   : > { %3457 = vmatmul.msk.bf16.gmra.mxu2 %vm699_vm1, %v1749_v53  ;;  %v2632_v22 = vadd.f32 %v2543_v1, %v2388_v34  ;;  %2815 = vperm.xlu1 %3663, %v2689_v59  }
 0x226   : > { %v2884_v61 = vmul.f32 %v2711_v29, %v2632_v22  ;;  %3113 = vst.msk [vmem:[%s4695_s30 + $0x8] sm:$0xff] %vm699_vm1, %v2632_v22 }
 0x227   : > { %v2010_v27 = vpop.f32.mrf.mxu2 }
 0x228   : > { %v2920_v42 = vsel %vm699_vm1, %v2884_v61, 0.0  ;;  %v2999_v56 = vmul.f32 %v2884_v61, %v2632_v22  ;;  %v2097_v47 = vadd.f32 %v2010_v27, %v1931_v0  ;;  %v1846_v5 = vpop.f32.mrf.mxu1  ;;  %v2304_v52 = vpop.f32.mrf.mxu3 }
 0x229   : > { %v2546_v8 = vpop.f32.mrf.mxu0  ;;  %v2921_v43 = vadd.f32 %v2920_v42, %v2919_v26 }
 0x22a   : > { %v3035_v48 = vsel %vm699_vm1, %v2999_v56, 0.0  ;;  %v2389_v1 = vadd.f32 %v2302_v41, %v2097_v47  ;;  %v1932_v41 = vadd.f32 %v1846_v5, %v4339_v7  ;;  %v1751_v56 = vsel %vm1726_vm5, %v1748_v32, %v1750_v28  ;;  %v2692_v32 = vld [vmem:[%s5139_s4 + $0xc8] sm:$0xff] }
 0x22b   : > { %v3036_v34 = vadd.f32 %v3035_v48, %v3034_v19  ;;  %v2721_v19 = vpop.permute.xlu1 %2720 }
 0x22c   : > { %3517 = vmatmul.msk.bf16.gmra.mxu0 %vm699_vm1, %v2449_v51  ;;  %v2633_v39 = vadd.f32 %v2546_v8, %v2389_v1  ;;  %v2184_v8 = vrot.slane %v4108_v4, 2  ;;  %v2185_v51 = vrot.slane %v4063_v16, 3  ;;  %2830 = vperm.xlu1 %3663, %v2692_v32  }
 0x22d   : > { %3488 = vmatmul.msk.bf16.gmra.mxu3 %vm699_vm1, %v2183_v46 }
 0x22e   : > { %3114 = vst.msk [vmem:[%s4695_s30 + $0x10] sm:$0xff] %vm699_vm1, %v2633_v39  ;;  %v2885_v29 = vmul.f32 %v2716_v50, %v2633_v39 }
 0x22f   : > { %v2012_v22 = vpop.f32.mrf.mxu2 }
 0x230   : > { %v2922_v49 = vsel %vm699_vm1, %v2885_v29, 0.0  ;;  %v3000_v0 = vmul.f32 %v2885_v29, %v2633_v39  ;;  %v2098_v61 = vadd.f32 %v2012_v22, %v1932_v41  ;;  %v1849_v27 = vpop.f32.mrf.mxu1  ;;  %v2307_v26 = vpop.f32.mrf.mxu3 }
 0x231   : > { %v2548_v42 = vpop.f32.mrf.mxu0  ;;  %v2923_v7 = vadd.f32 %v2922_v49, %v2921_v43  ;;  %v2691_v43 = vld [vmem:[%s5139_s4 + $0xc0] sm:$0xff]  ;;  %v1933_v16 = vadd.f32 %v1849_v27, %v4346_v45 }
 0x232   : > { %v3037_v47 = vsel %vm699_vm1, %v3000_v0, 0.0  ;;  %v2390_v5 = vadd.f32 %v2304_v52, %v2098_v61  ;;  %v2450_v52 = vrot.slane %v3973_v3, 3  ;;  %2825 = vperm.xlu0 %3662, %v2691_v43   ;;  %v1754_v3 = vrot.slane %v3919_v6, 2 }
 0x233   : > { %v3038_v50 = vadd.f32 %v3037_v47, %v3036_v34  ;;  %3428 = vmatmul.msk.bf16.gmra.mxu1 %vm699_vm1, %v1749_v53  ;;  %v4767_v53 = vor.u32 %v2185_v51, %v2184_v8 }
 0x234   : > { %3458 = vmatmul.msk.bf16.gmra.mxu2 %vm699_vm1, %v1751_v56  ;;  %v2634_v48 = vadd.f32 %v2548_v42, %v2390_v5  ;;  %v2451_v45 = vsel %vm2428_vm6, %v2448_v21, %v2450_v52  ;;  %v2694_v42 = vld [vmem:[%s5139_s4 + $0xd8] sm:$0xff] }
 0x235   : > { %v2187_v0 = vsel %vm2136_vm4, %v4720_v62, %v4767_v53  ;;  %v2695_v62 = vld [vmem:[%s5139_s4 + $0xe0] sm:$0xff] }
 0x236   : > { %v2886_v4 = vmul.f32 %v2721_v19, %v2634_v48  ;;  %3115 = vst.msk [vmem:[%s4695_s30 + $0x18] sm:$0xff] %vm699_vm1, %v2634_v48  ;;  %2845 = vperm.xlu1 %3663, %v2695_v62  }
 0x237   : > { %v2015_v1 = vpop.f32.mrf.mxu2 }
 0x238   : > { %v2924_v46 = vsel %vm699_vm1, %v2886_v4, 0.0  ;;  %v3001_v34 = vmul.f32 %v2886_v4, %v2634_v48  ;;  %v2099_v39 = vadd.f32 %v2015_v1, %v1933_v16  ;;  %v1851_v57 = vpop.f32.mrf.mxu1  ;;  %v2309_v41 = vpop.f32.mrf.mxu3  ;;  %v1753_v48 = vsel %vm1726_vm5, %v1750_v28, %v1752_v63  ;;  %v2698_v28 = vld [vmem:[%s5139_s4 + $0xf8] sm:$0xff] }
 0x239   : > { %v2551_v29 = vpop.f32.mrf.mxu0  ;;  %v2925_v59 = vadd.f32 %v2924_v46, %v2923_v7  ;;  %v1934_v21 = vadd.f32 %v1851_v57, %v4355_v24  ;;  %v2687_v7 = vld [vmem:[%s5139_s4 + $0xa0] sm:$0xff]  ;;  %v2188_v4 = vrot.slane %v3929_v17, 2  ;;  %v2189_v1 = vrot.slane %v3926_v15, 3  ;;  %v2690_v17 = vld [vmem:[%s5139_s4 + $0xb8] sm:$0xff] }
 0x23a   : > { %v3039_v22 = vsel %vm699_vm1, %v3001_v34, 0.0  ;;  %v2391_v49 = vadd.f32 %v2307_v26, %v2099_v39  ;;  %2840 = vperm.xlu0 %3662, %v2694_v42   ;;  %2805 = vperm.xlu2 %3664, %v2687_v7   ;;  %v2731_v34 = vpop.permute.xlu2 %2730  ;;  %v2697_v39 = vld [vmem:[%s5139_s4 + $0xf0] sm:$0xff]  ;;  %v2452_v15 = vrot.slane %v4053_v20, 3  ;;  %v2736_v7 = vpop.permute.xlu0 %2735 }
 0x23b   : > { %v3040_v61 = vadd.f32 %v3039_v22, %v3038_v50 }
 0x23c   : > { %3518 = vmatmul.msk.bf16.gmra.mxu0 %vm699_vm1, %v2451_v45  ;;  %v2635_v27 = vadd.f32 %v2551_v29, %v2391_v49  ;;  %v4818_v29 = vor.u32 %v2189_v1, %v2188_v4 }
 0x23d   : > { %3489 = vmatmul.msk.bf16.gmra.mxu3 %vm699_vm1, %v2187_v0 }
 0x23e   : > { %3116 = vst.msk [vmem:[%s4695_s30 + $0x20] sm:$0xff] %vm699_vm1, %v2635_v27  ;;  %v2887_v26 = vmul.f32 %v2726_v40, %v2635_v27  ;;  %2860 = vperm.xlu1 %3663, %v2698_v28   ;;  %v2192_v28 = vrot.slane %v3999_v60, 2 }
 0x23f   : > { %v2017_v47 = vpop.f32.mrf.mxu2 }
 0x240   : > { %v2926_v5 = vsel %vm699_vm1, %v2887_v26, 0.0  ;;  %v3002_v8 = vmul.f32 %v2887_v26, %v2635_v27  ;;  %v2100_v51 = vadd.f32 %v2017_v47, %v1934_v21  ;;  %v1854_v50 = vpop.f32.mrf.mxu1  ;;  %v2312_v19 = vpop.f32.mrf.mxu3  ;;  %v2191_v26 = vsel %vm2136_vm4, %v4767_v53, %v4818_v29  ;;  %v2701_v53 = vld [vmem:[%s5139_s4 + $0x110] sm:$0xff] }
 0x241   : > { %v2553_v43 = vpop.f32.mrf.mxu0  ;;  %v2927_v24 = vadd.f32 %v2926_v5, %v2925_v59  ;;  %v2700_v5 = vld [vmem:[%s5139_s4 + $0x108] sm:$0xff] }
 0x242   : > { %v3041_v32 = vsel %vm699_vm1, %v3002_v8, 0.0  ;;  %v2392_v16 = vadd.f32 %v2309_v41, %v2100_v51  ;;  %2855 = vperm.xlu0 %3662, %v2697_v39   ;;  %2820 = vperm.xlu2 %3664, %v2690_v17   ;;  %v2193_v17 = vrot.slane %v3935_v18, 3 }
 0x243   : > { %v3042_v46 = vadd.f32 %v3041_v32, %v3040_v61  ;;  %3429 = vmatmul.msk.bf16.gmra.mxu1 %vm699_vm1, %v1751_v56  ;;  %v1935_v56 = vadd.f32 %v1854_v50, %v4362_v23  ;;  %v2453_v23 = vsel %vm2428_vm6, %v2450_v52, %v2452_v15  ;;  %v5291_v52 = vld [vmem:[#allocation45_spill] sm:$0xff]  ;;  %v2693_v50 = vld [vmem:[%s5139_s4 + $0xd0] sm:$0xff] }
 0x244   : > { %3459 = vmatmul.msk.bf16.gmra.mxu2 %vm699_vm1, %v1753_v48  ;;  %v2636_v57 = vadd.f32 %v2553_v43, %v2392_v16  ;;  %v4863_v60 = vor.u32 %v2193_v17, %v2192_v28  ;;  %v2456_v17 = vrot.slane %v3921_v9, 3 }
 0x246   : > { %v2888_v41 = vmul.f32 %v2731_v34, %v2636_v57  ;;  %3117 = vst.msk [vmem:[%s4695_s30 + $0x28] sm:$0xff] %vm699_vm1, %v2636_v57  ;;  %2875 = vperm.xlu1 %3663, %v2701_v53   ;;  %v1755_v34 = vsel %vm1726_vm5, %v1752_v63, %v1754_v3  ;;  %v2454_v63 = vrot.slane %v3919_v6, 3  ;;  %v3670_v6 = vld [vmem:[%s5136_s1] ss:$0 sm:$0xff] }
 0x247   : > { %v2020_v59 = vpop.f32.mrf.mxu2 }
 0x248   : > { %v2928_v45 = vsel %vm699_vm1, %v2888_v41, 0.0  ;;  %v3003_v40 = vmul.f32 %v2888_v41, %v2636_v57  ;;  %v2101_v22 = vadd.f32 %v2020_v59, %v1935_v56  ;;  %v1856_v49 = vpop.f32.mrf.mxu1  ;;  %v2314_v0 = vpop.f32.mrf.mxu3 }
 0x249   : > { %v2556_v61 = vpop.f32.mrf.mxu0  ;;  %v2929_v27 = vadd.f32 %v2928_v45, %v2927_v24  ;;  %v1936_v8 = vadd.f32 %v1856_v49, %v5291_v52  ;;  %v2741_v41 = vpop.permute.xlu1 %2740  ;;  %v2696_v45 = vld [vmem:[%s5139_s4 + $0xe8] sm:$0xff]  ;;  %v1756_v52 = vrot.slane %v3921_v9, 2  ;;  %v4963_v9 = vrot.slane %v5236_v10, 2 }
 0x24a   : > { %v3043_v42 = vsel %vm699_vm1, %v3003_v40, 0.0  ;;  %v2393_v21 = vadd.f32 %v2312_v19, %v2101_v22  ;;  %2870 = vperm.xlu0 %3662, %v2700_v5   ;;  %2835 = vperm.xlu2 %3664, %v2693_v50  }
 0x24b   : > { %v3044_v62 = vadd.f32 %v3043_v42, %v3042_v46 }
 0x24c   : > { %3519 = vmatmul.msk.bf16.gmra.mxu0 %vm699_vm1, %v2453_v23  ;;  %v2637_v47 = vadd.f32 %v2556_v61, %v2393_v21 }
 0x24d   : > { %3490 = vmatmul.msk.bf16.gmra.mxu3 %vm699_vm1, %v2191_v26 }
 0x24e   : > { %3118 = vst.msk [vmem:[%s4695_s30 + $0x30] sm:$0xff] %vm699_vm1, %v2637_v47  ;;  %v2889_v51 = vmul.f32 %v2736_v7, %v2637_v47 }
 0x24f   : > { %v2022_v19 = vpop.f32.mrf.mxu2 }
 0x250   : > { %v2930_v43 = vsel %vm699_vm1, %v2889_v51, 0.0  ;;  %v3004_v24 = vmul.f32 %v2889_v51, %v2637_v47  ;;  %v2102_v32 = vadd.f32 %v2022_v19, %v1936_v8  ;;  %v1859_v16 = vpop.f32.mrf.mxu1  ;;  %v2317_v4 = vpop.f32.mrf.mxu3  ;;  %v2699_v8 = vld [vmem:[%s5139_s4 + $0x100] sm:$0xff] }
 0x251   : > { %v2558_v1 = vpop.f32.mrf.mxu0  ;;  %v2931_v46 = vadd.f32 %v2930_v43, %v2929_v27  ;;  %v1937_v40 = vadd.f32 %v1859_v16, %v4378_v44  ;;  %v2455_v44 = vsel %vm2428_vm6, %v2452_v15, %v2454_v63  ;;  %v2746_v47 = vpop.permute.xlu2 %2745 }
 0x252   : > { %v3045_v39 = vsel %vm699_vm1, %v3004_v24, 0.0  ;;  %v2394_v57 = vadd.f32 %v2314_v0, %v2102_v32  ;;  %2850 = vperm.xlu2 %3664, %v2696_v45  }
 0x253   : > { %v3046_v56 = vadd.f32 %v3045_v39, %v3044_v62  ;;  %3430 = vmatmul.msk.bf16.gmra.mxu1 %vm699_vm1, %v1753_v48  ;;  %v2195_v62 = vsel %vm2136_vm4, %v4818_v29, %v4863_v60 }
 0x254   : > { %3460 = vmatmul.msk.bf16.gmra.mxu2 %vm699_vm1, %v1755_v34  ;;  %v2638_v59 = vadd.f32 %v2558_v1, %v2394_v57  ;;  %v2196_v1 = vrot.slane %v4087_v37, 2  ;;  %v2751_v57 = vpop.permute.xlu0 %2750  ;;  %v2702_v37 = vld [vmem:[%s5139_s4 + $0x118] sm:$0xff] }
 0x256   : > { %v2890_v22 = vmul.f32 %v2741_v41, %v2638_v59  ;;  %3119 = vst.msk [vmem:[%s4695_s30 + $0x38] sm:$0xff] %vm699_vm1, %v2638_v59 }
 0x257   : > { %v2025_v18 = vpop.f32.mrf.mxu2 }
 0x258   : > { %v2932_v48 = vsel %vm699_vm1, %v2890_v22, 0.0  ;;  %v3005_v49 = vmul.f32 %v2890_v22, %v2638_v59  ;;  %v2103_v0 = vadd.f32 %v2025_v18, %v1937_v40  ;;  %v1861_v61 = vpop.f32.mrf.mxu1  ;;  %v2319_v27 = vpop.f32.mrf.mxu3 }
 0x259   : > { %v2561_v23 = vpop.f32.mrf.mxu0  ;;  %v2933_v42 = vadd.f32 %v2932_v48, %v2931_v46  ;;  %v1938_v20 = vadd.f32 %v1861_v61, %v4386_v14  ;;  %v1757_v14 = vsel %vm1726_vm5, %v1754_v3, %v1756_v52  ;;  %v2197_v46 = vrot.slane %v5235_v13, 3  ;;  %v3669_v48 = vld [vmem:[%s3750_s16 + $0x98] sm:$0xff]  }
 0x25a   : > { %v3047_v21 = vsel %vm699_vm1, %v3005_v49, 0.0  ;;  %v2395_v26 = vadd.f32 %v2317_v4, %v2103_v0  ;;  %2865 = vperm.xlu2 %3664, %v2699_v8   ;;  %v3625_v49 = vunpack.c.h.bf16 %v3669_v48 }
 0x25b   : > { %v3048_v7 = vadd.f32 %v3047_v21, %v3046_v56  ;;  %v5292_v56 = vld [vmem:[#allocation46_spill] sm:$0xff]  ;;  %v4899_v59 = vor.u32 %v2197_v46, %v2196_v1  ;;  %v5294_v1 = vshrl.u32 %v5236_v10, 16 }
 0x25c   : > { %3520 = vmatmul.msk.bf16.gmra.mxu0 %vm699_vm1, %v2455_v44  ;;  %v2639_v5 = vadd.f32 %v2561_v23, %v2395_v26  ;;  %v2756_v26 = vpop.permute.xlu1 %2755 }
 0x25d   : > { %3491 = vmatmul.msk.bf16.gmra.mxu3 %vm699_vm1, %v2195_v62  ;;  %v2199_v44 = vsel %vm2136_vm4, %v4863_v60, %v4899_v59  ;;  %v2200_v46 = vrot.slane %v5294_v1, 2 }
 0x25e   : > { %3120 = vst.msk [vmem:[%s4695_s30 + $0x40] sm:$0xff] %vm699_vm1, %v2639_v5  ;;  %v2891_v15 = vmul.f32 %v2746_v47, %v2639_v5  ;;  %v5293_v47 = vld [vmem:[#allocation47_spill] sm:$0xff] }
 0x25f   : > { %v2027_v51 = vpop.f32.mrf.mxu2 }
 0x260   : > { %v2934_v29 = vsel %vm699_vm1, %v2891_v15, 0.0  ;;  %v3006_v53 = vmul.f32 %v2891_v15, %v2639_v5  ;;  %v2104_v50 = vadd.f32 %v2027_v51, %v1938_v20  ;;  %v1864_v19 = vpop.f32.mrf.mxu1  ;;  %v2322_v43 = vpop.f32.mrf.mxu3 }
 0x261   : > { %v2563_v24 = vpop.f32.mrf.mxu0  ;;  %v2935_v32 = vadd.f32 %v2934_v29, %v2933_v42  ;;  %v1939_v41 = vadd.f32 %v1864_v19, %v5292_v56 }
 0x262   : > { %v3049_v16 = vsel %vm699_vm1, %v3006_v53, 0.0  ;;  %v2396_v4 = vadd.f32 %v2319_v27, %v2104_v50  ;;  %2880 = vperm.xlu2 %3664, %v2702_v37   ;;  %v2457_v27 = vsel %vm2428_vm6, %v2454_v63, %v2456_v17  ;;  %v422_v63 = vmul.f32 %v3670_v6, %v3625_v49  ;;  %v5296_v37 = vld [vmem:[#allocation48_spill] sm:$0xff] }
 0x263   : > { %v3050_v39 = vadd.f32 %v3049_v16, %v3048_v7  ;;  %3431 = vmatmul.msk.bf16.gmra.mxu1 %vm699_vm1, %v1755_v34  ;;  %v1758_v7 = vrot.slane %v4017_v31, 2 }
 0x264   : > { %3461 = vmatmul.msk.bf16.gmra.mxu2 %vm699_vm1, %v1757_v14  ;;  %v2640_v28 = vadd.f32 %v2563_v24, %v2396_v4  ;;  %v3671_v24 = vld [vmem:[%s5137_s2] ss:$0 sm:$0xff] }
 0x266   : > { %v2892_v3 = vmul.f32 %v2751_v57, %v2640_v28  ;;  %3121 = vst.msk [vmem:[%s4695_s30 + $0x48] sm:$0xff] %vm699_vm1, %v2640_v28 }
 0x267   : > { %v2030_v13 = vpop.f32.mrf.mxu2 }
 0x268   : > { %v2936_v34 = vsel %vm699_vm1, %v2892_v3, 0.0  ;;  %v3007_v45 = vmul.f32 %v2892_v3, %v2640_v28  ;;  %v2105_v40 = vadd.f32 %v2030_v13, %v1939_v41  ;;  %v1866_v22 = vpop.f32.mrf.mxu1  ;;  %v2324_v18 = vpop.f32.mrf.mxu3  ;;  %v2458_v41 = vrot.slane %v4017_v31, 3 }
 0x269   : > { %v2566_v0 = vpop.f32.mrf.mxu0  ;;  %v2937_v61 = vadd.f32 %v2936_v34, %v2935_v32  ;;  %v1940_v5 = vadd.f32 %v1866_v22, %v5293_v47  ;;  %v467_v32 = vadd.f32 %v3671_v24, %v422_v63  ;;  %v337_v22 = vld [vmem:[%s3750_s16 + $0xa0] sm:$0xf]  ;;  %v2766_v47 = vpop.permute.xlu0 %2765 }
 0x26a   : > { %v3051_v23 = vsel %vm699_vm1, %v3007_v45, 0.0  ;;  %v2397_v42 = vadd.f32 %v2322_v43, %v2105_v40  ;;  %v1759_v43 = vsel %vm1726_vm5, %v1756_v52, %v1758_v7  ;;  %v2761_v52 = vpop.permute.xlu2 %2760 }
 0x26b   : > { %v3052_v21 = vadd.f32 %v3051_v23, %v3050_v39  ;;  %v5295_v39 = vshll.u32 %v5236_v10, 16  ;;  %v508_v3 = vmax.f32 %v467_v32, 0.0  ;;  %v2459_v23 = vsel %vm2428_vm6, %v2456_v17, %v2458_v41 }
 0x26c   : > { %3521 = vmatmul.msk.bf16.gmra.mxu0 %vm699_vm1, %v2457_v27  ;;  %v2641_v62 = vadd.f32 %v2566_v0, %v2397_v42 }
 0x26d   : > { %3492 = vmatmul.msk.bf16.gmra.mxu3 %vm699_vm1, %v2199_v44  ;;  %v2201_v57 = vrot.slane %v5295_v39, 3  ;;  %v4954_v42 = vpack.c.bf16 %v508_v3, %v4442_v2 }
 0x26e   : > { %3122 = vst.msk [vmem:[%s4695_s30 + $0x50] sm:$0xff] %vm699_vm1, %v2641_v62  ;;  %v2893_v20 = vmul.f32 %v2756_v26, %v2641_v62 }
 0x26f   : > { %v2032_v60 = vpop.f32.mrf.mxu2  ;;  %v4944_v45 = vor.u32 %v2201_v57, %v2200_v46  ;;  %v2205_v2 = vshrl.u32 %v4954_v42, 16  ;;  %v2771_v57 = vpop.permute.xlu1 %2770 }
 0x270   : > { %v2938_v15 = vsel %vm699_vm1, %v2893_v20, 0.0  ;;  %v3008_v8 = vmul.f32 %v2893_v20, %v2641_v62  ;;  %v2106_v51 = vadd.f32 %v2032_v60, %v1940_v5  ;;  %v1869_v29 = vpop.f32.mrf.mxu1  ;;  %v2327_v53 = vpop.f32.mrf.mxu3  ;;  %v378_v62 = vunpack.c.l.bf16 %v337_v22 }
 0x271   : > { %v2568_v50 = vpop.f32.mrf.mxu0  ;;  %v2939_v19 = vadd.f32 %v2938_v15, %v2937_v61  ;;  %v1941_v13 = vadd.f32 %v1869_v29, %v5296_v37  ;;  %v2203_v26 = vsel %vm2136_vm4, %v4899_v59, %v4944_v45  ;;  %v2208_v59 = vshll.u32 %v4954_v42, 16 }
 0x272   : > { %v3053_v16 = vsel %vm699_vm1, %v3008_v8, 0.0  ;;  %v2398_v4 = vadd.f32 %v2324_v18, %v2106_v51  ;;  %v423_v60 = vmul.f32 %v3670_v6, %v378_v62 }
 0x273   : > { %v3054_v28 = vadd.f32 %v3053_v16, %v3052_v21  ;;  %3432 = vmatmul.msk.bf16.gmra.mxu1 %vm699_vm1, %v1757_v14  ;;  %v1761_v16 = vsel %vm1726_vm5, %v1758_v7, %v4963_v9  ;;  %v2210_v6 = vrot.slane %v2208_v59, 3 }
 0x274   : > { %3462 = vmatmul.msk.bf16.gmra.mxu2 %vm699_vm1, %v1759_v43  ;;  %v2642_v56 = vadd.f32 %v2568_v50, %v2398_v4  ;;  %v468_v46 = vadd.f32 %v3671_v24, %v423_v60 }
 0x276   : > { %v2894_v34 = vmul.f32 %v2761_v52, %v2642_v56  ;;  %3123 = vst.msk [vmem:[%s4695_s30 + $0x58] sm:$0xff] %vm699_vm1, %v2642_v56  ;;  %v2460_v52 = vrot.slane %v5236_v10, 3 }
 0x277   : > { %v2035_v40 = vpop.f32.mrf.mxu2 }
 0x278   : > { %v2940_v18 = vsel %vm699_vm1, %v2894_v34, 0.0  ;;  %v3009_v48 = vmul.f32 %v2894_v34, %v2642_v56  ;;  %v2107_v14 = vadd.f32 %v2035_v40, %v1941_v13  ;;  %v1871_v49 = vpop.f32.mrf.mxu1  ;;  %v2329_v0 = vpop.f32.mrf.mxu3  ;;  %v5297_v56 = vld [vmem:[#allocation18_spill] sm:$0xff]  ;;  %v509_v13 = vmax.f32 %v468_v46, 0.0 }
 0x279   : > { %v2571_v61 = vpop.f32.mrf.mxu0  ;;  %v2941_v27 = vadd.f32 %v2940_v18, %v2939_v19  ;;  %v1942_v17 = vadd.f32 %v1871_v49, %v4422_v33  ;;  %v2207_v33 = vrot.slane %v2205_v2, 2  ;;  %v2461_v10 = vsel %vm2428_vm6, %v2458_v41, %v2460_v52 }
 0x27a   : > { %v3055_v44 = vsel %vm699_vm1, %v3009_v48, 0.0  ;;  %v2399_v21 = vadd.f32 %v2327_v53, %v2107_v14 }
 0x27b   : > { %v3056_v63 = vadd.f32 %v3055_v44, %v3054_v28  ;;  %v2211_v37 = vor.u32 %v2210_v6, %v2207_v33  ;;  %v2776_v44 = vpop.permute.xlu2 %2775 }
 0x27c   : > { %3522 = vmatmul.msk.bf16.gmra.mxu0 %vm699_vm1, %v2459_v23  ;;  %v2643_v5 = vadd.f32 %v2571_v61, %v2399_v21 }
 0x27d   : > { %3493 = vmatmul.msk.bf16.gmra.mxu3 %vm699_vm1, %v2203_v26  ;;  %v2212_v61 = vsel %vm2136_vm4, %v4944_v45, %v2211_v37  ;;  %v1974_v26 = vrot.slane %v4954_v42, 2 }
 0x27e   : > { %3124 = vst.msk [vmem:[%s4695_s30 + $0x60] sm:$0xff] %vm699_vm1, %v2643_v5  ;;  %v2895_v20 = vmul.f32 %v2766_v47, %v2643_v5 }
 0x27f   : > { %v2037_v15 = vpop.f32.mrf.mxu2 }
 0x280   : > { %v2942_v8 = vsel %vm699_vm1, %v2895_v20, 0.0  ;;  %v3010_v51 = vmul.f32 %v2895_v20, %v2643_v5  ;;  %v2108_v29 = vadd.f32 %v2037_v15, %v1942_v17  ;;  %v1874_v53 = vpop.f32.mrf.mxu1  ;;  %v2332_v50 = vpop.f32.mrf.mxu3  ;;  %v1975_v15 = vsel %vm1726_vm5, %v4963_v9, %v1974_v26 }
 0x281   : > { %v2573_v19 = vpop.f32.mrf.mxu0  ;;  %v2943_v32 = vadd.f32 %v2942_v8, %v2941_v27  ;;  %v1943_v3 = vadd.f32 %v1874_v53, %v5297_v56  ;;  %v4989_v27 = vpack.c.bf16 %v509_v13, %v509_v13 }
 0x282   : > { %v3057_v4 = vsel %vm699_vm1, %v3010_v51, 0.0  ;;  %v2400_v1 = vadd.f32 %v2329_v0, %v2108_v29 }
 0x283   : > { %v3058_v39 = vadd.f32 %v3057_v4, %v3056_v63  ;;  %3433 = vmatmul.msk.bf16.gmra.mxu1 %vm699_vm1, %v1759_v43  ;;  %v2214_v62 = vshrl.u32 %v4989_v27, 16  ;;  %v2217_v45 = vshll.u32 %v4989_v27, 16 }
 0x284   : > { %v2644_v28 = vadd.f32 %v2573_v19, %v2400_v1  ;;  %3463 = vmatmul.msk.bf16.gmra.mxu2 %vm699_vm1, %v1761_v16 }
 0x285   : > { %v2216_v51 = vrot.slane %v2214_v62, 2  ;;  %v2219_v29 = vrot.slane %v2217_v45, 3  ;;  %v2791_v45 = vpop.permute.xlu2 %2790 }
 0x286   : > { %3125 = vst.msk [vmem:[%s4695_s30 + $0x68] sm:$0xff] %vm699_vm1, %v2644_v28  ;;  %v2896_v7 = vmul.f32 %v2771_v57, %v2644_v28 }
 0x287   : > { %v2040_v34 = vpop.f32.mrf.mxu2  ;;  %v2220_v1 = vor.u32 %v2219_v29, %v2216_v51 }
 0x288   : > { %v2944_v40 = vsel %vm699_vm1, %v2896_v7, 0.0  ;;  %v3011_v24 = vmul.f32 %v2896_v7, %v2644_v28  ;;  %v2109_v22 = vadd.f32 %v2040_v34, %v1943_v3  ;;  %v1876_v43 = vpop.f32.mrf.mxu1  ;;  %v2334_v18 = vpop.f32.mrf.mxu3 }
 0x289   : > { %v2576_v48 = vpop.f32.mrf.mxu0  ;;  %v2945_v14 = vadd.f32 %v2944_v40, %v2943_v32  ;;  %v1944_v31 = vadd.f32 %v1876_v43, %v4455_v55  ;;  %v2462_v32 = vrot.slane %v4954_v42, 3  ;;  %v2221_v34 = vsel %vm2136_vm4, %v2211_v37, %v2220_v1  ;;  %v2786_v40 = vpop.permute.xlu1 %2785 }
 0x28a   : > { %v3059_v49 = vsel %vm699_vm1, %v3011_v24, 0.0  ;;  %v2401_v0 = vadd.f32 %v2332_v50, %v2109_v22  ;;  %v2781_v50 = vpop.permute.xlu0 %2780  ;;  %v1762_v22 = vrot.slane %v4450_v25, 2  ;;  %v1976_v43 = vrot.slane %v4989_v27, 2 }
 0x28b   : > { %v3060_v23 = vadd.f32 %v3059_v49, %v3058_v39  ;;  %v2463_v7 = vsel %vm2428_vm6, %v2460_v52, %v2462_v32 }
 0x28c   : > { %3523 = vmatmul.msk.bf16.gmra.mxu0 %vm699_vm1, %v2461_v10  ;;  %v2645_v21 = vadd.f32 %v2576_v48, %v2401_v0  ;;  %v1763_v25 = vsel %vm1726_vm5, %v4963_v9, %v1762_v22 }
 0x28d   : > { %3494 = vmatmul.msk.bf16.gmra.mxu3 %vm699_vm1, %v2212_v61 }
 0x28e   : > { %3126 = vst.msk [vmem:[%s4695_s30 + $0x70] sm:$0xff] %vm699_vm1, %v2645_v21  ;;  %v2897_v41 = vmul.f32 %v2776_v44, %v2645_v21 }
 0x28f   : > { %v2042_v63 = vpop.f32.mrf.mxu2 }
 0x290   : > { %v2946_v47 = vsel %vm699_vm1, %v2897_v41, 0.0  ;;  %v3012_v5 = vmul.f32 %v2897_v41, %v2645_v21  ;;  %v2110_v2 = vadd.f32 %v2042_v63, %v1944_v31  ;;  %v1879_v17 = vpop.f32.mrf.mxu1  ;;  %v2337_v20 = vpop.f32.mrf.mxu3  ;;  %v1977_v21 = vsel %vm1726_vm5, %v1974_v26, %v1976_v43 }
 0x291   : > { %v2578_v59 = vpop.f32.mrf.mxu0  ;;  %v2947_v60 = vadd.f32 %v2946_v47, %v2945_v14  ;;  %v1945_v33 = vadd.f32 %v1879_v17, %v4462_v58  ;;  %v2464_v47 = vrot.slane %v4989_v27, 3 }
 0x292   : > { %v3061_v55 = vsel %vm699_vm1, %v3012_v5, 0.0  ;;  %v2402_v8 = vadd.f32 %v2334_v18, %v2110_v2  ;;  %v5298_v18 = vld [vmem:[#allocation26_spill] sm:$0xff]  ;;  %v5299_v5 = vld [vmem:[#allocation24_spill] sm:$0xff] }
 0x293   : > { %v3062_v53 = vadd.f32 %v3061_v55, %v3060_v23  ;;  %3434 = vmatmul.msk.bf16.gmra.mxu1 %vm699_vm1, %v1761_v16  ;;  %v2465_v51 = vsel %vm2428_vm6, %v2462_v32, %v2464_v47 }
 0x294   : > { %v2646_v19 = vadd.f32 %v2578_v59, %v2402_v8  ;;  %3464 = vmatmul.msk.bf16.gmra.mxu2 %vm699_vm1, %v1975_v15 }
 0x296   : > { %3127 = vst.msk [vmem:[%s4695_s30 + $0x78] sm:$0xff] %vm699_vm1, %v2646_v19  ;;  %v2898_v4 = vmul.f32 %v2781_v50, %v2646_v19  ;;  %v2796_v50 = vpop.permute.xlu0 %2795 }
 0x297   : > { %v2045_v6 = vpop.f32.mrf.mxu2 }
 0x298   : > { %v2948_v46 = vsel %vm699_vm1, %v2898_v4, 0.0  ;;  %v3013_v39 = vmul.f32 %v2898_v4, %v2646_v19  ;;  %v2111_v57 = vadd.f32 %v2045_v6, %v1945_v33  ;;  %v1881_v28 = vpop.f32.mrf.mxu1  ;;  %v2339_v16 = vpop.f32.mrf.mxu3  ;;  %v5300_v33 = vld [vmem:[#allocation39_spill] sm:$0xff] }
 0x299   : > { %v2581_v56 = vpop.f32.mrf.mxu0  ;;  %v2949_v3 = vadd.f32 %v2948_v46, %v2947_v60  ;;  %v1946_v52 = vadd.f32 %v1881_v28, %v5298_v18 }
 0x29a   : > { %v3063_v42 = vsel %vm699_vm1, %v3013_v39, 0.0  ;;  %v2403_v13 = vadd.f32 %v2337_v20, %v2111_v57 }
 0x29b   : > { %v3064_v58 = vadd.f32 %v3063_v42, %v3062_v53 }
 0x29c   : > { %3524 = vmatmul.msk.bf16.gmra.mxu0 %vm699_vm1, %v2463_v7  ;;  %v2647_v24 = vadd.f32 %v2581_v56, %v2403_v13 }
 0x29d   : > { %3495 = vmatmul.msk.bf16.gmra.mxu3 %vm699_vm1, %v2221_v34  ;;  %v2801_v34 = vpop.permute.xlu1 %2800 }
 0x29e   : > { %3128 = vst.msk [vmem:[%s4695_s30 + $0x80] sm:$0xff] %vm699_vm1, %v2647_v24  ;;  %v2899_v48 = vmul.f32 %v2786_v40, %v2647_v24 }
 0x29f   : > { %v2047_v14 = vpop.f32.mrf.mxu2 }
 0x2a0   : > { %v2950_v10 = vsel %vm699_vm1, %v2899_v48, 0.0  ;;  %v3014_v37 = vmul.f32 %v2899_v48, %v2647_v24  ;;  %v2112_v49 = vadd.f32 %v2047_v14, %v1946_v52  ;;  %v1884_v0 = vpop.f32.mrf.mxu1  ;;  %v2342_v61 = vpop.f32.mrf.mxu3 }
 0x2a1   : > { %v2583_v23 = vpop.f32.mrf.mxu0  ;;  %v2951_v44 = vadd.f32 %v2950_v10, %v2949_v3  ;;  %v1947_v9 = vadd.f32 %v1884_v0, %v5299_v5 }
 0x2a2   : > { %v3065_v31 = vsel %vm699_vm1, %v3014_v37, 0.0  ;;  %v2404_v41 = vadd.f32 %v2339_v16, %v2112_v49 }
 0x2a3   : > { %v3066_v62 = vadd.f32 %v3065_v31, %v3064_v58  ;;  %3435 = vmatmul.msk.bf16.gmra.mxu1 %vm699_vm1, %v1763_v25  ;;  %v5301_v58 = vld [vmem:[#allocation9_spill] sm:$0xff] }
 0x2a4   : > { %v2648_v63 = vadd.f32 %v2583_v23, %v2404_v41  ;;  %3465 = vmatmul.msk.bf16.gmra.mxu2 %vm699_vm1, %v1977_v21  ;;  %v2806_v23 = vpop.permute.xlu2 %2805  ;;  %v5302_v21 = vld [vmem:[#allocation13_spill] sm:$0xff] }
 0x2a6   : > { %3129 = vst.msk [vmem:[%s4695_s30 + $0x88] sm:$0xff] %vm699_vm1, %v2648_v63  ;;  %v2900_v2 = vmul.f32 %v2791_v45, %v2648_v63 }
 0x2a7   : > { %v2050_v17 = vpop.f32.mrf.mxu2 }
 0x2a8   : > { %v2952_v26 = vsel %vm699_vm1, %v2900_v2, 0.0  ;;  %v3015_v20 = vmul.f32 %v2900_v2, %v2648_v63  ;;  %v2113_v59 = vadd.f32 %v2050_v17, %v1947_v9  ;;  %v1886_v60 = vpop.f32.mrf.mxu1  ;;  %v2344_v15 = vpop.f32.mrf.mxu3 }
 0x2a9   : > { %v2586_v55 = vpop.f32.mrf.mxu0  ;;  %v2953_v8 = vadd.f32 %v2952_v26, %v2951_v44  ;;  %v1948_v4 = vadd.f32 %v1886_v60, %v5300_v33  ;;  %v2811_v60 = vpop.permute.xlu0 %2810 }
 0x2aa   : > { %v3067_v29 = vsel %vm699_vm1, %v3015_v20, 0.0  ;;  %v2405_v27 = vadd.f32 %v2342_v61, %v2113_v59 }
 0x2ab   : > { %v3068_v53 = vadd.f32 %v3067_v29, %v3066_v62 }
 0x2ac   : > { %3525 = vmatmul.msk.bf16.gmra.mxu0 %vm699_vm1, %v2465_v51  ;;  %v2649_v19 = vadd.f32 %v2586_v55, %v2405_v27  ;;  %v5303_v55 = vld [vmem:[#allocation17_spill] sm:$0xff] }
 0x2ae   : > { %3130 = vst.msk [vmem:[%s4695_s30 + $0x90] sm:$0xff] %vm699_vm1, %v2649_v19  ;;  %v2901_v1 = vmul.f32 %v2796_v50, %v2649_v19 }
 0x2af   : > { %v2052_v6 = vpop.f32.mrf.mxu2 }
 0x2b0   : > { %v2954_v46 = vsel %vm699_vm1, %v2901_v1, 0.0  ;;  %v3016_v39 = vmul.f32 %v2901_v1, %v2649_v19  ;;  %v2114_v57 = vadd.f32 %v2052_v6, %v1948_v4  ;;  %v1889_v32 = vpop.f32.mrf.mxu1  ;;  %v2347_v28 = vpop.f32.mrf.mxu3 }
 0x2b1   : > { %v2588_v16 = vpop.f32.mrf.mxu0  ;;  %v2955_v56 = vadd.f32 %v2954_v46, %v2953_v8  ;;  %v1949_v40 = vadd.f32 %v1889_v32, %v5301_v58 }
 0x2b2   : > { %v3069_v3 = vsel %vm699_vm1, %v3016_v39, 0.0  ;;  %v2406_v7 = vadd.f32 %v2344_v15, %v2114_v57  ;;  %v2816_v57 = vpop.permute.xlu1 %2815 }
 0x2b3   : > { %v3070_v42 = vadd.f32 %v3069_v3, %v3068_v53 }
 0x2b4   : > { %v2650_v13 = vadd.f32 %v2588_v16, %v2406_v7 }
 0x2b6   : > { %3131 = vst.msk [vmem:[%s4695_s30 + $0x98] sm:$0xff] %vm699_vm1, %v2650_v13  ;;  %v2902_v24 = vmul.f32 %v2801_v34, %v2650_v13 }
 0x2b7   : > { %v2055_v22 = vpop.f32.mrf.mxu2 }
 0x2b8   : > { %v2956_v43 = vsel %vm699_vm1, %v2902_v24, 0.0  ;;  %v3017_v18 = vmul.f32 %v2902_v24, %v2650_v13  ;;  %v2115_v52 = vadd.f32 %v2055_v22, %v1949_v40  ;;  %v1891_v48 = vpop.f32.mrf.mxu1  ;;  %v2349_v14 = vpop.f32.mrf.mxu3 }
 0x2b9   : > { %v2957_v10 = vadd.f32 %v2956_v43, %v2955_v56  ;;  %v2591_v37 = vpop.f32.mrf.mxu0  ;;  %v1950_v31 = vadd.f32 %v1891_v48, %v5302_v21 }
 0x2ba   : > { %v3071_v49 = vsel %vm699_vm1, %v3017_v18, 0.0  ;;  %v2407_v0 = vadd.f32 %v2347_v28, %v2115_v52  ;;  %v5304_v28 = vld [vmem:[#allocation42_spill] sm:$0xff]  ;;  %v2821_v52 = vpop.permute.xlu2 %2820 }
 0x2bb   : > { %v3072_v61 = vadd.f32 %v3071_v49, %v3070_v42 }
 0x2bc   : > { %v2651_v25 = vadd.f32 %v2591_v37, %v2407_v0 }
 0x2be   : > { %v2903_v44 = vmul.f32 %v2806_v23, %v2651_v25  ;;  %3132 = vst.msk [vmem:[%s4695_s30 + $0xa0] sm:$0xff] %vm699_vm1, %v2651_v25 }
 0x2bf   : > { %v2057_v41 = vpop.f32.mrf.mxu2 }
 0x2c0   : > { %v2958_v62 = vsel %vm699_vm1, %v2903_v44, 0.0  ;;  %v3018_v45 = vmul.f32 %v2903_v44, %v2651_v25  ;;  %v2116_v63 = vadd.f32 %v2057_v41, %v1950_v31  ;;  %v1894_v47 = vpop.f32.mrf.mxu1  ;;  %v2352_v5 = vpop.f32.mrf.mxu3 }
 0x2c1   : > { %v2959_v9 = vadd.f32 %v2958_v62, %v2957_v10  ;;  %v2593_v2 = vpop.f32.mrf.mxu0  ;;  %v1951_v8 = vadd.f32 %v1894_v47, %v5303_v55 }
 0x2c2   : > { %v3073_v17 = vsel %vm699_vm1, %v3018_v45, 0.0  ;;  %v2408_v26 = vadd.f32 %v2349_v14, %v2116_v63  ;;  %v5305_v14 = vld [vmem:[#allocation25_spill] sm:$0xff]  ;;  %v2826_v63 = vpop.permute.xlu0 %2825 }
 0x2c3   : > { %v3074_v20 = vadd.f32 %v3073_v17, %v3072_v61 }
 0x2c4   : > { %v2652_v59 = vadd.f32 %v2593_v2, %v2408_v26 }
 0x2c6   : > { %v2904_v15 = vmul.f32 %v2811_v60, %v2652_v59  ;;  %3133 = vst.msk [vmem:[%s4695_s30 + $0xa8] sm:$0xff] %vm699_vm1, %v2652_v59 }
 0x2c7   : > { %v2060_v51 = vpop.f32.mrf.mxu2 }
 0x2c8   : > { %v2960_v29 = vsel %vm699_vm1, %v2904_v15, 0.0  ;;  %v3019_v27 = vmul.f32 %v2904_v15, %v2652_v59  ;;  %v2117_v53 = vadd.f32 %v2060_v51, %v1951_v8  ;;  %v1896_v50 = vpop.f32.mrf.mxu1  ;;  %v2354_v19 = vpop.f32.mrf.mxu3 }
 0x2c9   : > { %v2961_v33 = vadd.f32 %v2960_v29, %v2959_v9  ;;  %v2596_v4 = vpop.f32.mrf.mxu0  ;;  %v1952_v16 = vadd.f32 %v1896_v50, %v5304_v28  ;;  %v5306_v50 = vld [vmem:[#allocation23_spill] sm:$0xff] }
 0x2ca   : > { %v3075_v1 = vsel %vm699_vm1, %v3019_v27, 0.0  ;;  %v2409_v6 = vadd.f32 %v2352_v5, %v2117_v53  ;;  %v2831_v27 = vpop.permute.xlu1 %2830 }
 0x2cb   : > { %v3076_v46 = vadd.f32 %v3075_v1, %v3074_v20 }
 0x2cc   : > { %v2653_v39 = vadd.f32 %v2596_v4, %v2409_v6 }
 0x2ce   : > { %v2905_v32 = vmul.f32 %v2816_v57, %v2653_v39  ;;  %3134 = vst.msk [vmem:[%s4695_s30 + $0xb0] sm:$0xff] %vm699_vm1, %v2653_v39 }
 0x2cf   : > { %v2062_v56 = vpop.f32.mrf.mxu2 }
 0x2d0   : > { %v2962_v3 = vsel %vm699_vm1, %v2905_v32, 0.0  ;;  %v3020_v7 = vmul.f32 %v2905_v32, %v2653_v39  ;;  %v2118_v42 = vadd.f32 %v2062_v56, %v1952_v16  ;;  %v1899_v13 = vpop.f32.mrf.mxu1  ;;  %v2357_v34 = vpop.f32.mrf.mxu3 }
 0x2d1   : > { %v2963_v58 = vadd.f32 %v2962_v3, %v2961_v33  ;;  %v2598_v40 = vpop.f32.mrf.mxu0  ;;  %v1953_v10 = vadd.f32 %v1899_v13, %v5305_v14  ;;  %v2836_v3 = vpop.permute.xlu2 %2835 }
 0x2d2   : > { %v3077_v24 = vsel %vm699_vm1, %v3020_v7, 0.0  ;;  %v2410_v22 = vadd.f32 %v2354_v19, %v2118_v42  ;;  %v5307_v42 = vld [vmem:[#allocation27_spill] sm:$0xff] }
 0x2d3   : > { %v3078_v43 = vadd.f32 %v3077_v24, %v3076_v46 }
 0x2d4   : > { %v2654_v18 = vadd.f32 %v2598_v40, %v2410_v22 }
 0x2d6   : > { %v2906_v48 = vmul.f32 %v2821_v52, %v2654_v18  ;;  %3135 = vst.msk [vmem:[%s4695_s30 + $0xb8] sm:$0xff] %vm699_vm1, %v2654_v18 }
 0x2d7   : > { %v2065_v37 = vpop.f32.mrf.mxu2 }
 0x2d8   : > { %v2964_v49 = vsel %vm699_vm1, %v2906_v48, 0.0  ;;  %v3021_v0 = vmul.f32 %v2906_v48, %v2654_v18  ;;  %v2119_v61 = vadd.f32 %v2065_v37, %v1953_v10  ;;  %v1901_v25 = vpop.f32.mrf.mxu1  ;;  %v2359_v23 = vpop.f32.mrf.mxu3 }
 0x2d9   : > { %v2965_v44 = vadd.f32 %v2964_v49, %v2963_v58  ;;  %v2601_v21 = vpop.f32.mrf.mxu0  ;;  %v1954_v5 = vadd.f32 %v1901_v25, %v4570_v38  ;;  %v2841_v49 = vpop.permute.xlu0 %2840 }
 0x2da   : > { %v3079_v31 = vsel %vm699_vm1, %v3021_v0, 0.0  ;;  %v2411_v41 = vadd.f32 %v2357_v34, %v2119_v61  ;;  %v5308_v61 = vld [vmem:[#allocation22_spill] sm:$0xff] }
 0x2db   : > { %v3080_v62 = vadd.f32 %v3079_v31, %v3078_v43 }
 0x2dc   : > { %v2655_v45 = vadd.f32 %v2601_v21, %v2411_v41 }
 0x2de   : > { %v2907_v47 = vmul.f32 %v2826_v63, %v2655_v45  ;;  %3136 = vst.msk [vmem:[%s4695_s30 + $0xc0] sm:$0xff] %vm699_vm1, %v2655_v45 }
 0x2df   : > { %v2067_v9 = vpop.f32.mrf.mxu2 }
 0x2e0   : > { %v2966_v2 = vsel %vm699_vm1, %v2907_v47, 0.0  ;;  %v3022_v17 = vmul.f32 %v2907_v47, %v2655_v45  ;;  %v2120_v26 = vadd.f32 %v2067_v9, %v1954_v5  ;;  %v1904_v20 = vpop.f32.mrf.mxu1  ;;  %v2362_v59 = vpop.f32.mrf.mxu3 }
 0x2e1   : > { %v2967_v60 = vadd.f32 %v2966_v2, %v2965_v44  ;;  %v2603_v15 = vpop.f32.mrf.mxu0  ;;  %v1955_v38 = vadd.f32 %v1904_v20, %v5306_v50 }
 0x2e2   : > { %v3081_v55 = vsel %vm699_vm1, %v3022_v17, 0.0  ;;  %v2412_v8 = vadd.f32 %v2359_v23, %v2120_v26  ;;  %v2846_v17 = vpop.permute.xlu1 %2845 }
 0x2e3   : > { %v3082_v51 = vadd.f32 %v3081_v55, %v3080_v62 }
 0x2e4   : > { %v2656_v29 = vadd.f32 %v2603_v15, %v2412_v8 }
 0x2e6   : > { %v2908_v53 = vmul.f32 %v2831_v27, %v2656_v29  ;;  %3137 = vst.msk [vmem:[%s4695_s30 + $0xc8] sm:$0xff] %vm699_vm1, %v2656_v29 }
 0x2e7   : > { %v2070_v19 = vpop.f32.mrf.mxu2 }
 0x2e8   : > { %v2968_v33 = vsel %vm699_vm1, %v2908_v53, 0.0  ;;  %v3023_v4 = vmul.f32 %v2908_v53, %v2656_v29  ;;  %v2121_v1 = vadd.f32 %v2070_v19, %v1955_v38  ;;  %v1906_v6 = vpop.f32.mrf.mxu1  ;;  %v2364_v46 = vpop.f32.mrf.mxu3 }
 0x2e9   : > { %v2969_v39 = vadd.f32 %v2968_v33, %v2967_v60  ;;  %v2606_v57 = vpop.f32.mrf.mxu0  ;;  %v1956_v13 = vadd.f32 %v1906_v6, %v5307_v42  ;;  %v2851_v33 = vpop.permute.xlu2 %2850 }
 0x2ea   : > { %v3083_v32 = vsel %vm699_vm1, %v3023_v4, 0.0  ;;  %v2413_v28 = vadd.f32 %v2362_v59, %v2121_v1  ;;  %v5309_v1 = vld [vmem:[#allocation28_spill] sm:$0xff] }
 0x2eb   : > { %v3084_v16 = vadd.f32 %v3083_v32, %v3082_v51 }
 0x2ec   : > { %v2657_v56 = vadd.f32 %v2606_v57, %v2413_v28 }
 0x2ee   : > { %v2909_v7 = vmul.f32 %v2836_v3, %v2657_v56  ;;  %3138 = vst.msk [vmem:[%s4695_s30 + $0xd0] sm:$0xff] %vm699_vm1, %v2657_v56 }
 0x2ef   : > { %v2072_v34 = vpop.f32.mrf.mxu2 }
 0x2f0   : > { %v2970_v58 = vsel %vm699_vm1, %v2909_v7, 0.0  ;;  %v3024_v40 = vmul.f32 %v2909_v7, %v2657_v56  ;;  %v2122_v24 = vadd.f32 %v2072_v34, %v1956_v13  ;;  %v1909_v22 = vpop.f32.mrf.mxu1  ;;  %v2367_v43 = vpop.f32.mrf.mxu3 }
 0x2f1   : > { %v2971_v18 = vadd.f32 %v2970_v58, %v2969_v39  ;;  %v2608_v52 = vpop.f32.mrf.mxu0  ;;  %v1957_v25 = vadd.f32 %v1909_v22, %v5308_v61  ;;  %v2856_v34 = vpop.permute.xlu0 %2855 }
 0x2f2   : > { %v3085_v48 = vsel %vm699_vm1, %v3024_v40, 0.0  ;;  %v2414_v14 = vadd.f32 %v2364_v46, %v2122_v24 }
 0x2f3   : > { %v3086_v10 = vadd.f32 %v3085_v48, %v3084_v16 }
 0x2f4   : > { %v2658_v37 = vadd.f32 %v2608_v52, %v2414_v14 }
 0x2f6   : > { %v2910_v0 = vmul.f32 %v2841_v49, %v2658_v37  ;;  %3139 = vst.msk [vmem:[%s4695_s30 + $0xd8] sm:$0xff] %vm699_vm1, %v2658_v37 }
 0x2f7   : > { %v2075_v23 = vpop.f32.mrf.mxu2 }
 0x2f8   : > { %v2972_v44 = vsel %vm699_vm1, %v2910_v0, 0.0  ;;  %v3025_v21 = vmul.f32 %v2910_v0, %v2658_v37  ;;  %v2123_v31 = vadd.f32 %v2075_v23, %v1957_v25  ;;  %v1911_v41 = vpop.f32.mrf.mxu1  ;;  %v2369_v62 = vpop.f32.mrf.mxu3 }
 0x2f9   : > { %v2973_v45 = vadd.f32 %v2972_v44, %v2971_v18  ;;  %v2611_v63 = vpop.f32.mrf.mxu0  ;;  %v1958_v20 = vadd.f32 %v1911_v41, %v4616_v12  ;;  %v2861_v25 = vpop.permute.xlu1 %2860 }
 0x2fa   : > { %v3087_v47 = vsel %vm699_vm1, %v3025_v21, 0.0  ;;  %v2415_v5 = vadd.f32 %v2367_v43, %v2123_v31 }
 0x2fb   : > { %v3088_v9 = vadd.f32 %v3087_v47, %v3086_v10 }
 0x2fc   : > { %v2659_v2 = vadd.f32 %v2611_v63, %v2415_v5 }
 0x2fe   : > { %v2911_v26 = vmul.f32 %v2846_v17, %v2659_v2  ;;  %3140 = vst.msk [vmem:[%s4695_s30 + $0xe0] sm:$0xff] %vm699_vm1, %v2659_v2  ;;  %v2866_v17 = vpop.permute.xlu2 %2865 }
 0x2ff   : > { %v2077_v59 = vpop.f32.mrf.mxu2 }
 0x300   : > { %v2974_v60 = vsel %vm699_vm1, %v2911_v26, 0.0  ;;  %v3026_v15 = vmul.f32 %v2911_v26, %v2659_v2  ;;  %v2124_v55 = vadd.f32 %v2077_v59, %v1958_v20  ;;  %v1914_v8 = vpop.f32.mrf.mxu1  ;;  %v2372_v51 = vpop.f32.mrf.mxu3 }
 0x301   : > { %v2975_v29 = vadd.f32 %v2974_v60, %v2973_v45  ;;  %v2613_v27 = vpop.f32.mrf.mxu0  ;;  %v1959_v12 = vadd.f32 %v1914_v8, %v5309_v1 }
 0x302   : > { %v3089_v53 = vsel %vm699_vm1, %v3026_v15, 0.0  ;;  %v2416_v50 = vadd.f32 %v2369_v62, %v2124_v55 }
 0x303   : > { %v3090_v38 = vadd.f32 %v3089_v53, %v3088_v9 }
 0x304   : > { %v2660_v19 = vadd.f32 %v2613_v27, %v2416_v50 }
 0x306   : > { %v2912_v4 = vmul.f32 %v2851_v33, %v2660_v19  ;;  %3141 = vst.msk [vmem:[%s4695_s30 + $0xe8] sm:$0xff] %vm699_vm1, %v2660_v19 }
 0x307   : > { %v2080_v6 = vpop.f32.mrf.mxu2 }
 0x308   : > { %v2976_v46 = vsel %vm699_vm1, %v2912_v4, 0.0  ;;  %v3027_v39 = vmul.f32 %v2912_v4, %v2660_v19  ;;  %v2125_v57 = vadd.f32 %v2080_v6, %v1959_v12  ;;  %v1916_v32 = vpop.f32.mrf.mxu1  ;;  %v2374_v56 = vpop.f32.mrf.mxu3 }
 0x309   : > { %v2977_v28 = vadd.f32 %v2976_v46, %v2975_v29  ;;  %v2616_v16 = vpop.f32.mrf.mxu0  ;;  %v1960_v40 = vadd.f32 %v1916_v32, %v4639_v36  ;;  %v2871_v19 = vpop.permute.xlu0 %2870 }
 0x30a   : > { %v3091_v3 = vsel %vm699_vm1, %v3027_v39, 0.0  ;;  %v2417_v7 = vadd.f32 %v2372_v51, %v2125_v57 }
 0x30b   : > { %v3092_v42 = vadd.f32 %v3091_v3, %v3090_v38 }
 0x30c   : > { %v2661_v13 = vadd.f32 %v2616_v16, %v2417_v7  ;;  %v2876_v7 = vpop.permute.xlu1 %2875 }
 0x30e   : > { %v2913_v58 = vmul.f32 %v2856_v34, %v2661_v13  ;;  %3142 = vst.msk [vmem:[%s4695_s30 + $0xf0] sm:$0xff] %vm699_vm1, %v2661_v13 }
 0x30f   : > { %v2082_v24 = vpop.f32.mrf.mxu2 }
 0x310   : > { %v2978_v22 = vsel %vm699_vm1, %v2913_v58, 0.0  ;;  %v3028_v43 = vmul.f32 %v2913_v58, %v2661_v13  ;;  %v2126_v18 = vadd.f32 %v2082_v24, %v1960_v40  ;;  %v1919_v52 = vpop.f32.mrf.mxu1  ;;  %v2377_v0 = vpop.f32.mrf.mxu3 }
 0x311   : > { %v2979_v48 = vadd.f32 %v2978_v22, %v2977_v28  ;;  %v2618_v14 = vpop.f32.mrf.mxu0  ;;  %v1961_v36 = vadd.f32 %v1919_v52, %v4646_v11 }
 0x312   : > { %v3093_v10 = vsel %vm699_vm1, %v3028_v43, 0.0  ;;  %v2418_v37 = vadd.f32 %v2374_v56, %v2126_v18 }
 0x313   : > { %v3094_v49 = vadd.f32 %v3093_v10, %v3092_v42  ;;  %v2881_v10 = vpop.permute.xlu2 %2880 }
 0x314   : > { %v2662_v61 = vadd.f32 %v2618_v14, %v2418_v37 }
 0x316   : > { %v2914_v23 = vmul.f32 %v2861_v25, %v2662_v61  ;;  %3143 = vst.msk [vmem:[%s4695_s30 + $0xf8] sm:$0xff] %vm699_vm1, %v2662_v61 }
 0x317   : > { %v2085_v44 = vpop.f32.mrf.mxu2 }
 0x318   : > { %v2980_v21 = vsel %vm699_vm1, %v2914_v23, 0.0  ;;  %v3029_v31 = vmul.f32 %v2914_v23, %v2662_v61  ;;  %v2127_v41 = vadd.f32 %v2085_v44, %v1961_v36  ;;  %v1921_v62 = vpop.f32.mrf.mxu1  ;;  %v2379_v26 = vpop.f32.mrf.mxu3 }
 0x319   : > { %v2981_v45 = vadd.f32 %v2980_v21, %v2979_v48  ;;  %v2621_v63 = vpop.f32.mrf.mxu0  ;;  %v1962_v11 = vadd.f32 %v1921_v62, %v4662_v35 }
 0x31a   : > { %v3095_v47 = vsel %vm699_vm1, %v3029_v31, 0.0  ;;  %v2419_v5 = vadd.f32 %v2377_v0, %v2127_v41 }
 0x31b   : > { %v3096_v9 = vadd.f32 %v3095_v47, %v3094_v49 }
 0x31c   : > { %v2663_v2 = vadd.f32 %v2621_v63, %v2419_v5 }
 0x31e   : > { %v2915_v20 = vmul.f32 %v2866_v17, %v2663_v2  ;;  %3144 = vst.msk [vmem:[%s4695_s30 + $0x100] sm:$0xff] %vm699_vm1, %v2663_v2 }
 0x31f   : > { %v2087_v59 = vpop.f32.mrf.mxu2 }
 0x320   : > { %v2982_v60 = vsel %vm699_vm1, %v2915_v20, 0.0  ;;  %v3030_v15 = vmul.f32 %v2915_v20, %v2663_v2  ;;  %v2128_v55 = vadd.f32 %v2087_v59, %v1962_v11  ;;  %v1924_v29 = vpop.f32.mrf.mxu1  ;;  %v2382_v4 = vpop.f32.mrf.mxu3 }
 0x321   : > { %v2983_v8 = vadd.f32 %v2982_v60, %v2981_v45  ;;  %v2623_v51 = vpop.f32.mrf.mxu0  ;;  %v1963_v35 = vadd.f32 %v1924_v29, %v4669_v54 }
 0x322   : > { %v3097_v27 = vsel %vm699_vm1, %v3030_v15, 0.0  ;;  %v2420_v53 = vadd.f32 %v2379_v26, %v2128_v55 }
 0x323   : > { %v3098_v50 = vadd.f32 %v3097_v27, %v3096_v9 }
 0x324   : > { %v2664_v38 = vadd.f32 %v2623_v51, %v2420_v53 }
 0x326   : > { %v2916_v33 = vmul.f32 %v2871_v19, %v2664_v38  ;;  %3145 = vst.msk [vmem:[%s4695_s30 + $0x108] sm:$0xff] %vm699_vm1, %v2664_v38 }
 0x327   : > { %v2090_v1 = vpop.f32.mrf.mxu2 }
 0x328   : > { %v2984_v12 = vsel %vm699_vm1, %v2916_v33, 0.0  ;;  %v3031_v6 = vmul.f32 %v2916_v33, %v2664_v38  ;;  %v2129_v46 = vadd.f32 %v2090_v1, %v1963_v35  ;;  %v1926_v56 = vpop.f32.mrf.mxu1  ;;  %v2384_v22 = vpop.f32.mrf.mxu3 }
 0x329   : > { %v2985_v39 = vadd.f32 %v2984_v12, %v2983_v8  ;;  %v2626_v57 = vpop.f32.mrf.mxu0  ;;  %v1964_v54 = vadd.f32 %v1926_v56, %v4685_v30 }
 0x32a   : > { %v3099_v32 = vsel %vm699_vm1, %v3031_v6, 0.0  ;;  %v2421_v28 = vadd.f32 %v2382_v4, %v2129_v46 }
 0x32b   : > { %v3100_v16 = vadd.f32 %v3099_v32, %v3098_v50 }
 0x32c   : > { %v2665_v3 = vadd.f32 %v2626_v57, %v2421_v28 }
 0x32e   : > { %v2917_v42 = vmul.f32 %v2876_v7, %v2665_v3  ;;  %3146 = vst.msk [vmem:[%s4695_s30 + $0x110] sm:$0xff] %vm699_vm1, %v2665_v3 }
 0x32f   : > { %v2092_v13 = vpop.f32.mrf.mxu2 }
 0x330   : > { %v2986_v34 = vsel %vm699_vm1, %v2917_v42, 0.0  ;;  %v3032_v58 = vmul.f32 %v2917_v42, %v2665_v3  ;;  %v2130_v40 = vadd.f32 %v2092_v13, %v1964_v54 }
 0x331   : > { %v2987_v24 = vadd.f32 %v2986_v34, %v2985_v39  ;;  %v2628_v48 = vpop.f32.mrf.mxu0 }
 0x332   : > { %v3101_v43 = vsel %vm699_vm1, %v3032_v58, 0.0  ;;  %v2422_v18 = vadd.f32 %v2384_v22, %v2130_v40 }
 0x333   : > { %v3102_v52 = vadd.f32 %v3101_v43, %v3100_v16 }
 0x334   : > { %v2666_v14 = vadd.f32 %v2628_v48, %v2422_v18 }
 0x336   : > { %v2918_v37 = vmul.f32 %v2881_v10, %v2666_v14  ;;  %3147 = vst.msk [vmem:[%s4695_s30 + $0x118] sm:$0xff] %vm699_vm1, %v2666_v14  ;;  %s292_s30 = scalar_lea.vmem %s5141_s6, %s5311_s25 }
 0x338   : > { %v2988_v30 = vsel %vm699_vm1, %v2918_v37, 0.0  ;;  %v3033_v49 = vmul.f32 %v2918_v37, %v2666_v14 }
 0x339   : > { %v2989_v0 = vadd.f32 %v2988_v30, %v2987_v24 }
 0x33a   : > { %v3103_v61 = vsel %vm699_vm1, %v3033_v49, 0.0 }
 0x33b   : > { %v2990_v25 = vrot.slane %v2989_v0, 4  ;;  %v3104_v23 = vadd.f32 %v3103_v61, %v3102_v52 }
 0x33d   : > { %v2991_v36 = vadd.f32 %v2990_v25, %v2989_v0  ;;  %v3105_v44 = vrot.slane %v3104_v23, 4 }
 0x33f   : > { %v2992_v21 = vrot.slane %v2991_v36, 2  ;;  %v3106_v31 = vadd.f32 %v3105_v44, %v3104_v23 }
 0x341   : > { %v2993_v41 = vadd.f32 %v2992_v21, %v2991_v36  ;;  %v3107_v62 = vrot.slane %v3106_v31, 2 }
 0x343   : > { %v2994_v45 = vrot.slane %v2993_v41, 1  ;;  %v3108_v63 = vadd.f32 %v3107_v62, %v3106_v31 }
 0x345   : > { %v2995_v47 = vadd.f32 %v2994_v45, %v2993_v41  ;;  %v3109_v5 = vrot.slane %v3108_v63, 1 }
 0x347   : > { %2997 = vst.msk [vmem:[%s292_s30] sm:$0x1] %vm2996_vm7, %v2995_v47  ;;  %v3110_v9 = vadd.f32 %v3109_v5, %v3108_v63 }
 0x349   : > { %3111 = vst.msk [vmem:[%s295_s15] sm:$0x1] %vm2996_vm7, %v3110_v9 }
 0x34a PF: > { %s18_s24 = sadd.s32 1, %s3678_s24  }
 0x34b   : > { %p15_p4 = scmp.ge.s32.totalorder %s18_s24, 4  }
 0x34d   :  { %17 = sbr.rel (!%p15_p4) target bundleno = 1 (0x1), region = 102 }

// kernel: resblock_forward.3
= control target key start
LH: loop header
LB: loop body
LE: loop exit
PB: predicated region body
PF: predicated region fallthrough
CT: control target
= control target key end

     0   :  { %s3639_s24 = smov 0   ;;  %s5053_s0 = inlined_call_operand.vmem [shape: bf16[2,328,32], index: 0, kind: input, shape index: {}]   ;;  %s5054_s1 = inlined_call_operand.vmem [shape: f32[1,32], index: 1, kind: input, shape index: {}]   ;;  %s5055_s2 = inlined_call_operand.vmem [shape: f32[1,32], index: 2, kind: input, shape index: {}]   ;;  %s5056_s3 = inlined_call_operand.vmem [shape: bf16[9,32,32], index: 3, kind: input, shape index: {}]   ;;  %s5057_s4 = inlined_call_operand.vmem [shape: f32[288,1], index: 4, kind: input, shape index: {}]   ;;  %s5058_s5 = inlined_call_operand.vmem [shape: bf16[2,288,32], index: 5, kind: output, shape index: {0}]   ;;  %s5059_s6 = inlined_call_operand.vmem [shape: f32[2,1,32], index: 6, kind: output, shape index: {1}]   ;;  %s5060_s7 = inlined_call_operand.vmem [shape: f32[2,1,32], index: 7, kind: output, shape index: {2}]  }
   0x1 LB: > { %s3159_s1 = sadd.s32 4294967295, %s3596_s24   ;;  %p3163_p0 = scmp.ge.s32.totalorder %s3596_s24, 1  ;;  %s3596_s24 = sphi %s3639_s24, %s18_s24  }
   0x2   : > { %p242_p1 = scmp.lt.s32.totalorder %s3596_s24, 3 }
   0x4   : > { %p243_p2 = pnand %p3163_p0, %p242_p1 }
   0x6   : > { %246 = sbr.rel (%p243_p2) target bundleno = 832 (0x340), region = 40 }
   0xb   : > { %v3527_v0 = vld [vmem:[%s5056_s3 + $0x18] sm:$0xff]  ;;  %p280_p3 = scmp.lt.s32.totalorder %s3159_s1, 1  ;;  %v3526_v1 = vld [vmem:[%s5056_s3 + $0x10] sm:$0xff]  ;;  %v3529_v2 = vld [vmem:[%s5056_s3 + $0x28] sm:$0xff]  ;;  %vm407_vm0 = vsmask.f32 7424 }
   0xc   : > { %3552 = vmatpush.bf16.msra.mxu1 %v3527_v0  ;;  %3553 = vmatpush.bf16.msra.mxu2 %v3527_v0  ;;  %v3525_v3 = vld [vmem:[%s5056_s3 + $0x8] sm:$0xff]  ;;  %vm568_vm1 = vcmask 261120   ;;  %v3531_v39 = vld [vmem:[%s5056_s3 + $0x38] sm:$0xff]  ;;  %v3528_v40 = vld [vmem:[%s5056_s3 + $0x20] sm:$0xff]  ;;  %vm893_vm2 = vcmask 1046528   ;;  %vm1595_vm5 = vcmask 1045504  }
   0xd   : > { %s5194_s1 = smov (!%p280_p3, %s3159_s1), 1  ;;  %629 = vmatpush.bf16.msra.mxu0 %v3527_v0  ;;  %3554 = vmatpush.bf16.msra.mxu3 %v3527_v0  ;;  %v3533_v4 = vld [vmem:[%s5056_s3 + $0x48] sm:$0xff]  ;;  %v3524_v42 = vld [vmem:[%s5056_s3] sm:$0xff]  ;;  %vm1303_vm3 = vsmask.f32 6400  ;;  %vm2297_vm6 = vcmask 1044480  }
   0xe   : > { %s3558_s30 = smul.u32 164, %s5194_s1  ;;  %vm2005_vm4 = vsmask.f32 5376  ;;  %vm3017_vm7 = vcmask 257024   ;;  %vm2865_vm8 = vcmask 253952   ;;  %s295_s10 = scalar_lea.vmem %s5060_s7, %s5194_s1 }
   0xf   : > { %s3559_s8 = smul.u32 144, %s5194_s1 }
  0x10   : > { %3555 = vmatpush.bf16.msra.mxu1 %v3526_v1  ;;  %3556 = vmatpush.bf16.msra.mxu2 %v3526_v1  ;;  %s3668_s14 = scalar_lea.vmem %s5053_s0, %s3558_s30 }
  0x11   : > { %630 = vmatpush.bf16.msra.mxu0 %v3526_v1  ;;  %v3671_v5 = vld [vmem:[%s3668_s14 + $0x28] sm:$0xff]  ;;  %v3674_v6 = vld [vmem:[%s3668_s14 + $0x30] sm:$0xff]  ;;  %v3680_v8 = vld [vmem:[%s3668_s14 + $0x58] sm:$0xff]  ;;  %3557 = vmatpush.bf16.msra.mxu3 %v3526_v1  ;;  %s4542_s13 = scalar_lea.vmem %s5058_s5, %s3559_s8  ;;  %s292_s8 = scalar_lea.vmem %s5059_s6, %s5194_s1 }
  0x12   : > { %v3677_v7 = vld [vmem:[%s3668_s14 + $0x50] sm:$0xff]  ;;  %v3683_v9 = vld [vmem:[%s3668_s14] sm:$0xff]  ;;  %v3686_v10 = vld [vmem:[%s3668_s14 + $0x8] sm:$0xff]  ;;  %v3689_v11 = vshll.u32 %v3671_v5, 16  ;;  %v3692_v12 = vshrl.u32 %v3671_v5, 16  ;;  %v3695_v13 = vshll.u32 %v3674_v6, 16 }
  0x13   : > { %v3698_v14 = vshll.u32 %v3677_v7, 16  ;;  %v3701_v15 = vshrl.u32 %v3677_v7, 16  ;;  %v3704_v16 = vshll.u32 %v3680_v8, 16  ;;  %v409_v17 = vshrl.u32 %v3683_v9, 16  ;;  %v3722_v28 = vld [vmem:[%s3668_s14 + $0x78] sm:$0xff]  ;;  %v3725_v29 = vld [vmem:[%s3668_s14 + $0x80] sm:$0xff] }
  0x14   : > { %1003 = vmatpush.bf16.msrb.mxu2 %v3529_v2  ;;  %776 = vmatpush.bf16.msrb.mxu1 %v3525_v3  ;;  %5090 = vst [vmem:[#allocation2_spill] sm:$0xff] %v3689_v11  ;;  %v411_v18 = vshll.u32 %v3683_v9, 16  ;;  %v450_v19 = vrot.slane %v3689_v11, 1  ;;  %v458_v20 = vrot.slane %v3695_v13, 1  ;;  %v5061_v22 = vshll.u32 %v3686_v10, 16  ;;  %v3733_v34 = vld [vmem:[%s3668_s14 + $0x38] sm:$0xff] }
  0x15   : > { %1461 = vmatpush.bf16.msrb.mxu0 %v3533_v4  ;;  %5091 = vst [vmem:[#allocation3_spill] sm:$0xff] %v3692_v12  ;;  %v490_v21 = vrot.slane %v3698_v14, 1  ;;  %v498_v23 = vrot.slane %v3704_v16, 1  ;;  %v3737_v35 = vld [vmem:[%s3668_s14 + $0x60] sm:$0xff]  ;;  %v3740_v36 = vshll.u32 %v3722_v28, 16  ;;  %v3743_v37 = vshrl.u32 %v3722_v28, 16  ;;  %1169 = vmatpush.bf16.msrb.mxu3 %v3531_v39 }
  0x16   : > { %5092 = vst [vmem:[#allocation4_spill] sm:$0xff] %v3695_v13  ;;  %v413_v24 = vrot.slane %v411_v18, 1  ;;  %v454_v25 = vor.u32 %v3692_v12, %v450_v19  ;;  %v418_v27 = vrot.slane %v5061_v22, 1  ;;  %v3746_v38 = vshll.u32 %v3725_v29, 16  ;;  %v3755_v41 = vld [vmem:[%s3668_s14 + $0x10] sm:$0xff]  ;;  %v3788_v57 = vld [vmem:[%s3668_s14 + $0x88] sm:$0xff] }
  0x17   : > { %5093 = vst [vmem:[#allocation5_spill] sm:$0xff] %v3698_v14  ;;  %v494_v26 = vor.u32 %v3701_v15, %v490_v21  ;;  %v5063_v43 = vrot.slane %v3740_v36, 1  ;;  %v3763_v45 = vshrl.u32 %v3674_v6, 16  ;;  %v3766_v46 = vshll.u32 %v3733_v34, 16  ;;  %v3791_v58 = vld [vmem:[%s3668_s14 + $0x48] sm:$0xff]  ;;  %v3811_v3 = vld [vmem:[%s3668_s14 + $0x40] sm:$0xff] }
  0x18   : > { %5094 = vst [vmem:[#allocation6_spill] sm:$0xff] %v3701_v15  ;;  %v414_v30 = vor.u32 %v413_v24, %v409_v17  ;;  %v459_v31 = vsel %vm407_vm0, %v454_v25, %v458_v20  ;;  %v538_v44 = vrot.slane %v3746_v38, 1  ;;  %1004 = vmatpush.bf16.msrb.mxu2 %v3528_v40  ;;  %777 = vmatpush.bf16.msrb.mxu1 %v3524_v42  ;;  %v3769_v47 = vshrl.u32 %v3680_v8, 16  ;;  %v3814_v4 = vld [vmem:[%s3668_s14 + $0x68] sm:$0xff]  ;;  %v3530_v24 = vld [vmem:[%s5056_s3 + $0x30] sm:$0xff]  ;;  %v3850_v42 = vld [vmem:[%s3668_s14 + $0x20] sm:$0xff] }
  0x19   : > { %v499_v32 = vsel %vm407_vm0, %v494_v26, %v498_v23  ;;  %3255 = vmatmul.msk.bf16.vlgmr.msra.gmra.mxu1 %vm568_vm1, %v459_v31  ;;  %5095 = vst [vmem:[#allocation7_spill] sm:$0xff] %v3763_v45  ;;  %v3772_v48 = vshll.u32 %v3737_v35, 16  ;;  %v534_v49 = vor.u32 %v3743_v37, %v5063_v43  ;;  %v5062_v50 = vshrl.u32 %v3686_v10, 16  ;;  %v3830_v26 = vld [vmem:[%s3668_s14 + $0x18] sm:$0xff]  ;;  %1170 = vmatpush.bf16.msrb.mxu3 %v3530_v24 }
  0x1a   : > { %3260 = vmatmul.msk.bf16.vlgmr.msra.gmra.mxu2 %vm568_vm1, %v499_v32  ;;  %v419_v33 = vsel %vm407_vm0, %v414_v30, %v418_v27  ;;  %5096 = vst [vmem:[#allocation8_spill] sm:$0xff] %v3766_v46  ;;  %v3779_v51 = vshll.u32 %v3755_v41, 16  ;;  %v462_v53 = vor.u32 %v3763_v45, %v458_v20  ;;  %v466_v54 = vrot.slane %v3766_v46, 1 }
  0x1b   : > { %3250 = vmatmul.msk.bf16.vlgmr.msra.gmra.mxu0 %vm568_vm1, %v419_v33  ;;  %v539_v52 = vsel %vm407_vm0, %v534_v49, %v538_v44  ;;  %v502_v55 = vor.u32 %v3769_v47, %v498_v23  ;;  %v506_v56 = vrot.slane %v3772_v48, 1  ;;  %v422_v59 = vor.u32 %v5062_v50, %v418_v27  ;;  %v3532_v23 = vld [vmem:[%s5056_s3 + $0x40] sm:$0xff]  ;;  %5100 = vst [vmem:[#allocation12_spill] sm:$0xff] %v3830_v26  ;;  %v3833_v27 = vld [vmem:[%s3668_s14 + $0x90] sm:$0xff]  }
  0x1c   : > { %3265 = vmatmul.msk.bf16.vlgmr.msra.gmra.mxu3 %vm568_vm1, %v539_v52  ;;  %v426_v60 = vrot.slane %v3779_v51, 1  ;;  %v467_v61 = vsel %vm407_vm0, %v462_v53, %v466_v54  ;;  %v3799_v63 = vshrl.u32 %v3725_v29, 16  ;;  %v3802_v0 = vshll.u32 %v3788_v57, 16  ;;  %5101 = vst [vmem:[#allocation13_spill] sm:$0xff] %v3833_v27  ;;  %1462 = vmatpush.bf16.msrb.mxu0 %v3532_v23 }
  0x1d   : > { %v507_v62 = vsel %vm407_vm0, %v502_v55, %v506_v56  ;;  %v3805_v1 = vshll.u32 %v3791_v58, 16  ;;  %v3827_v25 = vshrl.u32 %v3791_v58, 16  ;;  %v3837_v31 = vshrl.u32 %v3733_v34, 16 }
  0x1e   : > { %5097 = vst [vmem:[#allocation9_spill] sm:$0xff] %v3802_v0  ;;  %v427_v2 = vsel %vm407_vm0, %v422_v59, %v426_v60  ;;  %v542_v17 = vor.u32 %v3799_v63, %v538_v44  ;;  %v546_v18 = vrot.slane %v3802_v0, 1  ;;  %v3840_v32 = vshll.u32 %v3811_v3, 16 }
  0x1f   : > { %5098 = vst [vmem:[#allocation10_spill] sm:$0xff] %v3805_v1  ;;  %v482_v20 = vrot.slane %v3805_v1, 1  ;;  %v3843_v33 = vshrl.u32 %v3737_v35, 16  ;;  %v3846_v39 = vshll.u32 %v3814_v4, 16  ;;  %v3544_v44 = vunpack.c.l.bf16 %v3833_v27 }
  0x20   : > { %5099 = vst [vmem:[#allocation11_spill] sm:$0xff] %v3827_v25  ;;  %v547_v40 = vsel %vm407_vm0, %v542_v17, %v546_v18  ;;  %v3857_v52 = vshrl.u32 %v3755_v41, 16  ;;  %v3860_v53 = vshll.u32 %v3830_v26, 16  ;;  %v470_v55 = vor.u32 %v3837_v31, %v466_v54 }
  0x21   : > { %v486_v30 = vor.u32 %v3827_v25, %v482_v20  ;;  %5102 = vst [vmem:[#allocation14_spill] sm:$0xff] %v3837_v31  ;;  %v474_v59 = vrot.slane %v3840_v32, 1  ;;  %v3882_v22 = vshrl.u32 %v3850_v42, 16 }
  0x22   : > { %5103 = vst [vmem:[#allocation15_spill] sm:$0xff] %v3840_v32  ;;  %v430_v17 = vor.u32 %v3857_v52, %v426_v60  ;;  %v434_v23 = vrot.slane %v3860_v53, 1 }
  0x23   : > { %v491_v49 = vsel %vm407_vm0, %v486_v30, %v490_v21  ;;  %5104 = vst [vmem:[#allocation16_spill] sm:$0xff] %v3860_v53  ;;  %v3870_v21 = vpack.c.bf16 %v3544_v44, %v3544_v44  ;;  %v475_v54 = vsel %vm407_vm0, %v470_v55, %v474_v59  ;;  %v3878_v30 = vshrl.u32 %v3788_v57, 16  ;;  %v3890_v55 = vld [vmem:[%s3668_s14 + $0x70] sm:$0xff] }
  0x24   : > { %5108 = vst [vmem:[#allocation20_spill] sm:$0xff] %v3882_v22  ;;  %v435_v44 = vsel %vm407_vm0, %v430_v17, %v434_v23  ;;  %v3900_v17 = vshrl.u32 %v3814_v4, 16 }
  0x25   : > { %5106 = vst [vmem:[#allocation18_spill] sm:$0xff] %v3870_v21 }
  0x26   : > { %5107 = vst [vmem:[#allocation19_spill] sm:$0xff] %v3878_v30 }
  0x29   : > { %3256 = vmatmul.msk.bf16.gmra.mxu1 %vm568_vm1, %v467_v61  ;;  %v510_v61 = vor.u32 %v3843_v33, %v506_v56 }
  0x2a   : > { %3261 = vmatmul.msk.bf16.gmra.mxu2 %vm568_vm1, %v507_v62  ;;  %v514_v62 = vrot.slane %v3846_v39, 1 }
  0x2b   : > { %3251 = vmatmul.msk.bf16.gmra.mxu0 %vm568_vm1, %v427_v2  ;;  %v3868_v2 = vshll.u32 %v3850_v42, 16 }
  0x2c   : > { %3266 = vmatmul.msk.bf16.gmra.mxu3 %vm568_vm1, %v547_v40  ;;  %v515_v24 = vsel %vm407_vm0, %v510_v61, %v514_v62  ;;  %v552_v40 = vshll.u32 %v3870_v21, 16  ;;  %v550_v61 = vor.u32 %v3878_v30, %v546_v18  ;;  %v3897_v21 = vshrl.u32 %v3811_v3, 16 }
  0x2d   : > { %5105 = vst [vmem:[#allocation17_spill] sm:$0xff] %v3868_v2  ;;  %v442_v56 = vrot.slane %v3868_v2, 1 }
  0x2e   : > { %v554_v50 = vrot.slane %v552_v40, 1  ;;  %5109 = vst [vmem:[#allocation21_spill] sm:$0xff] %v3897_v21  ;;  %v478_v18 = vor.u32 %v3897_v21, %v474_v59  ;;  %v895_v59 = vrot.slane %v3686_v10, 1 }
  0x2f   : > { %v446_v60 = vor.u32 %v3882_v22, %v442_v56 }
  0x30   : > { %v483_v0 = vsel %vm407_vm0, %v478_v18, %v482_v20  ;;  %v3539_v20 = vld [vmem:[%s5056_s3 + $0x78] sm:$0xff]  ;;  %v899_v18 = vrot.slane %v3830_v26, 1 }
  0x31   : > { %v451_v43 = vsel %vm407_vm0, %v446_v60, %v450_v19  ;;  %v518_v19 = vor.u32 %v3900_v17, %v514_v62  ;;  %v897_v62 = vrot.slane %v3755_v41, 1  ;;  %2163 = vmatpush.bf16.msra.mxu3 %v3539_v20  ;;  %v5112_v20 = vshll.u32 %v3686_v10, 16 }
  0x39   : > { %3257 = vmatmul.msk.bf16.gmra.mxu1 %vm568_vm1, %v475_v54  ;;  %v3903_v54 = vshll.u32 %v3890_v55, 16 }
  0x3a   : > { %3262 = vmatmul.msk.bf16.gmra.mxu2 %vm568_vm1, %v515_v24  ;;  %v555_v24 = vsel %vm407_vm0, %v550_v61, %v554_v50  ;;  %v3537_v50 = vld [vmem:[%s5056_s3 + $0x68] sm:$0xff]  ;;  %v5110_v61 = vrot.slane %v3740_v36, 1 }
  0x3b   : > { %3252 = vmatmul.msk.bf16.gmra.mxu0 %vm568_vm1, %v435_v44  ;;  %v3907_v44 = vshrl.u32 %v3830_v26, 16  ;;  %v522_v40 = vrot.slane %v3903_v54, 1  ;;  %1871 = vmatpush.bf16.msra.mxu2 %v3537_v50 }
  0x3c   : > { %3267 = vmatmul.msk.bf16.gmra.mxu3 %vm568_vm1, %v555_v24 }
  0x3d   : > { %v438_v60 = vor.u32 %v3907_v44, %v434_v23  ;;  %v523_v30 = vsel %vm407_vm0, %v518_v19, %v522_v40  ;;  %v3541_v23 = vld [vmem:[%s5056_s3 + $0x88] sm:$0xff]  ;;  %v900_v19 = vsel %vm893_vm2, %v897_v62, %v899_v18 }
  0x3e   : > { %2407 = vmatpush.bf16.msra.mxu0 %v3541_v23  ;;  %v1308_v23 = vrot.slane %v3779_v51, 2 }
  0x3f   : > { %v443_v27 = vsel %vm407_vm0, %v438_v60, %v442_v56  ;;  %v898_v56 = vsel %vm893_vm2, %v895_v59, %v897_v62  ;;  %v5111_v60 = vshrl.u32 %v3686_v10, 16 }
  0x41   : > { %v1304_v50 = vrot.slane %v5111_v60, 1 }
  0x49   : > { %3258 = vmatmul.msk.bf16.gmra.mxu1 %vm568_vm1, %v483_v0  ;;  %v3535_v0 = vld [vmem:[%s5056_s3 + $0x58] sm:$0xff] }
  0x4a   : > { %3263 = vmatmul.msk.bf16.gmra.mxu2 %vm568_vm1, %v523_v30  ;;  %1705 = vmatpush.bf16.msra.mxu1 %v3535_v0  ;;  %v1307_v0 = vrot.slane %v3857_v52, 1 }
  0x4b   : > { %3253 = vmatmul.msk.bf16.gmra.mxu0 %vm568_vm1, %v443_v27  ;;  %v3935_v27 = vshrl.u32 %v3890_v55, 16 }
  0x4c   : > { %3336 = vmatmul.msk.bf16.vlgmr.msrb.gmra.mxu3 %vm568_vm1, %v898_v56 }
  0x4d   : > { %v526_v30 = vor.u32 %v3935_v27, %v522_v40  ;;  %v1305_v40 = vrot.slane %v5112_v20, 2  ;;  %v1311_v20 = vrot.slane %v3907_v44, 1 }
  0x4f   : > { %v531_v24 = vsel %vm407_vm0, %v526_v30, %v5110_v61  ;;  %v1306_v30 = vor.u32 %v1305_v40, %v1304_v50  ;;  %v1312_v50 = vrot.slane %v3860_v53, 2 }
  0x59   : > { %3259 = vmatmul.msk.bf16.gmra.mxu1 %vm568_vm1, %v491_v49  ;;  %v894_v49 = vrot.slane %v3683_v9, 1 }
  0x5a   : > { %3264 = vmatmul.msk.bf16.gmra.mxu2 %vm568_vm1, %v531_v24  ;;  %v901_v24 = vrot.slane %v3850_v42, 1 }
  0x5b   : > { %3254 = vmatmul.msk.bf16.gmra.mxu0 %vm568_vm1, %v451_v43  ;;  %v1309_v43 = vor.u32 %v1308_v23, %v1307_v0  ;;  %v896_v61 = vsel %vm893_vm2, %v894_v49, %v895_v59  ;;  %v1313_v59 = vor.u32 %v1312_v50, %v1311_v20  ;;  %v1315_v0 = vrot.slane %v3882_v22, 1 }
  0x5c   : > { %3337 = vmatmul.msk.bf16.gmra.mxu3 %vm568_vm1, %v900_v19  ;;  %v902_v60 = vsel %vm893_vm2, %v899_v18, %v901_v24  ;;  %v1316_v23 = vrot.slane %v3868_v2, 2 }
  0x5d   : > { %v1310_v62 = vsel %vm1303_vm3, %v1306_v30, %v1309_v43  ;;  %v1314_v40 = vsel %vm1303_vm3, %v1309_v43, %v1313_v59  ;;  %v1319_v43 = vrot.slane %v3692_v12, 1  ;;  %v1340_v12 = vrot.slane %v3698_v14, 2 }
  0x5e   : > { %v1317_v49 = vor.u32 %v1316_v23, %v1315_v0  ;;  %v1323_v0 = vrot.slane %v3763_v45, 1  ;;  %v1324_v23 = vrot.slane %v3695_v13, 2 }
  0x60   : > { %v1318_v30 = vsel %vm1303_vm3, %v1313_v59, %v1317_v49 }
  0x69   : > { %3276 = vmatmul.msk.bf16.vlgmr.msrb.gmra.mxu1 %vm568_vm1, %v3683_v9  ;;  %v903_v9 = vrot.slane %v3671_v5, 1 }
  0x6a   : > { %3306 = vmatmul.msk.bf16.vlgmr.msrb.gmra.mxu2 %vm568_vm1, %v896_v61  ;;  %v1320_v61 = vrot.slane %v3689_v11, 2 }
  0x6b   : > { %3366 = vmatmul.msk.bf16.vlgmr.msrb.gmra.mxu0 %vm568_vm1, %v1310_v62  ;;  %v904_v18 = vsel %vm893_vm2, %v901_v24, %v903_v9 }
  0x6c   : > { %3338 = vmatmul.msk.bf16.gmra.mxu3 %vm568_vm1, %v902_v60  ;;  %v1321_v62 = vor.u32 %v1320_v61, %v1319_v43 }
  0x79   : > { %3277 = vmatmul.msk.bf16.gmra.mxu1 %vm568_vm1, %v3686_v10  ;;  %v905_v10 = vrot.slane %v3674_v6, 1 }
  0x7a   : > { %3307 = vmatmul.msk.bf16.gmra.mxu2 %vm568_vm1, %v898_v56 }
  0x7b   : > { %3367 = vmatmul.msk.bf16.gmra.mxu0 %vm568_vm1, %v1314_v40  ;;  %v906_v56 = vsel %vm893_vm2, %v903_v9, %v905_v10 }
  0x7c   : > { %3339 = vmatmul.msk.bf16.gmra.mxu3 %vm568_vm1, %v904_v18 }
  0x89   : > { %3278 = vmatmul.msk.bf16.gmra.mxu1 %vm568_vm1, %v3755_v41  ;;  %v1322_v41 = vsel %vm1303_vm3, %v1317_v49, %v1321_v62  ;;  %v1325_v49 = vor.u32 %v1324_v23, %v1323_v0 }
  0x8a   : > { %3308 = vmatmul.msk.bf16.gmra.mxu2 %vm568_vm1, %v900_v19  ;;  %v907_v19 = vrot.slane %v3733_v34, 1 }
  0x8b   : > { %3368 = vmatmul.msk.bf16.gmra.mxu0 %vm568_vm1, %v1318_v30 }
  0x8c   : > { %3340 = vmatmul.msk.bf16.gmra.mxu3 %vm568_vm1, %v906_v56  ;;  %v908_v40 = vsel %vm893_vm2, %v905_v10, %v907_v19  ;;  %v909_v10 = vrot.slane %v3811_v3, 1 }
  0x8e   : > { %v910_v13 = vsel %vm893_vm2, %v907_v19, %v909_v10  ;;  %v911_v19 = vrot.slane %v3791_v58, 1 }
  0x96   : > { %v3987_v24 = vpop.f32.mrf.mxu1 }
  0x98   : > { %v3989_v20 = vpop.f32.mrf.mxu0 }
  0x99   : > { %3279 = vmatmul.msk.bf16.gmra.mxu1 %vm568_vm1, %v3830_v26  ;;  %v3534_v26 = vld [vmem:[%s5056_s3 + $0x50] sm:$0xff] }
  0x9a   : > { %3309 = vmatmul.msk.bf16.gmra.mxu2 %vm568_vm1, %v902_v60  ;;  %1706 = vmatpush.bf16.msra.mxu1 %v3534_v26 }
  0x9b   : > { %3369 = vmatmul.msk.bf16.gmra.mxu0 %vm568_vm1, %v1322_v41  ;;  %v1326_v41 = vsel %vm1303_vm3, %v1321_v62, %v1325_v49  ;;  %v1327_v62 = vrot.slane %v3837_v31, 1 }
  0x9c   : > { %3341 = vmatmul.msk.bf16.gmra.mxu3 %vm568_vm1, %v908_v40 }
  0x9d   : > { %v3997_v50 = vpop.f32.mrf.mxu2 }
  0x9e   : > { %5113 = vst [vmem:[#allocation22_spill] sm:$0xff] %v3997_v50  ;;  %v3999_v59 = vpop.f32.mrf.mxu1 }
  0x9f   : > { %v4009_v30 = vpop.f32.mrf.mxu3 }
  0xa0   : > { %v4002_v9 = vpop.f32.mrf.mxu0  ;;  %5115 = vst [vmem:[#allocation24_spill] sm:$0xff] %v4009_v30 }
  0xa5   : > { %v4007_v60 = vpop.f32.mrf.mxu2 }
  0xa6   : > { %5114 = vst [vmem:[#allocation23_spill] sm:$0xff] %v4007_v60  ;;  %v4011_v43 = vpop.f32.mrf.mxu1 }
  0xa7   : > { %v4023_v23 = vpop.f32.mrf.mxu3 }
  0xa8   : > { %v4013_v61 = vpop.f32.mrf.mxu0  ;;  %5117 = vst [vmem:[#allocation26_spill] sm:$0xff] %v4023_v23 }
  0xa9   : > { %3280 = vmatmul.msk.bf16.gmra.mxu1 %vm568_vm1, %v3850_v42  ;;  %v1328_v42 = vrot.slane %v3766_v46, 2  ;;  %v912_v46 = vsel %vm893_vm2, %v909_v10, %v911_v19  ;;  %v913_v10 = vrot.slane %v3677_v7, 1 }
  0xaa   : > { %3310 = vmatmul.msk.bf16.gmra.mxu2 %vm568_vm1, %v904_v18 }
  0xab   : > { %3370 = vmatmul.msk.bf16.gmra.mxu0 %vm568_vm1, %v1326_v41  ;;  %v1329_v18 = vor.u32 %v1328_v42, %v1327_v62 }
  0xac   : > { %3342 = vmatmul.msk.bf16.gmra.mxu3 %vm568_vm1, %v910_v13 }
  0xad   : > { %v4021_v0 = vpop.f32.mrf.mxu2  ;;  %v1330_v50 = vsel %vm1303_vm3, %v1325_v49, %v1329_v18  ;;  %v1331_v49 = vrot.slane %v3897_v21, 1 }
  0xae   : > { %5116 = vst [vmem:[#allocation25_spill] sm:$0xff] %v4021_v0  ;;  %v4025_v30 = vpop.f32.mrf.mxu1 }
  0xaf   : > { %v4035_v60 = vpop.f32.mrf.mxu3 }
  0xb0   : > { %v4028_v45 = vpop.f32.mrf.mxu0  ;;  %5119 = vst [vmem:[#allocation28_spill] sm:$0xff] %v4035_v60 }
  0xb5   : > { %v4033_v41 = vpop.f32.mrf.mxu2 }
  0xb6   : > { %5118 = vst [vmem:[#allocation27_spill] sm:$0xff] %v4033_v41  ;;  %v4037_v0 = vpop.f32.mrf.mxu1 }
  0xb7   : > { %v4049_v42 = vpop.f32.mrf.mxu3 }
  0xb8   : > { %v4039_v23 = vpop.f32.mrf.mxu0  ;;  %5121 = vst [vmem:[#allocation30_spill] sm:$0xff] %v4049_v42 }
  0xb9   : > { %3281 = vmatmul.msk.bf16.gmra.mxu1 %vm568_vm1, %v3671_v5  ;;  %v1332_v5 = vrot.slane %v3840_v32, 2  ;;  %v4080_v32 = vsel %vm893_vm2, %v911_v19, %v913_v10 }
  0xba   : > { %3311 = vmatmul.msk.bf16.gmra.mxu2 %vm568_vm1, %v906_v56 }
  0xbb   : > { %3371 = vmatmul.msk.bf16.gmra.mxu0 %vm568_vm1, %v1330_v50  ;;  %v1333_v56 = vor.u32 %v1332_v5, %v1331_v49 }
  0xbc   : > { %3343 = vmatmul.msk.bf16.gmra.mxu3 %vm568_vm1, %v912_v46 }
  0xbd   : > { %v4047_v62 = vpop.f32.mrf.mxu2  ;;  %v1334_v11 = vsel %vm1303_vm3, %v1329_v18, %v1333_v56  ;;  %v1335_v18 = vrot.slane %v3827_v25, 1 }
  0xbe   : > { %5120 = vst [vmem:[#allocation29_spill] sm:$0xff] %v4047_v62  ;;  %v4051_v60 = vpop.f32.mrf.mxu1 }
  0xbf   : > { %v4061_v41 = vpop.f32.mrf.mxu3 }
  0xc0   : > { %v4054_v31 = vpop.f32.mrf.mxu0  ;;  %5123 = vst [vmem:[#allocation32_spill] sm:$0xff] %v4061_v41 }
  0xc5   : > { %v4059_v50 = vpop.f32.mrf.mxu2 }
  0xc6   : > { %5122 = vst [vmem:[#allocation31_spill] sm:$0xff] %v4059_v50  ;;  %v4063_v62 = vpop.f32.mrf.mxu1 }
  0xc7   : > { %5124 = vst [vmem:[#allocation33_spill] sm:$0xff] %v4063_v62  ;;  %v4075_v5 = vpop.f32.mrf.mxu3 }
  0xc8   : > { %v4065_v42 = vpop.f32.mrf.mxu0  ;;  %5126 = vst [vmem:[#allocation35_spill] sm:$0xff] %v4075_v5 }
  0xc9   : > { %3282 = vmatmul.msk.bf16.gmra.mxu1 %vm568_vm1, %v3674_v6  ;;  %v1336_v6 = vrot.slane %v3805_v1, 2  ;;  %v3536_v1 = vld [vmem:[%s5056_s3 + $0x60] sm:$0xff] }
  0xca   : > { %3312 = vmatmul.msk.bf16.gmra.mxu2 %vm568_vm1, %v908_v40 }
  0xcb   : > { %3372 = vmatmul.msk.bf16.gmra.mxu0 %vm568_vm1, %v1334_v11  ;;  %v1337_v11 = vor.u32 %v1336_v6, %v1335_v18  ;;  %v915_v18 = vrot.slane %v3680_v8, 1  ;;  %v3538_v6 = vld [vmem:[%s5056_s3 + $0x70] sm:$0xff]  ;;  %1872 = vmatpush.bf16.msra.mxu2 %v3536_v1  ;;  %v3540_v1 = vld [vmem:[%s5056_s3 + $0x80] sm:$0xff] }
  0xcc   : > { %3344 = vmatmul.msk.bf16.gmra.mxu3 %vm568_vm1, %v4080_v32  ;;  %2408 = vmatpush.bf16.msra.mxu0 %v3540_v1 }
  0xcd   : > { %v4073_v49 = vpop.f32.mrf.mxu2  ;;  %v1338_v19 = vsel %vm1303_vm3, %v1333_v56, %v1337_v11  ;;  %2164 = vmatpush.bf16.msra.mxu3 %v3538_v6 }
  0xce   : > { %5125 = vst [vmem:[#allocation34_spill] sm:$0xff] %v4073_v49  ;;  %v4077_v41 = vpop.f32.mrf.mxu1 }
  0xcf   : > { %5127 = vst [vmem:[#allocation36_spill] sm:$0xff] %v4077_v41  ;;  %v1172_v49 = vpop.f32.mrf.mxu3  ;;  %v1343_v41 = vrot.slane %v3769_v47, 1 }
  0xd0   : > { %v4082_v21 = vpop.f32.mrf.mxu0 }
  0xd5   : > { %v4088_v40 = vpop.f32.mrf.mxu2 }
  0xd6   : > { %5128 = vst [vmem:[#allocation37_spill] sm:$0xff] %v4088_v40  ;;  %v4090_v50 = vpop.f32.mrf.mxu1 }
  0xd7   : > { %5129 = vst [vmem:[#allocation38_spill] sm:$0xff] %v4090_v50  ;;  %v1174_v56 = vpop.f32.mrf.mxu3  ;;  %v917_v50 = vrot.slane %v3737_v35, 1 }
  0xd8   : > { %v4092_v5 = vpop.f32.mrf.mxu0 }
  0xd9   : > { %3283 = vmatmul.msk.bf16.gmra.mxu1 %vm568_vm1, %v3733_v34  ;;  %v4135_v2 = vsel %vm893_vm2, %v915_v18, %v917_v50 }
  0xda   : > { %3313 = vmatmul.msk.bf16.gmra.mxu2 %vm568_vm1, %v910_v13  ;;  %v4111_v13 = vsel %vm893_vm2, %v913_v10, %v915_v18 }
  0xdb   : > { %3373 = vmatmul.msk.bf16.gmra.mxu0 %vm568_vm1, %v1338_v19  ;;  %v1339_v19 = vrot.slane %v3701_v15, 1 }
  0xdc   : > { %3345 = vmatmul.msk.bf16.gmra.mxu3 %vm568_vm1, %v4111_v13 }
  0xdd   : > { %v4106_v25 = vpop.f32.mrf.mxu2  ;;  %v1341_v10 = vor.u32 %v1340_v12, %v1339_v19 }
  0xde   : > { %5130 = vst [vmem:[#allocation39_spill] sm:$0xff] %v4106_v25  ;;  %v4108_v34 = vpop.f32.mrf.mxu1 }
  0xdf   : > { %5131 = vst [vmem:[#allocation40_spill] sm:$0xff] %v4108_v34  ;;  %v1177_v25 = vpop.f32.mrf.mxu3  ;;  %v1342_v14 = vsel %vm1303_vm3, %v1337_v11, %v1341_v10 }
  0xe0   : > { %v4113_v40 = vpop.f32.mrf.mxu0 }
  0xe5   : > { %v4125_v6 = vpop.f32.mrf.mxu2 }
  0xe6   : > { %5132 = vst [vmem:[#allocation41_spill] sm:$0xff] %v4125_v6  ;;  %v779_v15 = vpop.f32.mrf.mxu1 }
  0xe7   : > { %v780_v26 = vadd.f32 %v779_v15, %v3989_v20  ;;  %v1179_v12 = vpop.f32.mrf.mxu3 }
  0xe8   : > { %v1464_v34 = vpop.f32.mrf.mxu0 }
  0xe9   : > { %3284 = vmatmul.msk.bf16.gmra.mxu1 %vm568_vm1, %v3811_v3  ;;  %v1344_v3 = vrot.slane %v3704_v16, 2 }
  0xea   : > { %3314 = vmatmul.msk.bf16.gmra.mxu2 %vm568_vm1, %v912_v46 }
  0xeb   : > { %3374 = vmatmul.msk.bf16.gmra.mxu0 %vm568_vm1, %v1342_v14  ;;  %v1345_v46 = vor.u32 %v1344_v3, %v1343_v41 }
  0xec   : > { %3346 = vmatmul.msk.bf16.gmra.mxu3 %vm568_vm1, %v4135_v2 }
  0xed   : > { %v1006_v1 = vpop.f32.mrf.mxu2 }
  0xee   : > { %v1096_v19 = vadd.f32 %v1006_v1, %v780_v26  ;;  %v781_v6 = vpop.f32.mrf.mxu1 }
  0xef   : > { %v782_v15 = vadd.f32 %v781_v6, %v4002_v9  ;;  %v1182_v26 = vpop.f32.mrf.mxu3 }
  0xf0   : > { %v1262_v22 = vadd.f32 %v1172_v49, %v1096_v19  ;;  %v1466_v11 = vpop.f32.mrf.mxu0  ;;  %v1346_v49 = vsel %vm1303_vm3, %v1341_v10, %v1345_v46 }
  0xf2   : > { %v4141_v14 = vadd.f32 %v1464_v34, %v1262_v22  ;;  %v919_v22 = vrot.slane %v3814_v4, 1 }
  0xf4   : > { %v4155_v10 = vsel %vm893_vm2, %v917_v50, %v919_v22 }
  0xf5   : > { %v1008_v20 = vpop.f32.mrf.mxu2 }
  0xf6   : > { %v1097_v1 = vadd.f32 %v1008_v20, %v782_v15  ;;  %v784_v62 = vpop.f32.mrf.mxu1  ;;  %v1347_v15 = vrot.slane %v3843_v33, 1 }
  0xf7   : > { %v785_v9 = vadd.f32 %v784_v62, %v4013_v61  ;;  %v1184_v34 = vpop.f32.mrf.mxu3 }
  0xf8   : > { %v1263_v18 = vadd.f32 %v1174_v56, %v1097_v1  ;;  %v1469_v53 = vpop.f32.mrf.mxu0 }
  0xf9   : > { %3285 = vmatmul.msk.bf16.gmra.mxu1 %vm568_vm1, %v3791_v58 }
  0xfa   : > { %3315 = vmatmul.msk.bf16.gmra.mxu2 %vm568_vm1, %v4080_v32  ;;  %v4149_v19 = vadd.f32 %v1466_v11, %v1263_v18  ;;  %v1348_v32 = vrot.slane %v3772_v48, 2 }
  0xfb   : > { %3375 = vmatmul.msk.bf16.gmra.mxu0 %vm568_vm1, %v1346_v49 }
  0xfc   : > { %3347 = vmatmul.msk.bf16.gmra.mxu3 %vm568_vm1, %v4155_v10  ;;  %v1349_v62 = vor.u32 %v1348_v32, %v1347_v15  ;;  %v1351_v32 = vrot.slane %v3900_v17, 1 }
  0xfd   : > { %v1011_v41 = vpop.f32.mrf.mxu2 }
  0xfe   : > { %v1098_v56 = vadd.f32 %v1011_v41, %v785_v9  ;;  %v786_v6 = vpop.f32.mrf.mxu1 }
  0xff   : > { %v787_v61 = vadd.f32 %v786_v6, %v4028_v45  ;;  %v1187_v1 = vpop.f32.mrf.mxu3  ;;  %v921_v45 = vrot.slane %v3890_v55, 1 }
 0x100   : > { %v1264_v3 = vadd.f32 %v1177_v25, %v1098_v56  ;;  %v1471_v58 = vpop.f32.mrf.mxu0  ;;  %v1350_v25 = vsel %vm1303_vm3, %v1345_v46, %v1349_v62 }
 0x101   : > { %v4175_v46 = vsel %vm893_vm2, %v919_v22, %v921_v45 }
 0x102   : > { %v4161_v11 = vadd.f32 %v1469_v53, %v1264_v3 }
 0x105   : > { %v1013_v20 = vpop.f32.mrf.mxu2 }
 0x106   : > { %v1099_v18 = vadd.f32 %v1013_v20, %v787_v61  ;;  %v789_v49 = vpop.f32.mrf.mxu1 }
 0x107   : > { %v790_v53 = vadd.f32 %v789_v49, %v4039_v23  ;;  %v1189_v6 = vpop.f32.mrf.mxu3 }
 0x108   : > { %v1265_v50 = vadd.f32 %v1179_v12, %v1099_v18  ;;  %v1474_v9 = vpop.f32.mrf.mxu0 }
 0x109   : > { %3286 = vmatmul.msk.bf16.gmra.mxu1 %vm568_vm1, %v3677_v7 }
 0x10a   : > { %3316 = vmatmul.msk.bf16.gmra.mxu2 %vm568_vm1, %v4111_v13  ;;  %v4169_v41 = vadd.f32 %v1471_v58, %v1265_v50  ;;  %v1352_v13 = vrot.slane %v3846_v39, 2 }
 0x10b   : > { %3376 = vmatmul.msk.bf16.gmra.mxu0 %vm568_vm1, %v1350_v25 }
 0x10c   : > { %3348 = vmatmul.msk.bf16.gmra.mxu3 %vm568_vm1, %v4175_v46  ;;  %v1353_v61 = vor.u32 %v1352_v13, %v1351_v32  ;;  %v1355_v32 = vrot.slane %v3935_v27, 1 }
 0x10d   : > { %v1016_v56 = vpop.f32.mrf.mxu2 }
 0x10e   : > { %v1100_v12 = vadd.f32 %v1016_v56, %v790_v53  ;;  %v791_v3 = vpop.f32.mrf.mxu1 }
 0x10f   : > { %v792_v23 = vadd.f32 %v791_v3, %v4054_v31  ;;  %v1192_v18 = vpop.f32.mrf.mxu3  ;;  %v923_v31 = vrot.slane %v3722_v28, 1 }
 0x110   : > { %v1266_v15 = vadd.f32 %v1182_v26, %v1100_v12  ;;  %v1476_v7 = vpop.f32.mrf.mxu0  ;;  %v1354_v26 = vsel %vm1303_vm3, %v1349_v62, %v1353_v61 }
 0x111   : > { %v4195_v62 = vsel %vm893_vm2, %v921_v45, %v923_v31 }
 0x112   : > { %v4181_v58 = vadd.f32 %v1474_v9, %v1266_v15 }
 0x115   : > { %v1018_v20 = vpop.f32.mrf.mxu2 }
 0x116   : > { %v1101_v49 = vadd.f32 %v1018_v20, %v792_v23  ;;  %v794_v50 = vpop.f32.mrf.mxu1 }
 0x117   : > { %v795_v9 = vadd.f32 %v794_v50, %v4065_v42  ;;  %v1194_v12 = vpop.f32.mrf.mxu3 }
 0x118   : > { %v1267_v22 = vadd.f32 %v1184_v34, %v1101_v49  ;;  %v1479_v25 = vpop.f32.mrf.mxu0 }
 0x119   : > { %3287 = vmatmul.msk.bf16.gmra.mxu1 %vm568_vm1, %v3680_v8 }
 0x11a   : > { %3317 = vmatmul.msk.bf16.gmra.mxu2 %vm568_vm1, %v4135_v2  ;;  %v4189_v53 = vadd.f32 %v1476_v7, %v1267_v22  ;;  %v1356_v2 = vrot.slane %v3903_v54, 2 }
 0x11b   : > { %3377 = vmatmul.msk.bf16.gmra.mxu0 %vm568_vm1, %v1354_v26 }
 0x11c   : > { %3349 = vmatmul.msk.bf16.gmra.mxu3 %vm568_vm1, %v4195_v62  ;;  %v1357_v13 = vor.u32 %v1356_v2, %v1355_v32 }
 0x11d   : > { %v1021_v56 = vpop.f32.mrf.mxu2 }
 0x11e   : > { %v1102_v34 = vadd.f32 %v1021_v56, %v795_v9  ;;  %v796_v3 = vpop.f32.mrf.mxu1 }
 0x11f   : > { %v797_v42 = vadd.f32 %v796_v3, %v4082_v21  ;;  %v1197_v20 = vpop.f32.mrf.mxu3  ;;  %v925_v21 = vrot.slane %v3725_v29, 1 }
 0x120   : > { %v1268_v15 = vadd.f32 %v1187_v1, %v1102_v34  ;;  %v1481_v8 = vpop.f32.mrf.mxu0  ;;  %v1358_v1 = vsel %vm1303_vm3, %v1353_v61, %v1357_v13 }
 0x121   : > { %v4215_v61 = vsel %vm893_vm2, %v923_v31, %v925_v21 }
 0x122   : > { %v4201_v7 = vadd.f32 %v1479_v25, %v1268_v15  ;;  %v1359_v15 = vrot.slane %v3743_v37, 1 }
 0x125   : > { %v1023_v23 = vpop.f32.mrf.mxu2 }
 0x126   : > { %v1103_v49 = vadd.f32 %v1023_v23, %v797_v42  ;;  %v799_v50 = vpop.f32.mrf.mxu1 }
 0x127   : > { %v800_v25 = vadd.f32 %v799_v50, %v4092_v5  ;;  %v1199_v56 = vpop.f32.mrf.mxu3 }
 0x128   : > { %v1269_v45 = vadd.f32 %v1189_v6, %v1103_v49  ;;  %v1484_v22 = vpop.f32.mrf.mxu0 }
 0x129   : > { %3288 = vmatmul.msk.bf16.gmra.mxu1 %vm568_vm1, %v3737_v35 }
 0x12a   : > { %3318 = vmatmul.msk.bf16.gmra.mxu2 %vm568_vm1, %v4155_v10  ;;  %v4209_v26 = vadd.f32 %v1481_v8, %v1269_v45  ;;  %v1360_v10 = vrot.slane %v3740_v36, 2 }
 0x12b   : > { %3378 = vmatmul.msk.bf16.gmra.mxu0 %vm568_vm1, %v1358_v1 }
 0x12c   : > { %3350 = vmatmul.msk.bf16.gmra.mxu3 %vm568_vm1, %v4215_v61  ;;  %v1361_v32 = vor.u32 %v1360_v10, %v1359_v15 }
 0x12d   : > { %v1026_v9 = vpop.f32.mrf.mxu2 }
 0x12e   : > { %v1104_v6 = vadd.f32 %v1026_v9, %v800_v25  ;;  %v801_v34 = vpop.f32.mrf.mxu1 }
 0x12f   : > { %v802_v5 = vadd.f32 %v801_v34, %v4113_v40  ;;  %v1202_v42 = vpop.f32.mrf.mxu3  ;;  %v4233_v40 = vrot.slane %v3788_v57, 1  ;;  %v1364_v34 = vrot.slane %v3746_v38, 2 }
 0x130   : > { %v1270_v3 = vadd.f32 %v1192_v18, %v1104_v6  ;;  %v1486_v35 = vpop.f32.mrf.mxu0  ;;  %v1362_v18 = vsel %vm1303_vm3, %v1357_v13, %v1361_v32 }
 0x131   : > { %v4238_v13 = vsel %vm893_vm2, %v925_v21, %v4233_v40 }
 0x132   : > { %v4221_v8 = vadd.f32 %v1484_v22, %v1270_v3 }
 0x135   : > { %v1028_v2 = vpop.f32.mrf.mxu2 }
 0x136   : > { %v1105_v23 = vadd.f32 %v1028_v2, %v802_v5  ;;  %v804_v49 = vpop.f32.mrf.mxu1 }
 0x137   : > { %v805_v22 = vadd.f32 %v804_v49, %v3987_v24 }
 0x138   : > { %v1271_v31 = vadd.f32 %v1194_v12, %v1105_v23  ;;  %v1489_v50 = vpop.f32.mrf.mxu0  ;;  %v1204_v12 = vpop.f32.mrf.mxu3 }
 0x139   : > { %3289 = vmatmul.msk.bf16.gmra.mxu1 %vm568_vm1, %v3814_v4 }
 0x13a   : > { %3319 = vmatmul.msk.bf16.gmra.mxu2 %vm568_vm1, %v4175_v46  ;;  %v4229_v45 = vadd.f32 %v1486_v35, %v1271_v31  ;;  %v1363_v46 = vrot.slane %v3799_v63, 1 }
 0x13b   : > { %3379 = vmatmul.msk.bf16.gmra.mxu0 %vm568_vm1, %v1362_v18 }
 0x13c   : > { %3351 = vmatmul.msk.bf16.gmra.mxu3 %vm568_vm1, %v4238_v13  ;;  %v1365_v35 = vor.u32 %v1364_v34, %v1363_v46  ;;  %v3551_v46 = vld [vmem:[%s3668_s14 + $0x98] sm:$0xff]  }
 0x13d   : > { %v1031_v1 = vpop.f32.mrf.mxu2 }
 0x13e   : > { %v1106_v25 = vadd.f32 %v1031_v1, %v805_v22  ;;  %v806_v9 = vpop.f32.mrf.mxu1 }
 0x13f   : > { %v807_v24 = vadd.f32 %v806_v9, %v3999_v59  ;;  %v5133_v59 = vld [vmem:[#allocation13_spill] sm:$0xff]  ;;  %v5134_v9 = vld [vmem:[#allocation19_spill] sm:$0xff] }
 0x140   : > { %v1272_v4 = vadd.f32 %v1197_v20, %v1106_v25  ;;  %v1491_v6 = vpop.f32.mrf.mxu0  ;;  %v1207_v10 = vpop.f32.mrf.mxu3  ;;  %v1366_v20 = vsel %vm1303_vm3, %v1361_v32, %v1365_v35  ;;  %v1141_v31 = vrot.slane %v5133_v59, 1 }
 0x142   : > { %v4244_v3 = vadd.f32 %v1489_v50, %v1272_v4  ;;  %v1142_v32 = vsel %vm893_vm2, %v4233_v40, %v1141_v31  ;;  %v1367_v4 = vrot.slane %v5134_v9, 1 }
 0x145   : > { %v1033_v15 = vpop.f32.mrf.mxu2 }
 0x146   : > { %v1107_v5 = vadd.f32 %v1033_v15, %v807_v24  ;;  %v809_v2 = vpop.f32.mrf.mxu1  ;;  %v3548_v24 = vunpack.c.l.bf16 %v3551_v46 }
 0x147   : > { %v810_v50 = vadd.f32 %v809_v2, %v4011_v43 }
 0x148   : > { %v1273_v21 = vadd.f32 %v1199_v56, %v1107_v5  ;;  %v1494_v23 = vpop.f32.mrf.mxu0  ;;  %v1209_v56 = vpop.f32.mrf.mxu3 }
 0x149   : > { %3290 = vmatmul.msk.bf16.gmra.mxu1 %vm568_vm1, %v3890_v55 }
 0x14a   : > { %3320 = vmatmul.msk.bf16.gmra.mxu2 %vm568_vm1, %v4195_v62  ;;  %v4252_v49 = vadd.f32 %v1491_v6, %v1273_v21  ;;  %v5135_v62 = vld [vmem:[#allocation9_spill] sm:$0xff] }
 0x14b   : > { %3380 = vmatmul.msk.bf16.gmra.mxu0 %vm568_vm1, %v1366_v20  ;;  %v1368_v6 = vrot.slane %v5135_v62, 2 }
 0x14c   : > { %3352 = vmatmul.msk.bf16.gmra.mxu3 %vm568_vm1, %v1142_v32  ;;  %v5089_v32 = vshrl.u32 %v5133_v59, 16 }
 0x14d   : > { %v1036_v18 = vpop.f32.mrf.mxu2  ;;  %v1369_v15 = vor.u32 %v1368_v6, %v1367_v4 }
 0x14e   : > { %v1108_v22 = vadd.f32 %v1036_v18, %v810_v50  ;;  %v811_v1 = vpop.f32.mrf.mxu1  ;;  %v4266_v50 = vpack.c.bf16 %v3548_v24, %v3548_v24 }
 0x14f   : > { %v812_v43 = vadd.f32 %v811_v1, %v4025_v30 }
 0x150   : > { %v1274_v25 = vadd.f32 %v1202_v42, %v1108_v22  ;;  %v1496_v55 = vpop.f32.mrf.mxu0  ;;  %v1212_v2 = vpop.f32.mrf.mxu3  ;;  %v1370_v22 = vsel %vm1303_vm3, %v1365_v35, %v1369_v15  ;;  %v1143_v30 = vrot.slane %v4266_v50, 1 }
 0x152   : > { %v4263_v34 = vadd.f32 %v1494_v23, %v1274_v25 }
 0x155   : > { %v1038_v5 = vpop.f32.mrf.mxu2 }
 0x156   : > { %v1109_v21 = vadd.f32 %v1038_v5, %v812_v43  ;;  %v814_v20 = vpop.f32.mrf.mxu1 }
 0x157   : > { %v815_v1 = vadd.f32 %v814_v20, %v4037_v0 }
 0x158   : > { %v1275_v42 = vadd.f32 %v1204_v12, %v1109_v21  ;;  %v1499_v18 = vpop.f32.mrf.mxu0  ;;  %v5088_v12 = vshll.u32 %v5133_v59, 16  ;;  %v1214_v35 = vpop.f32.mrf.mxu3 }
 0x159   : > { %3291 = vmatmul.msk.bf16.gmra.mxu1 %vm568_vm1, %v3722_v28  ;;  %v1144_v28 = vsel %vm893_vm2, %v1141_v31, %v1143_v30  ;;  %v2007_v31 = vrot.slane %v3779_v51, 3  ;;  %v2009_v30 = vrot.slane %v3907_v44, 2 }
 0x15a   : > { %3321 = vmatmul.msk.bf16.gmra.mxu2 %vm568_vm1, %v4215_v61  ;;  %v4273_v23 = vadd.f32 %v1496_v55, %v1275_v42  ;;  %v1374_v55 = vrot.slane %v5089_v32, 1  ;;  %v1377_v24 = vrot.slane %v5088_v12, 2 }
 0x15b   : > { %3381 = vmatmul.msk.bf16.gmra.mxu0 %vm568_vm1, %v1370_v22 }
 0x15c   : > { %3353 = vmatmul.msk.bf16.gmra.mxu3 %vm568_vm1, %v1144_v28  ;;  %v1378_v5 = vor.u32 %v1377_v24, %v1374_v55  ;;  %v1381_v28 = vshrl.u32 %v4266_v50, 16 }
 0x15d   : > { %v1041_v25 = vpop.f32.mrf.mxu2 }
 0x15e   : > { %v1110_v4 = vadd.f32 %v1041_v25, %v815_v1  ;;  %v816_v6 = vpop.f32.mrf.mxu1  ;;  %v5136_v1 = vld [vmem:[#allocation16_spill] sm:$0xff] }
 0x15f   : > { %v817_v43 = vadd.f32 %v816_v6, %v4051_v60  ;;  %v2010_v25 = vrot.slane %v5136_v1, 3  ;;  %v5137_v6 = vld [vmem:[#allocation33_spill] sm:$0xff] }
 0x160   : > { %v1276_v46 = vadd.f32 %v1207_v10, %v1110_v4  ;;  %v1501_v61 = vpop.f32.mrf.mxu0  ;;  %v1217_v20 = vpop.f32.mrf.mxu3  ;;  %v2006_v10 = vrot.slane %v3857_v52, 2 }
 0x161   : > { %v2011_v51 = vor.u32 %v2010_v25, %v2009_v30 }
 0x162   : > { %v4286_v0 = vadd.f32 %v1499_v18, %v1276_v46  ;;  %v1379_v18 = vsel %vm1303_vm3, %v1369_v15, %v1378_v5  ;;  %v2008_v52 = vor.u32 %v2007_v31, %v2006_v10  ;;  %v5139_v31 = vld [vmem:[#allocation36_spill] sm:$0xff] }
 0x164   : > { %v2012_v24 = vsel %vm2005_vm4, %v2008_v52, %v2011_v51  ;;  %v5140_v52 = vld [vmem:[#allocation20_spill] sm:$0xff] }
 0x165   : > { %v1043_v21 = vpop.f32.mrf.mxu2 }
 0x166   : > { %v1111_v42 = vadd.f32 %v1043_v21, %v817_v43  ;;  %v819_v22 = vpop.f32.mrf.mxu1  ;;  %v1383_v43 = vrot.slane %v1381_v28, 1  ;;  %v5141_v28 = vld [vmem:[#allocation17_spill] sm:$0xff] }
 0x167   : > { %v820_v44 = vadd.f32 %v819_v22, %v5137_v6  ;;  %v5138_v22 = vld [vmem:[#allocation18_spill] sm:$0xff] }
 0x168   : > { %v1277_v4 = vadd.f32 %v1209_v56, %v1111_v42  ;;  %v1504_v12 = vpop.f32.mrf.mxu0  ;;  %v1384_v56 = vshll.u32 %v4266_v50, 16  ;;  %v1219_v46 = vpop.f32.mrf.mxu3  ;;  %v929_v10 = vrot.slane %v5138_v22, 1 }
 0x169   : > { %3292 = vmatmul.msk.bf16.gmra.mxu1 %vm568_vm1, %v3725_v29 }
 0x16a   : > { %3322 = vmatmul.msk.bf16.gmra.mxu2 %vm568_vm1, %v4238_v13  ;;  %v4298_v60 = vadd.f32 %v1501_v61, %v1277_v4  ;;  %v1386_v21 = vrot.slane %v1384_v56, 2  ;;  %v2014_v56 = vrot.slane %v5141_v28, 3 }
 0x16b   : > { %3382 = vmatmul.msk.bf16.gmra.mxu0 %vm568_vm1, %v1379_v18 }
 0x16c   : > { %3456 = vmatmul.msk.bf16.vlgmr.msra.gmra.mxu3 %vm568_vm1, %v2012_v24  ;;  %v1387_v1 = vor.u32 %v1386_v21, %v1383_v43 }
 0x16d   : > { %v1046_v15 = vpop.f32.mrf.mxu2 }
 0x16e   : > { %v1112_v55 = vadd.f32 %v1046_v15, %v820_v44  ;;  %v821_v29 = vpop.f32.mrf.mxu1  ;;  %v2013_v44 = vrot.slane %v5140_v52, 2 }
 0x16f   : > { %v822_v30 = vadd.f32 %v821_v29, %v5139_v31  ;;  %v3598_v31 = vmov 0  }
 0x170   : > { %v1278_v13 = vadd.f32 %v1212_v2, %v1112_v55  ;;  %v1506_v61 = vpop.f32.mrf.mxu0  ;;  %v4310_v4 = vpop.f32.mrf.mxu3  ;;  %v930_v2 = vsel %vm893_vm2, %v4233_v40, %v929_v10  ;;  %v1388_v55 = vsel %vm1303_vm3, %v1378_v5, %v1387_v1  ;;  %v2015_v24 = vor.u32 %v2014_v56, %v2013_v44  ;;  %3569 = vset.pattern.permute.xlu0 %v3598_v31  ;;  %v3572_v1 = vld [vmem:[%s3668_s14 + $0x8] sm:$0xff] }
 0x171   : > { %3570 = vset.pattern.permute.xlu1 %v3598_v31  ;;  %3571 = vset.pattern.permute.xlu2 %v3598_v31 }
 0x172   : > { %v4306_v42 = vadd.f32 %v1504_v12, %v1278_v13  ;;  %v5142_v13 = vld [vmem:[#allocation38_spill] sm:$0xff]  ;;  %v2016_v5 = vsel %vm2005_vm4, %v2011_v51, %v2015_v24  ;;  %v5143_v51 = vld [vmem:[#allocation12_spill] sm:$0xff] }
 0x173   : > { %v2299_v28 = vrot.slane %v5143_v51, 3 }
 0x175   : > { %v1048_v25 = vpop.f32.mrf.mxu2 }
 0x176   : > { %v1113_v18 = vadd.f32 %v1048_v25, %v822_v30  ;;  %v824_v6 = vpop.f32.mrf.mxu1  ;;  %v1596_v25 = vrot.slane %v3572_v1, 2  ;;  %v2537_v1 = vld [vmem:[%s5057_s4 + $0x8] sm:$0xff] }
 0x177   : > { %v825_v40 = vadd.f32 %v824_v6, %v5142_v13 }
 0x178   : > { %v1279_v15 = vadd.f32 %v1214_v35, %v1113_v18  ;;  %v1509_v12 = vpop.f32.mrf.mxu0  ;;  %v4324_v21 = vpop.f32.mrf.mxu3  ;;  %v3573_v18 = vld [vmem:[%s3668_s14 + $0x10] sm:$0xff] }
 0x179   : > { %3293 = vmatmul.msk.bf16.gmra.mxu1 %vm568_vm1, %v3788_v57  ;;  %v1597_v6 = vrot.slane %v3573_v18, 2  ;;  %v2298_v44 = vrot.slane %v3573_v18, 3 }
 0x17a   : > { %3323 = vmatmul.msk.bf16.gmra.mxu2 %vm568_vm1, %v930_v2  ;;  %v4320_v29 = vadd.f32 %v1506_v61, %v1279_v15  ;;  %v2536_v61 = vld [vmem:[%s5057_s4] sm:$0xff]  ;;  %v5144_v2 = vld [vmem:[#allocation40_spill] sm:$0xff] }
 0x17b   : > { %3383 = vmatmul.msk.bf16.gmra.mxu0 %vm568_vm1, %v1388_v55  ;;  %2574 = vperm.xlu0 %3569, %v2536_v61  }
 0x17c   : > { %3457 = vmatmul.msk.bf16.gmra.mxu3 %vm568_vm1, %v2016_v5  ;;  %v5146_v5 = vld [vmem:[#allocation2_spill] sm:$0xff] }
 0x17d   : > { %v1051_v43 = vpop.f32.mrf.mxu2 }
 0x17e   : > { %v1114_v35 = vadd.f32 %v1051_v43, %v825_v40  ;;  %v826_v22 = vpop.f32.mrf.mxu1  ;;  %v5145_v43 = vld [vmem:[#allocation3_spill] sm:$0xff] }
 0x17f   : > { %v827_v52 = vadd.f32 %v826_v22, %v5144_v2  ;;  %v2300_v22 = vsel %vm2297_vm6, %v2298_v44, %v2299_v28 }
 0x180   : > { %v1280_v10 = vadd.f32 %v1217_v20, %v1114_v35  ;;  %v1511_v57 = vpop.f32.mrf.mxu0  ;;  %v1599_v20 = vrot.slane %v5143_v51, 2  ;;  %v1227_v15 = vpop.f32.mrf.mxu3  ;;  %v2017_v35 = vrot.slane %v5145_v43, 2 }
 0x182   : > { %v4331_v30 = vadd.f32 %v1509_v12, %v1280_v10  ;;  %v1598_v12 = vsel %vm1595_vm5, %v1596_v25, %v1597_v6  ;;  %v1600_v40 = vsel %vm1595_vm5, %v1597_v6, %v1599_v20  ;;  %v2018_v10 = vrot.slane %v5146_v5, 3  ;;  %v5148_v6 = vld [vmem:[#allocation22_spill] sm:$0xff]  ;;  %v5150_v5 = vld [vmem:[#allocation23_spill] sm:$0xff] }
 0x183   : > { %2579 = vperm.xlu0 %3569, %v2537_v1  }
 0x184   : > { %v2019_v18 = vor.u32 %v2018_v10, %v2017_v35  ;;  %v3574_v35 = vld [vmem:[%s3668_s14 + $0x20] sm:$0xff] }
 0x185   : > { %v1053_v56 = vpop.f32.mrf.mxu2 }
 0x186   : > { %v1115_v55 = vadd.f32 %v1053_v56, %v827_v52  ;;  %v829_v13 = vpop.f32.mrf.mxu1  ;;  %v2020_v56 = vsel %vm2005_vm4, %v2015_v24, %v2019_v18 }
 0x188   : > { %v1281_v31 = vadd.f32 %v1219_v46, %v1115_v55  ;;  %v1514_v61 = vpop.f32.mrf.mxu0  ;;  %v830_v46 = vadd.f32 %v829_v13, %v5148_v6  ;;  %v1229_v2 = vpop.f32.mrf.mxu3  ;;  %v1601_v13 = vrot.slane %v3574_v35, 2 }
 0x189   : > { %3396 = vmatmul.msk.bf16.vlgmr.msra.gmra.mxu1 %vm568_vm1, %v1598_v12  ;;  %v2538_v12 = vld [vmem:[%s5057_s4 + $0x10] sm:$0xff] }
 0x18a   : > { %3426 = vmatmul.msk.bf16.vlgmr.msra.gmra.mxu2 %vm568_vm1, %v1600_v40  ;;  %v4348_v25 = vadd.f32 %v1511_v57, %v1281_v31  ;;  %2584 = vperm.xlu1 %3570, %v2538_v12   ;;  %v2301_v31 = vrot.slane %v3574_v35, 3  ;;  %v5154_v35 = vld [vmem:[#allocation25_spill] sm:$0xff] }
 0x18b   : > { %3486 = vmatmul.msk.bf16.vlgmr.msra.gmra.mxu0 %vm568_vm1, %v2300_v22 }
 0x18c   : > { %5147 = vst [vmem:[#allocation13_spill] sm:$0xff] %v4348_v25  ;;  %3458 = vmatmul.msk.bf16.gmra.mxu3 %vm568_vm1, %v2020_v56 }
 0x18d   : > { %v1056_v51 = vpop.f32.mrf.mxu2 }
 0x18e   : > { %v1116_v52 = vadd.f32 %v1056_v51, %v830_v46  ;;  %v831_v44 = vpop.f32.mrf.mxu1  ;;  %v5151_v46 = vld [vmem:[#allocation7_spill] sm:$0xff] }
 0x18f   : > { %v832_v10 = vadd.f32 %v831_v44, %v5150_v5  ;;  %v2021_v51 = vrot.slane %v5151_v46, 2  ;;  %v2539_v44 = vld [vmem:[%s5057_s4 + $0x18] sm:$0xff] }
 0x190   : > { %v1282_v55 = vadd.f32 %v4310_v4, %v1116_v52  ;;  %v1516_v43 = vpop.f32.mrf.mxu0  ;;  %v1232_v1 = vpop.f32.mrf.mxu3  ;;  %v1602_v4 = vsel %vm1595_vm5, %v1599_v20, %v1601_v13  ;;  %v5152_v52 = vld [vmem:[#allocation4_spill] sm:$0xff] }
 0x191   : > { %v2022_v32 = vrot.slane %v5152_v52, 3 }
 0x192   : > { %v4358_v57 = vadd.f32 %v1514_v61, %v1282_v55  ;;  %v2302_v61 = vsel %vm2297_vm6, %v2299_v28, %v2301_v31  ;;  %2589 = vperm.xlu1 %3570, %v2539_v44   ;;  %v3575_v44 = vld [vmem:[%s3668_s14 + $0x28] sm:$0xff] }
 0x193   : > { %v2023_v55 = vor.u32 %v2022_v32, %v2021_v51 }
 0x194   : > { %5149 = vst [vmem:[#allocation19_spill] sm:$0xff] %v4358_v57 }
 0x195   : > { %v1058_v22 = vpop.f32.mrf.mxu2 }
 0x196   : > { %v1117_v24 = vadd.f32 %v1058_v22, %v832_v10  ;;  %v834_v6 = vpop.f32.mrf.mxu1 }
 0x198   : > { %v1283_v12 = vadd.f32 %v4324_v21, %v1117_v24  ;;  %v1519_v56 = vpop.f32.mrf.mxu0  ;;  %v835_v21 = vadd.f32 %v834_v6, %v5154_v35  ;;  %v1234_v10 = vpop.f32.mrf.mxu3  ;;  %v2024_v24 = vsel %vm2005_vm4, %v2019_v18, %v2023_v55  ;;  %v5158_v18 = vld [vmem:[#allocation8_spill] sm:$0xff] }
 0x199   : > { %3397 = vmatmul.msk.bf16.gmra.mxu1 %vm568_vm1, %v1600_v40 }
 0x19a   : > { %3427 = vmatmul.msk.bf16.gmra.mxu2 %vm568_vm1, %v1602_v4  ;;  %v4372_v20 = vadd.f32 %v1516_v43, %v1283_v12  ;;  %v1603_v43 = vrot.slane %v3575_v44, 2  ;;  %v5156_v12 = vld [vmem:[#allocation27_spill] sm:$0xff] }
 0x19b   : > { %3487 = vmatmul.msk.bf16.gmra.mxu0 %vm568_vm1, %v2302_v61  ;;  %v2303_v61 = vrot.slane %v3575_v44, 3 }
 0x19c   : > { %5153 = vst [vmem:[#allocation9_spill] sm:$0xff] %v4372_v20  ;;  %3459 = vmatmul.msk.bf16.gmra.mxu3 %vm568_vm1, %v2024_v24  ;;  %v5160_v24 = vld [vmem:[#allocation29_spill] sm:$0xff] }
 0x19d   : > { %v1061_v5 = vpop.f32.mrf.mxu2 }
 0x19e   : > { %v1118_v28 = vadd.f32 %v1061_v5, %v835_v21  ;;  %v836_v22 = vpop.f32.mrf.mxu1  ;;  %v1604_v21 = vsel %vm1595_vm5, %v1601_v13, %v1603_v43  ;;  %v5157_v5 = vld [vmem:[#allocation14_spill] sm:$0xff] }
 0x19f   : > { %v837_v20 = vadd.f32 %v836_v22, %v5156_v12  ;;  %v2025_v57 = vrot.slane %v5157_v5, 2 }
 0x1a0   : > { %v1284_v46 = vadd.f32 %v1227_v15, %v1118_v28  ;;  %v1521_v52 = vpop.f32.mrf.mxu0  ;;  %v1237_v51 = vpop.f32.mrf.mxu3  ;;  %v2026_v15 = vrot.slane %v5158_v18, 3 }
 0x1a2   : > { %v4378_v40 = vadd.f32 %v1519_v56, %v1284_v46  ;;  %v2304_v56 = vsel %vm2297_vm6, %v2301_v31, %v2303_v61 }
 0x1a4   : > { %5155 = vst [vmem:[#allocation16_spill] sm:$0xff] %v4378_v40 }
 0x1a5   : > { %v1063_v32 = vpop.f32.mrf.mxu2 }
 0x1a6   : > { %v1119_v6 = vadd.f32 %v1063_v32, %v837_v20  ;;  %v839_v35 = vpop.f32.mrf.mxu1  ;;  %v2027_v20 = vor.u32 %v2026_v15, %v2025_v57  ;;  %v3576_v57 = vld [vmem:[%s3668_s14 + $0x30] sm:$0xff] }
 0x1a7   : > { %v840_v13 = vadd.f32 %v839_v35, %v5160_v24  ;;  %v1605_v5 = vrot.slane %v3576_v57, 2  ;;  %v5162_v35 = vld [vmem:[#allocation31_spill] sm:$0xff]  ;;  %v2305_v15 = vrot.slane %v3576_v57, 3 }
 0x1a8   : > { %v1285_v28 = vadd.f32 %v1229_v2, %v1119_v6  ;;  %v1524_v25 = vpop.f32.mrf.mxu0  ;;  %v1239_v44 = vpop.f32.mrf.mxu3  ;;  %v2028_v2 = vsel %vm2005_vm4, %v2023_v55, %v2027_v20 }
 0x1a9   : > { %3398 = vmatmul.msk.bf16.gmra.mxu1 %vm568_vm1, %v1602_v4  ;;  %v2542_v4 = vld [vmem:[%s5057_s4 + $0x30] sm:$0xff] }
 0x1aa   : > { %3428 = vmatmul.msk.bf16.gmra.mxu2 %vm568_vm1, %v1604_v21  ;;  %v4388_v22 = vadd.f32 %v1521_v52, %v1285_v28  ;;  %2604 = vperm.xlu0 %3569, %v2542_v4  }
 0x1ab   : > { %3488 = vmatmul.msk.bf16.gmra.mxu0 %vm568_vm1, %v2304_v56 }
 0x1ac   : > { %5159 = vst [vmem:[#allocation33_spill] sm:$0xff] %v4388_v22  ;;  %3460 = vmatmul.msk.bf16.gmra.mxu3 %vm568_vm1, %v2028_v2  ;;  %v2540_v2 = vld [vmem:[%s5057_s4 + $0x20] sm:$0xff] }
 0x1ad   : > { %v1066_v46 = vpop.f32.mrf.mxu2  ;;  %2594 = vperm.xlu2 %3571, %v2540_v2  }
 0x1ae   : > { %v1120_v12 = vadd.f32 %v1066_v46, %v840_v13  ;;  %v841_v32 = vpop.f32.mrf.mxu1  ;;  %v5163_v13 = vld [vmem:[#allocation21_spill] sm:$0xff] }
 0x1af   : > { %v842_v18 = vadd.f32 %v841_v32, %v5162_v35  ;;  %v2029_v46 = vrot.slane %v5163_v13, 2  ;;  %v2543_v32 = vld [vmem:[%s5057_s4 + $0x38] sm:$0xff] }
 0x1b0   : > { %v1286_v6 = vadd.f32 %v1232_v1, %v1120_v12  ;;  %v1526_v31 = vpop.f32.mrf.mxu0  ;;  %v1242_v56 = vpop.f32.mrf.mxu3  ;;  %v1606_v1 = vsel %vm1595_vm5, %v1603_v43, %v1605_v5  ;;  %v5164_v12 = vld [vmem:[#allocation15_spill] sm:$0xff]  ;;  %2609 = vperm.xlu1 %3570, %v2543_v32  }
 0x1b1   : > { %v2030_v22 = vrot.slane %v5164_v12, 3 }
 0x1b2   : > { %v4397_v52 = vadd.f32 %v1524_v25, %v1286_v6  ;;  %v2306_v25 = vsel %vm2297_vm6, %v2303_v61, %v2305_v15  ;;  %v5166_v61 = vld [vmem:[#allocation34_spill] sm:$0xff] }
 0x1b4   : > { %5161 = vst [vmem:[#allocation18_spill] sm:$0xff] %v4397_v52 }
 0x1b5   : > { %v1068_v28 = vpop.f32.mrf.mxu2 }
 0x1b6   : > { %v1121_v24 = vadd.f32 %v1068_v28, %v842_v18  ;;  %v844_v55 = vpop.f32.mrf.mxu1 }
 0x1b7   : > { %v845_v6 = vadd.f32 %v844_v55, %v5166_v61  ;;  %v5168_v55 = vld [vmem:[#allocation37_spill] sm:$0xff] }
 0x1b8   : > { %v1287_v4 = vadd.f32 %v1234_v10, %v1121_v24  ;;  %v1529_v40 = vpop.f32.mrf.mxu0  ;;  %v2031_v10 = vor.u32 %v2030_v22, %v2029_v46  ;;  %v1244_v35 = vpop.f32.mrf.mxu3  ;;  %v3577_v22 = vld [vmem:[%s3668_s14 + $0x38] sm:$0xff] }
 0x1b9   : > { %3399 = vmatmul.msk.bf16.gmra.mxu1 %vm568_vm1, %v1604_v21  ;;  %v2541_v21 = vld [vmem:[%s5057_s4 + $0x28] sm:$0xff]  ;;  %v1607_v46 = vrot.slane %v3577_v22, 2 }
 0x1ba   : > { %3429 = vmatmul.msk.bf16.gmra.mxu2 %vm568_vm1, %v1606_v1  ;;  %v4413_v43 = vadd.f32 %v1526_v31, %v1287_v4  ;;  %v2032_v24 = vsel %vm2005_vm4, %v2027_v20, %v2031_v10  ;;  %2599 = vperm.xlu2 %3571, %v2541_v21  }
 0x1bb   : > { %3489 = vmatmul.msk.bf16.gmra.mxu0 %vm568_vm1, %v2306_v25  ;;  %v2307_v25 = vrot.slane %v3577_v22, 3 }
 0x1bc   : > { %5165 = vst [vmem:[#allocation36_spill] sm:$0xff] %v4413_v43  ;;  %3461 = vmatmul.msk.bf16.gmra.mxu3 %vm568_vm1, %v2032_v24  ;;  %v2545_v24 = vld [vmem:[%s5057_s4 + $0x48] sm:$0xff] }
 0x1bd   : > { %v1071_v57 = vpop.f32.mrf.mxu2  ;;  %2619 = vperm.xlu0 %3569, %v2545_v24  }
 0x1be   : > { %v1122_v18 = vadd.f32 %v1071_v57, %v845_v6  ;;  %v846_v28 = vpop.f32.mrf.mxu1  ;;  %v5169_v6 = vld [vmem:[#allocation11_spill] sm:$0xff] }
 0x1bf   : > { %v847_v4 = vadd.f32 %v846_v28, %v5168_v55  ;;  %v2033_v57 = vrot.slane %v5169_v6, 2 }
 0x1c0   : > { %v1288_v13 = vadd.f32 %v1237_v51, %v1122_v18  ;;  %v1531_v12 = vpop.f32.mrf.mxu0  ;;  %v1247_v32 = vpop.f32.mrf.mxu3  ;;  %v1608_v51 = vsel %vm1595_vm5, %v1605_v5, %v1607_v46  ;;  %v5170_v18 = vld [vmem:[#allocation10_spill] sm:$0xff] }
 0x1c1   : > { %v2034_v43 = vrot.slane %v5170_v18, 3 }
 0x1c2   : > { %v4422_v31 = vadd.f32 %v1529_v40, %v1288_v13  ;;  %v2308_v40 = vsel %vm2297_vm6, %v2305_v15, %v2307_v25  ;;  %v5172_v13 = vld [vmem:[#allocation39_spill] sm:$0xff] }
 0x1c3   : > { %v2035_v5 = vor.u32 %v2034_v43, %v2033_v57  ;;  %v3578_v43 = vld [vmem:[%s3668_s14 + $0x40] sm:$0xff] }
 0x1c4   : > { %5167 = vst [vmem:[#allocation20_spill] sm:$0xff] %v4422_v31  ;;  %v1609_v57 = vrot.slane %v3578_v43, 2 }
 0x1c5   : > { %v1073_v2 = vpop.f32.mrf.mxu2 }
 0x1c6   : > { %v1123_v61 = vadd.f32 %v1073_v2, %v847_v4  ;;  %v849_v20 = vpop.f32.mrf.mxu1  ;;  %v2036_v2 = vsel %vm2005_vm4, %v2031_v10, %v2035_v5 }
 0x1c8   : > { %v1289_v21 = vadd.f32 %v1239_v44, %v1123_v61  ;;  %v1534_v52 = vpop.f32.mrf.mxu0  ;;  %v850_v44 = vadd.f32 %v849_v20, %v5172_v13  ;;  %v1249_v55 = vpop.f32.mrf.mxu3  ;;  %v5173_v20 = vld [vmem:[#allocation41_spill] sm:$0xff] }
 0x1c9   : > { %3400 = vmatmul.msk.bf16.gmra.mxu1 %vm568_vm1, %v1606_v1  ;;  %v2546_v1 = vld [vmem:[%s5057_s4 + $0x50] sm:$0xff] }
 0x1ca   : > { %3430 = vmatmul.msk.bf16.gmra.mxu2 %vm568_vm1, %v1608_v51  ;;  %v4435_v28 = vadd.f32 %v1531_v12, %v1289_v21  ;;  %2624 = vperm.xlu1 %3570, %v2546_v1   ;;  %v2309_v21 = vrot.slane %v3578_v43, 3 }
 0x1cb   : > { %3490 = vmatmul.msk.bf16.gmra.mxu0 %vm568_vm1, %v2308_v40 }
 0x1cc   : > { %5171 = vst [vmem:[#allocation17_spill] sm:$0xff] %v4435_v28  ;;  %3462 = vmatmul.msk.bf16.gmra.mxu3 %vm568_vm1, %v2036_v2  ;;  %v2544_v2 = vld [vmem:[%s5057_s4 + $0x40] sm:$0xff] }
 0x1cd   : > { %v1076_v22 = vpop.f32.mrf.mxu2  ;;  %2614 = vperm.xlu2 %3571, %v2544_v2  }
 0x1ce   : > { %v1124_v15 = vadd.f32 %v1076_v22, %v850_v44  ;;  %v851_v4 = vpop.f32.mrf.mxu1  ;;  %v5174_v44 = vld [vmem:[#allocation6_spill] sm:$0xff] }
 0x1cf   : > { %v852_v18 = vadd.f32 %v851_v4, %v5173_v20  ;;  %v2037_v22 = vrot.slane %v5174_v44, 2 }
 0x1d0   : > { %v1290_v61 = vadd.f32 %v1242_v56, %v1124_v15  ;;  %v1536_v6 = vpop.f32.mrf.mxu0  ;;  %v1252_v24 = vpop.f32.mrf.mxu3  ;;  %v1610_v56 = vsel %vm1595_vm5, %v1607_v46, %v1609_v57  ;;  %v5175_v15 = vld [vmem:[#allocation5_spill] sm:$0xff] }
 0x1d1   : > { %v2038_v28 = vrot.slane %v5175_v15, 3 }
 0x1d2   : > { %v4444_v12 = vadd.f32 %v1534_v52, %v1290_v61  ;;  %v2310_v52 = vsel %vm2297_vm6, %v2307_v25, %v2309_v21  ;;  %v5176_v61 = vld [vmem:[#allocation24_spill] sm:$0xff] }
 0x1d3   : > { %v2039_v46 = vor.u32 %v2038_v28, %v2037_v22  ;;  %v3579_v28 = vld [vmem:[%s3668_s14 + $0x48] sm:$0xff] }
 0x1d4   : > { %v1611_v22 = vrot.slane %v3579_v28, 2 }
 0x1d5   : > { %v1078_v40 = vpop.f32.mrf.mxu2 }
 0x1d6   : > { %v1125_v13 = vadd.f32 %v1078_v40, %v852_v18  ;;  %v854_v10 = vpop.f32.mrf.mxu1  ;;  %v2040_v40 = vsel %vm2005_vm4, %v2035_v5, %v2039_v46 }
 0x1d8   : > { %v1291_v1 = vadd.f32 %v1244_v35, %v1125_v13  ;;  %v1539_v31 = vpop.f32.mrf.mxu0  ;;  %v855_v35 = vadd.f32 %v854_v10, %v5176_v61  ;;  %v1254_v20 = vpop.f32.mrf.mxu3  ;;  %v5177_v10 = vld [vmem:[#allocation26_spill] sm:$0xff] }
 0x1d9   : > { %3401 = vmatmul.msk.bf16.gmra.mxu1 %vm568_vm1, %v1608_v51  ;;  %v2548_v51 = vld [vmem:[%s5057_s4 + $0x60] sm:$0xff] }
 0x1da   : > { %3431 = vmatmul.msk.bf16.gmra.mxu2 %vm568_vm1, %v1610_v56  ;;  %v4457_v4 = vadd.f32 %v1536_v6, %v1291_v1  ;;  %2634 = vperm.xlu0 %3569, %v2548_v51   ;;  %v2311_v1 = vrot.slane %v3579_v28, 3 }
 0x1db   : > { %3491 = vmatmul.msk.bf16.gmra.mxu0 %vm568_vm1, %v2310_v52 }
 0x1dc   : > { %3463 = vmatmul.msk.bf16.gmra.mxu3 %vm568_vm1, %v2040_v40  ;;  %v2549_v40 = vld [vmem:[%s5057_s4 + $0x68] sm:$0xff] }
 0x1dd   : > { %v1081_v43 = vpop.f32.mrf.mxu2  ;;  %2639 = vperm.xlu1 %3570, %v2549_v40  }
 0x1de   : > { %v1126_v25 = vadd.f32 %v1081_v43, %v855_v35  ;;  %v856_v18 = vpop.f32.mrf.mxu1  ;;  %v2041_v35 = vrot.slane %v3769_v47, 2  ;;  %v2042_v43 = vrot.slane %v3704_v16, 3  ;;  %v5178_v16 = vld [vmem:[#allocation28_spill] sm:$0xff] }
 0x1df   : > { %v857_v15 = vadd.f32 %v856_v18, %v5177_v10 }
 0x1e0   : > { %v1292_v13 = vadd.f32 %v1247_v32, %v1126_v25  ;;  %v1541_v44 = vpop.f32.mrf.mxu0  ;;  %v1257_v2 = vpop.f32.mrf.mxu3  ;;  %v1612_v32 = vsel %vm1595_vm5, %v1609_v57, %v1611_v22  ;;  %v2043_v47 = vor.u32 %v2042_v43, %v2041_v35 }
 0x1e2   : > { %v4466_v6 = vadd.f32 %v1539_v31, %v1292_v13  ;;  %v2312_v31 = vsel %vm2297_vm6, %v2309_v21, %v2311_v1  ;;  %v2044_v10 = vsel %vm2005_vm4, %v2039_v46, %v2043_v47 }
 0x1e5   : > { %v1083_v52 = vpop.f32.mrf.mxu2 }
 0x1e6   : > { %v1127_v61 = vadd.f32 %v1083_v52, %v857_v15  ;;  %v859_v5 = vpop.f32.mrf.mxu1 }
 0x1e8   : > { %v1293_v25 = vadd.f32 %v1249_v55, %v1127_v61  ;;  %v1544_v51 = vpop.f32.mrf.mxu0  ;;  %v860_v55 = vadd.f32 %v859_v5, %v5178_v16  ;;  %v1259_v13 = vpop.f32.mrf.mxu3  ;;  %v3580_v61 = vld [vmem:[%s3668_s14 + $0x50] sm:$0xff]  ;;  %v5179_v5 = vld [vmem:[#allocation30_spill] sm:$0xff] }
 0x1e9   : > { %3402 = vmatmul.msk.bf16.gmra.mxu1 %vm568_vm1, %v1610_v56  ;;  %v2547_v56 = vld [vmem:[%s5057_s4 + $0x58] sm:$0xff]  ;;  %v1613_v35 = vrot.slane %v3580_v61, 2 }
 0x1ea   : > { %3432 = vmatmul.msk.bf16.gmra.mxu2 %vm568_vm1, %v1612_v32  ;;  %v4479_v18 = vadd.f32 %v1541_v44, %v1293_v25  ;;  %2629 = vperm.xlu2 %3571, %v2547_v56   ;;  %v2313_v25 = vrot.slane %v3580_v61, 3 }
 0x1eb   : > { %3492 = vmatmul.msk.bf16.gmra.mxu0 %vm568_vm1, %v2312_v31 }
 0x1ec   : > { %3464 = vmatmul.msk.bf16.gmra.mxu3 %vm568_vm1, %v2044_v10  ;;  %v2551_v10 = vld [vmem:[%s5057_s4 + $0x78] sm:$0xff] }
 0x1ed   : > { %v1086_v57 = vpop.f32.mrf.mxu2  ;;  %2649 = vperm.xlu0 %3569, %v2551_v10  }
 0x1ee   : > { %v1128_v21 = vadd.f32 %v1086_v57, %v860_v55  ;;  %v861_v28 = vpop.f32.mrf.mxu1  ;;  %v2045_v55 = vrot.slane %v3843_v33, 2  ;;  %v2046_v57 = vrot.slane %v3772_v48, 3  ;;  %v5180_v48 = vld [vmem:[#allocation32_spill] sm:$0xff] }
 0x1ef   : > { %v862_v43 = vadd.f32 %v861_v28, %v5179_v5 }
 0x1f0   : > { %v1294_v15 = vadd.f32 %v1252_v24, %v1128_v21  ;;  %v1546_v52 = vpop.f32.mrf.mxu0  ;;  %v2166_v40 = vpop.f32.mrf.mxu3  ;;  %v1614_v24 = vsel %vm1595_vm5, %v1611_v22, %v1613_v35  ;;  %v2047_v33 = vor.u32 %v2046_v57, %v2045_v55  ;;  %v5181_v55 = vld [vmem:[#allocation35_spill] sm:$0xff] }
 0x1f2   : > { %v4488_v44 = vadd.f32 %v1544_v51, %v1294_v15  ;;  %v2314_v51 = vsel %vm2297_vm6, %v2311_v1, %v2313_v25  ;;  %v2048_v5 = vsel %vm2005_vm4, %v2043_v47, %v2047_v33 }
 0x1f5   : > { %v1088_v31 = vpop.f32.mrf.mxu2 }
 0x1f6   : > { %v1129_v16 = vadd.f32 %v1088_v31, %v862_v43  ;;  %v864_v46 = vpop.f32.mrf.mxu1 }
 0x1f8   : > { %v1295_v21 = vadd.f32 %v1254_v20, %v1129_v16  ;;  %v1549_v56 = vpop.f32.mrf.mxu0  ;;  %v865_v20 = vadd.f32 %v864_v46, %v5180_v48  ;;  %v4505_v15 = vpop.f32.mrf.mxu3  ;;  %v3581_v16 = vld [vmem:[%s3668_s14 + $0x58] sm:$0xff] }
 0x1f9   : > { %3403 = vmatmul.msk.bf16.gmra.mxu1 %vm568_vm1, %v1612_v32  ;;  %v2552_v32 = vld [vmem:[%s5057_s4 + $0x80] sm:$0xff]  ;;  %v1615_v46 = vrot.slane %v3581_v16, 2 }
 0x1fa   : > { %3433 = vmatmul.msk.bf16.gmra.mxu2 %vm568_vm1, %v1614_v24  ;;  %v4501_v28 = vadd.f32 %v1546_v52, %v1295_v21  ;;  %2654 = vperm.xlu1 %3570, %v2552_v32   ;;  %v2315_v21 = vrot.slane %v3581_v16, 3  ;;  %v2575_v16 = vpop.permute.xlu0 %2574 }
 0x1fb   : > { %3493 = vmatmul.msk.bf16.gmra.mxu0 %vm568_vm1, %v2314_v51  ;;  %v1616_v48 = vsel %vm1595_vm5, %v1613_v35, %v1615_v46 }
 0x1fc   : > { %3465 = vmatmul.msk.bf16.gmra.mxu3 %vm568_vm1, %v2048_v5  ;;  %v2316_v5 = vsel %vm2297_vm6, %v2313_v25, %v2315_v21 }
 0x1fd   : > { %v1091_v22 = vpop.f32.mrf.mxu2 }
 0x1fe   : > { %v1130_v1 = vadd.f32 %v1091_v22, %v865_v20  ;;  %v866_v61 = vpop.f32.mrf.mxu1  ;;  %v2049_v20 = vrot.slane %v3900_v17, 2  ;;  %v2050_v22 = vrot.slane %v3846_v39, 3 }
 0x1ff   : > { %v867_v57 = vadd.f32 %v866_v61, %v5181_v55  ;;  %v2550_v61 = vld [vmem:[%s5057_s4 + $0x70] sm:$0xff] }
 0x200   : > { %v1296_v43 = vadd.f32 %v1257_v2, %v1130_v1  ;;  %v1551_v31 = vpop.f32.mrf.mxu0  ;;  %v4516_v10 = vpop.f32.mrf.mxu3  ;;  %2644 = vperm.xlu2 %3571, %v2550_v61   ;;  %v2051_v17 = vor.u32 %v2050_v22, %v2049_v20 }
 0x202   : > { %v4512_v52 = vadd.f32 %v1549_v56, %v1296_v43  ;;  %v2052_v55 = vsel %vm2005_vm4, %v2047_v33, %v2051_v17 }
 0x205   : > { %v1093_v51 = vpop.f32.mrf.mxu2 }
 0x206   : > { %v1131_v47 = vadd.f32 %v1093_v51, %v867_v57  ;;  %v1708_v2 = vpop.f32.mrf.mxu1 }
 0x207   : > { %v1798_v39 = vadd.f32 %v1708_v2, %v4141_v14  ;;  %v4545_v14 = vld [vmem:[%s3668_s14 + $0x60] sm:$0xff] }
 0x208   : > { %v1297_v1 = vadd.f32 %v1259_v13, %v1131_v47  ;;  %v2410_v56 = vpop.f32.mrf.mxu0  ;;  %v4531_v35 = vpop.f32.mrf.mxu3  ;;  %v2317_v2 = vrot.slane %v4545_v14, 3 }
 0x209   : > { %3404 = vmatmul.msk.bf16.gmra.mxu1 %vm568_vm1, %v1614_v24 }
 0x20a   : > { %3434 = vmatmul.msk.bf16.gmra.mxu2 %vm568_vm1, %v1616_v48  ;;  %v4527_v43 = vadd.f32 %v1551_v31, %v1297_v1  ;;  %v2554_v31 = vld [vmem:[%s5057_s4 + $0x90] sm:$0xff] }
 0x20b   : > { %3494 = vmatmul.msk.bf16.gmra.mxu0 %vm568_vm1, %v2316_v5  ;;  %2664 = vperm.xlu0 %3569, %v2554_v31  }
 0x20c   : > { %3466 = vmatmul.msk.bf16.gmra.mxu3 %vm568_vm1, %v2052_v55  ;;  %v2318_v55 = vsel %vm2297_vm6, %v2315_v21, %v2317_v2  ;;  %v2557_v21 = vld [vmem:[%s5057_s4 + $0xa8] sm:$0xff] }
 0x20d   : > { %v1874_v13 = vpop.f32.mrf.mxu2 }
 0x20e   : > { %v1964_v25 = vadd.f32 %v1874_v13, %v1798_v39  ;;  %v1710_v32 = vpop.f32.mrf.mxu1  ;;  %v2054_v39 = vrot.slane %v3903_v54, 3 }
 0x20f   : > { %v1799_v47 = vadd.f32 %v1710_v32, %v4149_v19  ;;  %v2053_v19 = vrot.slane %v3935_v27, 2 }
 0x210   : > { %v2256_v24 = vadd.f32 %v2166_v40, %v1964_v25  ;;  %v2412_v57 = vpop.f32.mrf.mxu0  ;;  %v1617_v40 = vrot.slane %v4545_v14, 2  ;;  %v4550_v22 = vpop.f32.mrf.mxu3 }
 0x211   : > { %v4572_v54 = vor.u32 %v2054_v39, %v2053_v19 }
 0x212   : > { %v2500_v51 = vadd.f32 %v2410_v56, %v2256_v24  ;;  %v2555_v56 = vld [vmem:[%s5057_s4 + $0x98] sm:$0xff]  ;;  %v4560_v61 = vsel %vm1595_vm5, %v1615_v46, %v1617_v40  ;;  %v2580_v24 = vpop.permute.xlu0 %2579 }
 0x213   : > { %2669 = vperm.xlu1 %3570, %v2555_v56   ;;  %2679 = vperm.xlu0 %3569, %v2557_v21   ;;  %v2056_v19 = vsel %vm2005_vm4, %v2051_v17, %v4572_v54 }
 0x214   : > { %v2981_v33 = vpack.c.bf16 %v2500_v51, %v2500_v51  ;;  %v2752_v13 = vmul.f32 %v2575_v16, %v2500_v51 }
 0x215   : > { %v1876_v20 = vpop.f32.mrf.mxu2 }
 0x216   : > { %3018 = vst.msk [vmem:[%s4542_s13] sm:$0xf] %vm3017_vm7, %v2981_v33  ;;  %v1965_v1 = vadd.f32 %v1876_v20, %v1799_v47  ;;  %v1713_v5 = vpop.f32.mrf.mxu1  ;;  %v2867_v27 = vmul.f32 %v2752_v13, %v2500_v51  ;;  %v2788_v47 = vsel %vm568_vm1, %v2752_v13, 0.0 }
 0x218   : > { %v2257_v25 = vadd.f32 %v4505_v15, %v1965_v1  ;;  %v2415_v32 = vpop.f32.mrf.mxu0  ;;  %v1800_v15 = vadd.f32 %v1713_v5, %v4161_v11  ;;  %v2558_v11 = vld [vmem:[%s5057_s4 + $0xb0] sm:$0xff]  ;;  %v2585_v5 = vpop.permute.xlu1 %2584  ;;  %v2903_v39 = vsel %vm568_vm1, %v2867_v27, 0.0 }
 0x219   : > { %3405 = vmatmul.msk.bf16.gmra.mxu1 %vm568_vm1, %v1616_v48  ;;  %v4578_v48 = vpop.f32.mrf.mxu3 }
 0x21a   : > { %3435 = vmatmul.msk.bf16.gmra.mxu2 %vm568_vm1, %v4560_v61  ;;  %v2501_v46 = vadd.f32 %v2412_v57, %v2257_v25 }
 0x21b   : > { %3495 = vmatmul.msk.bf16.gmra.mxu0 %vm568_vm1, %v2318_v55  ;;  %2684 = vperm.xlu1 %3570, %v2558_v11  }
 0x21c   : > { %v2753_v16 = vmul.f32 %v2580_v24, %v2501_v46  ;;  %v2982_v31 = vpack.c.bf16 %v2501_v46, %v2501_v46  ;;  %v2553_v24 = vld [vmem:[%s5057_s4 + $0x88] sm:$0xff]  ;;  %3467 = vmatmul.msk.bf16.gmra.mxu3 %vm568_vm1, %v2056_v19  ;;  %v2057_v19 = vrot.slane %v3743_v37, 2 }
 0x21d   : > { %v1879_v33 = vpop.f32.mrf.mxu2  ;;  %2659 = vperm.xlu2 %3571, %v2553_v24  }
 0x21e   : > { %v2789_v57 = vsel %vm568_vm1, %v2753_v16, 0.0  ;;  %v2868_v20 = vmul.f32 %v2753_v16, %v2501_v46  ;;  %3019 = vst.msk [vmem:[%s4542_s13 + $0x4] sm:$0xf] %vm3017_vm7, %v2982_v31  ;;  %v1966_v51 = vadd.f32 %v1879_v33, %v1800_v15  ;;  %v1715_v56 = vpop.f32.mrf.mxu1  ;;  %v4597_v16 = vld [vmem:[%s3668_s14 + $0x68] sm:$0xff]  ;;  %v2560_v33 = vld [vmem:[%s5057_s4 + $0xc0] sm:$0xff] }
 0x21f   : > { %v2790_v1 = vadd.f32 %v2789_v57, %v2788_v47  ;;  %v1619_v17 = vrot.slane %v4597_v16, 2  ;;  %v1801_v31 = vadd.f32 %v1715_v56, %v4169_v41  ;;  %2694 = vperm.xlu0 %3569, %v2560_v33   ;;  %v2561_v41 = vld [vmem:[%s5057_s4 + $0xc8] sm:$0xff] }
 0x220   : > { %v2904_v13 = vsel %vm568_vm1, %v2868_v20, 0.0  ;;  %v2258_v25 = vadd.f32 %v4516_v10, %v1966_v51  ;;  %v2417_v55 = vpop.f32.mrf.mxu0  ;;  %v2319_v10 = vrot.slane %v4597_v16, 3 }
 0x221   : > { %v2905_v46 = vadd.f32 %v2904_v13, %v2903_v39  ;;  %v4605_v57 = vpop.f32.mrf.mxu3  ;;  %v2058_v39 = vrot.slane %v3740_v36, 3 }
 0x222   : > { %v2502_v15 = vadd.f32 %v2415_v32, %v2258_v25 }
 0x223   : > { %2699 = vperm.xlu1 %3570, %v2561_v41   ;;  %v4634_v37 = vor.u32 %v2058_v39, %v2057_v19  ;;  %v2556_v19 = vld [vmem:[%s5057_s4 + $0xa0] sm:$0xff] }
 0x224   : > { %v2983_v27 = vpack.c.bf16 %v2502_v15, %v2502_v15  ;;  %v2754_v21 = vmul.f32 %v2585_v5, %v2502_v15  ;;  %v4618_v5 = vsel %vm1595_vm5, %v1617_v40, %v1619_v17  ;;  %v2590_v40 = vpop.permute.xlu1 %2589 }
 0x225   : > { %v1881_v47 = vpop.f32.mrf.mxu2  ;;  %2674 = vperm.xlu2 %3571, %v2556_v19  }
 0x226   : > { %3020 = vst.msk [vmem:[%s4542_s13 + $0x8] sm:$0xf] %vm3017_vm7, %v2983_v27  ;;  %v2791_v32 = vsel %vm568_vm1, %v2754_v21, 0.0  ;;  %v2869_v20 = vmul.f32 %v2754_v21, %v2502_v15  ;;  %v1967_v51 = vadd.f32 %v1881_v47, %v1801_v31  ;;  %v1718_v56 = vpop.f32.mrf.mxu1 }
 0x227   : > { %v2792_v11 = vadd.f32 %v2791_v32, %v2790_v1  ;;  %v2320_v1 = vsel %vm2297_vm6, %v2317_v2, %v2319_v10  ;;  %v2563_v2 = vld [vmem:[%s5057_s4 + $0xd8] sm:$0xff]  ;;  %v2595_v32 = vpop.permute.xlu2 %2594 }
 0x228   : > { %v2906_v13 = vsel %vm568_vm1, %v2869_v20, 0.0  ;;  %v2259_v25 = vadd.f32 %v4531_v35, %v1967_v51  ;;  %v2420_v24 = vpop.f32.mrf.mxu0  ;;  %v1802_v35 = vadd.f32 %v1718_v56, %v4181_v58  ;;  %2709 = vperm.xlu0 %3569, %v2563_v2   ;;  %v2564_v58 = vld [vmem:[%s5057_s4 + $0xe0] sm:$0xff]  ;;  %v2060_v20 = vsel %vm2005_vm4, %v4572_v54, %v4634_v37 }
 0x229   : > { %v2907_v15 = vadd.f32 %v2906_v13, %v2905_v46  ;;  %3406 = vmatmul.msk.bf16.gmra.mxu1 %vm568_vm1, %v4560_v61  ;;  %v4640_v31 = vpop.f32.mrf.mxu3  ;;  %v4658_v13 = vld [vmem:[%s3668_s14 + $0x70] sm:$0xff] }
 0x22a   : > { %3436 = vmatmul.msk.bf16.gmra.mxu2 %vm568_vm1, %v4618_v5  ;;  %v2503_v36 = vadd.f32 %v2417_v55, %v2259_v25  ;;  %v1621_v54 = vrot.slane %v4658_v13, 2 }
 0x22b   : > { %3496 = vmatmul.msk.bf16.gmra.mxu0 %vm568_vm1, %v2320_v1  ;;  %2714 = vperm.xlu1 %3570, %v2564_v58  }
 0x22c   : > { %v2755_v27 = vmul.f32 %v2590_v40, %v2503_v36  ;;  %v2984_v14 = vpack.c.bf16 %v2503_v36, %v2503_v36  ;;  %3468 = vmatmul.msk.bf16.gmra.mxu3 %vm568_vm1, %v2060_v20 }
 0x22d   : > { %v1884_v46 = vpop.f32.mrf.mxu2 }
 0x22e   : > { %v2793_v61 = vsel %vm568_vm1, %v2755_v27, 0.0  ;;  %v2870_v21 = vmul.f32 %v2755_v27, %v2503_v36  ;;  %3021 = vst.msk [vmem:[%s4542_s13 + $0xc] sm:$0xf] %vm3017_vm7, %v2984_v14  ;;  %v1968_v55 = vadd.f32 %v1884_v46, %v1802_v35  ;;  %v1720_v47 = vpop.f32.mrf.mxu1  ;;  %v2566_v36 = vld [vmem:[%s5057_s4 + $0xf0] sm:$0xff] }
 0x22f   : > { %v2794_v33 = vadd.f32 %v2793_v61, %v2792_v11  ;;  %v1803_v1 = vadd.f32 %v1720_v47, %v4189_v53  ;;  %v2567_v53 = vld [vmem:[%s5057_s4 + $0xf8] sm:$0xff]  ;;  %v4679_v61 = vsel %vm1595_vm5, %v1619_v17, %v1621_v54 }
 0x230   : > { %v2908_v51 = vsel %vm568_vm1, %v2870_v21, 0.0  ;;  %v2260_v41 = vadd.f32 %v4550_v22, %v1968_v55  ;;  %v2422_v56 = vpop.f32.mrf.mxu0  ;;  %v2321_v22 = vrot.slane %v4658_v13, 3  ;;  %2724 = vperm.xlu0 %3569, %v2566_v36   ;;  %v2061_v21 = vrot.slane %v3799_v63, 2  ;;  %v2559_v17 = vld [vmem:[%s5057_s4 + $0xb8] sm:$0xff]  ;;  %v2600_v63 = vpop.permute.xlu2 %2599 }
 0x231   : > { %v2909_v39 = vadd.f32 %v2908_v51, %v2907_v15  ;;  %v4666_v15 = vpop.f32.mrf.mxu3  ;;  %v2062_v55 = vrot.slane %v3746_v38, 3  ;;  %2689 = vperm.xlu2 %3571, %v2559_v17  }
 0x232   : > { %v2504_v11 = vadd.f32 %v2420_v24, %v2260_v41  ;;  %v2569_v41 = vld [vmem:[%s5057_s4 + $0x108] sm:$0xff] }
 0x233   : > { %2729 = vperm.xlu1 %3570, %v2567_v53   ;;  %v2605_v53 = vpop.permute.xlu0 %2604 }
 0x234   : > { %v2985_v25 = vpack.c.bf16 %v2504_v11, %v2504_v11  ;;  %v2756_v40 = vmul.f32 %v2595_v32, %v2504_v11 }
 0x235   : > { %v1886_v35 = vpop.f32.mrf.mxu2 }
 0x236   : > { %3022 = vst.msk [vmem:[%s4542_s13 + $0x10] sm:$0xf] %vm3017_vm7, %v2985_v25  ;;  %v2795_v24 = vsel %vm568_vm1, %v2756_v40, 0.0  ;;  %v2871_v27 = vmul.f32 %v2756_v40, %v2504_v11  ;;  %v1969_v14 = vadd.f32 %v1886_v35, %v1803_v1  ;;  %v1723_v46 = vpop.f32.mrf.mxu1 }
 0x237   : > { %v2796_v2 = vadd.f32 %v2795_v24, %v2794_v33  ;;  %v2322_v33 = vsel %vm2297_vm6, %v2319_v10, %v2321_v22  ;;  %v1804_v16 = vadd.f32 %v1723_v46, %v4201_v7  ;;  %v2570_v7 = vld [vmem:[%s5057_s4 + $0x110] sm:$0xff]  ;;  %v4722_v46 = vld [vmem:[%s3668_s14 + $0x78] sm:$0xff] }
 0x238   : > { %v2910_v58 = vsel %vm568_vm1, %v2871_v27, 0.0  ;;  %v2261_v47 = vadd.f32 %v4578_v48, %v1969_v14  ;;  %v2425_v32 = vpop.f32.mrf.mxu0  ;;  %v4698_v48 = vor.u32 %v2062_v55, %v2061_v21  ;;  %2739 = vperm.xlu0 %3569, %v2569_v41   ;;  %v2562_v27 = vld [vmem:[%s5057_s4 + $0xd0] sm:$0xff] }
 0x239   : > { %v2911_v20 = vadd.f32 %v2910_v58, %v2909_v39  ;;  %3407 = vmatmul.msk.bf16.gmra.mxu1 %vm568_vm1, %v4618_v5  ;;  %v4704_v39 = vpop.f32.mrf.mxu3  ;;  %2704 = vperm.xlu2 %3571, %v2562_v27   ;;  %v2323_v58 = vrot.slane %v4722_v46, 3 }
 0x23a   : > { %3437 = vmatmul.msk.bf16.gmra.mxu2 %vm568_vm1, %v4679_v61  ;;  %v2505_v38 = vadd.f32 %v2422_v56, %v2261_v47  ;;  %v2064_v40 = vsel %vm2005_vm4, %v4634_v37, %v4698_v48  ;;  %v1623_v37 = vrot.slane %v4722_v46, 2 }
 0x23b   : > { %3497 = vmatmul.msk.bf16.gmra.mxu0 %vm568_vm1, %v2322_v33  ;;  %2744 = vperm.xlu1 %3570, %v2570_v7  }
 0x23c   : > { %v2757_v10 = vmul.f32 %v2600_v63, %v2505_v38  ;;  %v2986_v51 = vpack.c.bf16 %v2505_v38, %v2505_v38  ;;  %3469 = vmatmul.msk.bf16.gmra.mxu3 %vm568_vm1, %v2064_v40 }
 0x23d   : > { %v1889_v19 = vpop.f32.mrf.mxu2 }
 0x23e   : > { %v2797_v5 = vsel %vm568_vm1, %v2757_v10, 0.0  ;;  %v2872_v11 = vmul.f32 %v2757_v10, %v2505_v38  ;;  %3023 = vst.msk [vmem:[%s4542_s13 + $0x14] sm:$0xf] %vm3017_vm7, %v2986_v51  ;;  %v1970_v56 = vadd.f32 %v1889_v19, %v1804_v16  ;;  %v1725_v1 = vpop.f32.mrf.mxu1  ;;  %v2065_v16 = vrot.slane %v5134_v9, 2  ;;  %v2610_v9 = vpop.permute.xlu1 %2609 }
 0x23f   : > { %v2798_v25 = vadd.f32 %v2797_v5, %v2796_v2  ;;  %v1805_v55 = vadd.f32 %v1725_v1, %v4209_v26  ;;  %v1624_v26 = vsel %vm1595_vm5, %v1621_v54, %v1623_v37  ;;  %v2066_v10 = vrot.slane %v5135_v62, 3 }
 0x240   : > { %v2912_v36 = vsel %vm568_vm1, %v2872_v11, 0.0  ;;  %v2262_v35 = vadd.f32 %v4605_v57, %v1970_v56  ;;  %v2427_v24 = vpop.f32.mrf.mxu0  ;;  %v2324_v5 = vsel %vm2297_vm6, %v2321_v22, %v2323_v58  ;;  %v2565_v11 = vld [vmem:[%s5057_s4 + $0xe8] sm:$0xff] }
 0x241   : > { %v2913_v14 = vadd.f32 %v2912_v36, %v2911_v20  ;;  %v4727_v33 = vpop.f32.mrf.mxu3  ;;  %2719 = vperm.xlu2 %3571, %v2565_v11   ;;  %v5183_v11 = vshll.u32 %v5133_v59, 16 }
 0x242   : > { %v2506_v2 = vadd.f32 %v2425_v32, %v2262_v35 }
 0x244   : > { %v2987_v21 = vpack.c.bf16 %v2506_v2, %v2506_v2  ;;  %v2758_v57 = vmul.f32 %v2605_v53, %v2506_v2  ;;  %v2568_v53 = vld [vmem:[%s5057_s4 + $0x100] sm:$0xff] }
 0x245   : > { %v1891_v47 = vpop.f32.mrf.mxu2 }
 0x246   : > { %3024 = vst.msk [vmem:[%s4542_s13 + $0x18] sm:$0xf] %vm3017_vm7, %v2987_v21  ;;  %v2799_v17 = vsel %vm568_vm1, %v2758_v57, 0.0  ;;  %v2873_v32 = vmul.f32 %v2758_v57, %v2506_v2  ;;  %v1971_v20 = vadd.f32 %v1891_v47, %v1805_v55  ;;  %v1728_v38 = vpop.f32.mrf.mxu1  ;;  %v2615_v21 = vpop.permute.xlu2 %2614  ;;  %v4771_v57 = vld [vmem:[%s3668_s14 + $0x80] sm:$0xff] }
 0x247   : > { %v2800_v63 = vadd.f32 %v2799_v17, %v2798_v25  ;;  %v1806_v13 = vadd.f32 %v1728_v38, %v4221_v8 }
 0x248   : > { %v2914_v51 = vsel %vm568_vm1, %v2873_v32, 0.0  ;;  %v2263_v41 = vadd.f32 %v4640_v31, %v1971_v20  ;;  %v2430_v19 = vpop.f32.mrf.mxu0  ;;  %v4753_v31 = vor.u32 %v2066_v10, %v2065_v16  ;;  %v2325_v32 = vrot.slane %v4771_v57, 3 }
 0x249   : > { %v2915_v54 = vadd.f32 %v2914_v51, %v2913_v14  ;;  %3408 = vmatmul.msk.bf16.gmra.mxu1 %vm568_vm1, %v4679_v61  ;;  %v4756_v25 = vpop.f32.mrf.mxu3  ;;  %2734 = vperm.xlu2 %3571, %v2568_v53  }
 0x24a   : > { %3438 = vmatmul.msk.bf16.gmra.mxu2 %vm568_vm1, %v1624_v26  ;;  %v2507_v62 = vadd.f32 %v2427_v24, %v2263_v41  ;;  %v2068_v24 = vsel %vm2005_vm4, %v4698_v48, %v4753_v31  ;;  %v1625_v48 = vrot.slane %v4771_v57, 2 }
 0x24b   : > { %3498 = vmatmul.msk.bf16.gmra.mxu0 %vm568_vm1, %v2324_v5 }
 0x24c   : > { %v2759_v22 = vmul.f32 %v2610_v9, %v2507_v62  ;;  %v2988_v56 = vpack.c.bf16 %v2507_v62, %v2507_v62  ;;  %3470 = vmatmul.msk.bf16.gmra.mxu3 %vm568_vm1, %v2068_v24 }
 0x24d   : > { %v1894_v7 = vpop.f32.mrf.mxu2 }
 0x24e   : > { %v2801_v1 = vsel %vm568_vm1, %v2759_v22, 0.0  ;;  %v2874_v40 = vmul.f32 %v2759_v22, %v2507_v62  ;;  %3025 = vst.msk [vmem:[%s4542_s13 + $0x1c] sm:$0xf] %vm3017_vm7, %v2988_v56  ;;  %v1972_v61 = vadd.f32 %v1894_v7, %v1806_v13  ;;  %v1730_v35 = vpop.f32.mrf.mxu1  ;;  %v2326_v22 = vsel %vm2297_vm6, %v2323_v58, %v2325_v32  ;;  %v2620_v7 = vpop.permute.xlu0 %2619 }
 0x24f   : > { %v2802_v36 = vadd.f32 %v2801_v1, %v2800_v63  ;;  %v1807_v17 = vadd.f32 %v1730_v35, %v4229_v45  ;;  %v1626_v45 = vsel %vm1595_vm5, %v1623_v37, %v1625_v48  ;;  %v2571_v37 = vld [vmem:[%s5057_s4 + $0x118] sm:$0xff] }
 0x250   : > { %v2916_v8 = vsel %vm568_vm1, %v2874_v40, 0.0  ;;  %v2264_v27 = vadd.f32 %v4666_v15, %v1972_v61  ;;  %v2432_v14 = vpop.f32.mrf.mxu0 }
 0x251   : > { %v2917_v2 = vadd.f32 %v2916_v8, %v2915_v54  ;;  %v4776_v63 = vpop.f32.mrf.mxu3  ;;  %v2070_v54 = vrot.slane %v5183_v11, 3  ;;  %2749 = vperm.xlu2 %3571, %v2571_v37  }
 0x252   : > { %v2508_v55 = vadd.f32 %v2430_v19, %v2264_v27  ;;  %v5182_v19 = vshrl.u32 %v5133_v59, 16 }
 0x254   : > { %v2989_v47 = vpack.c.bf16 %v2508_v55, %v2508_v55  ;;  %v2760_v15 = vmul.f32 %v2615_v21, %v2508_v55  ;;  %v2069_v5 = vrot.slane %v5182_v19, 2  ;;  %v2625_v21 = vpop.permute.xlu1 %2624 }
 0x255   : > { %v1896_v20 = vpop.f32.mrf.mxu2 }
 0x256   : > { %3026 = vst.msk [vmem:[%s4542_s13 + $0x20] sm:$0xf] %vm3017_vm7, %v2989_v47  ;;  %v2803_v38 = vsel %vm568_vm1, %v2760_v15, 0.0  ;;  %v2875_v16 = vmul.f32 %v2760_v15, %v2508_v55  ;;  %v1973_v10 = vadd.f32 %v1896_v20, %v1807_v17  ;;  %v1733_v41 = vpop.f32.mrf.mxu1  ;;  %v4818_v47 = vld [vmem:[%s3668_s14 + $0x88] sm:$0xff]  ;;  %v4822_v15 = vld [vmem:[%s3668_s14 + $0x98] sm:$0xff]  }
 0x257   : > { %v2804_v51 = vadd.f32 %v2803_v38, %v2802_v36  ;;  %v1808_v46 = vadd.f32 %v1733_v41, %v4244_v3  ;;  %v1627_v17 = vrot.slane %v4818_v47, 2  ;;  %v2074_v20 = vshrl.u32 %v4822_v15, 16 }
 0x258   : > { %v2918_v9 = vsel %vm568_vm1, %v2875_v16, 0.0  ;;  %v2265_v62 = vadd.f32 %v4704_v39, %v1973_v10  ;;  %v2435_v13 = vpop.f32.mrf.mxu0  ;;  %v4803_v39 = vor.u32 %v2070_v54, %v2069_v5  ;;  %v2327_v10 = vrot.slane %v4818_v47, 3 }
 0x259   : > { %v2919_v56 = vadd.f32 %v2918_v9, %v2917_v2  ;;  %3409 = vmatmul.msk.bf16.gmra.mxu1 %vm568_vm1, %v1624_v26  ;;  %v4806_v61 = vpop.f32.mrf.mxu3 }
 0x25a   : > { %3439 = vmatmul.msk.bf16.gmra.mxu2 %vm568_vm1, %v1626_v45  ;;  %v2509_v59 = vadd.f32 %v2432_v14, %v2265_v62  ;;  %v2072_v27 = vsel %vm2005_vm4, %v4753_v31, %v4803_v39  ;;  %v2077_v31 = vshll.u32 %v4822_v15, 16  ;;  %v2076_v62 = vrot.slane %v2074_v20, 2 }
 0x25b   : > { %3499 = vmatmul.msk.bf16.gmra.mxu0 %vm568_vm1, %v2326_v22 }
 0x25c   : > { %v2761_v58 = vmul.f32 %v2620_v7, %v2509_v59  ;;  %v2990_v1 = vpack.c.bf16 %v2509_v59, %v2509_v59  ;;  %3471 = vmatmul.msk.bf16.gmra.mxu3 %vm568_vm1, %v2072_v27  ;;  %v2328_v7 = vsel %vm2297_vm6, %v2325_v32, %v2327_v10 }
 0x25d   : > { %v1899_v40 = vpop.f32.mrf.mxu2 }
 0x25e   : > { %v2805_v36 = vsel %vm568_vm1, %v2761_v58, 0.0  ;;  %v2876_v35 = vmul.f32 %v2761_v58, %v2509_v59  ;;  %3027 = vst.msk [vmem:[%s4542_s13 + $0x24] sm:$0xf] %vm3017_vm7, %v2990_v1  ;;  %v1974_v26 = vadd.f32 %v1899_v40, %v1808_v46  ;;  %v1735_v8 = vpop.f32.mrf.mxu1  ;;  %v337_v59 = vld [vmem:[%s3668_s14 + $0xa0] sm:$0xf]  ;;  %v2630_v58 = vpop.permute.xlu2 %2629 }
 0x25f   : > { %v2806_v24 = vadd.f32 %v2805_v36, %v2804_v51 }
 0x260   : > { %v2920_v3 = vsel %vm568_vm1, %v2876_v35, 0.0  ;;  %v2266_v14 = vadd.f32 %v4727_v33, %v1974_v26  ;;  %v2437_v53 = vpop.f32.mrf.mxu0  ;;  %v1809_v33 = vadd.f32 %v1735_v8, %v4252_v49  ;;  %v1628_v49 = vsel %vm1595_vm5, %v1625_v48, %v1627_v17 }
 0x261   : > { %v2921_v2 = vadd.f32 %v2920_v3, %v2919_v56  ;;  %v4828_v41 = vpop.f32.mrf.mxu3 }
 0x262   : > { %v2510_v55 = vadd.f32 %v2435_v13, %v2266_v14  ;;  %v2079_v13 = vrot.slane %v2077_v31, 3  ;;  %v4866_v31 = vld [vmem:[%s3668_s14 + $0x90] sm:$0xff]  }
 0x264   : > { %v2991_v38 = vpack.c.bf16 %v2510_v55, %v2510_v55  ;;  %v2762_v16 = vmul.f32 %v2625_v21, %v2510_v55  ;;  %v4849_v1 = vor.u32 %v2079_v13, %v2076_v62 }
 0x265   : > { %v1901_v51 = vpop.f32.mrf.mxu2 }
 0x266   : > { %3028 = vst.msk [vmem:[%s4542_s13 + $0x28] sm:$0xf] %vm3017_vm7, %v2991_v38  ;;  %v2807_v19 = vsel %vm568_vm1, %v2762_v16, 0.0  ;;  %v2877_v5 = vmul.f32 %v2762_v16, %v2510_v55  ;;  %v1975_v11 = vadd.f32 %v1901_v51, %v1809_v33  ;;  %v1738_v9 = vpop.f32.mrf.mxu1  ;;  %v2081_v3 = vsel %vm2005_vm4, %v4803_v39, %v4849_v1  ;;  %v2635_v55 = vpop.permute.xlu0 %2634 }
 0x267   : > { %v2808_v54 = vadd.f32 %v2807_v19, %v2806_v24  ;;  %v1810_v40 = vadd.f32 %v1738_v9, %v4263_v34  ;;  %v4869_v38 = vrot.slane %v4866_v31, 2  ;;  %v2329_v19 = vrot.slane %v4866_v31, 3 }
 0x268   : > { %v2922_v22 = vsel %vm568_vm1, %v2877_v5, 0.0  ;;  %v2267_v37 = vadd.f32 %v4756_v25, %v1975_v11  ;;  %v2440_v56 = vpop.f32.mrf.mxu0  ;;  %v378_v25 = vunpack.c.l.bf16 %v337_v59 }
 0x269   : > { %v2923_v46 = vadd.f32 %v2922_v22, %v2921_v2  ;;  %3410 = vmatmul.msk.bf16.gmra.mxu1 %vm568_vm1, %v1626_v45  ;;  %v4852_v32 = vpop.f32.mrf.mxu3 }
 0x26a   : > { %3440 = vmatmul.msk.bf16.gmra.mxu2 %vm568_vm1, %v1628_v49  ;;  %v2511_v48 = vadd.f32 %v2437_v53, %v2267_v37  ;;  %v4860_v14 = vpack.c.bf16 %v378_v25, %v378_v25  ;;  %v1630_v37 = vsel %vm1595_vm5, %v1627_v17, %v4869_v38  ;;  %v2640_v25 = vpop.permute.xlu1 %2639 }
 0x26b   : > { %3500 = vmatmul.msk.bf16.gmra.mxu0 %vm568_vm1, %v2328_v7 }
 0x26c   : > { %v2763_v36 = vmul.f32 %v2630_v58, %v2511_v48  ;;  %v2992_v57 = vpack.c.bf16 %v2511_v48, %v2511_v48  ;;  %3472 = vmatmul.msk.bf16.gmra.mxu3 %vm568_vm1, %v2081_v3  ;;  %v2083_v39 = vshrl.u32 %v4860_v14, 16  ;;  %v2086_v33 = vshll.u32 %v4860_v14, 16 }
 0x26d   : > { %v1904_v35 = vpop.f32.mrf.mxu2  ;;  %v2330_v58 = vsel %vm2297_vm6, %v2327_v10, %v2329_v19 }
 0x26e   : > { %v2809_v26 = vsel %vm568_vm1, %v2763_v36, 0.0  ;;  %v2878_v24 = vmul.f32 %v2763_v36, %v2511_v48  ;;  %3029 = vst.msk [vmem:[%s4542_s13 + $0x2c] sm:$0xf] %vm3017_vm7, %v2992_v57  ;;  %v1976_v45 = vadd.f32 %v1904_v35, %v1810_v40  ;;  %v1740_v27 = vpop.f32.mrf.mxu1 }
 0x26f   : > { %v2810_v8 = vadd.f32 %v2809_v26, %v2808_v54  ;;  %v1811_v51 = vadd.f32 %v1740_v27, %v4273_v23  ;;  %v2085_v23 = vrot.slane %v2083_v39, 2  ;;  %v2331_v39 = vrot.slane %v4822_v15, 3 }
 0x270   : > { %v2924_v34 = vsel %vm568_vm1, %v2878_v24, 0.0  ;;  %v2268_v53 = vadd.f32 %v4776_v63, %v1976_v45  ;;  %v2442_v2 = vpop.f32.mrf.mxu0 }
 0x271   : > { %v2925_v21 = vadd.f32 %v2924_v34, %v2923_v46  ;;  %v4875_v11 = vpop.f32.mrf.mxu3 }
 0x272   : > { %v2512_v20 = vadd.f32 %v2440_v56, %v2268_v53  ;;  %v2088_v56 = vrot.slane %v2086_v33, 3  ;;  %v2645_v53 = vpop.permute.xlu2 %2644 }
 0x274   : > { %v2993_v16 = vpack.c.bf16 %v2512_v20, %v2512_v20  ;;  %v2764_v63 = vmul.f32 %v2635_v55, %v2512_v20  ;;  %v2089_v17 = vor.u32 %v2088_v56, %v2085_v23 }
 0x275   : > { %v1906_v5 = vpop.f32.mrf.mxu2 }
 0x276   : > { %3030 = vst.msk [vmem:[%s4542_s13 + $0x30] sm:$0xf] %vm3017_vm7, %v2993_v16  ;;  %v2811_v54 = vsel %vm568_vm1, %v2764_v63, 0.0  ;;  %v2879_v9 = vmul.f32 %v2764_v63, %v2512_v20  ;;  %v1977_v62 = vadd.f32 %v1906_v5, %v1811_v51  ;;  %v1743_v22 = vpop.f32.mrf.mxu1 }
 0x277   : > { %v2812_v13 = vadd.f32 %v2811_v54, %v2810_v8  ;;  %v1812_v57 = vadd.f32 %v1743_v22, %v4286_v0  ;;  %v2090_v8 = vsel %vm2005_vm4, %v4849_v1, %v2089_v17  ;;  %v2650_v22 = vpop.permute.xlu0 %2649 }
 0x278   : > { %v2926_v7 = vsel %vm568_vm1, %v2879_v9, 0.0  ;;  %v2269_v59 = vadd.f32 %v4806_v61, %v1977_v62  ;;  %v2445_v46 = vpop.f32.mrf.mxu0  ;;  %v2332_v62 = vsel %vm2297_vm6, %v2329_v19, %v2331_v39 }
 0x279   : > { %v2927_v48 = vadd.f32 %v2926_v7, %v2925_v21  ;;  %3411 = vmatmul.msk.bf16.gmra.mxu1 %vm568_vm1, %v1628_v49  ;;  %v4893_v26 = vpop.f32.mrf.mxu3  ;;  %v1843_v21 = vrot.slane %v4822_v15, 2 }
 0x27a   : > { %v2513_v40 = vadd.f32 %v2442_v2, %v2269_v59  ;;  %3441 = vmatmul.msk.bf16.gmra.mxu2 %vm568_vm1, %v1630_v37 }
 0x27b   : > { %3501 = vmatmul.msk.bf16.gmra.mxu0 %vm568_vm1, %v2330_v58  ;;  %v1844_v54 = vsel %vm1595_vm5, %v4869_v38, %v1843_v21 }
 0x27c   : > { %v2994_v36 = vpack.c.bf16 %v2513_v40, %v2513_v40  ;;  %v2765_v35 = vmul.f32 %v2640_v25, %v2513_v40  ;;  %3473 = vmatmul.msk.bf16.gmra.mxu3 %vm568_vm1, %v2090_v8 }
 0x27d   : > { %v1909_v61 = vpop.f32.mrf.mxu2 }
 0x27e   : > { %3031 = vst.msk [vmem:[%s4542_s13 + $0x34] sm:$0xf] %vm3017_vm7, %v2994_v36  ;;  %v2813_v47 = vsel %vm568_vm1, %v2765_v35, 0.0  ;;  %v2880_v10 = vmul.f32 %v2765_v35, %v2513_v40  ;;  %v1978_v24 = vadd.f32 %v1909_v61, %v1812_v57  ;;  %v1745_v49 = vpop.f32.mrf.mxu1  ;;  %v1631_v61 = vrot.slane %v4266_v50, 2 }
 0x27f   : > { %v2814_v45 = vadd.f32 %v2813_v47, %v2812_v13  ;;  %v1813_v20 = vadd.f32 %v1745_v49, %v4298_v60  ;;  %v1845_v47 = vrot.slane %v4860_v14, 2  ;;  %v2333_v49 = vrot.slane %v4860_v14, 3 }
 0x280   : > { %v2928_v27 = vsel %vm568_vm1, %v2880_v10, 0.0  ;;  %v2270_v0 = vadd.f32 %v4828_v41, %v1978_v24  ;;  %v2447_v3 = vpop.f32.mrf.mxu0  ;;  %v1632_v50 = vsel %vm1595_vm5, %v4869_v38, %v1631_v61 }
 0x281   : > { %v2929_v34 = vadd.f32 %v2928_v27, %v2927_v48  ;;  %v4906_v1 = vpop.f32.mrf.mxu3 }
 0x282   : > { %v2514_v2 = vadd.f32 %v2445_v46, %v2270_v0 }
 0x284   : > { %v2995_v55 = vpack.c.bf16 %v2514_v2, %v2514_v2  ;;  %v2766_v31 = vmul.f32 %v2645_v53, %v2514_v2 }
 0x285   : > { %v1911_v33 = vpop.f32.mrf.mxu2 }
 0x286   : > { %3032 = vst.msk [vmem:[%s4542_s13 + $0x38] sm:$0xf] %vm3017_vm7, %v2995_v55  ;;  %v2815_v41 = vsel %vm568_vm1, %v2766_v31, 0.0  ;;  %v2881_v16 = vmul.f32 %v2766_v31, %v2514_v2  ;;  %v1979_v51 = vadd.f32 %v1911_v33, %v1813_v20  ;;  %v1748_v5 = vpop.f32.mrf.mxu1  ;;  %v1846_v2 = vsel %vm1595_vm5, %v1843_v21, %v1845_v47  ;;  %v2660_v33 = vpop.permute.xlu2 %2659  ;;  %v5185_v47 = vld [vmem:[#allocation19_spill] sm:$0xff] }
 0x287   : > { %v2816_v63 = vadd.f32 %v2815_v41, %v2814_v45  ;;  %v1814_v7 = vadd.f32 %v1748_v5, %v4306_v42  ;;  %v2655_v42 = vpop.permute.xlu1 %2654  ;;  %v2334_v20 = vsel %vm2297_vm6, %v2331_v39, %v2333_v49 }
 0x288   : > { %v2930_v60 = vsel %vm568_vm1, %v2881_v16, 0.0  ;;  %v2271_v9 = vadd.f32 %v4852_v32, %v1979_v51  ;;  %v2450_v15 = vpop.f32.mrf.mxu0 }
 0x289   : > { %v2931_v13 = vadd.f32 %v2930_v60, %v2929_v34  ;;  %3412 = vmatmul.msk.bf16.gmra.mxu1 %vm568_vm1, %v1630_v37  ;;  %v4920_v58 = vpop.f32.mrf.mxu3 }
 0x28a   : > { %v2515_v23 = vadd.f32 %v2447_v3, %v2271_v9  ;;  %3442 = vmatmul.msk.bf16.gmra.mxu2 %vm568_vm1, %v1844_v54 }
 0x28b   : > { %3502 = vmatmul.msk.bf16.gmra.mxu0 %vm568_vm1, %v2332_v62 }
 0x28c   : > { %v2996_v56 = vpack.c.bf16 %v2515_v23, %v2515_v23  ;;  %v2767_v59 = vmul.f32 %v2650_v22, %v2515_v23  ;;  %v2665_v22 = vpop.permute.xlu0 %2664 }
 0x28d   : > { %v1914_v46 = vpop.f32.mrf.mxu2 }
 0x28e   : > { %3033 = vst.msk [vmem:[%s4542_s13 + $0x3c] sm:$0xf] %vm3017_vm7, %v2996_v56  ;;  %v2817_v32 = vsel %vm568_vm1, %v2767_v59, 0.0  ;;  %v2882_v19 = vmul.f32 %v2767_v59, %v2515_v23  ;;  %v1980_v48 = vadd.f32 %v1914_v46, %v1814_v7  ;;  %v1750_v37 = vpop.f32.mrf.mxu1  ;;  %v5184_v56 = vld [vmem:[#allocation13_spill] sm:$0xff] }
 0x28f   : > { %v2818_v25 = vadd.f32 %v2817_v32, %v2816_v63  ;;  %v1815_v24 = vadd.f32 %v1750_v37, %v4320_v29 }
 0x290   : > { %v2932_v40 = vsel %vm568_vm1, %v2882_v19, 0.0  ;;  %v2272_v17 = vadd.f32 %v4875_v11, %v1980_v48  ;;  %v2452_v36 = vpop.f32.mrf.mxu0 }
 0x291   : > { %v2933_v57 = vadd.f32 %v2932_v40, %v2931_v13  ;;  %v4931_v27 = vpop.f32.mrf.mxu3 }
 0x292   : > { %v2516_v35 = vadd.f32 %v2450_v15, %v2272_v17 }
 0x294   : > { %v2997_v10 = vpack.c.bf16 %v2516_v35, %v2516_v35  ;;  %v2768_v45 = vmul.f32 %v2655_v42, %v2516_v35 }
 0x295   : > { %v1916_v8 = vpop.f32.mrf.mxu2 }
 0x296   : > { %3034 = vst.msk [vmem:[%s4542_s13 + $0x40] sm:$0xf] %vm3017_vm7, %v2997_v10  ;;  %v2819_v11 = vsel %vm568_vm1, %v2768_v45, 0.0  ;;  %v2883_v0 = vmul.f32 %v2768_v45, %v2516_v35  ;;  %v1981_v3 = vadd.f32 %v1916_v8, %v1815_v24  ;;  %v1753_v53 = vpop.f32.mrf.mxu1  ;;  %v2670_v35 = vpop.permute.xlu1 %2669 }
 0x297   : > { %v2820_v34 = vadd.f32 %v2819_v11, %v2818_v25  ;;  %v1816_v21 = vadd.f32 %v1753_v53, %v4331_v30 }
 0x298   : > { %v2934_v29 = vsel %vm568_vm1, %v2883_v0, 0.0  ;;  %v2273_v14 = vadd.f32 %v4893_v26, %v1981_v3  ;;  %v2455_v55 = vpop.f32.mrf.mxu0 }
 0x299   : > { %v2935_v31 = vadd.f32 %v2934_v29, %v2933_v57  ;;  %3413 = vmatmul.msk.bf16.gmra.mxu1 %vm568_vm1, %v1632_v50  ;;  %v2218_v63 = vpop.f32.mrf.mxu3 }
 0x29a   : > { %v2517_v41 = vadd.f32 %v2452_v36, %v2273_v14  ;;  %3443 = vmatmul.msk.bf16.gmra.mxu2 %vm568_vm1, %v1846_v2  ;;  %v2675_v14 = vpop.permute.xlu2 %2674 }
 0x29b   : > { %3503 = vmatmul.msk.bf16.gmra.mxu0 %vm568_vm1, %v2334_v20 }
 0x29c   : > { %v2998_v38 = vpack.c.bf16 %v2517_v41, %v2517_v41  ;;  %v2769_v16 = vmul.f32 %v2660_v33, %v2517_v41 }
 0x29d   : > { %v1919_v51 = vpop.f32.mrf.mxu2 }
 0x29e   : > { %3035 = vst.msk [vmem:[%s4542_s13 + $0x44] sm:$0xf] %vm3017_vm7, %v2998_v38  ;;  %v2821_v26 = vsel %vm568_vm1, %v2769_v16, 0.0  ;;  %v2884_v39 = vmul.f32 %v2769_v16, %v2517_v41  ;;  %v1982_v5 = vadd.f32 %v1919_v51, %v1816_v21  ;;  %v1755_v60 = vpop.f32.mrf.mxu1 }
 0x29f   : > { %v2822_v54 = vadd.f32 %v2821_v26, %v2820_v34  ;;  %v1817_v7 = vadd.f32 %v1755_v60, %v5184_v56 }
 0x2a0   : > { %v2936_v9 = vsel %vm568_vm1, %v2884_v39, 0.0  ;;  %v2274_v15 = vadd.f32 %v4906_v1, %v1982_v5  ;;  %v2457_v62 = vpop.f32.mrf.mxu0 }
 0x2a1   : > { %v2937_v13 = vadd.f32 %v2936_v9, %v2935_v31  ;;  %v2221_v32 = vpop.f32.mrf.mxu3  ;;  %v5186_v31 = vld [vmem:[#allocation9_spill] sm:$0xff] }
 0x2a2   : > { %v2518_v30 = vadd.f32 %v2455_v55, %v2274_v15  ;;  %v2680_v15 = vpop.permute.xlu0 %2679 }
 0x2a4   : > { %v2999_v23 = vpack.c.bf16 %v2518_v30, %v2518_v30  ;;  %v2770_v59 = vmul.f32 %v2665_v22, %v2518_v30  ;;  %v5187_v22 = vld [vmem:[#allocation16_spill] sm:$0xff] }
 0x2a5   : > { %v1921_v46 = vpop.f32.mrf.mxu2 }
 0x2a6   : > { %3036 = vst.msk [vmem:[%s4542_s13 + $0x48] sm:$0xf] %vm3017_vm7, %v2999_v23  ;;  %v2823_v19 = vsel %vm568_vm1, %v2770_v59, 0.0  ;;  %v2885_v48 = vmul.f32 %v2770_v59, %v2518_v30  ;;  %v1983_v25 = vadd.f32 %v1921_v46, %v1817_v7  ;;  %v1758_v40 = vpop.f32.mrf.mxu1 }
 0x2a7   : > { %v2824_v37 = vadd.f32 %v2823_v19, %v2822_v54  ;;  %v1818_v10 = vadd.f32 %v1758_v40, %v5185_v47 }
 0x2a8   : > { %v2938_v1 = vsel %vm568_vm1, %v2885_v48, 0.0  ;;  %v2275_v17 = vadd.f32 %v4920_v58, %v1983_v25  ;;  %v2460_v36 = vpop.f32.mrf.mxu0 }
 0x2a9   : > { %v2939_v57 = vadd.f32 %v2938_v1, %v2937_v13  ;;  %v2223_v34 = vpop.f32.mrf.mxu3  ;;  %v2685_v1 = vpop.permute.xlu1 %2684 }
 0x2aa   : > { %v2519_v42 = vadd.f32 %v2457_v62, %v2275_v17 }
 0x2ac   : > { %v3000_v61 = vpack.c.bf16 %v2519_v42, %v2519_v42  ;;  %v2771_v24 = vmul.f32 %v2670_v35, %v2519_v42 }
 0x2ad   : > { %v1924_v45 = vpop.f32.mrf.mxu2 }
 0x2ae   : > { %3037 = vst.msk [vmem:[%s4542_s13 + $0x4c] sm:$0xf] %vm3017_vm7, %v3000_v61  ;;  %v2825_v49 = vsel %vm568_vm1, %v2771_v24, 0.0  ;;  %v2886_v8 = vmul.f32 %v2771_v24, %v2519_v42  ;;  %v1984_v11 = vadd.f32 %v1924_v45, %v1818_v10  ;;  %v1760_v3 = vpop.f32.mrf.mxu1  ;;  %v5188_v42 = vld [vmem:[#allocation33_spill] sm:$0xff] }
 0x2af   : > { %v2826_v0 = vadd.f32 %v2825_v49, %v2824_v37  ;;  %v1819_v33 = vadd.f32 %v1760_v3, %v5186_v31 }
 0x2b0   : > { %v2940_v58 = vsel %vm568_vm1, %v2886_v8, 0.0  ;;  %v2276_v53 = vadd.f32 %v4931_v27, %v1984_v11  ;;  %v2462_v50 = vpop.f32.mrf.mxu0 }
 0x2b1   : > { %v2941_v2 = vadd.f32 %v2940_v58, %v2939_v57  ;;  %v2226_v60 = vpop.f32.mrf.mxu3  ;;  %v2690_v58 = vpop.permute.xlu2 %2689 }
 0x2b2   : > { %v2520_v29 = vadd.f32 %v2460_v36, %v2276_v53 }
 0x2b4   : > { %v2772_v55 = vmul.f32 %v2675_v14, %v2520_v29  ;;  %v3001_v20 = vpack.c.bf16 %v2520_v29, %v2520_v29 }
 0x2b5   : > { %v1926_v41 = vpop.f32.mrf.mxu2 }
 0x2b6   : > { %v2827_v38 = vsel %vm568_vm1, %v2772_v55, 0.0  ;;  %v2887_v21 = vmul.f32 %v2772_v55, %v2520_v29  ;;  %3038 = vst.msk [vmem:[%s4542_s13 + $0x50] sm:$0xf] %vm3017_vm7, %v3001_v20  ;;  %v1985_v16 = vadd.f32 %v1926_v41, %v1819_v33  ;;  %v1763_v26 = vpop.f32.mrf.mxu1 }
 0x2b7   : > { %v2828_v51 = vadd.f32 %v2827_v38, %v2826_v0  ;;  %v1820_v30 = vadd.f32 %v1763_v26, %v5187_v22 }
 0x2b8   : > { %v2942_v27 = vsel %vm568_vm1, %v2887_v21, 0.0  ;;  %v2277_v39 = vadd.f32 %v2218_v63, %v1985_v16  ;;  %v2465_v5 = vpop.f32.mrf.mxu0 }
 0x2b9   : > { %v2943_v54 = vadd.f32 %v2942_v27, %v2941_v2  ;;  %v2228_v17 = vpop.f32.mrf.mxu3  ;;  %v5189_v2 = vld [vmem:[#allocation18_spill] sm:$0xff]  ;;  %v2695_v27 = vpop.permute.xlu0 %2694 }
 0x2ba   : > { %v2521_v9 = vadd.f32 %v2462_v50, %v2277_v39 }
 0x2bc   : > { %v2773_v62 = vmul.f32 %v2680_v15, %v2521_v9  ;;  %v3002_v13 = vpack.c.bf16 %v2521_v9, %v2521_v9 }
 0x2bd   : > { %v1929_v23 = vpop.f32.mrf.mxu2 }
 0x2be   : > { %v2829_v56 = vsel %vm568_vm1, %v2773_v62, 0.0  ;;  %v2888_v7 = vmul.f32 %v2773_v62, %v2521_v9  ;;  %3039 = vst.msk [vmem:[%s4542_s13 + $0x54] sm:$0xf] %vm3017_vm7, %v3002_v13  ;;  %v1986_v59 = vadd.f32 %v1929_v23, %v1820_v30  ;;  %v1765_v19 = vpop.f32.mrf.mxu1 }
 0x2bf   : > { %v2830_v46 = vadd.f32 %v2829_v56, %v2828_v51  ;;  %v1821_v35 = vadd.f32 %v1765_v19, %v5188_v42 }
 0x2c0   : > { %v2944_v63 = vsel %vm568_vm1, %v2888_v7, 0.0  ;;  %v2278_v48 = vadd.f32 %v2221_v32, %v1986_v59  ;;  %v2467_v25 = vpop.f32.mrf.mxu0 }
 0x2c1   : > { %v2945_v37 = vadd.f32 %v2944_v63, %v2943_v54  ;;  %v2231_v55 = vpop.f32.mrf.mxu3  ;;  %v5190_v54 = vld [vmem:[#allocation36_spill] sm:$0xff]  ;;  %v2700_v63 = vpop.permute.xlu1 %2699 }
 0x2c2   : > { %v2522_v40 = vadd.f32 %v2465_v5, %v2278_v48 }
 0x2c4   : > { %v2774_v36 = vmul.f32 %v2685_v1, %v2522_v40  ;;  %v3003_v57 = vpack.c.bf16 %v2522_v40, %v2522_v40 }
 0x2c5   : > { %v1931_v61 = vpop.f32.mrf.mxu2 }
 0x2c6   : > { %v2831_v47 = vsel %vm568_vm1, %v2774_v36, 0.0  ;;  %v2889_v10 = vmul.f32 %v2774_v36, %v2522_v40  ;;  %3040 = vst.msk [vmem:[%s4542_s13 + $0x58] sm:$0xf] %vm3017_vm7, %v3003_v57  ;;  %v1987_v24 = vadd.f32 %v1931_v61, %v1821_v35  ;;  %v1768_v49 = vpop.f32.mrf.mxu1 }
 0x2c7   : > { %v2832_v45 = vadd.f32 %v2831_v47, %v2830_v46  ;;  %v1822_v29 = vadd.f32 %v1768_v49, %v5189_v2 }
 0x2c8   : > { %v2946_v32 = vsel %vm568_vm1, %v2889_v10, 0.0  ;;  %v2279_v8 = vadd.f32 %v2223_v34, %v1987_v24  ;;  %v2470_v11 = vpop.f32.mrf.mxu0 }
 0x2c9   : > { %v2947_v0 = vadd.f32 %v2946_v32, %v2945_v37  ;;  %v2233_v56 = vpop.f32.mrf.mxu3  ;;  %v5191_v37 = vld [vmem:[#allocation20_spill] sm:$0xff]  ;;  %v2705_v32 = vpop.permute.xlu2 %2704 }
 0x2ca   : > { %v2523_v3 = vadd.f32 %v2467_v25, %v2279_v8 }
 0x2cc   : > { %v2775_v53 = vmul.f32 %v2690_v58, %v2523_v3  ;;  %v3004_v50 = vpack.c.bf16 %v2523_v3, %v2523_v3 }
 0x2cd   : > { %v1934_v14 = vpop.f32.mrf.mxu2 }
 0x2ce   : > { %v2833_v20 = vsel %vm568_vm1, %v2775_v53, 0.0  ;;  %v2890_v31 = vmul.f32 %v2775_v53, %v2523_v3  ;;  %3041 = vst.msk [vmem:[%s4542_s13 + $0x5c] sm:$0xf] %vm3017_vm7, %v3004_v50  ;;  %v1988_v33 = vadd.f32 %v1934_v14, %v1822_v29  ;;  %v1770_v38 = vpop.f32.mrf.mxu1 }
 0x2cf   : > { %v2834_v41 = vadd.f32 %v2833_v20, %v2832_v45  ;;  %v1823_v9 = vadd.f32 %v1770_v38, %v5190_v54  ;;  %v2710_v38 = vpop.permute.xlu0 %2709 }
 0x2d0   : > { %v2948_v34 = vsel %vm568_vm1, %v2890_v31, 0.0  ;;  %v2280_v21 = vadd.f32 %v2226_v60, %v1988_v33  ;;  %v2472_v16 = vpop.f32.mrf.mxu0 }
 0x2d1   : > { %v2949_v51 = vadd.f32 %v2948_v34, %v2947_v0  ;;  %v2236_v45 = vpop.f32.mrf.mxu3  ;;  %v5192_v0 = vld [vmem:[#allocation17_spill] sm:$0xff] }
 0x2d2   : > { %v2524_v26 = vadd.f32 %v2470_v11, %v2280_v21 }
 0x2d4   : > { %v2776_v39 = vmul.f32 %v2695_v27, %v2524_v26  ;;  %v3005_v5 = vpack.c.bf16 %v2524_v26, %v2524_v26 }
 0x2d5   : > { %v1936_v15 = vpop.f32.mrf.mxu2 }
 0x2d6   : > { %v2835_v62 = vsel %vm568_vm1, %v2776_v39, 0.0  ;;  %v2891_v13 = vmul.f32 %v2776_v39, %v2524_v26  ;;  %3042 = vst.msk [vmem:[%s4542_s13 + $0x60] sm:$0xf] %vm3017_vm7, %v3005_v5  ;;  %v1989_v22 = vadd.f32 %v1936_v15, %v1823_v9  ;;  %v1773_v23 = vpop.f32.mrf.mxu1 }
 0x2d7   : > { %v2836_v30 = vadd.f32 %v2835_v62, %v2834_v41  ;;  %v1824_v40 = vadd.f32 %v1773_v23, %v5191_v37  ;;  %v2715_v23 = vpop.permute.xlu1 %2714 }
 0x2d8   : > { %v2950_v60 = vsel %vm568_vm1, %v2891_v13, 0.0  ;;  %v2281_v7 = vadd.f32 %v2228_v17, %v1989_v22  ;;  %v2475_v59 = vpop.f32.mrf.mxu0 }
 0x2d9   : > { %v2951_v46 = vadd.f32 %v2950_v60, %v2949_v51  ;;  %v2238_v34 = vpop.f32.mrf.mxu3 }
 0x2da   : > { %v2525_v19 = vadd.f32 %v2472_v16, %v2281_v7 }
 0x2dc   : > { %v2777_v48 = vmul.f32 %v2700_v63, %v2525_v19  ;;  %v3006_v25 = vpack.c.bf16 %v2525_v19, %v2525_v19 }
 0x2dd   : > { %v1939_v1 = vpop.f32.mrf.mxu2 }
 0x2de   : > { %v2837_v36 = vsel %vm568_vm1, %v2777_v48, 0.0  ;;  %v2892_v57 = vmul.f32 %v2777_v48, %v2525_v19  ;;  %3043 = vst.msk [vmem:[%s4542_s13 + $0x64] sm:$0xf] %vm3017_vm7, %v3006_v25  ;;  %v1990_v42 = vadd.f32 %v1939_v1, %v1824_v40  ;;  %v1775_v61 = vpop.f32.mrf.mxu1 }
 0x2df   : > { %v2838_v35 = vadd.f32 %v2837_v36, %v2836_v30  ;;  %v1825_v3 = vadd.f32 %v1775_v61, %v5192_v0 }
 0x2e0   : > { %v2952_v17 = vsel %vm568_vm1, %v2892_v57, 0.0  ;;  %v2282_v47 = vadd.f32 %v2231_v55, %v1990_v42  ;;  %v2477_v10 = vpop.f32.mrf.mxu0  ;;  %v2720_v42 = vpop.permute.xlu2 %2719 }
 0x2e1   : > { %v2953_v24 = vadd.f32 %v2952_v17, %v2951_v46 }
 0x2e2   : > { %v2526_v49 = vadd.f32 %v2475_v59, %v2282_v47  ;;  %v2241_v59 = vpop.f32.mrf.mxu3 }
 0x2e4   : > { %v2778_v8 = vmul.f32 %v2705_v32, %v2526_v49  ;;  %v3007_v11 = vpack.c.bf16 %v2526_v49, %v2526_v49 }
 0x2e5   : > { %v1941_v58 = vpop.f32.mrf.mxu2 }
 0x2e6   : > { %v2839_v53 = vsel %vm568_vm1, %v2778_v8, 0.0  ;;  %v2893_v50 = vmul.f32 %v2778_v8, %v2526_v49  ;;  %3044 = vst.msk [vmem:[%s4542_s13 + $0x68] sm:$0xf] %vm3017_vm7, %v3007_v11  ;;  %v1991_v2 = vadd.f32 %v1941_v58, %v1825_v3  ;;  %v1778_v14 = vpop.f32.mrf.mxu1 }
 0x2e7   : > { %v2840_v29 = vadd.f32 %v2839_v53, %v2838_v35  ;;  %v1826_v51 = vadd.f32 %v1778_v14, %v4444_v12  ;;  %v2725_v53 = vpop.permute.xlu0 %2724 }
 0x2e8   : > { %v2954_v55 = vsel %vm568_vm1, %v2893_v50, 0.0  ;;  %v2283_v20 = vadd.f32 %v2233_v56, %v1991_v2  ;;  %v2480_v31 = vpop.f32.mrf.mxu0 }
 0x2e9   : > { %v2955_v33 = vadd.f32 %v2954_v55, %v2953_v24 }
 0x2ea   : > { %v2527_v41 = vadd.f32 %v2477_v10, %v2283_v20  ;;  %v2243_v32 = vpop.f32.mrf.mxu3 }
 0x2ec   : > { %v2779_v21 = vmul.f32 %v2710_v38, %v2527_v41  ;;  %v3008_v16 = vpack.c.bf16 %v2527_v41, %v2527_v41 }
 0x2ed   : > { %v1944_v26 = vpop.f32.mrf.mxu2 }
 0x2ee   : > { %v2841_v27 = vsel %vm568_vm1, %v2779_v21, 0.0  ;;  %v2894_v39 = vmul.f32 %v2779_v21, %v2527_v41  ;;  %3045 = vst.msk [vmem:[%s4542_s13 + $0x6c] sm:$0xf] %vm3017_vm7, %v3008_v16  ;;  %v1992_v5 = vadd.f32 %v1944_v26, %v1826_v51  ;;  %v1780_v9 = vpop.f32.mrf.mxu1  ;;  %v2730_v51 = vpop.permute.xlu1 %2729 }
 0x2ef   : > { %v2842_v54 = vadd.f32 %v2841_v27, %v2840_v29  ;;  %v1827_v12 = vadd.f32 %v1780_v9, %v4457_v4 }
 0x2f0   : > { %v2956_v15 = vsel %vm568_vm1, %v2894_v39, 0.0  ;;  %v2284_v62 = vadd.f32 %v2236_v45, %v1992_v5  ;;  %v2482_v13 = vpop.f32.mrf.mxu0 }
 0x2f1   : > { %v2957_v22 = vadd.f32 %v2956_v15, %v2955_v33 }
 0x2f2   : > { %v2528_v30 = vadd.f32 %v2480_v31, %v2284_v62  ;;  %v2246_v21 = vpop.f32.mrf.mxu3 }
 0x2f4   : > { %v2780_v56 = vmul.f32 %v2715_v23, %v2528_v30  ;;  %v3009_v60 = vpack.c.bf16 %v2528_v30, %v2528_v30 }
 0x2f5   : > { %v1946_v7 = vpop.f32.mrf.mxu2 }
 0x2f6   : > { %v2843_v46 = vsel %vm568_vm1, %v2780_v56, 0.0  ;;  %v2895_v19 = vmul.f32 %v2780_v56, %v2528_v30  ;;  %3046 = vst.msk [vmem:[%s4542_s13 + $0x70] sm:$0xf] %vm3017_vm7, %v3009_v60  ;;  %v1993_v63 = vadd.f32 %v1946_v7, %v1827_v12  ;;  %v1783_v25 = vpop.f32.mrf.mxu1  ;;  %v2735_v60 = vpop.permute.xlu2 %2734 }
 0x2f7   : > { %v2844_v48 = vadd.f32 %v2843_v46, %v2842_v54  ;;  %v1828_v61 = vadd.f32 %v1783_v25, %v4466_v6 }
 0x2f8   : > { %v2958_v37 = vsel %vm568_vm1, %v2895_v19, 0.0  ;;  %v2285_v40 = vadd.f32 %v2238_v34, %v1993_v63  ;;  %v2485_v1 = vpop.f32.mrf.mxu0 }
 0x2f9   : > { %v2959_v36 = vadd.f32 %v2958_v37, %v2957_v22 }
 0x2fa   : > { %v2529_v57 = vadd.f32 %v2482_v13, %v2285_v40  ;;  %v2248_v12 = vpop.f32.mrf.mxu3 }
 0x2fc   : > { %v2781_v35 = vmul.f32 %v2720_v42, %v2529_v57  ;;  %v3010_v4 = vpack.c.bf16 %v2529_v57, %v2529_v57 }
 0x2fd   : > { %v1949_v17 = vpop.f32.mrf.mxu2 }
 0x2fe   : > { %v2845_v47 = vsel %vm568_vm1, %v2781_v35, 0.0  ;;  %v2896_v10 = vmul.f32 %v2781_v35, %v2529_v57  ;;  %3047 = vst.msk [vmem:[%s4542_s13 + $0x74] sm:$0xf] %vm3017_vm7, %v3010_v4  ;;  %v1994_v24 = vadd.f32 %v1949_v17, %v1828_v61  ;;  %v1785_v49 = vpop.f32.mrf.mxu1  ;;  %v2740_v35 = vpop.permute.xlu0 %2739 }
 0x2ff   : > { %v2846_v45 = vadd.f32 %v2845_v47, %v2844_v48  ;;  %v1829_v2 = vadd.f32 %v1785_v49, %v4479_v18 }
 0x300   : > { %v2960_v8 = vsel %vm568_vm1, %v2896_v10, 0.0  ;;  %v2286_v11 = vadd.f32 %v2241_v59, %v1994_v24  ;;  %v2487_v3 = vpop.f32.mrf.mxu0 }
 0x301   : > { %v2961_v0 = vadd.f32 %v2960_v8, %v2959_v36 }
 0x302   : > { %v2530_v58 = vadd.f32 %v2485_v1, %v2286_v11  ;;  %v2251_v17 = vpop.f32.mrf.mxu3 }
 0x304   : > { %v2782_v50 = vmul.f32 %v2725_v53, %v2530_v58  ;;  %v3011_v6 = vpack.c.bf16 %v2530_v58, %v2530_v58  ;;  %v2745_v53 = vpop.permute.xlu1 %2744 }
 0x305   : > { %v1951_v29 = vpop.f32.mrf.mxu2 }
 0x306   : > { %v2847_v14 = vsel %vm568_vm1, %v2782_v50, 0.0  ;;  %v2897_v55 = vmul.f32 %v2782_v50, %v2530_v58  ;;  %3048 = vst.msk [vmem:[%s4542_s13 + $0x78] sm:$0xf] %vm3017_vm7, %v3011_v6  ;;  %v1995_v20 = vadd.f32 %v1951_v29, %v1829_v2  ;;  %v1788_v33 = vpop.f32.mrf.mxu1 }
 0x307   : > { %v2848_v31 = vadd.f32 %v2847_v14, %v2846_v45  ;;  %v1830_v39 = vadd.f32 %v1788_v33, %v4488_v44 }
 0x308   : > { %v2962_v41 = vsel %vm568_vm1, %v2897_v55, 0.0  ;;  %v2287_v38 = vadd.f32 %v2243_v32, %v1995_v20  ;;  %v2490_v26 = vpop.f32.mrf.mxu0 }
 0x309   : > { %v2963_v34 = vadd.f32 %v2962_v41, %v2961_v0 }
 0x30a   : > { %v2531_v16 = vadd.f32 %v2487_v3, %v2287_v38 }
 0x30c   : > { %v2783_v27 = vmul.f32 %v2730_v51, %v2531_v16  ;;  %v3012_v18 = vpack.c.bf16 %v2531_v16, %v2531_v16 }
 0x30d   : > { %v1954_v5 = vpop.f32.mrf.mxu2 }
 0x30e   : > { %v2849_v54 = vsel %vm568_vm1, %v2783_v27, 0.0  ;;  %v2898_v9 = vmul.f32 %v2783_v27, %v2531_v16  ;;  %3049 = vst.msk [vmem:[%s4542_s13 + $0x7c] sm:$0xf] %vm3017_vm7, %v3012_v18  ;;  %v1996_v15 = vadd.f32 %v1954_v5, %v1830_v39  ;;  %v1790_v13 = vpop.f32.mrf.mxu1  ;;  %v2750_v16 = vpop.permute.xlu2 %2749 }
 0x30f   : > { %v2850_v62 = vadd.f32 %v2849_v54, %v2848_v31  ;;  %v1831_v44 = vadd.f32 %v1790_v13, %v4501_v28  ;;  %v2253_v31 = vpop.f32.mrf.mxu3 }
 0x310   : > { %v2964_v22 = vsel %vm568_vm1, %v2898_v9, 0.0  ;;  %v2288_v30 = vadd.f32 %v2246_v21, %v1996_v15  ;;  %v2492_v46 = vpop.f32.mrf.mxu0 }
 0x311   : > { %v2965_v23 = vadd.f32 %v2964_v22, %v2963_v34 }
 0x312   : > { %v2532_v56 = vadd.f32 %v2490_v26, %v2288_v30 }
 0x314   : > { %v2784_v7 = vmul.f32 %v2735_v60, %v2532_v56  ;;  %v3013_v59 = vpack.c.bf16 %v2532_v56, %v2532_v56 }
 0x315   : > { %v1956_v19 = vpop.f32.mrf.mxu2 }
 0x316   : > { %v2851_v63 = vsel %vm568_vm1, %v2784_v7, 0.0  ;;  %v2899_v48 = vmul.f32 %v2784_v7, %v2532_v56  ;;  %3050 = vst.msk [vmem:[%s4542_s13 + $0x80] sm:$0xf] %vm3017_vm7, %v3013_v59  ;;  %v1997_v25 = vadd.f32 %v1956_v19, %v1831_v44  ;;  %v1793_v40 = vpop.f32.mrf.mxu1 }
 0x317   : > { %v2852_v37 = vadd.f32 %v2851_v63, %v2850_v62  ;;  %v1832_v28 = vadd.f32 %v1793_v40, %v4512_v52 }
 0x318   : > { %v2966_v1 = vsel %vm568_vm1, %v2899_v48, 0.0  ;;  %v2289_v36 = vadd.f32 %v2248_v12, %v1997_v25  ;;  %v2495_v32 = vpop.f32.mrf.mxu0 }
 0x319   : > { %v2967_v57 = vadd.f32 %v2966_v1, %v2965_v23 }
 0x31a   : > { %v2533_v42 = vadd.f32 %v2492_v46, %v2289_v36 }
 0x31c   : > { %v2785_v4 = vmul.f32 %v2740_v35, %v2533_v42  ;;  %v3014_v61 = vpack.c.bf16 %v2533_v42, %v2533_v42 }
 0x31d   : > { %v1959_v47 = vpop.f32.mrf.mxu2 }
 0x31e   : > { %v2853_v10 = vsel %vm568_vm1, %v2785_v4, 0.0  ;;  %v2900_v24 = vmul.f32 %v2785_v4, %v2533_v42  ;;  %3051 = vst.msk [vmem:[%s4542_s13 + $0x84] sm:$0xf] %vm3017_vm7, %v3014_v61  ;;  %v1998_v45 = vadd.f32 %v1959_v47, %v1832_v28  ;;  %v1795_v3 = vpop.f32.mrf.mxu1 }
 0x31f   : > { %v2854_v49 = vadd.f32 %v2853_v10, %v2852_v37  ;;  %v1833_v6 = vadd.f32 %v1795_v3, %v4527_v43 }
 0x320   : > { %v2968_v8 = vsel %vm568_vm1, %v2900_v24, 0.0  ;;  %v2290_v11 = vadd.f32 %v2251_v17, %v1998_v45  ;;  %v2497_v34 = vpop.f32.mrf.mxu0 }
 0x321   : > { %v2969_v0 = vadd.f32 %v2968_v8, %v2967_v57 }
 0x322   : > { %v2534_v58 = vadd.f32 %v2495_v32, %v2290_v11 }
 0x324   : > { %v2786_v50 = vmul.f32 %v2745_v53, %v2534_v58  ;;  %v3015_v52 = vpack.c.bf16 %v2534_v58, %v2534_v58 }
 0x325   : > { %v1961_v2 = vpop.f32.mrf.mxu2 }
 0x326   : > { %v2855_v29 = vsel %vm568_vm1, %v2786_v50, 0.0  ;;  %v2901_v14 = vmul.f32 %v2786_v50, %v2534_v58  ;;  %3052 = vst.msk [vmem:[%s4542_s13 + $0x88] sm:$0xf] %vm3017_vm7, %v3015_v52  ;;  %v1999_v55 = vadd.f32 %v1961_v2, %v1833_v6 }
 0x327   : > { %v2856_v20 = vadd.f32 %v2855_v29, %v2854_v49 }
 0x328   : > { %v2970_v33 = vsel %vm568_vm1, %v2901_v14, 0.0  ;;  %v2291_v41 = vadd.f32 %v2253_v31, %v1999_v55 }
 0x329   : > { %v2971_v38 = vadd.f32 %v2970_v33, %v2969_v0 }
 0x32a   : > { %v2535_v21 = vadd.f32 %v2497_v34, %v2291_v41 }
 0x32c   : > { %v2787_v51 = vmul.f32 %v2750_v16, %v2535_v21  ;;  %v3016_v26 = vpack.c.bf16 %v2535_v21, %v2535_v21 }
 0x32e   : > { %v2857_v43 = vsel %vm568_vm1, %v2787_v51, 0.0  ;;  %v2902_v27 = vmul.f32 %v2787_v51, %v2535_v21  ;;  %3053 = vst.msk [vmem:[%s4542_s13 + $0x8c] sm:$0xf] %vm3017_vm7, %v3016_v26 }
 0x32f   : > { %v2858_v18 = vadd.f32 %v2857_v43, %v2856_v20 }
 0x330   : > { %v2972_v39 = vsel %vm568_vm1, %v2902_v27, 0.0 }
 0x331   : > { %v2859_v5 = vrot.slane %v2858_v18, 4  ;;  %v2973_v54 = vadd.f32 %v2972_v39, %v2971_v38 }
 0x333   : > { %v2860_v9 = vadd.f32 %v2859_v5, %v2858_v18  ;;  %v2974_v15 = vrot.slane %v2973_v54, 4 }
 0x335   : > { %v2861_v62 = vrot.slane %v2860_v9, 2  ;;  %v2975_v13 = vadd.f32 %v2974_v15, %v2973_v54 }
 0x337   : > { %v2862_v22 = vadd.f32 %v2861_v62, %v2860_v9  ;;  %v2976_v30 = vrot.slane %v2975_v13, 2 }
 0x339   : > { %v2863_v23 = vrot.slane %v2862_v22, 1  ;;  %v2977_v56 = vadd.f32 %v2976_v30, %v2975_v13 }
 0x33b   : > { %v2864_v60 = vadd.f32 %v2863_v23, %v2862_v22  ;;  %v2978_v12 = vrot.slane %v2977_v56, 1 }
 0x33d   : > { %2866 = vst.msk [vmem:[%s292_s8] sm:$0x1] %vm2865_vm8, %v2864_v60  ;;  %v2979_v7 = vadd.f32 %v2978_v12, %v2977_v56 }
 0x33f   : > { %2980 = vst.msk [vmem:[%s295_s10] sm:$0x1] %vm2865_vm8, %v2979_v7 }
 0x340 PF: > { %s18_s24 = sadd.s32 1, %s3596_s24  }
 0x341   : > { %p15_p4 = scmp.ge.s32.totalorder %s18_s24, 4  }
 0x343   :  { %17 = sbr.rel (!%p15_p4) target bundleno = 1 (0x1), region = 102 }

</bundles_post_ra>
